<compile_context>
chip_gen: v5e
topology: v5e:2x2
jax: 0.10.0
libtpu: 0.0.40
codegen_flags: <defaults>
</compile_context>

<pallas_src>
import functools

import numpy as np
import jax
import jax.numpy as jnp
from jax import lax
from jax.experimental import pallas as pl
from jax.experimental.pallas import tpu as pltpu


def basic_block_kernel(x_ref, w1_ref, s1_ref, b1_ref, w2_ref, s2_ref, b2_ref,
                       sel_ref, tsa_ref, out_ref, pad_scr, sa_scr,
                       *, B, H, W, C):
    WC = W * C
    Ws = W + 6
    inv_c = 1.0 / C

    # Zero the padded scratches once per grid step with wide stores.  Only the
    # interiors are rewritten below, so the halos stay zero for every image in
    # the block and for both convs.
    pad_scr[...] = jnp.zeros((H + 2, (W + 2) * C), jnp.float32)
    sa_scr[...] = jnp.zeros((H + 6, 2 * Ws), jnp.float32)

    def conv3x3(w_ref, s_ref, b_ref):
        # Block-Toeplitz banded conv: out(H, W*C) = sum_dy pad[dy:dy+H] @ W_dy.
        acc = jnp.zeros((H, WC), jnp.float32)
        for dy in range(3):
            acc = acc + jnp.dot(
                pad_scr[dy:dy + H, :].astype(jnp.bfloat16), w_ref[dy],
                preferred_element_type=jnp.float32)
        return acc * s_ref[...] + b_ref[...]          # folded (inference) BN

    for b in range(B):
        x = x_ref[b]                                  # (H, W*C) f32 lane-dense

        # ---- conv1 + bn1 + relu -------------------------------------------
        pad_scr[1:H + 1, C:(W + 1) * C] = x
        out1 = jnp.maximum(conv3x3(w1_ref, s1_ref, b1_ref), 0.0)

        # ---- conv2 + bn2 (halo is still zero) -------------------------------
        pad_scr[1:H + 1, C:(W + 1) * C] = out1
        out2 = conv3x3(w2_ref, s2_ref, b2_ref)        # (H, W*C) f32

        # ---- per-pixel channel sum / max, kept lane-dense --------------------
        # Log-tree of lane rotations; lane w*C then holds the reduction over
        # the C channel lanes of pixel w.  One tiny matmul gathers those lanes.
        s = out2
        m = out2
        for sh in (1, 2, 4, 8):
            s = s + jnp.roll(s, -sh, axis=-1)
            m = jnp.maximum(m, jnp.roll(m, -sh, axis=-1))
        red = jnp.dot(jnp.concatenate([s, m], axis=-1).astype(jnp.bfloat16),
                      sel_ref[...], preferred_element_type=jnp.float32)
        avg = red[:, :W] * inv_c                      # (H, W)
        mx = red[:, W:]                               # (H, W)

        # ---- spatial attention: 7x7 conv as ONE fused banded matmul ---------
        sa_scr[3:H + 3, 3:W + 3] = avg
        sa_scr[3:H + 3, Ws + 3:Ws + 3 + W] = mx
        lhs = jnp.concatenate(
            [sa_scr[dy:dy + H, :] for dy in range(7)],
            axis=-1).astype(jnp.bfloat16)             # (H, 14*(W+6))
        # RHS columns are channel-expanded to W*C, so the sigmoid output is
        # already broadcast across channels (no (H, W, C) relayout needed).
        att = jax.nn.sigmoid(jnp.dot(lhs, tsa_ref[...],
                                     preferred_element_type=jnp.float32))

        # ---- att * out2 + identity, relu: single full-width slab store ------
        out_ref[b] = jnp.maximum(out2 * att + x, 0.0)


def _build_conv_band(w_hwio, W):
    """(3, 3, C, C) HWIO -> (3, (W+2)*C, W*C) block-Toeplitz bf16 matrices."""
    w = np.asarray(w_hwio, np.float32)
    kh, kw, cin, cout = w.shape
    band = np.zeros((kh, (W + 2) * cin, W * cout), np.float32)
    for dy in range(kh):
        for dx in range(kw):
            for x in range(W):
                band[dy, (x + dx) * cin:(x + dx + 1) * cin,
                     x * cout:(x + 1) * cout] = w[dy, dx]
    return jnp.asarray(band).astype(jnp.bfloat16)


def _build_sa_band(wsa_hwio, H, W, C):
    """(7, 7, 2, 1) HWIO -> (14*(W+6), W*C) fused banded bf16 matrix.

    Row blocks ordered (dy, plane); columns are channel-expanded so every
    output channel of pixel w receives the same attention logit."""
    w = np.asarray(wsa_hwio, np.float32)
    Ws = W + 6
    band = np.zeros((7 * 2 * Ws, W * C), np.float32)
    for dy in range(7):
        for c in range(2):
            for dx in range(7):
                for x in range(W):
                    row = dy * 2 * Ws + c * Ws + (x + dx)
                    band[row, x * C:(x + 1) * C] = w[dy, dx, c, 0]
    return jnp.asarray(band).astype(jnp.bfloat16)


def _build_select_mat(W, C):
    """(2*W*C, 2*W) bf16: column w picks the channel-sum at lane w*C of the
    first W*C block; column W+w picks the channel-max of the second block."""
    sel = np.zeros((2 * W * C, 2 * W), np.float32)
    for x in range(W):
        sel[x * C, x] = 1.0
        sel[W * C + x * C, W + x] = 1.0
    return jnp.asarray(sel).astype(jnp.bfloat16)


def basic_block(x_nhwc, w1_hwio, s1, b1, w2_hwio, s2, b2, wsa_hwio,
                block_n=None):
    N, H, W, C = x_nhwc.shape
    WC = W * C
    if block_n is None:
        block_n = 2 if N % 2 == 0 else 1
    assert N % block_n == 0
    B = block_n

    wband1 = _build_conv_band(w1_hwio, W)
    wband2 = _build_conv_band(w2_hwio, W)
    tsa = _build_sa_band(wsa_hwio, H, W, C)
    sel = _build_select_mat(W, C)
    # Per-channel BN scale/shift tiled to the lane-dense (1, W*C) layout.
    s1d = jnp.tile(jnp.asarray(s1, jnp.float32).reshape(C), W).reshape(1, WC)
    b1d = jnp.tile(jnp.asarray(b1, jnp.float32).reshape(C), W).reshape(1, WC)
    s2d = jnp.tile(jnp.asarray(s2, jnp.float32).reshape(C), W).reshape(1, WC)
    b2d = jnp.tile(jnp.asarray(b2, jnp.float32).reshape(C), W).reshape(1, WC)

    x_dense = x_nhwc.reshape(N, H, WC)                 # contiguous, free

    kernel = functools.partial(basic_block_kernel, B=B, H=H, W=W, C=C)
    grid_spec = pltpu.PrefetchScalarGridSpec(
        num_scalar_prefetch=0,
        grid=(N // B,),
        in_specs=[
            pl.BlockSpec((B, H, WC), lambda n: (n, 0, 0)),
            pl.BlockSpec((3, (W + 2) * C, WC), lambda n: (0, 0, 0)),
            pl.BlockSpec((1, WC), lambda n: (0, 0)),
            pl.BlockSpec((1, WC), lambda n: (0, 0)),
            pl.BlockSpec((3, (W + 2) * C, WC), lambda n: (0, 0, 0)),
            pl.BlockSpec((1, WC), lambda n: (0, 0)),
            pl.BlockSpec((1, WC), lambda n: (0, 0)),
            pl.BlockSpec((2 * WC, 2 * W), lambda n: (0, 0)),
            pl.BlockSpec((14 * (W + 6), WC), lambda n: (0, 0)),
        ],
        out_specs=pl.BlockSpec((B, H, WC), lambda n: (n, 0, 0)),
        scratch_shapes=[
            pltpu.VMEM((H + 2, (W + 2) * C), jnp.float32),   # padded conv input
            pltpu.VMEM((H + 6, 2 * (W + 6)), jnp.float32),   # padded SA planes
        ],
    )

    conv_flops = 2 * 3 * 2 * H * ((W + 2) * C) * WC
    sa_flops = 2 * H * (14 * (W + 6)) * WC + 2 * H * (2 * WC) * (2 * W)
    cost = pl.CostEstimate(
        flops=int(N * (conv_flops + sa_flops)),
        transcendentals=int(N * H * WC),
        bytes_accessed=int(2 * N * H * WC * 4
                           + 2 * (wband1.size + wband2.size
                                  + tsa.size + sel.size)
                           + 4 * WC * 4),
    )

    out = pl.pallas_call(
        kernel,
        out_shape=jax.ShapeDtypeStruct((N, H, WC), jnp.float32),
        grid_spec=grid_spec,
        compiler_params=pltpu.CompilerParams(
            dimension_semantics=("parallel",)),
        cost_estimate=cost,
    )(x_dense, wband1, s1d, b1d, wband2, s2d, b2d, sel, tsa)
    return out.reshape(N, H, W, C)


def reference(x, w1_hwio, s1, b1, w2_hwio, s2, b2, wsa_hwio):
    """Pure-JAX reference of BasicBlock.forward (NHWC), matching the kernel's
    mixed precision: bf16 conv inputs, f32 accumulation / elementwise."""
    dn = ('NHWC', 'HWIO', 'NHWC')
    C = x.shape[-1]
    bf = jnp.bfloat16
    out = lax.conv_general_dilated(x.astype(bf), w1_hwio.astype(bf), (1, 1),
                                   'SAME', dimension_numbers=dn,
                                   preferred_element_type=jnp.float32)
    out = out * s1.reshape(1, 1, 1, C) + b1.reshape(1, 1, 1, C)
    out = jnp.maximum(out, 0.0)
    out = lax.conv_general_dilated(out.astype(bf), w2_hwio.astype(bf), (1, 1),
                                   'SAME', dimension_numbers=dn,
                                   preferred_element_type=jnp.float32)
    out = out * s2.reshape(1, 1, 1, C) + b2.reshape(1, 1, 1, C)
    avg = jnp.mean(out, axis=-1, keepdims=True)
    mx = jnp.max(out, axis=-1, keepdims=True)
    cat = jnp.concatenate([avg, mx], axis=-1)
    att = lax.conv_general_dilated(cat.astype(bf), wsa_hwio.astype(bf), (1, 1),
                                   'SAME', dimension_numbers=dn,
                                   preferred_element_type=jnp.float32)
    out = jax.nn.sigmoid(att) * out
    out = out + x
    return jnp.maximum(out, 0.0)


if __name__ == "__main__":
    N, C, H, W = 4, 16, 16, 16     # in_channels == out_channels, stride=1
    key = jax.random.PRNGKey(0)
    ks = jax.random.split(key, 12)

    # PyTorch-convention parameter shapes, deterministic init.
    x_nchw = jax.random.normal(ks[0], (N, C, H, W), jnp.float32)
    w1_oihw = jax.random.normal(ks[1], (C, C, 3, 3), jnp.float32) * 0.1
    w2_oihw = jax.random.normal(ks[2], (C, C, 3, 3), jnp.float32) * 0.1
    wsa_oihw = jax.random.normal(ks[3], (1, 2, 7, 7), jnp.float32) * 0.1
    g1 = 1.0 + 0.1 * jax.random.normal(ks[4], (C,), jnp.float32)
    be1 = 0.1 * jax.random.normal(ks[5], (C,), jnp.float32)
    m1 = 0.1 * jax.random.normal(ks[6], (C,), jnp.float32)
    v1 = 1.0 + 0.1 * jax.random.uniform(ks[7], (C,), jnp.float32)
    g2 = 1.0 + 0.1 * jax.random.normal(ks[8], (C,), jnp.float32)
    be2 = 0.1 * jax.random.normal(ks[9], (C,), jnp.float32)
    m2 = 0.1 * jax.random.normal(ks[10], (C,), jnp.float32)
    v2 = 1.0 + 0.1 * jax.random.uniform(ks[11], (C,), jnp.float32)

    eps = 1e-5
    s1 = g1 / jnp.sqrt(v1 + eps)
    sh1 = be1 - m1 * s1
    s2 = g2 / jnp.sqrt(v2 + eps)
    sh2 = be2 - m2 * s2

    # NCHW -> NHWC, OIHW -> HWIO
    x = jnp.transpose(x_nchw, (0, 2, 3, 1))
    w1_hwio = jnp.transpose(w1_oihw, (2, 3, 1, 0))
    w2_hwio = jnp.transpose(w2_oihw, (2, 3, 1, 0))
    wsa_hwio = jnp.transpose(wsa_oihw, (2, 3, 1, 0))      # (7, 7, 2, 1)

    out = basic_block(x, w1_hwio, s1, sh1, w2_hwio, s2, sh2, wsa_hwio,
                      block_n=2)
    out = jax.block_until_ready(out)

    ref = reference(x, w1_hwio, s1, sh1, w2_hwio, s2, sh2, wsa_hwio)
    err = float(jnp.max(jnp.abs(out - ref)))
    assert jnp.allclose(out, ref, atol=2e-3, rtol=2e-3), f"max err {err}"
    print("KERNEL_OK")
</pallas_src>

<mosaic_0001>
module attributes {stable_mosaic.version = 11 : i64} {
  func.func @basic_block_kernel(%arg0: i32, %arg1: memref<2x16x256xf32, #tpu.memory_space<vmem>>, %arg2: memref<3x288x256xbf16, #tpu.memory_space<vmem>>, %arg3: memref<1x256xf32, #tpu.memory_space<vmem>>, %arg4: memref<1x256xf32, #tpu.memory_space<vmem>>, %arg5: memref<3x288x256xbf16, #tpu.memory_space<vmem>>, %arg6: memref<1x256xf32, #tpu.memory_space<vmem>>, %arg7: memref<1x256xf32, #tpu.memory_space<vmem>>, %arg8: memref<512x32xbf16, #tpu.memory_space<vmem>>, %arg9: memref<308x256xbf16, #tpu.memory_space<vmem>>, %arg10: memref<2x16x256xf32, #tpu.memory_space<vmem>>, %arg11: memref<18x288xf32, #tpu.memory_space<vmem>>, %arg12: memref<22x44xf32, #tpu.memory_space<vmem>>) attributes {dimension_semantics = [#tpu.dimension_semantics<parallel>], iteration_bounds = array<i64: 2>, scalar_prefetch = 0 : i64, scratch_operands = 2 : i64, tpu.core_type = #tpu.core_type<tc>, window_params = [{transform_indices = @transform_0, window_bounds = array<i64: 2, 16, 256>}, {pipeline_mode = #tpu.pipeline_mode<synchronous>, transform_indices = @transform_1, window_bounds = array<i64: 3, 288, 256>}, {pipeline_mode = #tpu.pipeline_mode<synchronous>, transform_indices = @transform_2, window_bounds = array<i64: 1, 256>}, {pipeline_mode = #tpu.pipeline_mode<synchronous>, transform_indices = @transform_3, window_bounds = array<i64: 1, 256>}, {pipeline_mode = #tpu.pipeline_mode<synchronous>, transform_indices = @transform_4, window_bounds = array<i64: 3, 288, 256>}, {pipeline_mode = #tpu.pipeline_mode<synchronous>, transform_indices = @transform_5, window_bounds = array<i64: 1, 256>}, {pipeline_mode = #tpu.pipeline_mode<synchronous>, transform_indices = @transform_6, window_bounds = array<i64: 1, 256>}, {pipeline_mode = #tpu.pipeline_mode<synchronous>, transform_indices = @transform_7, window_bounds = array<i64: 512, 32>}, {pipeline_mode = #tpu.pipeline_mode<synchronous>, transform_indices = @transform_8, window_bounds = array<i64: 308, 256>}, {transform_indices = @transform_9, window_bounds = array<i64: 2, 16, 256>}]} {
    %cst = arith.constant 0.000000e+00 : f32
    %0 = vector.broadcast %cst : f32 to vector<18x288xf32>
    %c0 = arith.constant 0 : index
    %c0_0 = arith.constant 0 : index
    %1 = vector.load %arg11[%c0, %c0_0] : memref<18x288xf32, #tpu.memory_space<vmem>>, vector<18x288xf32>
    tpu.vector_store %arg11[%c0, %c0_0], %0 {strides = array<i32>} : memref<18x288xf32, #tpu.memory_space<vmem>>, vector<18x288xf32>,
    %cst_1 = arith.constant 0.000000e+00 : f32
    %2 = vector.broadcast %cst_1 : f32 to vector<22x44xf32>
    %c0_2 = arith.constant 0 : index
    %c0_3 = arith.constant 0 : index
    %3 = vector.load %arg12[%c0_2, %c0_3] : memref<22x44xf32, #tpu.memory_space<vmem>>, vector<22x44xf32>
    tpu.vector_store %arg12[%c0_2, %c0_3], %2 {strides = array<i32>} : memref<22x44xf32, #tpu.memory_space<vmem>>, vector<22x44xf32>,
    %c0_4 = arith.constant 0 : index
    %c0_5 = arith.constant 0 : index
    %c0_6 = arith.constant 0 : index
    %4 = vector.load %arg1[%c0_4, %c0_5, %c0_6] : memref<2x16x256xf32, #tpu.memory_space<vmem>>, vector<1x16x256xf32>
    %5 = vector.shape_cast %4 : vector<1x16x256xf32> to vector<16x256xf32>
    %c1 = arith.constant 1 : index
    %c16 = arith.constant 16 : index
    %6 = vector.load %arg11[%c1, %c16] : memref<18x288xf32, #tpu.memory_space<vmem>>, vector<16x256xf32>
    tpu.vector_store %arg11[%c1, %c16], %5 {strides = array<i32>} : memref<18x288xf32, #tpu.memory_space<vmem>>, vector<16x256xf32>,
    %cst_7 = arith.constant 0.000000e+00 : f32
    %7 = vector.broadcast %cst_7 : f32 to vector<16x256xf32>
    %c0_8 = arith.constant 0 : index
    %c0_9 = arith.constant 0 : index
    %8 = vector.load %arg11[%c0_8, %c0_9] : memref<18x288xf32, #tpu.memory_space<vmem>>, vector<16x288xf32>
    %9 = arith.truncf %8 : vector<16x288xf32> to vector<16x288xbf16>
    %c0_10 = arith.constant 0 : index
    %c0_11 = arith.constant 0 : index
    %c0_12 = arith.constant 0 : index
    %10 = vector.load %arg2[%c0_10, %c0_11, %c0_12] : memref<3x288x256xbf16, #tpu.memory_space<vmem>>, vector<1x288x256xbf16>
    %11 = vector.shape_cast %10 : vector<1x288x256xbf16> to vector<288x256xbf16>
    %cst_13 = arith.constant dense<0.000000e+00> : vector<16x256xf32>
    %12 = tpu.matmul %9, %11, %cst_13 {dimension_numbers = #tpu.dot_dimension_numbers<[1], [0], [0], [1], [0, 0, 1, 1], [], []>} : vector<16x288xbf16>, vector<288x256xbf16>, vector<16x256xf32> -> vector<16x256xf32>
    %13 = arith.addf %7, %12 : vector<16x256xf32>
    %c1_14 = arith.constant 1 : index
    %c0_15 = arith.constant 0 : index
    %14 = vector.load %arg11[%c1_14, %c0_15] : memref<18x288xf32, #tpu.memory_space<vmem>>, vector<16x288xf32>
    %15 = arith.truncf %14 : vector<16x288xf32> to vector<16x288xbf16>
    %c1_16 = arith.constant 1 : index
    %c0_17 = arith.constant 0 : index
    %c0_18 = arith.constant 0 : index
    %16 = vector.load %arg2[%c1_16, %c0_17, %c0_18] : memref<3x288x256xbf16, #tpu.memory_space<vmem>>, vector<1x288x256xbf16>
    %17 = vector.shape_cast %16 : vector<1x288x256xbf16> to vector<288x256xbf16>
    %cst_19 = arith.constant dense<0.000000e+00> : vector<16x256xf32>
    %18 = tpu.matmul %15, %17, %cst_19 {dimension_numbers = #tpu.dot_dimension_numbers<[1], [0], [0], [1], [0, 0, 1, 1], [], []>} : vector<16x288xbf16>, vector<288x256xbf16>, vector<16x256xf32> -> vector<16x256xf32>
    %19 = arith.addf %13, %18 : vector<16x256xf32>
    %c2 = arith.constant 2 : index
    %c0_20 = arith.constant 0 : index
    %20 = vector.load %arg11[%c2, %c0_20] : memref<18x288xf32, #tpu.memory_space<vmem>>, vector<16x288xf32>
    %21 = arith.truncf %20 : vector<16x288xf32> to vector<16x288xbf16>
    %c2_21 = arith.constant 2 : index
    %c0_22 = arith.constant 0 : index
    %c0_23 = arith.constant 0 : index
    %22 = vector.load %arg2[%c2_21, %c0_22, %c0_23] : memref<3x288x256xbf16, #tpu.memory_space<vmem>>, vector<1x288x256xbf16>
    %23 = vector.shape_cast %22 : vector<1x288x256xbf16> to vector<288x256xbf16>
    %cst_24 = arith.constant dense<0.000000e+00> : vector<16x256xf32>
    %24 = tpu.matmul %21, %23, %cst_24 {dimension_numbers = #tpu.dot_dimension_numbers<[1], [0], [0], [1], [0, 0, 1, 1], [], []>} : vector<16x288xbf16>, vector<288x256xbf16>, vector<16x256xf32> -> vector<16x256xf32>
    %25 = arith.addf %19, %24 : vector<16x256xf32>
    %c0_25 = arith.constant 0 : index
    %c0_26 = arith.constant 0 : index
    %26 = vector.load %arg3[%c0_25, %c0_26] : memref<1x256xf32, #tpu.memory_space<vmem>>, vector<1x256xf32>
    %27 = vector.broadcast %26 : vector<1x256xf32> to vector<16x256xf32>
    %28 = arith.mulf %25, %27 : vector<16x256xf32>
    %c0_27 = arith.constant 0 : index
    %c0_28 = arith.constant 0 : index
    %29 = vector.load %arg4[%c0_27, %c0_28] : memref<1x256xf32, #tpu.memory_space<vmem>>, vector<1x256xf32>
    %30 = vector.broadcast %29 : vector<1x256xf32> to vector<16x256xf32>
    %31 = arith.addf %28, %30 : vector<16x256xf32>
    %cst_29 = arith.constant 0.000000e+00 : f32
    %32 = vector.broadcast %cst_29 : f32 to vector<16x256xf32>
    %33 = arith.maximumf %31, %32 : vector<16x256xf32>
    %c1_30 = arith.constant 1 : index
    %c16_31 = arith.constant 16 : index
    %34 = vector.load %arg11[%c1_30, %c16_31] : memref<18x288xf32, #tpu.memory_space<vmem>>, vector<16x256xf32>
    tpu.vector_store %arg11[%c1_30, %c16_31], %33 {strides = array<i32>} : memref<18x288xf32, #tpu.memory_space<vmem>>, vector<16x256xf32>,
    %cst_32 = arith.constant 0.000000e+00 : f32
    %35 = vector.broadcast %cst_32 : f32 to vector<16x256xf32>
    %c0_33 = arith.constant 0 : index
    %c0_34 = arith.constant 0 : index
    %36 = vector.load %arg11[%c0_33, %c0_34] : memref<18x288xf32, #tpu.memory_space<vmem>>, vector<16x288xf32>
    %37 = arith.truncf %36 : vector<16x288xf32> to vector<16x288xbf16>
    %c0_35 = arith.constant 0 : index
    %c0_36 = arith.constant 0 : index
    %c0_37 = arith.constant 0 : index
    %38 = vector.load %arg5[%c0_35, %c0_36, %c0_37] : memref<3x288x256xbf16, #tpu.memory_space<vmem>>, vector<1x288x256xbf16>
    %39 = vector.shape_cast %38 : vector<1x288x256xbf16> to vector<288x256xbf16>
    %cst_38 = arith.constant dense<0.000000e+00> : vector<16x256xf32>
    %40 = tpu.matmul %37, %39, %cst_38 {dimension_numbers = #tpu.dot_dimension_numbers<[1], [0], [0], [1], [0, 0, 1, 1], [], []>} : vector<16x288xbf16>, vector<288x256xbf16>, vector<16x256xf32> -> vector<16x256xf32>
    %41 = arith.addf %35, %40 : vector<16x256xf32>
    %c1_39 = arith.constant 1 : index
    %c0_40 = arith.constant 0 : index
    %42 = vector.load %arg11[%c1_39, %c0_40] : memref<18x288xf32, #tpu.memory_space<vmem>>, vector<16x288xf32>
    %43 = arith.truncf %42 : vector<16x288xf32> to vector<16x288xbf16>
    %c1_41 = arith.constant 1 : index
    %c0_42 = arith.constant 0 : index
    %c0_43 = arith.constant 0 : index
    %44 = vector.load %arg5[%c1_41, %c0_42, %c0_43] : memref<3x288x256xbf16, #tpu.memory_space<vmem>>, vector<1x288x256xbf16>
    %45 = vector.shape_cast %44 : vector<1x288x256xbf16> to vector<288x256xbf16>
    %cst_44 = arith.constant dense<0.000000e+00> : vector<16x256xf32>
    %46 = tpu.matmul %43, %45, %cst_44 {dimension_numbers = #tpu.dot_dimension_numbers<[1], [0], [0], [1], [0, 0, 1, 1], [], []>} : vector<16x288xbf16>, vector<288x256xbf16>, vector<16x256xf32> -> vector<16x256xf32>
    %47 = arith.addf %41, %46 : vector<16x256xf32>
    %c2_45 = arith.constant 2 : index
    %c0_46 = arith.constant 0 : index
    %48 = vector.load %arg11[%c2_45, %c0_46] : memref<18x288xf32, #tpu.memory_space<vmem>>, vector<16x288xf32>
    %49 = arith.truncf %48 : vector<16x288xf32> to vector<16x288xbf16>
    %c2_47 = arith.constant 2 : index
    %c0_48 = arith.constant 0 : index
    %c0_49 = arith.constant 0 : index
    %50 = vector.load %arg5[%c2_47, %c0_48, %c0_49] : memref<3x288x256xbf16, #tpu.memory_space<vmem>>, vector<1x288x256xbf16>
    %51 = vector.shape_cast %50 : vector<1x288x256xbf16> to vector<288x256xbf16>
    %cst_50 = arith.constant dense<0.000000e+00> : vector<16x256xf32>
    %52 = tpu.matmul %49, %51, %cst_50 {dimension_numbers = #tpu.dot_dimension_numbers<[1], [0], [0], [1], [0, 0, 1, 1], [], []>} : vector<16x288xbf16>, vector<288x256xbf16>, vector<16x256xf32> -> vector<16x256xf32>
    %53 = arith.addf %47, %52 : vector<16x256xf32>
    %c0_51 = arith.constant 0 : index
    %c0_52 = arith.constant 0 : index
    %54 = vector.load %arg6[%c0_51, %c0_52] : memref<1x256xf32, #tpu.memory_space<vmem>>, vector<1x256xf32>
    %55 = vector.broadcast %54 : vector<1x256xf32> to vector<16x256xf32>
    %56 = arith.mulf %53, %55 : vector<16x256xf32>
    %c0_53 = arith.constant 0 : index
    %c0_54 = arith.constant 0 : index
    %57 = vector.load %arg7[%c0_53, %c0_54] : memref<1x256xf32, #tpu.memory_space<vmem>>, vector<1x256xf32>
    %58 = vector.broadcast %57 : vector<1x256xf32> to vector<16x256xf32>
    %59 = arith.addf %56, %58 : vector<16x256xf32>
    %60 = vector.extract_strided_slice %59 {offsets = [0, 1], sizes = [16, 255], strides = [1, 1]} : vector<16x256xf32> to vector<16x255xf32>
    %61 = vector.extract_strided_slice %59 {offsets = [0, 0], sizes = [16, 1], strides = [1, 1]} : vector<16x256xf32> to vector<16x1xf32>
    %62 = tpu.concatenate %60, %61 in 1 : vector<16x255xf32>, vector<16x1xf32> -> vector<16x256xf32>
    %63 = arith.addf %59, %62 : vector<16x256xf32>
    %64 = vector.extract_strided_slice %59 {offsets = [0, 1], sizes = [16, 255], strides = [1, 1]} : vector<16x256xf32> to vector<16x255xf32>
    %65 = vector.extract_strided_slice %59 {offsets = [0, 0], sizes = [16, 1], strides = [1, 1]} : vector<16x256xf32> to vector<16x1xf32>
    %66 = tpu.concatenate %64, %65 in 1 : vector<16x255xf32>, vector<16x1xf32> -> vector<16x256xf32>
    %67 = arith.maximumf %59, %66 : vector<16x256xf32>
    %68 = vector.extract_strided_slice %63 {offsets = [0, 2], sizes = [16, 254], strides = [1, 1]} : vector<16x256xf32> to vector<16x254xf32>
    %69 = vector.extract_strided_slice %63 {offsets = [0, 0], sizes = [16, 2], strides = [1, 1]} : vector<16x256xf32> to vector<16x2xf32>
    %70 = tpu.concatenate %68, %69 in 1 : vector<16x254xf32>, vector<16x2xf32> -> vector<16x256xf32>
    %71 = arith.addf %63, %70 : vector<16x256xf32>
    %72 = vector.extract_strided_slice %67 {offsets = [0, 2], sizes = [16, 254], strides = [1, 1]} : vector<16x256xf32> to vector<16x254xf32>
    %73 = vector.extract_strided_slice %67 {offsets = [0, 0], sizes = [16, 2], strides = [1, 1]} : vector<16x256xf32> to vector<16x2xf32>
    %74 = tpu.concatenate %72, %73 in 1 : vector<16x254xf32>, vector<16x2xf32> -> vector<16x256xf32>
    %75 = arith.maximumf %67, %74 : vector<16x256xf32>
    %76 = vector.extract_strided_slice %71 {offsets = [0, 4], sizes = [16, 252], strides = [1, 1]} : vector<16x256xf32> to vector<16x252xf32>
    %77 = vector.extract_strided_slice %71 {offsets = [0, 0], sizes = [16, 4], strides = [1, 1]} : vector<16x256xf32> to vector<16x4xf32>
    %78 = tpu.concatenate %76, %77 in 1 : vector<16x252xf32>, vector<16x4xf32> -> vector<16x256xf32>
    %79 = arith.addf %71, %78 : vector<16x256xf32>
    %80 = vector.extract_strided_slice %75 {offsets = [0, 4], sizes = [16, 252], strides = [1, 1]} : vector<16x256xf32> to vector<16x252xf32>
    %81 = vector.extract_strided_slice %75 {offsets = [0, 0], sizes = [16, 4], strides = [1, 1]} : vector<16x256xf32> to vector<16x4xf32>
    %82 = tpu.concatenate %80, %81 in 1 : vector<16x252xf32>, vector<16x4xf32> -> vector<16x256xf32>
    %83 = arith.maximumf %75, %82 : vector<16x256xf32>
    %84 = vector.extract_strided_slice %79 {offsets = [0, 8], sizes = [16, 248], strides = [1, 1]} : vector<16x256xf32> to vector<16x248xf32>
    %85 = vector.extract_strided_slice %79 {offsets = [0, 0], sizes = [16, 8], strides = [1, 1]} : vector<16x256xf32> to vector<16x8xf32>
    %86 = tpu.concatenate %84, %85 in 1 : vector<16x248xf32>, vector<16x8xf32> -> vector<16x256xf32>
    %87 = arith.addf %79, %86 : vector<16x256xf32>
    %88 = vector.extract_strided_slice %83 {offsets = [0, 8], sizes = [16, 248], strides = [1, 1]} : vector<16x256xf32> to vector<16x248xf32>
    %89 = vector.extract_strided_slice %83 {offsets = [0, 0], sizes = [16, 8], strides = [1, 1]} : vector<16x256xf32> to vector<16x8xf32>
    %90 = tpu.concatenate %88, %89 in 1 : vector<16x248xf32>, vector<16x8xf32> -> vector<16x256xf32>
    %91 = arith.maximumf %83, %90 : vector<16x256xf32>
    %92 = tpu.concatenate %87, %91 in 1 : vector<16x256xf32>, vector<16x256xf32> -> vector<16x512xf32>
    %93 = arith.truncf %92 : vector<16x512xf32> to vector<16x512xbf16>
    %c0_55 = arith.constant 0 : index
    %c0_56 = arith.constant 0 : index
    %94 = vector.load %arg8[%c0_55, %c0_56] : memref<512x32xbf16, #tpu.memory_space<vmem>>, vector<512x32xbf16>
    %cst_57 = arith.constant dense<0.000000e+00> : vector<16x32xf32>
    %95 = tpu.matmul %93, %94, %cst_57 {dimension_numbers = #tpu.dot_dimension_numbers<[1], [0], [0], [1], [0, 0, 1, 1], [], []>} : vector<16x512xbf16>, vector<512x32xbf16>, vector<16x32xf32> -> vector<16x32xf32>
    %96 = vector.extract_strided_slice %95 {offsets = [0, 0], sizes = [16, 16], strides = [1, 1]} : vector<16x32xf32> to vector<16x16xf32>
    %cst_58 = arith.constant 6.250000e-02 : f32
    %97 = vector.broadcast %cst_58 : f32 to vector<16x16xf32>
    %98 = arith.mulf %96, %97 : vector<16x16xf32>
    %99 = vector.extract_strided_slice %95 {offsets = [0, 16], sizes = [16, 16], strides = [1, 1]} : vector<16x32xf32> to vector<16x16xf32>
    %c3 = arith.constant 3 : index
    %c3_59 = arith.constant 3 : index
    %100 = vector.load %arg12[%c3, %c3_59] : memref<22x44xf32, #tpu.memory_space<vmem>>, vector<16x16xf32>
    tpu.vector_store %arg12[%c3, %c3_59], %98 {strides = array<i32>} : memref<22x44xf32, #tpu.memory_space<vmem>>, vector<16x16xf32>,
    %c3_60 = arith.constant 3 : index
    %c25 = arith.constant 25 : index
    %101 = vector.load %arg12[%c3_60, %c25] : memref<22x44xf32, #tpu.memory_space<vmem>>, vector<16x16xf32>
    tpu.vector_store %arg12[%c3_60, %c25], %99 {strides = array<i32>} : memref<22x44xf32, #tpu.memory_space<vmem>>, vector<16x16xf32>,
    %c0_61 = arith.constant 0 : index
    %c0_62 = arith.constant 0 : index
    %102 = vector.load %arg12[%c0_61, %c0_62] : memref<22x44xf32, #tpu.memory_space<vmem>>, vector<16x44xf32>
    %c1_63 = arith.constant 1 : index
    %c0_64 = arith.constant 0 : index
    %103 = vector.load %arg12[%c1_63, %c0_64] : memref<22x44xf32, #tpu.memory_space<vmem>>, vector<16x44xf32>
    %c2_65 = arith.constant 2 : index
    %c0_66 = arith.constant 0 : index
    %104 = vector.load %arg12[%c2_65, %c0_66] : memref<22x44xf32, #tpu.memory_space<vmem>>, vector<16x44xf32>
    %c3_67 = arith.constant 3 : index
    %c0_68 = arith.constant 0 : index
    %105 = vector.load %arg12[%c3_67, %c0_68] : memref<22x44xf32, #tpu.memory_space<vmem>>, vector<16x44xf32>
    %c4 = arith.constant 4 : index
    %c0_69 = arith.constant 0 : index
    %106 = vector.load %arg12[%c4, %c0_69] : memref<22x44xf32, #tpu.memory_space<vmem>>, vector<16x44xf32>
    %c5 = arith.constant 5 : index
    %c0_70 = arith.constant 0 : index
    %107 = vector.load %arg12[%c5, %c0_70] : memref<22x44xf32, #tpu.memory_space<vmem>>, vector<16x44xf32>
    %c6 = arith.constant 6 : index
    %c0_71 = arith.constant 0 : index
    %108 = vector.load %arg12[%c6, %c0_71] : memref<22x44xf32, #tpu.memory_space<vmem>>, vector<16x44xf32>
    %109 = tpu.concatenate %102, %103, %104, %105, %106, %107, %108 in 1 : vector<16x44xf32>, vector<16x44xf32>, vector<16x44xf32>, vector<16x44xf32>, vector<16x44xf32>, vector<16x44xf32>, vector<16x44xf32> -> vector<16x308xf32>
    %110 = arith.truncf %109 : vector<16x308xf32> to vector<16x308xbf16>
    %c0_72 = arith.constant 0 : index
    %c0_73 = arith.constant 0 : index
    %111 = vector.load %arg9[%c0_72, %c0_73] : memref<308x256xbf16, #tpu.memory_space<vmem>>, vector<308x256xbf16>
    %cst_74 = arith.constant dense<0.000000e+00> : vector<16x256xf32>
    %112 = tpu.matmul %110, %111, %cst_74 {dimension_numbers = #tpu.dot_dimension_numbers<[1], [0], [0], [1], [0, 0, 1, 1], [], []>} : vector<16x308xbf16>, vector<308x256xbf16>, vector<16x256xf32> -> vector<16x256xf32>
    %113 = arith.negf %112 : vector<16x256xf32>
    %114 = math.exp %113 : vector<16x256xf32>
    %cst_75 = arith.constant 1.000000e+00 : f32
    %115 = vector.broadcast %cst_75 : f32 to vector<16x256xf32>
    %116 = arith.addf %115, %114 : vector<16x256xf32>
    %117 = arith.divf %115, %116 : vector<16x256xf32>
    %118 = arith.mulf %59, %117 : vector<16x256xf32>
    %119 = arith.addf %118, %5 : vector<16x256xf32>
    %cst_76 = arith.constant 0.000000e+00 : f32
    %120 = vector.broadcast %cst_76 : f32 to vector<16x256xf32>
    %121 = arith.maximumf %119, %120 : vector<16x256xf32>
    %c0_77 = arith.constant 0 : index
    %c0_78 = arith.constant 0 : index
    %c0_79 = arith.constant 0 : index
    %122 = vector.load %arg10[%c0_77, %c0_78, %c0_79] : memref<2x16x256xf32, #tpu.memory_space<vmem>>, vector<1x16x256xf32>
    %123 = vector.shape_cast %122 : vector<1x16x256xf32> to vector<16x256xf32>
    %124 = vector.shape_cast %121 : vector<16x256xf32> to vector<1x16x256xf32>
    tpu.vector_store %arg10[%c0_77, %c0_78, %c0_79], %124 {strides = array<i32>} : memref<2x16x256xf32, #tpu.memory_space<vmem>>, vector<1x16x256xf32>,
    %c1_80 = arith.constant 1 : index
    %c0_81 = arith.constant 0 : index
    %c0_82 = arith.constant 0 : index
    %125 = vector.load %arg1[%c1_80, %c0_81, %c0_82] : memref<2x16x256xf32, #tpu.memory_space<vmem>>, vector<1x16x256xf32>
    %126 = vector.shape_cast %125 : vector<1x16x256xf32> to vector<16x256xf32>
    %c1_83 = arith.constant 1 : index
    %c16_84 = arith.constant 16 : index
    %127 = vector.load %arg11[%c1_83, %c16_84] : memref<18x288xf32, #tpu.memory_space<vmem>>, vector<16x256xf32>
    tpu.vector_store %arg11[%c1_83, %c16_84], %126 {strides = array<i32>} : memref<18x288xf32, #tpu.memory_space<vmem>>, vector<16x256xf32>,
    %cst_85 = arith.constant 0.000000e+00 : f32
    %128 = vector.broadcast %cst_85 : f32 to vector<16x256xf32>
    %c0_86 = arith.constant 0 : index
    %c0_87 = arith.constant 0 : index
    %129 = vector.load %arg11[%c0_86, %c0_87] : memref<18x288xf32, #tpu.memory_space<vmem>>, vector<16x288xf32>
    %130 = arith.truncf %129 : vector<16x288xf32> to vector<16x288xbf16>
    %c0_88 = arith.constant 0 : index
    %c0_89 = arith.constant 0 : index
    %c0_90 = arith.constant 0 : index
    %131 = vector.load %arg2[%c0_88, %c0_89, %c0_90] : memref<3x288x256xbf16, #tpu.memory_space<vmem>>, vector<1x288x256xbf16>
    %132 = vector.shape_cast %131 : vector<1x288x256xbf16> to vector<288x256xbf16>
    %cst_91 = arith.constant dense<0.000000e+00> : vector<16x256xf32>
    %133 = tpu.matmul %130, %132, %cst_91 {dimension_numbers = #tpu.dot_dimension_numbers<[1], [0], [0], [1], [0, 0, 1, 1], [], []>} : vector<16x288xbf16>, vector<288x256xbf16>, vector<16x256xf32> -> vector<16x256xf32>
    %134 = arith.addf %128, %133 : vector<16x256xf32>
    %c1_92 = arith.constant 1 : index
    %c0_93 = arith.constant 0 : index
    %135 = vector.load %arg11[%c1_92, %c0_93] : memref<18x288xf32, #tpu.memory_space<vmem>>, vector<16x288xf32>
    %136 = arith.truncf %135 : vector<16x288xf32> to vector<16x288xbf16>
    %c1_94 = arith.constant 1 : index
    %c0_95 = arith.constant 0 : index
    %c0_96 = arith.constant 0 : index
    %137 = vector.load %arg2[%c1_94, %c0_95, %c0_96] : memref<3x288x256xbf16, #tpu.memory_space<vmem>>, vector<1x288x256xbf16>
    %138 = vector.shape_cast %137 : vector<1x288x256xbf16> to vector<288x256xbf16>
    %cst_97 = arith.constant dense<0.000000e+00> : vector<16x256xf32>
    %139 = tpu.matmul %136, %138, %cst_97 {dimension_numbers = #tpu.dot_dimension_numbers<[1], [0], [0], [1], [0, 0, 1, 1], [], []>} : vector<16x288xbf16>, vector<288x256xbf16>, vector<16x256xf32> -> vector<16x256xf32>
    %140 = arith.addf %134, %139 : vector<16x256xf32>
    %c2_98 = arith.constant 2 : index
    %c0_99 = arith.constant 0 : index
    %141 = vector.load %arg11[%c2_98, %c0_99] : memref<18x288xf32, #tpu.memory_space<vmem>>, vector<16x288xf32>
    %142 = arith.truncf %141 : vector<16x288xf32> to vector<16x288xbf16>
    %c2_100 = arith.constant 2 : index
    %c0_101 = arith.constant 0 : index
    %c0_102 = arith.constant 0 : index
    %143 = vector.load %arg2[%c2_100, %c0_101, %c0_102] : memref<3x288x256xbf16, #tpu.memory_space<vmem>>, vector<1x288x256xbf16>
    %144 = vector.shape_cast %143 : vector<1x288x256xbf16> to vector<288x256xbf16>
    %cst_103 = arith.constant dense<0.000000e+00> : vector<16x256xf32>
    %145 = tpu.matmul %142, %144, %cst_103 {dimension_numbers = #tpu.dot_dimension_numbers<[1], [0], [0], [1], [0, 0, 1, 1], [], []>} : vector<16x288xbf16>, vector<288x256xbf16>, vector<16x256xf32> -> vector<16x256xf32>
    %146 = arith.addf %140, %145 : vector<16x256xf32>
    %c0_104 = arith.constant 0 : index
    %c0_105 = arith.constant 0 : index
    %147 = vector.load %arg3[%c0_104, %c0_105] : memref<1x256xf32, #tpu.memory_space<vmem>>, vector<1x256xf32>
    %148 = vector.broadcast %147 : vector<1x256xf32> to vector<16x256xf32>
    %149 = arith.mulf %146, %148 : vector<16x256xf32>
    %c0_106 = arith.constant 0 : index
    %c0_107 = arith.constant 0 : index
    %150 = vector.load %arg4[%c0_106, %c0_107] : memref<1x256xf32, #tpu.memory_space<vmem>>, vector<1x256xf32>
    %151 = vector.broadcast %150 : vector<1x256xf32> to vector<16x256xf32>
    %152 = arith.addf %149, %151 : vector<16x256xf32>
    %cst_108 = arith.constant 0.000000e+00 : f32
    %153 = vector.broadcast %cst_108 : f32 to vector<16x256xf32>
    %154 = arith.maximumf %152, %153 : vector<16x256xf32>
    %c1_109 = arith.constant 1 : index
    %c16_110 = arith.constant 16 : index
    %155 = vector.load %arg11[%c1_109, %c16_110] : memref<18x288xf32, #tpu.memory_space<vmem>>, vector<16x256xf32>
    tpu.vector_store %arg11[%c1_109, %c16_110], %154 {strides = array<i32>} : memref<18x288xf32, #tpu.memory_space<vmem>>, vector<16x256xf32>,
    %cst_111 = arith.constant 0.000000e+00 : f32
    %156 = vector.broadcast %cst_111 : f32 to vector<16x256xf32>
    %c0_112 = arith.constant 0 : index
    %c0_113 = arith.constant 0 : index
    %157 = vector.load %arg11[%c0_112, %c0_113] : memref<18x288xf32, #tpu.memory_space<vmem>>, vector<16x288xf32>
    %158 = arith.truncf %157 : vector<16x288xf32> to vector<16x288xbf16>
    %c0_114 = arith.constant 0 : index
    %c0_115 = arith.constant 0 : index
    %c0_116 = arith.constant 0 : index
    %159 = vector.load %arg5[%c0_114, %c0_115, %c0_116] : memref<3x288x256xbf16, #tpu.memory_space<vmem>>, vector<1x288x256xbf16>
    %160 = vector.shape_cast %159 : vector<1x288x256xbf16> to vector<288x256xbf16>
    %cst_117 = arith.constant dense<0.000000e+00> : vector<16x256xf32>
    %161 = tpu.matmul %158, %160, %cst_117 {dimension_numbers = #tpu.dot_dimension_numbers<[1], [0], [0], [1], [0, 0, 1, 1], [], []>} : vector<16x288xbf16>, vector<288x256xbf16>, vector<16x256xf32> -> vector<16x256xf32>
    %162 = arith.addf %156, %161 : vector<16x256xf32>
    %c1_118 = arith.constant 1 : index
    %c0_119 = arith.constant 0 : index
    %163 = vector.load %arg11[%c1_118, %c0_119] : memref<18x288xf32, #tpu.memory_space<vmem>>, vector<16x288xf32>
    %164 = arith.truncf %163 : vector<16x288xf32> to vector<16x288xbf16>
    %c1_120 = arith.constant 1 : index
    %c0_121 = arith.constant 0 : index
    %c0_122 = arith.constant 0 : index
    %165 = vector.load %arg5[%c1_120, %c0_121, %c0_122] : memref<3x288x256xbf16, #tpu.memory_space<vmem>>, vector<1x288x256xbf16>
    %166 = vector.shape_cast %165 : vector<1x288x256xbf16> to vector<288x256xbf16>
    %cst_123 = arith.constant dense<0.000000e+00> : vector<16x256xf32>
    %167 = tpu.matmul %164, %166, %cst_123 {dimension_numbers = #tpu.dot_dimension_numbers<[1], [0], [0], [1], [0, 0, 1, 1], [], []>} : vector<16x288xbf16>, vector<288x256xbf16>, vector<16x256xf32> -> vector<16x256xf32>
    %168 = arith.addf %162, %167 : vector<16x256xf32>
    %c2_124 = arith.constant 2 : index
    %c0_125 = arith.constant 0 : index
    %169 = vector.load %arg11[%c2_124, %c0_125] : memref<18x288xf32, #tpu.memory_space<vmem>>, vector<16x288xf32>
    %170 = arith.truncf %169 : vector<16x288xf32> to vector<16x288xbf16>
    %c2_126 = arith.constant 2 : index
    %c0_127 = arith.constant 0 : index
    %c0_128 = arith.constant 0 : index
    %171 = vector.load %arg5[%c2_126, %c0_127, %c0_128] : memref<3x288x256xbf16, #tpu.memory_space<vmem>>, vector<1x288x256xbf16>
    %172 = vector.shape_cast %171 : vector<1x288x256xbf16> to vector<288x256xbf16>
    %cst_129 = arith.constant dense<0.000000e+00> : vector<16x256xf32>
    %173 = tpu.matmul %170, %172, %cst_129 {dimension_numbers = #tpu.dot_dimension_numbers<[1], [0], [0], [1], [0, 0, 1, 1], [], []>} : vector<16x288xbf16>, vector<288x256xbf16>, vector<16x256xf32> -> vector<16x256xf32>
    %174 = arith.addf %168, %173 : vector<16x256xf32>
    %c0_130 = arith.constant 0 : index
    %c0_131 = arith.constant 0 : index
    %175 = vector.load %arg6[%c0_130, %c0_131] : memref<1x256xf32, #tpu.memory_space<vmem>>, vector<1x256xf32>
    %176 = vector.broadcast %175 : vector<1x256xf32> to vector<16x256xf32>
    %177 = arith.mulf %174, %176 : vector<16x256xf32>
    %c0_132 = arith.constant 0 : index
    %c0_133 = arith.constant 0 : index
    %178 = vector.load %arg7[%c0_132, %c0_133] : memref<1x256xf32, #tpu.memory_space<vmem>>, vector<1x256xf32>
    %179 = vector.broadcast %178 : vector<1x256xf32> to vector<16x256xf32>
    %180 = arith.addf %177, %179 : vector<16x256xf32>
    %181 = vector.extract_strided_slice %180 {offsets = [0, 1], sizes = [16, 255], strides = [1, 1]} : vector<16x256xf32> to vector<16x255xf32>
    %182 = vector.extract_strided_slice %180 {offsets = [0, 0], sizes = [16, 1], strides = [1, 1]} : vector<16x256xf32> to vector<16x1xf32>
    %183 = tpu.concatenate %181, %182 in 1 : vector<16x255xf32>, vector<16x1xf32> -> vector<16x256xf32>
    %184 = arith.addf %180, %183 : vector<16x256xf32>
    %185 = vector.extract_strided_slice %180 {offsets = [0, 1], sizes = [16, 255], strides = [1, 1]} : vector<16x256xf32> to vector<16x255xf32>
    %186 = vector.extract_strided_slice %180 {offsets = [0, 0], sizes = [16, 1], strides = [1, 1]} : vector<16x256xf32> to vector<16x1xf32>
    %187 = tpu.concatenate %185, %186 in 1 : vector<16x255xf32>, vector<16x1xf32> -> vector<16x256xf32>
    %188 = arith.maximumf %180, %187 : vector<16x256xf32>
    %189 = vector.extract_strided_slice %184 {offsets = [0, 2], sizes = [16, 254], strides = [1, 1]} : vector<16x256xf32> to vector<16x254xf32>
    %190 = vector.extract_strided_slice %184 {offsets = [0, 0], sizes = [16, 2], strides = [1, 1]} : vector<16x256xf32> to vector<16x2xf32>
    %191 = tpu.concatenate %189, %190 in 1 : vector<16x254xf32>, vector<16x2xf32> -> vector<16x256xf32>
    %192 = arith.addf %184, %191 : vector<16x256xf32>
    %193 = vector.extract_strided_slice %188 {offsets = [0, 2], sizes = [16, 254], strides = [1, 1]} : vector<16x256xf32> to vector<16x254xf32>
    %194 = vector.extract_strided_slice %188 {offsets = [0, 0], sizes = [16, 2], strides = [1, 1]} : vector<16x256xf32> to vector<16x2xf32>
    %195 = tpu.concatenate %193, %194 in 1 : vector<16x254xf32>, vector<16x2xf32> -> vector<16x256xf32>
    %196 = arith.maximumf %188, %195 : vector<16x256xf32>
    %197 = vector.extract_strided_slice %192 {offsets = [0, 4], sizes = [16, 252], strides = [1, 1]} : vector<16x256xf32> to vector<16x252xf32>
    %198 = vector.extract_strided_slice %192 {offsets = [0, 0], sizes = [16, 4], strides = [1, 1]} : vector<16x256xf32> to vector<16x4xf32>
    %199 = tpu.concatenate %197, %198 in 1 : vector<16x252xf32>, vector<16x4xf32> -> vector<16x256xf32>
    %200 = arith.addf %192, %199 : vector<16x256xf32>
    %201 = vector.extract_strided_slice %196 {offsets = [0, 4], sizes = [16, 252], strides = [1, 1]} : vector<16x256xf32> to vector<16x252xf32>
    %202 = vector.extract_strided_slice %196 {offsets = [0, 0], sizes = [16, 4], strides = [1, 1]} : vector<16x256xf32> to vector<16x4xf32>
    %203 = tpu.concatenate %201, %202 in 1 : vector<16x252xf32>, vector<16x4xf32> -> vector<16x256xf32>
    %204 = arith.maximumf %196, %203 : vector<16x256xf32>
    %205 = vector.extract_strided_slice %200 {offsets = [0, 8], sizes = [16, 248], strides = [1, 1]} : vector<16x256xf32> to vector<16x248xf32>
    %206 = vector.extract_strided_slice %200 {offsets = [0, 0], sizes = [16, 8], strides = [1, 1]} : vector<16x256xf32> to vector<16x8xf32>
    %207 = tpu.concatenate %205, %206 in 1 : vector<16x248xf32>, vector<16x8xf32> -> vector<16x256xf32>
    %208 = arith.addf %200, %207 : vector<16x256xf32>
    %209 = vector.extract_strided_slice %204 {offsets = [0, 8], sizes = [16, 248], strides = [1, 1]} : vector<16x256xf32> to vector<16x248xf32>
    %210 = vector.extract_strided_slice %204 {offsets = [0, 0], sizes = [16, 8], strides = [1, 1]} : vector<16x256xf32> to vector<16x8xf32>
    %211 = tpu.concatenate %209, %210 in 1 : vector<16x248xf32>, vector<16x8xf32> -> vector<16x256xf32>
    %212 = arith.maximumf %204, %211 : vector<16x256xf32>
    %213 = tpu.concatenate %208, %212 in 1 : vector<16x256xf32>, vector<16x256xf32> -> vector<16x512xf32>
    %214 = arith.truncf %213 : vector<16x512xf32> to vector<16x512xbf16>
    %c0_134 = arith.constant 0 : index
    %c0_135 = arith.constant 0 : index
    %215 = vector.load %arg8[%c0_134, %c0_135] : memref<512x32xbf16, #tpu.memory_space<vmem>>, vector<512x32xbf16>
    %cst_136 = arith.constant dense<0.000000e+00> : vector<16x32xf32>
    %216 = tpu.matmul %214, %215, %cst_136 {dimension_numbers = #tpu.dot_dimension_numbers<[1], [0], [0], [1], [0, 0, 1, 1], [], []>} : vector<16x512xbf16>, vector<512x32xbf16>, vector<16x32xf32> -> vector<16x32xf32>
    %217 = vector.extract_strided_slice %216 {offsets = [0, 0], sizes = [16, 16], strides = [1, 1]} : vector<16x32xf32> to vector<16x16xf32>
    %cst_137 = arith.constant 6.250000e-02 : f32
    %218 = vector.broadcast %cst_137 : f32 to vector<16x16xf32>
    %219 = arith.mulf %217, %218 : vector<16x16xf32>
    %220 = vector.extract_strided_slice %216 {offsets = [0, 16], sizes = [16, 16], strides = [1, 1]} : vector<16x32xf32> to vector<16x16xf32>
    %c3_138 = arith.constant 3 : index
    %c3_139 = arith.constant 3 : index
    %221 = vector.load %arg12[%c3_138, %c3_139] : memref<22x44xf32, #tpu.memory_space<vmem>>, vector<16x16xf32>
    tpu.vector_store %arg12[%c3_138, %c3_139], %219 {strides = array<i32>} : memref<22x44xf32, #tpu.memory_space<vmem>>, vector<16x16xf32>,
    %c3_140 = arith.constant 3 : index
    %c25_141 = arith.constant 25 : index
    %222 = vector.load %arg12[%c3_140, %c25_141] : memref<22x44xf32, #tpu.memory_space<vmem>>, vector<16x16xf32>
    tpu.vector_store %arg12[%c3_140, %c25_141], %220 {strides = array<i32>} : memref<22x44xf32, #tpu.memory_space<vmem>>, vector<16x16xf32>,
    %c0_142 = arith.constant 0 : index
    %c0_143 = arith.constant 0 : index
    %223 = vector.load %arg12[%c0_142, %c0_143] : memref<22x44xf32, #tpu.memory_space<vmem>>, vector<16x44xf32>
    %c1_144 = arith.constant 1 : index
    %c0_145 = arith.constant 0 : index
    %224 = vector.load %arg12[%c1_144, %c0_145] : memref<22x44xf32, #tpu.memory_space<vmem>>, vector<16x44xf32>
    %c2_146 = arith.constant 2 : index
    %c0_147 = arith.constant 0 : index
    %225 = vector.load %arg12[%c2_146, %c0_147] : memref<22x44xf32, #tpu.memory_space<vmem>>, vector<16x44xf32>
    %c3_148 = arith.constant 3 : index
    %c0_149 = arith.constant 0 : index
    %226 = vector.load %arg12[%c3_148, %c0_149] : memref<22x44xf32, #tpu.memory_space<vmem>>, vector<16x44xf32>
    %c4_150 = arith.constant 4 : index
    %c0_151 = arith.constant 0 : index
    %227 = vector.load %arg12[%c4_150, %c0_151] : memref<22x44xf32, #tpu.memory_space<vmem>>, vector<16x44xf32>
    %c5_152 = arith.constant 5 : index
    %c0_153 = arith.constant 0 : index
    %228 = vector.load %arg12[%c5_152, %c0_153] : memref<22x44xf32, #tpu.memory_space<vmem>>, vector<16x44xf32>
    %c6_154 = arith.constant 6 : index
    %c0_155 = arith.constant 0 : index
    %229 = vector.load %arg12[%c6_154, %c0_155] : memref<22x44xf32, #tpu.memory_space<vmem>>, vector<16x44xf32>
    %230 = tpu.concatenate %223, %224, %225, %226, %227, %228, %229 in 1 : vector<16x44xf32>, vector<16x44xf32>, vector<16x44xf32>, vector<16x44xf32>, vector<16x44xf32>, vector<16x44xf32>, vector<16x44xf32> -> vector<16x308xf32>
    %231 = arith.truncf %230 : vector<16x308xf32> to vector<16x308xbf16>
    %c0_156 = arith.constant 0 : index
    %c0_157 = arith.constant 0 : index
    %232 = vector.load %arg9[%c0_156, %c0_157] : memref<308x256xbf16, #tpu.memory_space<vmem>>, vector<308x256xbf16>
    %cst_158 = arith.constant dense<0.000000e+00> : vector<16x256xf32>
    %233 = tpu.matmul %231, %232, %cst_158 {dimension_numbers = #tpu.dot_dimension_numbers<[1], [0], [0], [1], [0, 0, 1, 1], [], []>} : vector<16x308xbf16>, vector<308x256xbf16>, vector<16x256xf32> -> vector<16x256xf32>
    %234 = arith.negf %233 : vector<16x256xf32>
    %235 = math.exp %234 : vector<16x256xf32>
    %cst_159 = arith.constant 1.000000e+00 : f32
    %236 = vector.broadcast %cst_159 : f32 to vector<16x256xf32>
    %237 = arith.addf %236, %235 : vector<16x256xf32>
    %238 = arith.divf %236, %237 : vector<16x256xf32>
    %239 = arith.mulf %180, %238 : vector<16x256xf32>
    %240 = arith.addf %239, %126 : vector<16x256xf32>
    %cst_160 = arith.constant 0.000000e+00 : f32
    %241 = vector.broadcast %cst_160 : f32 to vector<16x256xf32>
    %242 = arith.maximumf %240, %241 : vector<16x256xf32>
    %c1_161 = arith.constant 1 : index
    %c0_162 = arith.constant 0 : index
    %c0_163 = arith.constant 0 : index
    %243 = vector.load %arg10[%c1_161, %c0_162, %c0_163] : memref<2x16x256xf32, #tpu.memory_space<vmem>>, vector<1x16x256xf32>
    %244 = vector.shape_cast %243 : vector<1x16x256xf32> to vector<16x256xf32>
    %245 = vector.shape_cast %242 : vector<16x256xf32> to vector<1x16x256xf32>
    tpu.vector_store %arg10[%c1_161, %c0_162, %c0_163], %245 {strides = array<i32>} : memref<2x16x256xf32, #tpu.memory_space<vmem>>, vector<1x16x256xf32>,
    return
  }
  func.func @transform_0(%arg0: i32) -> (i32, i32, i32) {
    %c0_i32 = arith.constant 0 : i32
    %c0_i32_0 = arith.constant 0 : i32
    %c0_i32_1 = arith.constant 0 : i32
    return %arg0, %c0_i32, %c0_i32_0 : i32, i32, i32
  }
  func.func @transform_1(%arg0: i32) -> (i32, i32, i32) {
    %c0_i32 = arith.constant 0 : i32
    %c0_i32_0 = arith.constant 0 : i32
    %c0_i32_1 = arith.constant 0 : i32
    %c0_i32_2 = arith.constant 0 : i32
    return %c0_i32, %c0_i32_0, %c0_i32_1 : i32, i32, i32
  }
  func.func @transform_2(%arg0: i32) -> (i32, i32) {
    %c0_i32 = arith.constant 0 : i32
    %c0_i32_0 = arith.constant 0 : i32
    %c0_i32_1 = arith.constant 0 : i32
    return %c0_i32, %c0_i32_0 : i32, i32
  }
  func.func @transform_3(%arg0: i32) -> (i32, i32) {
    %c0_i32 = arith.constant 0 : i32
    %c0_i32_0 = arith.constant 0 : i32
    %c0_i32_1 = arith.constant 0 : i32
    return %c0_i32, %c0_i32_0 : i32, i32
  }
  func.func @transform_4(%arg0: i32) -> (i32, i32, i32) {
    %c0_i32 = arith.constant 0 : i32
    %c0_i32_0 = arith.constant 0 : i32
    %c0_i32_1 = arith.constant 0 : i32
    %c0_i32_2 = arith.constant 0 : i32
    return %c0_i32, %c0_i32_0, %c0_i32_1 : i32, i32, i32
  }
  func.func @transform_5(%arg0: i32) -> (i32, i32) {
    %c0_i32 = arith.constant 0 : i32
    %c0_i32_0 = arith.constant 0 : i32
    %c0_i32_1 = arith.constant 0 : i32
    return %c0_i32, %c0_i32_0 : i32, i32
  }
  func.func @transform_6(%arg0: i32) -> (i32, i32) {
    %c0_i32 = arith.constant 0 : i32
    %c0_i32_0 = arith.constant 0 : i32
    %c0_i32_1 = arith.constant 0 : i32
    return %c0_i32, %c0_i32_0 : i32, i32
  }
  func.func @transform_7(%arg0: i32) -> (i32, i32) {
    %c0_i32 = arith.constant 0 : i32
    %c0_i32_0 = arith.constant 0 : i32
    %c0_i32_1 = arith.constant 0 : i32
    return %c0_i32, %c0_i32_0 : i32, i32
  }
  func.func @transform_8(%arg0: i32) -> (i32, i32) {
    %c0_i32 = arith.constant 0 : i32
    %c0_i32_0 = arith.constant 0 : i32
    %c0_i32_1 = arith.constant 0 : i32
    return %c0_i32, %c0_i32_0 : i32, i32
  }
  func.func @transform_9(%arg0: i32) -> (i32, i32, i32) {
    %c0_i32 = arith.constant 0 : i32
    %c0_i32_0 = arith.constant 0 : i32
    %c0_i32_1 = arith.constant 0 : i32
    return %arg0, %c0_i32, %c0_i32_0 : i32, i32, i32
  }
}

</mosaic_0001>

<bundles_post_ra>
// kernel: tpu_custom_call.1
= control target key start
LH: loop header
LB: loop body
LE: loop exit
PB: predicated region body
PF: predicated region fallthrough
CT: control target
= control target key end

     0   :  { %s11707_s0 = inlined_call_operand.hbm [shape: f32[4,16,256], index: 0, kind: input, shape index: {}]   ;;  %s11708_s1 = inlined_call_operand.hbm [shape: bf16[3,288,256], index: 1, kind: input, shape index: {}]   ;;  %s11709_s2 = inlined_call_operand.vmem [shape: f32[1,256], index: 2, kind: input, shape index: {}]   ;;  %s11710_s3 = inlined_call_operand.vmem [shape: f32[1,256], index: 3, kind: input, shape index: {}]   ;;  %s11711_s4 = inlined_call_operand.hbm [shape: bf16[3,288,256], index: 4, kind: input, shape index: {}]   ;;  %s11712_s5 = inlined_call_operand.vmem [shape: f32[1,256], index: 5, kind: input, shape index: {}]   ;;  %s11713_s6 = inlined_call_operand.vmem [shape: f32[1,256], index: 6, kind: input, shape index: {}]   ;;  %s11714_s7 = inlined_call_operand.vmem [shape: bf16[512,32], index: 7, kind: input, shape index: {}]   ;;  %s11715_s8 = inlined_call_operand.vmem [shape: bf16[308,256], index: 8, kind: input, shape index: {}]   ;;  %s11716_s9 = inlined_call_operand.hbm [shape: f32[4,16,256], index: 9, kind: output, shape index: {}]  }
   0x1   :  { %11748 = sst [smem:[#allocation15_spill]] %s11708_s1 }
   0x2   :  { %11749 = sst [smem:[#allocation16_spill]] %s11711_s4 }
   0x3   :  { %14 = vsyncpa [#allocation5], 0 }
   0x4   :  { %16 = vsyncpa [#allocation5 + $0x1], 0 }
   0x5   :  { %17 = vsyncpa [#allocation8], 0 }
   0x6   :  { %18 = vsyncpa [#allocation6], 0 }
   0x7   :  { %20 = vsyncpa [#allocation6 + $0x1], 0  ;;  %s10262_s30 = smov 0   ;;  %s10264_s10 = smov 0  }
   0x8   :  { %s10266_s11 = smov 0   ;;  %s10268_s12 = smov 0  }
   0x9 LB: > { %s10283_s13 = sadd.s32 4294967295, %s10189_s12   ;;  %s6855_s14 = sadd.s32 4294967294, %s10189_s12   ;;  %s10189_s12 = sphi %s10268_s12, %s11819_s12   ;;  %s10185_s11 = sphi %s10266_s11, %s11818_s11   ;;  %s10181_s10 = sphi %s10264_s10, %s11817_s10   ;;  %s10177_s30 = sphi %s10262_s30, %s11816_s30  }
   0xa   : > { %p46_p0 = scmp.ne.s32.totalorder %s10181_s10, %s10177_s30  ;;  %p47_p1 = scmp.eq.s32.totalorder %s10283_s13, 0 }
   0xb   : > { %p238_p2 = scmp.eq.s32.totalorder %s10283_s13, 1  ;;  %p244_p3 = scmp.eq.s32.totalorder %s6855_s14, 1 }
   0xc   : > { %p10292_p4 = por %p47_p1, %p46_p0  ;;  %p6856_p5 = scmp.ge.s32.totalorder %s10189_s12, 1 }
   0xd   : > { %p10297_p6 = por %p244_p3, %p46_p0  ;;  %p251_p7 = scmp.lt.s32.totalorder %s10189_s12, 3 }
   0xe   : > { %s11752_s1 = sld [smem:[#allocation15_spill]]  ;;  %s10191_s21 = smov [#allocation7]  }
   0xf   : > { %p10305_p8 = pnand %p6856_p5, %p251_p7  ;;  %s264_s22 = sshll.u32 %s10191_s21, 4  ;;  %s265_s22 = int_to_ptr.vmem [resolvable:$true] %s264_s22 }
  0x10   : > { %s11754_s4 = sld [smem:[#allocation16_spill]]  ;;  %s10192_s26 = smov 128  }
  0x11   : > { %p9795_p9 = pneg %p10305_p8  ;;  %s10193_s27 = smov 8  }
  0x12   : > { %s10194_s28 = smov [#allocation9]   ;;  %s10318_s14 = sadd.s32 1, %s10189_s12  }
  0x13   : > { %p9796_p10 = pnand %p9795_p9, %p47_p1  ;;  %s284_s29 = sshll.u32 %s10194_s28, 4  ;;  %s285_s29 = int_to_ptr.vmem [resolvable:$true] %s284_s29 }
  0x14   : > { %s262_s19 = sshll.u32 %s11752_s1, 4  ;;  %s33_s17 = sadd.s32 1, %s10185_s11  ;;  %s263_s19 = int_to_ptr.hbm [resolvable:$true] %s262_s19 }
  0x15   : > { %9798 = dma.hbm_to_vmem [thread:$0]  (!%p9796_p10), %s263_s19, 13824, %s265_s22, [#allocation8], %s10192_s26, %s10192_s26, %s10193_s27  }
  0x16   : > { %s282_s25 = sshll.u32 %s11754_s4, 4  ;;  %s30_s18 = ssub.s32 %s10189_s12, %s10318_s14  ;;  %s283_s25 = int_to_ptr.hbm [resolvable:$true] %s282_s25 }
  0x17   : > { %9801 = dma.hbm_to_vmem [thread:$0]  (!%p9796_p10), %s283_s25, 13824, %s285_s29, [#allocation8], %s10192_s26, %s10192_s26, %s10193_s27  }
  0x18   : > { %p40_p12 = scmp.ne.s32.totalorder %s10185_s11, %s10181_s10  ;;  %p31_p13 = scmp.eq.s32.totalorder %s30_s18, 0 }
  0x19   : > { %p41_p0 = scmp.eq.s32.totalorder %s10189_s12, 0  ;;  %p9812_p5 = scmp.lt.s32.totalorder %s10189_s12, 2 }
  0x1a   : > { %p10328_p3 = por %p238_p2, %p40_p12  ;;  %s310_s22 = sand.u32 1, %s10185_s11  }
  0x1b   : > { %s10334_s19 = scalar_select %p31_p13, %s10185_s11, %s33_s17  }
  0x1c   : > { %p42_p7 = por %p41_p0, %p40_p12  ;;  %s6860_s23 = sshll.u32 %s310_s22, 6 }
  0x1d   : > { %11756 = sst [smem:[#allocation14_spill]] %s10334_s19  ;;  %s9208_s24 = sshll.u32 %s10189_s12, 6 }
  0x1e   : > { %s320_s27 = scalar_lea.hbm %s11707_s0, %s9208_s24  ;;  %s314_s28 = scalar_lea.vmem [#allocation4], %s6860_s23 }
  0x1f   : > { %s323_s29 = sshll.u32 %s314_s28, 4  ;;  %s321_s18 = sshll.u32 %s320_s27, 4  ;;  %s324_s29 = int_to_ptr.vmem [resolvable:$true] %s323_s29  ;;  %s322_s18 = int_to_ptr.hbm [resolvable:$true] %s321_s18 }
  0x20   : > { %p10341_p2 = pnand %p9812_p5, %p42_p7  ;;  %s311_s17 = scalar_lea.sflag [#allocation5], %s310_s22 }
  0x21   : > { %s10089_s4 = sshra.s32 %s322_s18, 4  ;;  %s10096_s25 = scalar_lea.hbm %s11707_s0, 128  ;;  %s10090_s4 = int_to_ptr.hbm [resolvable:$true] %s10089_s4 }
  0x22   : > { %s10091_s19 = scalar_lea.hbm %s10090_s4, 64  ;;  %p10093_p10 = pneg %p10341_p2 }
  0x23   : > { %p10092_p9 = scmp.ne.s32.totalorder %s10090_s4, %s10091_s19  ;;  %p10097_p0 = scmp.lt.s32.totalorder %s10090_s4, %s11707_s0 }
  0x24   : > { %p10098_p5 = scmp.lt.s32.totalorder %s10096_s25, %s10091_s19 }
  0x25   : > { %p10094_p12 = pnand %p10093_p10, %p10092_p9 }
  0x26   : > { %p10099_p7 = por %p10098_p5, %p10097_p0 }
  0x27   : > { %p10095_p13 = pneg %p10094_p12 }
  0x29   : > { %p10100_p11 = pnand %p10099_p7, %p10095_p13 }
  0x2b   : > { %10103 = shalt.err (!%p10100_p11)
}
  0x2c   : > { %s10195_s22 = smov 256   ;;  %s10196_s28 = smov 16  }
  0x2d   : > { %9805 = dma.hbm_to_vmem [thread:$0]  (!%p10341_p2), %s322_s18, 1024, %s324_s29, %s311_s17, %s10195_s22, %s10195_s22, %s10196_s28  }
  0x2e   : > { %335 = sbr.rel (%p10305_p8) target bundleno = 3373 (0xd2d), region = 56  ;;  %s10358_s24 = sand.u32 (!%p10305_p8), 1, %s10181_s10  }
  0x2f   : > { %s6865_s4 = sshll.u32 (!%p10305_p8), %s10358_s24, 6  ;;  %s338_s19 = scalar_lea.sflag (!%p10305_p8), [#allocation5], %s10358_s24 }
  0x30   : > { %s10364_s23 = scalar_lea.vmem (!%p10305_p8), [#allocation4], %s6865_s4 }
  0x33   : > { %10164 = dma.done.wait (%p10292_p4), %s338_s19, 1024  }
  0x34   : > { %10166 = vsyncadd (%p10292_p4), %s338_s19, 4294966272 }
  0x35   : > { %10168 = dma.done.wait (%p47_p1), [#allocation8], 27648  }
  0x36   : > { %10170 = vsyncadd (%p47_p1), [#allocation8], 4294939648  ;;  %vm399_vm0 = vcmask 254976   ;;  %v10197_v0 = vmov 0.0   ;;  %v409_v1 = vld [vmem:[%s10364_s23 + $0x18] sm:$0xff]  ;;  %v407_v2 = vld [vmem:[%s10364_s23 + $0x8] sm:$0xff] }
  0x37   : > { %400 = vst.msk [vmem:[#allocation2 + $0x40] sm:$0x3] %vm399_vm0, %v10197_v0  ;;  %v406_v3 = vld [vmem:[%s10364_s23] sm:$0xff]  ;;  %v419_v4 = vrot.slane %v409_v1, 7  ;;  %v416_v5 = vrot.slane %v407_v2, 7  ;;  %v408_v6 = vld [vmem:[%s10364_s23 + $0x10] sm:$0xff] }
  0x38   : > { %390 = vst [vmem:[#allocation2] sm:$0xff] %v10197_v0  ;;  %v6991_v7 = vld [vmem:[#allocation7 + $0x210] sm:$0xf]  ;;  %v415_v8 = vrot.slane %v406_v3, 7  ;;  %v417_v9 = vrot.slane %v408_v6, 7  ;;  %s10198_s1 = smov 16  }
  0x39   : > { %391 = vst [vmem:[#allocation2 + $0x8] sm:$0xff] %v10197_v0  ;;  %v9276_v10 = vld [vmem:[#allocation7 + $0x214] sm:$0xf0]  ;;  %v6983_v11 = vld [vmem:[#allocation7 + $0x200] sm:$0xf]  ;;  %431 = vrot.lane.b32.xlu1 %v419_v4, %s10198_s1  ;;  %423 = vrot.lane.b32.xlu0 %v416_v5, %s10198_s1  ;;  %vm414_vm1 = vcmask 1040384  }
  0x3a   : > { %394 = vst [vmem:[#allocation2 + $0x18] sm:$0xff] %v10197_v0  ;;  %v6992_v12 = vor.u32 %v9276_v10, %v6991_v7  ;;  %v9274_v13 = vld [vmem:[#allocation7 + $0x204] sm:$0xf0]  ;;  %v418_v14 = vsel %vm414_vm1, %v415_v8, %v417_v9  ;;  %v6927_v15 = vld [vmem:[#allocation7 + $0x190] sm:$0xf]  ;;  %v420_v31 = vsel %vm414_vm1, %v416_v5, %v419_v4  ;;  %vm392_vm2 = vcmask 261120  }
  0x3b   : > { %397 = vst [vmem:[#allocation2 + $0x30] sm:$0x3] %v10197_v0  ;;  %v9260_v16 = vld [vmem:[#allocation7 + $0x194] sm:$0xf0]  ;;  %v7007_v17 = vld [vmem:[#allocation7 + $0x230] sm:$0xf]  ;;  %425 = vrot.lane.b32.xlu2 %v418_v14, %s10198_s1  ;;  %v6984_v18 = vor.u32 %v9274_v13, %v6983_v11 }
  0x3c   : > { %398 = vst [vmem:[#allocation2 + $0x38] sm:$0x3] %v10197_v0  ;;  %790 = vmatpush.bf16.msra.mxu1 %v6992_v12  ;;  %v6928_v19 = vor.u32 %v9260_v16, %v6927_v15  ;;  %v9280_v20 = vld [vmem:[#allocation7 + $0x234] sm:$0xf0]  ;;  %v9275_v21 = vld [vmem:[#allocation7 + $0x214] sm:$0xf] }
  0x3d   : > { %v6993_v22 = vld [vmem:[#allocation7 + $0x218] sm:$0xf0]  ;;  %v6975_v23 = vld [vmem:[#allocation7 + $0x1f0] sm:$0xf]  ;;  %v9272_v24 = vld [vmem:[#allocation7 + $0x1f4] sm:$0xf0]  ;;  %v7008_v25 = vor.u32 %v9280_v20, %v7007_v17 }
  0x3e   : > { %v6996_v26 = vor.u32 %v9275_v21, %v6993_v22  ;;  %v6919_v27 = vld [vmem:[#allocation7 + $0x180] sm:$0xf]  ;;  %776 = vmatpush.bf16.msra.mxu0 %v6928_v19  ;;  %v9258_v28 = vld [vmem:[#allocation7 + $0x184] sm:$0xf0]  ;;  %v9259_v34 = vld [vmem:[#allocation7 + $0x194] sm:$0xf]  ;;  %v6976_v37 = vor.u32 %v9272_v24, %v6975_v23 }
  0x3f   : > { %v6999_v29 = vld [vmem:[#allocation7 + $0x220] sm:$0xf]  ;;  %v9278_v30 = vld [vmem:[#allocation7 + $0x224] sm:$0xf0]  ;;  %810 = vmatpush.bf16.msra.mxu3 %v7008_v25  ;;  %v6920_v32 = vor.u32 %v9258_v28, %v6919_v27  ;;  %v6929_v35 = vld [vmem:[#allocation7 + $0x198] sm:$0xf0] }
  0x40   : > { %832 = vmatpush.bf16.msra.mxu2 %v6996_v26  ;;  %v7000_v33 = vor.u32 %v9278_v30, %v6999_v29  ;;  %v9273_v36 = vld [vmem:[#allocation7 + $0x204] sm:$0xf]  ;;  %791 = vmatpush.bf16.msra.mxu1 %v6984_v18  ;;  %v6967_v38 = vld [vmem:[#allocation7 + $0x1e0] sm:$0xf]  ;;  %v6985_v39 = vld [vmem:[#allocation7 + $0x208] sm:$0xf0]  ;;  %v6932_v41 = vor.u32 %v9259_v34, %v6929_v35 }
  0x41   : > { %v9270_v40 = vld [vmem:[#allocation7 + $0x1e4] sm:$0xf0]  ;;  %v6988_v42 = vor.u32 %v9273_v36, %v6985_v39  ;;  %v6911_v43 = vld [vmem:[#allocation7 + $0x170] sm:$0xf]  ;;  %v9256_v44 = vld [vmem:[#allocation7 + $0x174] sm:$0xf0]  ;;  %427 = vrot.lane.b32.xlu0 %v420_v31, %s10198_s1  ;;  %421 = vrot.lane.b32.xlu1 %v415_v8, %s10198_s1 }
  0x42   : > { %777 = vmatpush.bf16.msra.mxu0 %v6920_v32  ;;  %v6912_v45 = vor.u32 %v9256_v44, %v6911_v43  ;;  %v6968_v46 = vor.u32 %v9270_v40, %v6967_v38  ;;  %v6959_v47 = vld [vmem:[#allocation7 + $0x1d0] sm:$0xf]  ;;  %v9268_v48 = vld [vmem:[#allocation7 + $0x1d4] sm:$0xf0]  ;;  %v9257_v50 = vld [vmem:[#allocation7 + $0x184] sm:$0xf] }
  0x43   : > { %811 = vmatpush.bf16.msra.mxu3 %v7000_v33  ;;  %429 = vrot.lane.b32.xlu2 %v417_v9, %s10198_s1  ;;  %v6960_v49 = vor.u32 %v9268_v48, %v6959_v47  ;;  %v6921_v51 = vld [vmem:[#allocation7 + $0x188] sm:$0xf0]  ;;  %393 = vst.msk [vmem:[#allocation2 + $0x10] sm:$0xff] %vm392_vm2, %v10197_v0  ;;  %v9271_v53 = vld [vmem:[#allocation7 + $0x1f4] sm:$0xf]  ;;  %vm451_vm3 = vcmask 1047680  }
  0x44   : > { %792 = vmatpush.bf16.msra.mxu1 %v6976_v37  ;;  %833 = vmatpush.bf16.msra.mxu2 %v6988_v42  ;;  %v6924_v52 = vor.u32 %v9257_v50, %v6921_v51  ;;  %v6977_v54 = vld [vmem:[#allocation7 + $0x1f8] sm:$0xf0]  ;;  %396 = vst.msk [vmem:[#allocation2 + $0x28] sm:$0xff] %vm392_vm2, %v10197_v0  ;;  %v6951_v56 = vld [vmem:[#allocation7 + $0x1c0] sm:$0xf]  ;;  %vm455_vm4 = vcmask 1040512  }
  0x45   : > { %v6980_v55 = vor.u32 %v9271_v53, %v6977_v54  ;;  %v9266_v57 = vld [vmem:[#allocation7 + $0x1c4] sm:$0xf0]  ;;  %v6903_v59 = vld [vmem:[#allocation7 + $0x160] sm:$0xf]  ;;  %v9255_v62 = vld [vmem:[#allocation7 + $0x174] sm:$0xf] }
  0x46   : > { %778 = vmatpush.bf16.msra.mxu0 %v6912_v45  ;;  %v6952_v58 = vor.u32 %v9266_v57, %v6951_v56  ;;  %v9254_v60 = vld [vmem:[#allocation7 + $0x164] sm:$0xf0]  ;;  %v6913_v63 = vld [vmem:[#allocation7 + $0x178] sm:$0xf0]  ;;  %v9269_v1 = vld [vmem:[#allocation7 + $0x1e4] sm:$0xf] }
  0x47   : > { %818 = vmatpush.bf16.msrb.mxu3 %v6932_v41  ;;  %v6904_v61 = vor.u32 %v9254_v60, %v6903_v59  ;;  %v6916_v2 = vor.u32 %v9255_v62, %v6913_v63  ;;  %v6969_v3 = vld [vmem:[#allocation7 + $0x1e8] sm:$0xf0]  ;;  %v6943_v4 = vld [vmem:[#allocation7 + $0x1b0] sm:$0xf]  ;;  %v9264_v5 = vld [vmem:[#allocation7 + $0x1b4] sm:$0xf0] }
  0x48   : > { %793 = vmatpush.bf16.msra.mxu1 %v6968_v46  ;;  %834 = vmatpush.bf16.msra.mxu2 %v6980_v55  ;;  %v6972_v6 = vor.u32 %v9269_v1, %v6969_v3  ;;  %v6944_v7 = vor.u32 %v9264_v5, %v6943_v4  ;;  %v6895_v8 = vld [vmem:[#allocation7 + $0x150] sm:$0xf]  ;;  %v9252_v9 = vld [vmem:[#allocation7 + $0x154] sm:$0xf0]  ;;  %v9253_v11 = vld [vmem:[#allocation7 + $0x164] sm:$0xf] }
  0x49   : > { %v6896_v10 = vor.u32 %v9252_v9, %v6895_v8  ;;  %v6905_v12 = vld [vmem:[#allocation7 + $0x168] sm:$0xf0]  ;;  %v9267_v13 = vld [vmem:[#allocation7 + $0x1d4] sm:$0xf]  ;;  %v6961_v15 = vld [vmem:[#allocation7 + $0x1d8] sm:$0xf0] }
  0x4a   : > { %779 = vmatpush.bf16.msra.mxu0 %v6904_v61  ;;  %v6908_v14 = vor.u32 %v9253_v11, %v6905_v12  ;;  %v6964_v16 = vor.u32 %v9267_v13, %v6961_v15  ;;  %v6935_v17 = vld [vmem:[#allocation7 + $0x1a0] sm:$0xf]  ;;  %v9262_v18 = vld [vmem:[#allocation7 + $0x1a4] sm:$0xf0]  ;;  %v7073_v23 = vld [vmem:[#allocation7 + $0x70] sm:$0xf] }
  0x4b   : > { %819 = vmatpush.bf16.msrb.mxu3 %v6924_v52  ;;  %v6936_v20 = vor.u32 %v9262_v18, %v6935_v17  ;;  %v6887_v21 = vld [vmem:[#allocation7 + $0x140] sm:$0xf]  ;;  %v9250_v22 = vld [vmem:[#allocation7 + $0x144] sm:$0xf0]  ;;  %v9224_v25 = vld [vmem:[#allocation7 + $0x74] sm:$0xf0] }
  0x4c   : > { %794 = vmatpush.bf16.msra.mxu1 %v6960_v49  ;;  %835 = vmatpush.bf16.msra.mxu2 %v6972_v6  ;;  %v6888_v24 = vor.u32 %v9250_v22, %v6887_v21  ;;  %v9251_v26 = vld [vmem:[#allocation7 + $0x154] sm:$0xf]  ;;  %v7074_v27 = vor.u32 %v9224_v25, %v7073_v23  ;;  %v6897_v28 = vld [vmem:[#allocation7 + $0x158] sm:$0xf0]  ;;  %v9265_v29 = vld [vmem:[#allocation7 + $0x1c4] sm:$0xf] }
  0x4d   : > { %v6953_v30 = vld [vmem:[#allocation7 + $0x1c8] sm:$0xf0]  ;;  %v6900_v31 = vor.u32 %v9251_v26, %v6897_v28  ;;  %v6879_v33 = vld [vmem:[#allocation7 + $0x130] sm:$0xf]  ;;  %v9248_v34 = vld [vmem:[#allocation7 + $0x134] sm:$0xf0] }
  0x4e   : > { %780 = vmatpush.bf16.msra.mxu0 %v6896_v10  ;;  %v6956_v32 = vor.u32 %v9265_v29, %v6953_v30  ;;  %v7065_v35 = vld [vmem:[#allocation7 + $0x60] sm:$0xf]  ;;  %v6880_v36 = vor.u32 %v9248_v34, %v6879_v33  ;;  %v9222_v37 = vld [vmem:[#allocation7 + $0x64] sm:$0xf0]  ;;  %v9249_v38 = vld [vmem:[#allocation7 + $0x144] sm:$0xf] }
  0x4f   : > { %820 = vmatpush.bf16.msrb.mxu3 %v6916_v2  ;;  %v6889_v39 = vld [vmem:[#allocation7 + $0x148] sm:$0xf0]  ;;  %v7066_v40 = vor.u32 %v9222_v37, %v7065_v35  ;;  %v9263_v42 = vld [vmem:[#allocation7 + $0x1b4] sm:$0xf]  ;;  %v6945_v43 = vld [vmem:[#allocation7 + $0x1b8] sm:$0xf0] }
  0x50   : > { %795 = vmatpush.bf16.msra.mxu1 %v6952_v58  ;;  %836 = vmatpush.bf16.msra.mxu2 %v6964_v16  ;;  %v6892_v41 = vor.u32 %v9249_v38, %v6889_v39  ;;  %v6871_v44 = vld [vmem:[#allocation7 + $0x120] sm:$0xf]  ;;  %v6948_v45 = vor.u32 %v9263_v42, %v6945_v43  ;;  %v9246_v46 = vld [vmem:[#allocation7 + $0x124] sm:$0xf0]  ;;  %v7057_v47 = vld [vmem:[#allocation7 + $0x50] sm:$0xf] }
  0x51   : > { %v9220_v48 = vld [vmem:[#allocation7 + $0x54] sm:$0xf0]  ;;  %v6872_v49 = vor.u32 %v9246_v46, %v6871_v44  ;;  %v9247_v50 = vld [vmem:[#allocation7 + $0x134] sm:$0xf]  ;;  %v6881_v51 = vld [vmem:[#allocation7 + $0x138] sm:$0xf0] }
  0x52   : > { %781 = vmatpush.bf16.msra.mxu0 %v6888_v24  ;;  %v9261_v52 = vld [vmem:[#allocation7 + $0x1a4] sm:$0xf]  ;;  %v7058_v54 = vor.u32 %v9220_v48, %v7057_v47  ;;  %v6937_v55 = vld [vmem:[#allocation7 + $0x1a8] sm:$0xf0]  ;;  %v9279_v56 = vld [vmem:[#allocation7 + $0x234] sm:$0xf]  ;;  %v6884_v58 = vor.u32 %v9247_v50, %v6881_v51 }
  0x53   : > { %821 = vmatpush.bf16.msrb.mxu3 %v6908_v14  ;;  %v7009_v57 = vld [vmem:[#allocation7 + $0x238] sm:$0xf0]  ;;  %v6940_v59 = vor.u32 %v9261_v52, %v6937_v55  ;;  %v7153_v61 = vld [vmem:[#allocation7 + $0x110] sm:$0xf]  ;;  %v9244_v62 = vld [vmem:[#allocation7 + $0x114] sm:$0xf0] }
  0x54   : > { %796 = vmatpush.bf16.msra.mxu1 %v6944_v7  ;;  %837 = vmatpush.bf16.msra.mxu2 %v6956_v32  ;;  %v7012_v60 = vor.u32 %v9279_v56, %v7009_v57  ;;  %v7154_v63 = vor.u32 %v9244_v62, %v7153_v61  ;;  %v7049_v1 = vld [vmem:[#allocation7 + $0x40] sm:$0xf]  ;;  %v9218_v2 = vld [vmem:[#allocation7 + $0x44] sm:$0xf0]  ;;  %v9245_v3 = vld [vmem:[#allocation7 + $0x124] sm:$0xf] }
  0x55   : > { %v6873_v4 = vld [vmem:[#allocation7 + $0x128] sm:$0xf0]  ;;  %v9277_v5 = vld [vmem:[#allocation7 + $0x224] sm:$0xf]  ;;  %v7050_v7 = vor.u32 %v9218_v2, %v7049_v1  ;;  %v7145_v10 = vld [vmem:[#allocation7 + $0x100] sm:$0xf] }
  0x56   : > { %782 = vmatpush.bf16.msra.mxu0 %v6880_v36  ;;  %v7001_v6 = vld [vmem:[#allocation7 + $0x228] sm:$0xf0]  ;;  %v6876_v9 = vor.u32 %v9245_v3, %v6873_v4  ;;  %v9242_v11 = vld [vmem:[#allocation7 + $0x104] sm:$0xf0]  ;;  %v7041_v13 = vld [vmem:[#allocation7 + $0x30] sm:$0xf] }
  0x57   : > { %822 = vmatpush.bf16.msrb.mxu3 %v6900_v31  ;;  %v7004_v8 = vor.u32 %v9277_v5, %v7001_v6  ;;  %v7146_v12 = vor.u32 %v9242_v11, %v7145_v10  ;;  %v9216_v14 = vld [vmem:[#allocation7 + $0x34] sm:$0xf0]  ;;  %vm458_vm5 = vcmask 122880   ;;  %vm433_vm6 = vcmask 130048   ;;  %v7033_v18 = vld [vmem:[#allocation7 + $0x20] sm:$0xf] }
  0x58   : > { %797 = vmatpush.bf16.msra.mxu1 %v6936_v20  ;;  %838 = vmatpush.bf16.msra.mxu2 %v6948_v45  ;;  %v7042_v15 = vor.u32 %v9216_v14, %v7041_v13  ;;  %vm449_vm7 = vcmask 130049   ;;  %v9214_v20 = vld [vmem:[#allocation7 + $0x24] sm:$0xf0]  ;;  %v7025_v23 = vld [vmem:[#allocation7 + $0x10] sm:$0xf]  ;;  %vm446_vm8 = vcmask 1047681  }
  0x59   : > { %v7034_v22 = vor.u32 %v9214_v20, %v7033_v18  ;;  %v9212_v24 = vld [vmem:[#allocation7 + $0x14] sm:$0xf0]  ;;  %v7017_v28 = vld [vmem:[#allocation7] sm:$0xf]  ;;  %v9210_v29 = vld [vmem:[#allocation7 + $0x4] sm:$0xf0] }
  0x5a   : > { %783 = vmatpush.bf16.msra.mxu0 %v6872_v49  ;;  %v7026_v25 = vor.u32 %v9212_v24, %v7025_v23  ;;  %v7018_v31 = vor.u32 %v9210_v29, %v7017_v28  ;;  %vm554_vm9 = vsmask.f32 7424  ;;  %v7137_v49 = vld [vmem:[#allocation7 + $0xf0] sm:$0xf]  ;;  %v9240_v50 = vld [vmem:[#allocation7 + $0xf4] sm:$0xf0] }
  0x5b   : > { %823 = vmatpush.bf16.msrb.mxu3 %v6892_v41  ;;  %v9223_v55 = vld [vmem:[#allocation7 + $0x74] sm:$0xf]  ;;  %v7075_v56 = vld [vmem:[#allocation7 + $0x78] sm:$0xf0]  ;;  %v7129_v10 = vld [vmem:[#allocation7 + $0xe0] sm:$0xf] }
  0x5c   : > { %1043 = vmatpush.bf16.msrb.mxu1 %v7074_v27  ;;  %839 = vmatpush.bf16.msra.mxu2 %v6940_v59  ;;  %v9243_v1 = vld [vmem:[#allocation7 + $0x114] sm:$0xf]  ;;  %v7155_v2 = vld [vmem:[#allocation7 + $0x118] sm:$0xf0]  ;;  %v9238_v11 = vld [vmem:[#allocation7 + $0xe4] sm:$0xf0] }
  0x5d   : > { %v9221_v14 = vld [vmem:[#allocation7 + $0x64] sm:$0xf]  ;;  %v7130_v23 = vor.u32 %v9238_v11, %v7129_v10  ;;  %v9236_v28 = vld [vmem:[#allocation7 + $0xd4] sm:$0xf0]  ;;  %v9219_v29 = vld [vmem:[#allocation7 + $0x54] sm:$0xf] }
  0x5e   : > { %852 = vmatpush.bf16.msrb.mxu0 %v7012_v60  ;;  %v9239_v60 = vld [vmem:[#allocation7 + $0xf4] sm:$0xf]  ;;  %v9241_v20 = vld [vmem:[#allocation7 + $0x104] sm:$0xf]  ;;  %v7099_v10 = vld [vmem:[#allocation7 + $0xa8] sm:$0xf0] }
  0x5f   : > { %824 = vmatpush.bf16.msrb.mxu3 %v6884_v58  ;;  %v9237_v24 = vld [vmem:[#allocation7 + $0xe4] sm:$0xf]  ;;  %vm1182_vm10 = vcmask 1046528   ;;  %s11735_s22 = smov 127   ;;  %vm2567_vm11 = vcmask 1039360   ;;  %s11721_s28 = smov 126  }
  0x60   : > { %1044 = vmatpush.bf16.msrb.mxu1 %v7066_v40  ;;  %1077 = vmatpush.bf16.msrb.mxu2 %v7154_v63  ;;  %v7138_v63 = vor.u32 %v9240_v50, %v7137_v49  ;;  %v7105_v49 = vld [vmem:[#allocation7 + $0xb0] sm:$0xf]  ;;  %v9232_v50 = vld [vmem:[#allocation7 + $0xb4] sm:$0xf0]  ;;  %vm11742_vm12 = vcmask 1031168   ;;  %s11717_s19 = smov 124  }
  0x61   : > { %vm11739_vm13 = vcmask 1014784   ;;  %s11719_s15 = smov 120   ;;  %vm11723_vm14 = vcmask 982016   ;;  %vm11741_vm15 = vcmask 359424   ;;  %vm404_vm0 = vcmask 357376   ;;  %s11732_s25 = smov 9  }
  0x62   : > { %853 = vmatpush.bf16.msrb.mxu0 %v7004_v8  ;;  %403 = vst.msk [vmem:[#allocation3 + $0x8] sm:$0xff] %vm11741_vm15, %v10197_v0  ;;  %s11730_s26 = smov 3   ;;  %s11725_s27 = smov 88  }
  0x63   : > { %825 = vmatpush.bf16.msrb.mxu3 %v6876_v9  ;;  %v7078_v9 = vor.u32 %v9223_v55, %v7075_v56  ;;  %v9316_v55 = vld [vmem:[#allocation7 + $0x354] sm:$0xf0]  ;;  %v7106_v56 = vor.u32 %v9232_v50, %v7105_v49  ;;  %v9311_v50 = vld [vmem:[#allocation7 + $0x334] sm:$0xf]  ;;  %405 = vst.msk [vmem:[#allocation3 + $0x10] sm:$0x3f] %vm404_vm0, %v10197_v0 }
  0x64   : > { %1045 = vmatpush.bf16.msrb.mxu1 %v7058_v54  ;;  %1078 = vmatpush.bf16.msrb.mxu2 %v7146_v12  ;;  %402 = vst.msk [vmem:[#allocation3] sm:$0xff] %vm11741_vm15, %v10197_v0  ;;  %vm11738_vm0 = vcmask 154648   ;;  %s11729_s20 = smov 8   ;;  %s11728_s29 = smov 92  }
  0x65   : > { %s11759_s18 = smov 126   ;;  %s11771_s17 = smov 120  }
  0x68   : > { %1046 = vmatpush.bf16.msrb.mxu1 %v7050_v7  ;;  %v7139_v7 = vld [vmem:[#allocation7 + $0xf8] sm:$0xf0] }
  0x69   : > { %v7142_v18 = vor.u32 %v9239_v60, %v7139_v7  ;;  %v7097_v60 = vld [vmem:[#allocation7 + $0xa0] sm:$0xf] }
  0x6c   : > { %1047 = vmatpush.bf16.msrb.mxu1 %v7042_v15  ;;  %v7067_v15 = vld [vmem:[#allocation7 + $0x68] sm:$0xf0] }
  0x70   : > { %1048 = vmatpush.bf16.msrb.mxu1 %v7034_v22 }
  0x74   : > { %1049 = vmatpush.bf16.msrb.mxu1 %v7026_v25  ;;  %v7131_v25 = vld [vmem:[#allocation7 + $0xe8] sm:$0xf0] }
  0x78   : > { %1050 = vmatpush.bf16.msrb.mxu1 %v7018_v31 }
  0x95   : > { %v10396_v19 = vpop.permute.xlu2 %425 }
  0x96   : > { %452 = vst.msk [vmem:[#allocation2 + $0x18] sm:$0xff] %vm451_vm3, %v10396_v19 }
  0x9d   : > { %v430_v53 = vpop.permute.xlu2 %429  ;;  %v10407_v37 = vld [vmem:[#allocation2 + $0x18] sm:$0xff] }
  0x9e   : > { %456 = vst.msk [vmem:[#allocation2 + $0x30] sm:$0x1] %vm455_vm4, %v430_v53 }
  0xa5   : > { %v508_v33 = vld [vmem:[#allocation2 + $0x30] sm:$0x1] }
  0xa6   : > { %v514_v36 = vpack.c.bf16 %v508_v33, %v508_v33 }
  0xa8   : > { %v563_v46 = vshll.u32 %v514_v36, 16 }
  0xaa   : > { %v565_v62 = vrot.slane %v563_v46, 1  ;;  %v9233_v46 = vld [vmem:[#allocation7 + $0xc4] sm:$0xf] }
  0xab   : > { %v432_v16 = vpop.permute.xlu1 %431  ;;  %v424_v17 = vpop.permute.xlu0 %423 }
  0xac   : > { %459 = vst.msk [vmem:[#allocation2 + $0x40] sm:$0x1] %vm458_vm5, %v432_v16  ;;  %v436_v21 = vsel %vm433_vm6, %v430_v53, %v432_v16  ;;  %v7158_v16 = vor.u32 %v9243_v1, %v7155_v2 }
  0xad   : > { %450 = vst.msk [vmem:[#allocation2 + $0x10] sm:$0xfe] %vm449_vm7, %v424_v17 }
  0xae   : > { %457 = vst [vmem:[#allocation2 + $0x38] sm:$0x1] %v436_v21  ;;  %v7147_v21 = vld [vmem:[#allocation7 + $0x108] sm:$0xf0] }
  0xaf   : > { %v7150_v31 = vor.u32 %v9241_v20, %v7147_v21  ;;  %v9227_v20 = vld [vmem:[#allocation7 + $0x94] sm:$0xf]  ;;  %v7091_v21 = vld [vmem:[#allocation7 + $0x98] sm:$0xf0] }
  0xb3   : > { %v428_v26 = vpop.permute.xlu0 %427  ;;  %v422_v27 = vpop.permute.xlu1 %421  ;;  %v510_v32 = vld [vmem:[#allocation2 + $0x40] sm:$0x1] }
  0xb4   : > { %454 = vst.msk [vmem:[#allocation2 + $0x28] sm:$0xff] %vm433_vm6, %v428_v26  ;;  %v434_v30 = vsel %vm433_vm6, %v422_v27, %v424_v17  ;;  %v516_v35 = vpack.c.bf16 %v510_v32, %v510_v32  ;;  %v507_v40 = vld [vmem:[#allocation2 + $0x10] sm:$0xfe]  ;;  %v10414_v44 = vsel %vm433_vm6, %v10396_v19, %v428_v26  ;;  %v7070_v26 = vor.u32 %v9221_v14, %v7067_v15  ;;  %v9228_v14 = vld [vmem:[#allocation7 + $0x94] sm:$0xf0] }
  0xb5   : > { %447 = vst.msk [vmem:[#allocation2] sm:$0xfe] %vm446_vm8, %v422_v27  ;;  %v509_v34 = vld [vmem:[#allocation2 + $0x38] sm:$0x1]  ;;  %v7121_v27 = vld [vmem:[#allocation7 + $0xd0] sm:$0xf]  ;;  %v7134_v32 = vor.u32 %v9237_v24, %v7131_v25 }
  0xb6   : > { %448 = vst [vmem:[#allocation2 + $0x8] sm:$0xfe] %v434_v30  ;;  %v515_v38 = vpack.c.bf16 %v509_v34, %v509_v34  ;;  %v587_v43 = vshll.u32 %v516_v35, 16  ;;  %v7059_v30 = vld [vmem:[#allocation7 + $0x58] sm:$0xf0]  ;;  %v7122_v33 = vor.u32 %v9236_v28, %v7121_v27 }
  0xb7   : > { %v9235_v34 = vld [vmem:[#allocation7 + $0xd4] sm:$0xf]  ;;  %v7123_v35 = vld [vmem:[#allocation7 + $0xd8] sm:$0xf0]  ;;  %v7062_v36 = vor.u32 %v9219_v29, %v7059_v30  ;;  %v9226_v24 = vld [vmem:[#allocation7 + $0x84] sm:$0xf0]  ;;  %v7094_v29 = vor.u32 %v9227_v20, %v7091_v21 }
  0xb8   : > { %v575_v52 = vshll.u32 %v515_v38, 16  ;;  %v589_v59 = vrot.slane %v587_v43, 1  ;;  %v7113_v38 = vld [vmem:[#allocation7 + $0xc0] sm:$0xf]  ;;  %v7126_v43 = vor.u32 %v9235_v34, %v7123_v35  ;;  %v9211_v15 = vld [vmem:[#allocation7 + $0x14] sm:$0xf] }
  0xb9   : > { %v9209_v25 = vld [vmem:[#allocation7 + $0x4] sm:$0xf]  ;;  %v7219_v27 = vld [vmem:[#allocation7 + $0x2b0] sm:$0xf]  ;;  %v9296_v28 = vld [vmem:[#allocation7 + $0x2b4] sm:$0xf0] }
  0xba   : > { %v577_v6 = vrot.slane %v575_v52, 1  ;;  %v7043_v52 = vld [vmem:[#allocation7 + $0x38] sm:$0xf0]  ;;  %v7283_v30 = vld [vmem:[#allocation7 + $0x330] sm:$0xf] }
  0xbb   : > { %v10409_v39 = vld [vmem:[#allocation2 + $0x28] sm:$0xff]  ;;  %v9288_v20 = vld [vmem:[#allocation7 + $0x274] sm:$0xf0] }
  0xbc   : > { %v505_v41 = vld [vmem:[#allocation2] sm:$0xfe]  ;;  %v513_v42 = vpack.c.bf16 %v10409_v39, %v507_v40  ;;  %v9234_v40 = vld [vmem:[#allocation7 + $0xc4] sm:$0xf0]  ;;  %v7083_v34 = vld [vmem:[#allocation7 + $0x88] sm:$0xf0] }
  0xbd   : > { %v511_v45 = vpack.c.bf16 %v10407_v37, %v505_v41  ;;  %v506_v47 = vld [vmem:[#allocation2 + $0x8] sm:$0xfe]  ;;  %v9217_v41 = vld [vmem:[#allocation7 + $0x44] sm:$0xf] }
  0xbe   : > { %v582_v48 = vshll.u32 %v513_v42, 16  ;;  %v512_v51 = vpack.c.bf16 %v10414_v44, %v506_v47  ;;  %v580_v57 = vshrl.u32 %v513_v42, 16  ;;  %v7051_v42 = vld [vmem:[#allocation7 + $0x48] sm:$0xf0] }
  0xbf   : > { %v556_v53 = vshrl.u32 %v511_v45, 16  ;;  %v558_v54 = vshll.u32 %v511_v45, 16  ;;  %v7114_v45 = vor.u32 %v9234_v40, %v7113_v38  ;;  %v7115_v47 = vld [vmem:[#allocation7 + $0xc8] sm:$0xf0]  ;;  %v9295_v38 = vld [vmem:[#allocation7 + $0x2b4] sm:$0xf] }
  0xc0   : > { %v584_v58 = vrot.slane %v582_v48, 1  ;;  %v570_v19 = vshll.u32 %v512_v51, 16  ;;  %v568_v4 = vshrl.u32 %v512_v51, 16  ;;  %v7054_v48 = vor.u32 %v9217_v41, %v7051_v42  ;;  %v9215_v51 = vld [vmem:[#allocation7 + $0x34] sm:$0xf]  ;;  %v461_v42 = vld [vmem:[#allocation2 + $0x8] sm:$0xff] }
  0xc1   : > { %v560_v61 = vrot.slane %v558_v54, 1  ;;  %v7299_v54 = vld [vmem:[#allocation7 + $0x350] sm:$0xf]  ;;  %v7221_v40 = vld [vmem:[#allocation7 + $0x2b8] sm:$0xf0] }
  0xc2   : > { %v585_v3 = vor.u32 %v584_v58, %v580_v57  ;;  %v572_v5 = vrot.slane %v570_v19, 1  ;;  %v460_v57 = vld [vmem:[#allocation2] sm:$0xff]  ;;  %v9231_v58 = vld [vmem:[#allocation7 + $0xb4] sm:$0xf]  ;;  %v7046_v19 = vor.u32 %v9215_v51, %v7043_v52  ;;  %v7300_v1 = vor.u32 %v9316_v55, %v7299_v54  ;;  %v7285_v51 = vld [vmem:[#allocation7 + $0x338] sm:$0xf0] }
  0xc3   : > { %v561_v8 = vor.u32 %v560_v61, %v556_v53  ;;  %v7118_v53 = vor.u32 %v9233_v46, %v7115_v47  ;;  %v9230_v61 = vld [vmem:[#allocation7 + $0xa4] sm:$0xf0]  ;;  %v10426_v2 = vpack.c.bf16 %v10407_v37, %v460_v57  ;;  %v7275_v47 = vld [vmem:[#allocation7 + $0x320] sm:$0xf]  ;;  %v7224_v49 = vor.u32 %v9295_v38, %v7221_v40  ;;  %v9293_v54 = vld [vmem:[#allocation7 + $0x2a4] sm:$0xf] }
  0xc4   : > { %v10419_v12 = vsel %vm554_vm9, %v585_v3, %v589_v59  ;;  %v573_v13 = vor.u32 %v572_v5, %v568_v4  ;;  %v7107_v59 = vld [vmem:[#allocation7 + $0xb8] sm:$0xf0]  ;;  %v462_v3 = vld [vmem:[#allocation2 + $0x10] sm:$0xff]  ;;  %v7291_v5 = vld [vmem:[#allocation7 + $0x340] sm:$0xf]  ;;  %v467_v52 = vpack.c.bf16 %v10414_v44, %v461_v42 }
  0xc5   : > { %v566_v17 = vsel %vm554_vm9, %v561_v8, %v565_v62  ;;  %7013 = vmatmul.msk.bf16.vlgmr.msra.gmra.mxu3 %vm392_vm2, %v10419_v12  ;;  %v9213_v62 = vld [vmem:[#allocation7 + $0x24] sm:$0xf]  ;;  %v7110_v4 = vor.u32 %v9231_v58, %v7107_v59  ;;  %v10431_v7 = vpack.c.bf16 %v10409_v39, %v462_v3  ;;  %v7098_v8 = vor.u32 %v9230_v61, %v7097_v60  ;;  %v7213_v55 = vld [vmem:[#allocation7 + $0x2a8] sm:$0xf0]  ;;  %v7203_v57 = vld [vmem:[#allocation7 + $0x290] sm:$0xf] }
  0xc6   : > { %784 = vmatmul.bf16.vlgmr.msra.gmra.mxu0 %v566_v17  ;;  %1057 = vmatpush.bf16.msra.mxu3 %v7138_v63  ;;  %v578_v22 = vsel %vm554_vm9, %v573_v13, %v577_v6  ;;  %v7035_v63 = vld [vmem:[#allocation7 + $0x28] sm:$0xf0]  ;;  %v9314_v6 = vld [vmem:[#allocation7 + $0x344] sm:$0xf0]  ;;  %v7089_v13 = vld [vmem:[#allocation7 + $0x90] sm:$0xf]  ;;  %v7288_v59 = vor.u32 %v9311_v50, %v7285_v51  ;;  %v7216_v61 = vor.u32 %v9293_v54, %v7213_v55 }
  0xc7   : > { %1085 = vmatpush.bf16.msra.mxu0 %v7078_v9  ;;  %798 = vmatmul.bf16.vlgmr.msra.gmra.mxu1 %v578_v22  ;;  %v9229_v9 = vld [vmem:[#allocation7 + $0xa4] sm:$0xf]  ;;  %v7038_v11 = vor.u32 %v9213_v62, %v7035_v63  ;;  %v9292_v58 = vld [vmem:[#allocation7 + $0x294] sm:$0xf0]  ;;  %v7277_v63 = vld [vmem:[#allocation7 + $0x328] sm:$0xf0] }
  0xc8   : > { %840 = vmatmul.bf16.vlgmr.msra.gmra.mxu2 %v578_v22  ;;  %1119 = vmatpush.bf16.msra.mxu1 %v7158_v16  ;;  %v7027_v16 = vld [vmem:[#allocation7 + $0x18] sm:$0xf0]  ;;  %v9308_v60 = vld [vmem:[#allocation7 + $0x314] sm:$0xf0]  ;;  %v9309_v62 = vld [vmem:[#allocation7 + $0x324] sm:$0xf] }
  0xc9   : > { %1099 = vmatpush.bf16.msra.mxu2 %v7142_v18  ;;  %v7090_v18 = vor.u32 %v9228_v14, %v7089_v13  ;;  %v7030_v22 = vor.u32 %v9211_v15, %v7027_v16  ;;  %v9291_v3 = vld [vmem:[#allocation7 + $0x294] sm:$0xf]  ;;  %v7269_v14 = vld [vmem:[#allocation7 + $0x318] sm:$0xf0]  ;;  %v7197_v16 = vld [vmem:[#allocation7 + $0x288] sm:$0xf0] }
  0xca   : > { %1058 = vmatpush.bf16.msra.mxu3 %v7130_v23  ;;  %v7081_v23 = vld [vmem:[#allocation7 + $0x80] sm:$0xf]  ;;  %v9307_v13 = vld [vmem:[#allocation7 + $0x314] sm:$0xf]  ;;  %v9302_v40 = vld [vmem:[#allocation7 + $0x2e4] sm:$0xf0] }
  0xcb   : > { %1086 = vmatpush.bf16.msra.mxu0 %v7070_v26  ;;  %v7019_v26 = vld [vmem:[#allocation7 + $0x8] sm:$0xf0]  ;;  %v7272_v21 = vor.u32 %v9307_v13, %v7269_v14  ;;  %v7243_v38 = vld [vmem:[#allocation7 + $0x2e0] sm:$0xf]  ;;  %v7171_v50 = vld [vmem:[#allocation7 + $0x250] sm:$0xf] }
  0xcc   : > { %1120 = vmatpush.bf16.msra.mxu1 %v7150_v31  ;;  %v9312_v31 = vld [vmem:[#allocation7 + $0x334] sm:$0xf0]  ;;  %v7022_v35 = vor.u32 %v9209_v25, %v7019_v26  ;;  %v9305_v26 = vld [vmem:[#allocation7 + $0x304] sm:$0xf]  ;;  %v7235_v54 = vld [vmem:[#allocation7 + $0x2d0] sm:$0xf] }
  0xcd   : > { %1100 = vmatpush.bf16.msra.mxu2 %v7134_v32  ;;  %v7082_v32 = vor.u32 %v9226_v24, %v7081_v23  ;;  %v7284_v41 = vor.u32 %v9312_v31, %v7283_v30  ;;  %v9304_v23 = vld [vmem:[#allocation7 + $0x2f4] sm:$0xf0]  ;;  %v1129_v24 = vld [vmem:[#allocation2 + $0x10] sm:$0xfc]  ;;  %v7301_v13 = vld [vmem:[#allocation7 + $0x358] sm:$0xf0] }
  0xce   : > { %1059 = vmatpush.bf16.msra.mxu3 %v7122_v33  ;;  %v9225_v33 = vld [vmem:[#allocation7 + $0x84] sm:$0xf]  ;;  %v9287_v31 = vld [vmem:[#allocation7 + $0x274] sm:$0xf]  ;;  %v9284_v51 = vld [vmem:[#allocation7 + $0x254] sm:$0xf0] }
  0xcf   : > { %1087 = vmatpush.bf16.msra.mxu0 %v7062_v36  ;;  %v7220_v36 = vor.u32 %v9296_v28, %v7219_v27  ;;  %v7086_v46 = vor.u32 %v9225_v33, %v7083_v34  ;;  %v7261_v27 = vld [vmem:[#allocation7 + $0x308] sm:$0xf0]  ;;  %v1135_v28 = vpack.c.bf16 %v10409_v39, %v1129_v24  ;;  %v7179_v34 = vld [vmem:[#allocation7 + $0x260] sm:$0xf]  ;;  %v9300_v55 = vld [vmem:[#allocation7 + $0x2d4] sm:$0xf0] }
  0xd1   : > { %1101 = vmatpush.bf16.msra.mxu2 %v7126_v43  ;;  %v7211_v43 = vld [vmem:[#allocation7 + $0x2a0] sm:$0xf]  ;;  %v1189_v42 = vrot.slane %v1135_v28, 1 }
  0xd2   : > { %1060 = vmatpush.bf16.msra.mxu3 %v7114_v45  ;;  %v9294_v45 = vld [vmem:[#allocation7 + $0x2a4] sm:$0xf0] }
  0xd3   : > { %1088 = vmatpush.bf16.msra.mxu0 %v7054_v48  ;;  %v9310_v48 = vld [vmem:[#allocation7 + $0x324] sm:$0xf0] }
  0xd5   : > { %1102 = vmatpush.bf16.msra.mxu2 %v7118_v53  ;;  %826 = vmatmul.bf16.vlgmr.msrb.gmra.mxu3 %v566_v17  ;;  %v7102_v17 = vor.u32 %v9229_v9, %v7099_v10  ;;  %v7212_v53 = vor.u32 %v9294_v45, %v7211_v43  ;;  %v7280_v9 = vor.u32 %v9309_v62, %v7277_v63  ;;  %v7259_v10 = vld [vmem:[#allocation7 + $0x300] sm:$0xf]  ;;  %v9303_v45 = vld [vmem:[#allocation7 + $0x2f4] sm:$0xf]  ;;  %v7173_v63 = vld [vmem:[#allocation7 + $0x258] sm:$0xf0] }
  0xd6   : > { %7014 = vmatmul.msk.bf16.vlgmr.msrb.gmra.mxu0 %vm392_vm2, %v10419_v12  ;;  %1061 = vmatpush.bf16.msra.mxu3 %v7106_v56  ;;  %v7292_v12 = vor.u32 %v9314_v6, %v7291_v5  ;;  %v7276_v56 = vor.u32 %v9310_v48, %v7275_v47  ;;  %v7195_v6 = vld [vmem:[#allocation7 + $0x280] sm:$0xf]  ;;  %v9285_v47 = vld [vmem:[#allocation7 + $0x264] sm:$0xf]  ;;  %v7181_v48 = vld [vmem:[#allocation7 + $0x268] sm:$0xf0] }
  0xd7   : > { %1089 = vmatpush.bf16.msra.mxu0 %v7046_v19  ;;  %1051 = vmatmul.bf16.vlgmr.msrb.gmra.mxu1 %v10426_v2  ;;  %v7267_v19 = vld [vmem:[#allocation7 + $0x310] sm:$0xf]  ;;  %v9283_v62 = vld [vmem:[#allocation7 + $0x254] sm:$0xf] }
  0xd8   : > { %7159 = vmatmul.msk.bf16.vlgmr.msrb.gmra.mxu2 %vm392_vm2, %v10431_v7  ;;  %1411 = vmatpush.bf16.msrb.mxu1 %v7300_v1  ;;  %v7204_v1 = vor.u32 %v9292_v58, %v7203_v57  ;;  %v7268_v5 = vor.u32 %v9308_v60, %v7267_v19  ;;  %v7184_v58 = vor.u32 %v9285_v47, %v7181_v48  ;;  %v7245_v19 = vld [vmem:[#allocation7 + $0x2e8] sm:$0xf0]  ;;  %v1127_v60 = vld [vmem:[#allocation2] sm:$0xfc] }
  0xd9   : > { %1103 = vmatpush.bf16.msra.mxu2 %v7110_v4  ;;  %v7205_v4 = vld [vmem:[#allocation7 + $0x298] sm:$0xf0]  ;;  %v7176_v14 = vor.u32 %v9283_v62, %v7173_v63 }
  0xda   : > { %1062 = vmatpush.bf16.msra.mxu3 %v7098_v8  ;;  %v9290_v8 = vld [vmem:[#allocation7 + $0x284] sm:$0xf0] }
  0xdb   : > { %1090 = vmatpush.bf16.msra.mxu0 %v7038_v11  ;;  %v9306_v11 = vld [vmem:[#allocation7 + $0x304] sm:$0xf0]  ;;  %v7196_v15 = vor.u32 %v9290_v8, %v7195_v6  ;;  %v7227_v6 = vld [vmem:[#allocation7 + $0x2c0] sm:$0xf] }
  0xdc   : > { %1412 = vmatpush.bf16.msrb.mxu1 %v7292_v12  ;;  %v1132_v12 = vld [vmem:[#allocation2 + $0x40] sm:$0x3] }
  0xdd   : > { %1104 = vmatpush.bf16.msra.mxu2 %v7102_v17  ;;  %v7260_v17 = vor.u32 %v9306_v11, %v7259_v10  ;;  %v1133_v10 = vpack.c.bf16 %v10407_v37, %v1127_v60 }
  0xde   : > { %1063 = vmatpush.bf16.msra.mxu3 %v7090_v18  ;;  %v7187_v18 = vld [vmem:[#allocation7 + $0x270] sm:$0xf] }
  0xdf   : > { %1091 = vmatpush.bf16.msra.mxu0 %v7030_v22  ;;  %v7251_v22 = vld [vmem:[#allocation7 + $0x2f0] sm:$0xf]  ;;  %v7188_v30 = vor.u32 %v9288_v20, %v7187_v18  ;;  %v9281_v18 = vld [vmem:[#allocation7 + $0x244] sm:$0xf]  ;;  %v7165_v20 = vld [vmem:[#allocation7 + $0x248] sm:$0xf0] }
  0xe0   : > { %v7252_v33 = vor.u32 %v9304_v23, %v7251_v22  ;;  %v1183_v37 = vrot.slane %v1133_v10, 1 }
  0xe1   : > { %1105 = vmatpush.bf16.msra.mxu2 %v7094_v29  ;;  %v1138_v29 = vpack.c.bf16 %v1132_v12, %v1132_v12 }
  0xe2   : > { %1064 = vmatpush.bf16.msra.mxu3 %v7082_v32  ;;  %v7189_v32 = vld [vmem:[#allocation7 + $0x278] sm:$0xf0] }
  0xe3   : > { %1092 = vmatpush.bf16.msra.mxu0 %v7022_v35  ;;  %v9286_v35 = vld [vmem:[#allocation7 + $0x264] sm:$0xf0]  ;;  %v1190_v43 = vrot.slane %v1138_v29, 1 }
  0xe4   : > { %v7180_v39 = vor.u32 %v9286_v35, %v7179_v34 }
  0xe5   : > { %1106 = vmatpush.bf16.msra.mxu2 %v7086_v46  ;;  %1065 = vmatmul.bf16.vlgmr.msra.gmra.mxu3 %v467_v52  ;;  %v7253_v46 = vld [vmem:[#allocation7 + $0x2f8] sm:$0xf0]  ;;  %v10442_v57 = vsel %vm1182_vm10, %v1189_v42, %v1190_v43 }
  0xe6   : > { %1377 = vmatpush.bf16.msrb.mxu3 %v7220_v36  ;;  %1093 = vmatmul.bf16.vlgmr.msra.gmra.mxu0 %v10426_v2  ;;  %v7208_v2 = vor.u32 %v9291_v3, %v7205_v4  ;;  %v7264_v36 = vor.u32 %v9305_v26, %v7261_v27  ;;  %v7236_v3 = vor.u32 %v9300_v55, %v7235_v54  ;;  %v7163_v4 = vld [vmem:[#allocation7 + $0x240] sm:$0xf]  ;;  %v7293_v26 = vld [vmem:[#allocation7 + $0x348] sm:$0xf0] }
  0xe7   : > { %1391 = vmatpush.bf16.msrb.mxu0 %v7284_v41  ;;  %7160 = vmatmul.msk.bf16.vlgmr.msra.gmra.mxu1 %vm392_vm2, %v10431_v7  ;;  %v9289_v7 = vld [vmem:[#allocation7 + $0x284] sm:$0xf]  ;;  %v7192_v41 = vor.u32 %v9287_v31, %v7189_v32  ;;  %v7168_v27 = vor.u32 %v9281_v18, %v7165_v20 }
  0xe8   : > { %1107 = vmatmul.bf16.vlgmr.msra.gmra.mxu2 %v467_v52  ;;  %1433 = vmatpush.bf16.msra.mxu1 %v7288_v59  ;;  %v7200_v25 = vor.u32 %v9289_v7, %v7197_v16  ;;  %v1130_v52 = vld [vmem:[#allocation2 + $0x30] sm:$0x3]  ;;  %v9301_v59 = vld [vmem:[#allocation7 + $0x2e4] sm:$0xf]  ;;  %v7237_v7 = vld [vmem:[#allocation7 + $0x2d8] sm:$0xf0] }
  0xe9   : > { %1419 = vmatpush.bf16.msrb.mxu2 %v7224_v49  ;;  %v7244_v49 = vor.u32 %v9302_v40, %v7243_v38  ;;  %v7248_v8 = vor.u32 %v9301_v59, %v7245_v19  ;;  %v1136_v11 = vpack.c.bf16 %v1130_v52, %v1130_v52 }
  0xea   : > { %1378 = vmatpush.bf16.msrb.mxu3 %v7212_v53  ;;  %v7256_v53 = vor.u32 %v9303_v45, %v7253_v46 }
  0xeb   : > { %1392 = vmatpush.bf16.msrb.mxu0 %v7276_v56  ;;  %v1131_v56 = vld [vmem:[#allocation2 + $0x38] sm:$0x3]  ;;  %v1184_v24 = vrot.slane %v1136_v11, 1 }
  0xec   : > { %1434 = vmatpush.bf16.msra.mxu1 %v7280_v9  ;;  %v9298_v9 = vld [vmem:[#allocation7 + $0x2c4] sm:$0xf0]  ;;  %v1137_v12 = vpack.c.bf16 %v1131_v56, %v1131_v56 }
  0xed   : > { %1420 = vmatpush.bf16.msrb.mxu2 %v7216_v61  ;;  %v7172_v61 = vor.u32 %v9284_v51, %v7171_v50  ;;  %v1185_v32 = vsel %vm1182_vm10, %v1183_v37, %v1184_v24 }
  0xee   : > { %1379 = vmatpush.bf16.msrb.mxu3 %v7204_v1  ;;  %v1128_v1 = vld [vmem:[#allocation2 + $0x8] sm:$0xfc]  ;;  %v1187_v29 = vrot.slane %v1137_v12, 1 }
  0xef   : > { %1393 = vmatpush.bf16.msrb.mxu0 %v7268_v5  ;;  %v9282_v5 = vld [vmem:[#allocation7 + $0x244] sm:$0xf0]  ;;  %v1134_v16 = vpack.c.bf16 %v10414_v44, %v1128_v1  ;;  %v7229_v44 = vld [vmem:[#allocation7 + $0x2c8] sm:$0xf0] }
  0xf0   : > { %1435 = vmatpush.bf16.msra.mxu1 %v7272_v21  ;;  %v7228_v21 = vor.u32 %v9298_v9, %v7227_v6 }
  0xf1   : > { %1421 = vmatpush.bf16.msrb.mxu2 %v7208_v2  ;;  %v9315_v2 = vld [vmem:[#allocation7 + $0x354] sm:$0xf]  ;;  %v1186_v28 = vrot.slane %v1134_v16, 1 }
  0xf2   : > { %1380 = vmatpush.bf16.msrb.mxu3 %v7196_v15  ;;  %v9299_v15 = vld [vmem:[#allocation7 + $0x2d4] sm:$0xf]  ;;  %v7304_v22 = vor.u32 %v9315_v2, %v7301_v13 }
  0xf3   : > { %1394 = vmatpush.bf16.msrb.mxu0 %v7260_v17  ;;  %v7164_v17 = vor.u32 %v9282_v5, %v7163_v4  ;;  %v7240_v23 = vor.u32 %v9299_v15, %v7237_v7  ;;  %v1188_v34 = vsel %vm1182_vm10, %v1186_v28, %v1187_v29 }
  0xf4   : > { %1436 = vmatpush.bf16.msra.mxu1 %v7264_v36 }
  0xf5   : > { %1422 = vmatpush.bf16.msrb.mxu2 %v7200_v25  ;;  %v9313_v25 = vld [vmem:[#allocation7 + $0x344] sm:$0xf] }
  0xf6   : > { %1381 = vmatpush.bf16.msrb.mxu3 %v7188_v30  ;;  %v9297_v30 = vld [vmem:[#allocation7 + $0x2c4] sm:$0xf]  ;;  %v7296_v31 = vor.u32 %v9313_v25, %v7293_v26 }
  0xf7   : > { %1395 = vmatpush.bf16.msrb.mxu0 %v7252_v33  ;;  %7305 = vmatmul.msk.bf16.vlgmr.msrb.gmra.mxu1 %vm392_vm2, %v10442_v57  ;;  %v7232_v33 = vor.u32 %v9297_v30, %v7229_v44  ;;  %v1475_v30 = vld [vmem:[%s11710_s3] sm:$0x3] }
  0xf8   : > { %1437 = vmatpush.bf16.msra.mxu1 %v7256_v53 }
  0xf9   : > { %1423 = vmatpush.bf16.msrb.mxu2 %v7192_v41 }
  0xfa   : > { %1382 = vmatpush.bf16.msrb.mxu3 %v7180_v39 }
  0xfb   : > { %1396 = vmatpush.bf16.msrb.mxu0 %v7244_v49 }
  0xfc   : > { %1438 = vmatpush.bf16.msra.mxu1 %v7248_v8 }
  0xfd   : > { %1424 = vmatpush.bf16.msrb.mxu2 %v7184_v58 }
  0xfe   : > { %1383 = vmatpush.bf16.msrb.mxu3 %v7172_v61 }
  0xff   : > { %1397 = vmatpush.bf16.msrb.mxu0 %v7236_v3 }
 0x100   : > { %1439 = vmatpush.bf16.msra.mxu1 %v7240_v23 }
 0x101   : > { %1425 = vmatpush.bf16.msrb.mxu2 %v7176_v14 }
 0x102   : > { %1384 = vmatpush.bf16.msrb.mxu3 %v7164_v17  ;;  %v1465_v17 = vld [vmem:[%s11709_s2] sm:$0x3] }
 0x103   : > { %1398 = vmatpush.bf16.msrb.mxu0 %v7228_v21  ;;  %v1467_v29 = vperm.slane %v1465_v17, 0 }
 0x104   : > { %1440 = vmatpush.bf16.msra.mxu1 %v7232_v33  ;;  %v1478_v33 = vperm.slane %v1475_v30, 1 }
 0x105   : > { %1426 = vmatpush.bf16.msrb.mxu2 %v7168_v27  ;;  %1385 = vmatmul.bf16.vlgmr.msrb.gmra.mxu3 %v1185_v32  ;;  %v1468_v27 = vperm.slane %v1465_v17, 1  ;;  %v7431_v17 = vld [vmem:[#allocation9 + $0x218] sm:$0xf0] }
 0x106   : > { %1453 = vmatpush.bf16.msra.mxu3 %v7304_v22  ;;  %1399 = vmatmul.bf16.vlgmr.msrb.gmra.mxu0 %v1188_v34 }
 0x107   : > { %1441 = vmatmul.bf16.vlgmr.msra.gmra.mxu1 %v1188_v34 }
 0x108   : > { %1427 = vmatmul.bf16.vlgmr.msrb.gmra.mxu2 %v1185_v32 }
 0x10a   : > { %1454 = vmatpush.bf16.msra.mxu3 %v7296_v31 }
 0x115   : > { %7306 = vmatmul.msk.bf16.vlgmr.msra.gmra.mxu3 %vm392_vm2, %v10442_v57 }
 0x143   : > { %v785_v35 = vpop.f32.mrf.mxu0 }
 0x144   : > { %v799_v36 = vpop.f32.mrf.mxu1 }
 0x145   : > { %v800_v38 = vadd.f32 %v799_v36, %v785_v35 }
 0x148   : > { %v813_v40 = vpop.f32.mrf.mxu3 }
 0x149   : > { %v814_v41 = vadd.f32 %v813_v40, %v800_v38 }
 0x14b   : > { %v841_v43 = vpop.f32.mrf.mxu2  ;;  %v787_v39 = vpop.f32.mrf.mxu0 }
 0x14c   : > { %v801_v42 = vpop.f32.mrf.mxu1 }
 0x14d   : > { %v802_v2 = vadd.f32 %v801_v42, %v787_v39 }
 0x150   : > { %v815_v45 = vpop.f32.mrf.mxu3 }
 0x151   : > { %v816_v16 = vadd.f32 %v815_v45, %v802_v2  ;;  %v7437_v2 = vld [vmem:[#allocation9 + $0x220] sm:$0xf] }
 0x153   : > { %v843_v47 = vpop.f32.mrf.mxu2  ;;  %v855_v50 = vpop.f32.mrf.mxu0 }
 0x154   : > { %v1052_v46 = vpop.f32.mrf.mxu1 }
 0x155   : > { %v1053_v8 = vadd.f32 %v1052_v46, %v814_v41  ;;  %v1477_v46 = vperm.slane %v1475_v30, 0  ;;  %v7423_v30 = vld [vmem:[#allocation9 + $0x208] sm:$0xf0] }
 0x158   : > { %v827_v48 = vpop.f32.mrf.mxu3 }
 0x159   : > { %v842_v3 = vadd.f32 %v841_v43, %v827_v48 }
 0x15b   : > { %v1080_v51 = vpop.f32.mrf.mxu2  ;;  %v857_v54 = vpop.f32.mrf.mxu0  ;;  %v856_v6 = vadd.f32 %v855_v50, %v842_v3  ;;  %v7429_v3 = vld [vmem:[#allocation9 + $0x210] sm:$0xf] }
 0x15c   : > { %v1054_v49 = vpop.f32.mrf.mxu1 }
 0x15d   : > { %v1055_v20 = vadd.f32 %v1054_v49, %v816_v16  ;;  %v9383_v16 = vld [vmem:[#allocation9 + $0x214] sm:$0xf] }
 0x160   : > { %v829_v52 = vpop.f32.mrf.mxu3 }
 0x161   : > { %v844_v13 = vadd.f32 %v843_v47, %v829_v52 }
 0x163   : > { %v1082_v55 = vpop.f32.mrf.mxu2  ;;  %v1094_v58 = vpop.f32.mrf.mxu0  ;;  %v858_v22 = vadd.f32 %v857_v54, %v844_v13  ;;  %v9386_v13 = vld [vmem:[#allocation9 + $0x224] sm:$0xf0] }
 0x164   : > { %v1122_v53 = vpop.f32.mrf.mxu1  ;;  %v1095_v10 = vadd.f32 %v1094_v58, %v856_v6  ;;  %v7445_v6 = vld [vmem:[#allocation9 + $0x230] sm:$0xf] }
 0x168   : > { %v1066_v56 = vpop.f32.mrf.mxu3 }
 0x169   : > { %v1067_v14 = vadd.f32 %v1066_v56, %v1053_v8  ;;  %v9388_v8 = vld [vmem:[#allocation9 + $0x234] sm:$0xf0] }
 0x16b   : > { %v1108_v59 = vpop.f32.mrf.mxu2  ;;  %v1096_v61 = vpop.f32.mrf.mxu0  ;;  %v1081_v21 = vadd.f32 %v1080_v51, %v1067_v14 }
 0x16c   : > { %v1124_v57 = vpop.f32.mrf.mxu1  ;;  %v1109_v7 = vadd.f32 %v1108_v59, %v1095_v10  ;;  %v1097_v44 = vadd.f32 %v1096_v61, %v858_v22  ;;  %v7446_v10 = vor.u32 %v9388_v8, %v7445_v6  ;;  %v9368_v22 = vld [vmem:[#allocation9 + $0x194] sm:$0xf0] }
 0x16d   : > { %v9360_v6 = vld [vmem:[#allocation9 + $0x154] sm:$0xf0] }
 0x16e   : > { %v1123_v24 = vadd.f32 %v1122_v53, %v1109_v7  ;;  %v9380_v7 = vld [vmem:[#allocation9 + $0x1f4] sm:$0xf0]  ;;  %1881 = vmatpush.bf16.msra.mxu2 %v7446_v10  ;;  %v9359_v10 = vld [vmem:[#allocation9 + $0x154] sm:$0xf] }
 0x170   : > { %v1068_v19 = vpop.f32.mrf.mxu3 }
 0x171   : > { %v1069_v28 = vadd.f32 %v1068_v19, %v1055_v20  ;;  %v7434_v20 = vor.u32 %v9383_v16, %v7431_v17  ;;  %v7511_v17 = vld [vmem:[#allocation9 + $0x70] sm:$0xf] }
 0x173   : > { %v1110_v63 = vpop.f32.mrf.mxu2  ;;  %v1083_v40 = vadd.f32 %v1082_v55, %v1069_v28 }
 0x174   : > { %v1414_v60 = vpop.f32.mrf.mxu1  ;;  %v1111_v35 = vadd.f32 %v1110_v63, %v1097_v44  ;;  %v7357_v44 = vld [vmem:[#allocation9 + $0x180] sm:$0xf] }
 0x176   : > { %v1125_v47 = vadd.f32 %v1124_v57, %v1111_v35 }
 0x17c   : > { %v1416_v1 = vpop.f32.mrf.mxu1 }
 0x183   : > { %v1400_v4 = vpop.f32.mrf.mxu0 }
 0x184   : > { %v1442_v15 = vpop.f32.mrf.mxu1 }
 0x188   : > { %v1386_v62 = vpop.f32.mrf.mxu3 }
 0x189   : > { %v1401_v11 = vadd.f32 %v1400_v4, %v1386_v62  ;;  %v9384_v4 = vld [vmem:[#allocation9 + $0x214] sm:$0xf0] }
 0x18b   : > { %v1428_v9 = vpop.f32.mrf.mxu2  ;;  %v1415_v12 = vadd.f32 %v1414_v60, %v1401_v11  ;;  %v1402_v23 = vpop.f32.mrf.mxu0  ;;  %v9382_v11 = vld [vmem:[#allocation9 + $0x204] sm:$0xf0] }
 0x18c   : > { %v1443_v18 = vadd.f32 %v1442_v15, %v1428_v9  ;;  %v1444_v41 = vpop.f32.mrf.mxu1  ;;  %v7421_v9 = vld [vmem:[#allocation9 + $0x200] sm:$0xf]  ;;  %v7413_v15 = vld [vmem:[#allocation9 + $0x1f0] sm:$0xf] }
 0x18d   : > { %v1461_v31 = vadd.f32 %v1415_v12, %v1081_v21  ;;  %v7422_v14 = vor.u32 %v9382_v11, %v7421_v9  ;;  %v7438_v12 = vor.u32 %v9386_v13, %v7437_v2  ;;  %v7365_v21 = vld [vmem:[#allocation9 + $0x190] sm:$0xf]  ;;  %v7335_v11 = vld [vmem:[#allocation9 + $0x158] sm:$0xf0] }
 0x18e   : > { %v7338_v13 = vor.u32 %v9359_v10, %v7335_v11  ;;  %v7471_v11 = vld [vmem:[#allocation9 + $0x20] sm:$0xf] }
 0x18f   : > { %v1471_v42 = vmul.f32 %v1467_v29, %v1461_v31  ;;  %1882 = vmatpush.bf16.msra.mxu2 %v7438_v12  ;;  %v7391_v12 = vld [vmem:[#allocation9 + $0x1c8] sm:$0xf0] }
 0x190   : > { %v1388_v5 = vpop.f32.mrf.mxu3 }
 0x191   : > { %v1403_v25 = vadd.f32 %v1402_v23, %v1388_v5  ;;  %v1481_v53 = vadd.f32 %v1477_v46, %v1471_v42  ;;  %v7430_v5 = vor.u32 %v9384_v4, %v7429_v3  ;;  %v9367_v23 = vld [vmem:[#allocation9 + $0x194] sm:$0xf]  ;;  %v7399_v4 = vld [vmem:[#allocation9 + $0x1d8] sm:$0xf0] }
 0x193   : > { %v1430_v34 = vpop.f32.mrf.mxu2  ;;  %v1417_v36 = vadd.f32 %v1416_v1, %v1403_v25  ;;  %v1485_v59 = vmax.f32 %v1481_v53, 0.0  ;;  %1861 = vmatpush.bf16.msrb.mxu3 %v7430_v5  ;;  %1903 = vmatpush.bf16.msrb.mxu2 %v7434_v20  ;;  %v7405_v25 = vld [vmem:[#allocation9 + $0x1e0] sm:$0xf]  ;;  %v7333_v5 = vld [vmem:[#allocation9 + $0x150] sm:$0xf] }
 0x194   : > { %v1445_v43 = vadd.f32 %v1444_v41, %v1430_v34  ;;  %v7359_v34 = vld [vmem:[#allocation9 + $0x188] sm:$0xf0]  ;;  %v9379_v41 = vld [vmem:[#allocation9 + $0x1f4] sm:$0xf]  ;;  %v7334_v2 = vor.u32 %v9360_v6, %v7333_v5  ;;  %v9350_v5 = vld [vmem:[#allocation9 + $0x104] sm:$0xf0] }
 0x195   : > { %v1463_v48 = vadd.f32 %v1417_v36, %v1083_v40  ;;  %v1493_v61 = vrot.slane %v1485_v59, 7  ;;  %v9376_v40 = vld [vmem:[#allocation9 + $0x1d4] sm:$0xf0]  ;;  %v7479_v6 = vld [vmem:[#allocation9 + $0x30] sm:$0xf] }
 0x197   : > { %v1473_v56 = vmul.f32 %v1467_v29, %v1463_v48  ;;  %1862 = vmatpush.bf16.msrb.mxu3 %v7422_v14  ;;  %v9381_v29 = vld [vmem:[#allocation9 + $0x204] sm:$0xf]  ;;  %v7373_v14 = vld [vmem:[#allocation9 + $0x1a0] sm:$0xf] }
 0x198   : > { %v1456_v37 = vpop.f32.mrf.mxu3  ;;  %v7426_v31 = vor.u32 %v9381_v29, %v7423_v30  ;;  %v7503_v29 = vld [vmem:[#allocation9 + $0x60] sm:$0xf]  ;;  %v9330_v30 = vld [vmem:[#allocation9 + $0x64] sm:$0xf0] }
 0x199   : > { %v1457_v26 = vadd.f32 %v1456_v37, %v1443_v18  ;;  %v1483_v19 = vadd.f32 %v1477_v46, %v1473_v56  ;;  %v7414_v18 = vor.u32 %v9380_v7, %v7413_v15  ;;  %v7366_v37 = vor.u32 %v9368_v22, %v7365_v21  ;;  %v7349_v46 = vld [vmem:[#allocation9 + $0x170] sm:$0xf]  ;;  %v7407_v56 = vld [vmem:[#allocation9 + $0x1e8] sm:$0xf0]  ;;  %v9370_v15 = vld [vmem:[#allocation9 + $0x1a4] sm:$0xf0] }
 0x19a   : > { %1904 = vmatpush.bf16.msrb.mxu2 %v7426_v31  ;;  %v9373_v7 = vld [vmem:[#allocation9 + $0x1c4] sm:$0xf]  ;;  %v7374_v16 = vor.u32 %v9370_v15, %v7373_v14  ;;  %v7325_v22 = vld [vmem:[#allocation9 + $0x140] sm:$0xf] }
 0x19b   : > { %v1462_v32 = vadd.f32 %v1457_v26, %v1123_v24  ;;  %v1487_v62 = vmax.f32 %v1483_v19, 0.0  ;;  %1863 = vmatpush.bf16.msrb.mxu3 %v7414_v18  ;;  %v7367_v24 = vld [vmem:[#allocation9 + $0x198] sm:$0xf0]  ;;  %v9378_v26 = vld [vmem:[#allocation9 + $0x1e4] sm:$0xf0]  ;;  %1847 = vmatpush.bf16.msra.mxu0 %v7366_v37  ;;  %v7394_v20 = vor.u32 %v9373_v7, %v7391_v12 }
 0x19c   : > { %v7406_v28 = vor.u32 %v9378_v26, %v7405_v25  ;;  %v9361_v19 = vld [vmem:[#allocation9 + $0x164] sm:$0xf]  ;;  %v9332_v18 = vld [vmem:[#allocation9 + $0x74] sm:$0xf0]  ;;  %v7327_v25 = vld [vmem:[#allocation9 + $0x148] sm:$0xf0] }
 0x19d   : > { %v1472_v38 = vmul.f32 %v1468_v27, %v1462_v32  ;;  %v1495_v63 = vrot.slane %v1487_v62, 7  ;;  %v9366_v32 = vld [vmem:[#allocation9 + $0x184] sm:$0xf0]  ;;  %v7381_v62 = vld [vmem:[#allocation9 + $0x1b0] sm:$0xf]  ;;  %v7512_v21 = vor.u32 %v9332_v18, %v7511_v17 }
 0x19e   : > { %v7358_v35 = vor.u32 %v9366_v32, %v7357_v44  ;;  %v9357_v37 = vld [vmem:[#allocation9 + $0x144] sm:$0xf]  ;;  %v9371_v26 = vld [vmem:[#allocation9 + $0x1b4] sm:$0xf]  ;;  %v7317_v44 = vld [vmem:[#allocation9 + $0x130] sm:$0xf]  ;;  %v7504_v32 = vor.u32 %v9330_v30, %v7503_v29 }
 0x19f   : > { %v1482_v45 = vadd.f32 %v1478_v33, %v1472_v38  ;;  %v1496_v1 = vsel %vm414_vm1, %v1493_v61, %v1495_v63  ;;  %v7397_v38 = vld [vmem:[#allocation9 + $0x1d0] sm:$0xf]  ;;  %1864 = vmatpush.bf16.msrb.mxu3 %v7406_v28  ;;  %v7330_v28 = vor.u32 %v9357_v37, %v7327_v25  ;;  %v9320_v12 = vld [vmem:[#allocation9 + $0x14] sm:$0xf0] }
 0x1a0   : > { %v1458_v39 = vpop.f32.mrf.mxu3  ;;  %v7398_v42 = vor.u32 %v9376_v40, %v7397_v38  ;;  %1848 = vmatpush.bf16.msra.mxu0 %v7358_v35  ;;  %v7319_v35 = vld [vmem:[#allocation9 + $0x138] sm:$0xf0]  ;;  %v9369_v38 = vld [vmem:[#allocation9 + $0x1a4] sm:$0xf]  ;;  %v7375_v40 = vld [vmem:[#allocation9 + $0x1a8] sm:$0xf0] }
 0x1a1   : > { %v1459_v49 = vadd.f32 %v1458_v39, %v1445_v43  ;;  %v1486_v50 = vmax.f32 %v1482_v45, 0.0  ;;  %v7415_v43 = vld [vmem:[#allocation9 + $0x1f8] sm:$0xf0]  ;;  %v9364_v39 = vld [vmem:[#allocation9 + $0x174] sm:$0xf0] }
 0x1a2   : > { %v7418_v45 = vor.u32 %v9379_v41, %v7415_v43  ;;  %v7350_v48 = vor.u32 %v9364_v39, %v7349_v46  ;;  %v7495_v46 = vld [vmem:[#allocation9 + $0x50] sm:$0xf]  ;;  %v9328_v39 = vld [vmem:[#allocation9 + $0x54] sm:$0xf0] }
 0x1a3   : > { %v1464_v51 = vadd.f32 %v1459_v49, %v1125_v47  ;;  %v1494_v52 = vrot.slane %v1486_v50, 7  ;;  %1865 = vmatpush.bf16.msrb.mxu3 %v7398_v42  ;;  %v9363_v47 = vld [vmem:[#allocation9 + $0x174] sm:$0xf]  ;;  %v7351_v49 = vld [vmem:[#allocation9 + $0x178] sm:$0xf0] }
 0x1a4   : > { %1905 = vmatpush.bf16.msrb.mxu2 %v7418_v45  ;;  %v7389_v50 = vld [vmem:[#allocation9 + $0x1c0] sm:$0xf]  ;;  %1849 = vmatpush.bf16.msra.mxu0 %v7350_v48  ;;  %v7378_v45 = vor.u32 %v9369_v38, %v7375_v40  ;;  %v9351_v40 = vld [vmem:[#allocation9 + $0x114] sm:$0xf] }
 0x1a5   : > { %v1474_v54 = vmul.f32 %v1468_v27, %v1464_v51  ;;  %1501 = vrot.lane.b32.xlu0 %v1494_v52, %s10198_s1  ;;  %v7370_v27 = vor.u32 %v9367_v23, %v7367_v24  ;;  %v9374_v51 = vld [vmem:[#allocation9 + $0x1c4] sm:$0xf0]  ;;  %v7309_v48 = vld [vmem:[#allocation9 + $0x120] sm:$0xf] }
 0x1a6   : > { %v7390_v53 = vor.u32 %v9374_v51, %v7389_v50  ;;  %v9358_v23 = vld [vmem:[#allocation9 + $0x144] sm:$0xf0]  ;;  %v9353_v50 = vld [vmem:[#allocation9 + $0x124] sm:$0xf]  ;;  %v7311_v51 = vld [vmem:[#allocation9 + $0x128] sm:$0xf0] }
 0x1a7   : > { %v1484_v58 = vadd.f32 %v1478_v33, %v1474_v54  ;;  %v9365_v33 = vld [vmem:[#allocation9 + $0x184] sm:$0xf]  ;;  %1889 = vmatpush.bf16.msrb.mxu1 %v7370_v27  ;;  %v7326_v24 = vor.u32 %v9358_v23, %v7325_v22  ;;  %v7383_v27 = vld [vmem:[#allocation9 + $0x1b8] sm:$0xf0]  ;;  %v9318_v22 = vld [vmem:[#allocation9 + $0x4] sm:$0xf0] }
 0x1a8   : > { %v7362_v36 = vor.u32 %v9365_v33, %v7359_v34  ;;  %v9377_v54 = vld [vmem:[#allocation9 + $0x1e4] sm:$0xf]  ;;  %1866 = vmatpush.bf16.msrb.mxu3 %v7390_v53  ;;  %v7386_v31 = vor.u32 %v9371_v26, %v7383_v27  ;;  %v9356_v33 = vld [vmem:[#allocation9 + $0x134] sm:$0xf0]  ;;  %v9355_v34 = vld [vmem:[#allocation9 + $0x134] sm:$0xf]  ;;  %v7314_v53 = vor.u32 %v9353_v50, %v7311_v51 }
 0x1a9   : > { %v1488_v55 = vmax.f32 %v1484_v58, 0.0  ;;  %v7341_v58 = vld [vmem:[#allocation9 + $0x160] sm:$0xf]  ;;  %v7410_v59 = vor.u32 %v9377_v54, %v7407_v56  ;;  %v7318_v42 = vor.u32 %v9356_v33, %v7317_v44  ;;  %v7322_v43 = vor.u32 %v9355_v34, %v7319_v35  ;;  %v9387_v54 = vld [vmem:[#allocation9 + $0x234] sm:$0xf] }
 0x1aa   : > { %v7447_v56 = vld [vmem:[#allocation9 + $0x238] sm:$0xf0]  ;;  %v9329_v50 = vld [vmem:[#allocation9 + $0x64] sm:$0xf] }
 0x1ab   : > { %v1497_v60 = vrot.slane %v1488_v55, 7  ;;  %1890 = vmatpush.bf16.msrb.mxu1 %v7362_v36  ;;  %v9362_v55 = vld [vmem:[#allocation9 + $0x164] sm:$0xf0]  ;;  %1906 = vmatpush.bf16.msrb.mxu2 %v7410_v59  ;;  %v7513_v33 = vld [vmem:[#allocation9 + $0x78] sm:$0xf0] }
 0x1ad   : > { %1509 = vrot.lane.b32.xlu2 %v1497_v60, %s10198_s1  ;;  %1499 = vrot.lane.b32.xlu0 %v1493_v61, %s10198_s1  ;;  %v1498_v57 = vsel %vm414_vm1, %v1494_v52, %v1497_v60  ;;  %v7354_v52 = vor.u32 %v9363_v47, %v7351_v49  ;;  %v7343_v60 = vld [vmem:[#allocation9 + $0x168] sm:$0xf0]  ;;  %v7342_v61 = vor.u32 %v9362_v55, %v7341_v58  ;;  %v9354_v49 = vld [vmem:[#allocation9 + $0x124] sm:$0xf0]  ;;  %v7591_v58 = vld [vmem:[#allocation9 + $0x110] sm:$0xf] }
 0x1ae   : > { %1505 = vrot.lane.b32.xlu1 %v1498_v57, %s10198_s1  ;;  %v7346_v57 = vor.u32 %v9361_v19, %v7343_v60  ;;  %v7496_v47 = vor.u32 %v9328_v39, %v7495_v46  ;;  %v7450_v55 = vor.u32 %v9387_v54, %v7447_v56  ;;  %v9352_v19 = vld [vmem:[#allocation9 + $0x114] sm:$0xf0]  ;;  %v7487_v60 = vld [vmem:[#allocation9 + $0x40] sm:$0xf] }
 0x1af   : > { %1891 = vmatpush.bf16.msrb.mxu1 %v7354_v52  ;;  %1850 = vmatpush.bf16.msra.mxu0 %v7342_v61  ;;  %v7310_v52 = vor.u32 %v9354_v49, %v7309_v48  ;;  %v9326_v61 = vld [vmem:[#allocation9 + $0x44] sm:$0xf0] }
 0x1b3   : > { %1892 = vmatpush.bf16.msrb.mxu1 %v7346_v57  ;;  %1851 = vmatpush.bf16.msra.mxu0 %v7334_v2  ;;  %v7592_v57 = vor.u32 %v9352_v19, %v7591_v58  ;;  %v9322_v2 = vld [vmem:[#allocation9 + $0x24] sm:$0xf0]  ;;  %v7505_v58 = vld [vmem:[#allocation9 + $0x68] sm:$0xf0] }
 0x1b4   : > { %v7472_v14 = vor.u32 %v9322_v2, %v7471_v11  ;;  %v7585_v19 = vld [vmem:[#allocation9 + $0x108] sm:$0xf0]  ;;  %v7497_v11 = vld [vmem:[#allocation9 + $0x58] sm:$0xf0] }
 0x1b5   : > { %1507 = vrot.lane.b32.xlu2 %v1495_v63, %s10198_s1  ;;  %v9372_v63 = vld [vmem:[#allocation9 + $0x1b4] sm:$0xf0] }
 0x1b6   : > { %1503 = vrot.lane.b32.xlu1 %v1496_v1, %s10198_s1  ;;  %v9375_v1 = vld [vmem:[#allocation9 + $0x1d4] sm:$0xf]  ;;  %v7382_v3 = vor.u32 %v9372_v63, %v7381_v62  ;;  %v7488_v62 = vor.u32 %v9326_v61, %v7487_v60  ;;  %v9385_v63 = vld [vmem:[#allocation9 + $0x224] sm:$0xf] }
 0x1b7   : > { %v7402_v9 = vor.u32 %v9375_v1, %v7399_v4  ;;  %1893 = vmatpush.bf16.msrb.mxu1 %v7338_v13  ;;  %1852 = vmatpush.bf16.msra.mxu0 %v7326_v24  ;;  %v7439_v1 = vld [vmem:[#allocation9 + $0x228] sm:$0xf0] }
 0x1b8   : > { %1867 = vmatpush.bf16.msrb.mxu3 %v7382_v3  ;;  %v7583_v3 = vld [vmem:[#allocation9 + $0x100] sm:$0xf]  ;;  %v7442_v4 = vor.u32 %v9385_v63, %v7439_v1  ;;  %v7575_v63 = vld [vmem:[#allocation9 + $0xf0] sm:$0xf]  ;;  %v7508_v1 = vor.u32 %v9329_v50, %v7505_v58  ;;  %v9418_v58 = vld [vmem:[#allocation9 + $0x324] sm:$0xf0] }
 0x1b9   : > { %1907 = vmatpush.bf16.msrb.mxu2 %v7402_v9  ;;  %v9324_v9 = vld [vmem:[#allocation9 + $0x34] sm:$0xf0] }
 0x1ba   : > { %v7480_v10 = vor.u32 %v9324_v9, %v7479_v6 }
 0x1bb   : > { %1894 = vmatpush.bf16.msrb.mxu1 %v7330_v28  ;;  %1853 = vmatpush.bf16.msra.mxu0 %v7318_v42 }
 0x1bc   : > { %1868 = vmatpush.bf16.msrb.mxu3 %v7374_v16  ;;  %v7463_v16 = vld [vmem:[#allocation9 + $0x10] sm:$0xf] }
 0x1bd   : > { %1908 = vmatpush.bf16.msrb.mxu2 %v7394_v20  ;;  %v7464_v18 = vor.u32 %v9320_v12, %v7463_v16  ;;  %v9346_v12 = vld [vmem:[#allocation9 + $0xe4] sm:$0xf0] }
 0x1bf   : > { %1895 = vmatpush.bf16.msrb.mxu1 %v7322_v43  ;;  %1854 = vmatpush.bf16.msra.mxu0 %v7310_v52 }
 0x1c0   : > { %2114 = vmatpush.bf16.msra.mxu3 %v7512_v21  ;;  %v7455_v21 = vld [vmem:[#allocation9] sm:$0xf] }
 0x1c1   : > { %1909 = vmatpush.bf16.msrb.mxu2 %v7386_v31  ;;  %v7456_v37 = vor.u32 %v9318_v22, %v7455_v21  ;;  %v9325_v21 = vld [vmem:[#allocation9 + $0x44] sm:$0xf]  ;;  %v7489_v22 = vld [vmem:[#allocation9 + $0x48] sm:$0xf0] }
 0x1c3   : > { %1896 = vmatpush.bf16.msrb.mxu1 %v7314_v53  ;;  %1923 = vmatpush.bf16.msrb.mxu0 %v7450_v55  ;;  %v9349_v55 = vld [vmem:[#allocation9 + $0x104] sm:$0xf] }
 0x1c4   : > { %2115 = vmatpush.bf16.msra.mxu3 %v7504_v32  ;;  %v9331_v32 = vld [vmem:[#allocation9 + $0x74] sm:$0xf]  ;;  %v7588_v6 = vor.u32 %v9349_v55, %v7585_v19  ;;  %v7545_v19 = vld [vmem:[#allocation9 + $0xb8] sm:$0xf0] }
 0x1c5   : > { %1910 = vmatpush.bf16.msrb.mxu2 %v7378_v45  ;;  %v9339_v55 = vld [vmem:[#allocation9 + $0xb4] sm:$0xf] }
 0x1c7   : > { %2148 = vmatpush.bf16.msra.mxu1 %v7592_v57  ;;  %1924 = vmatpush.bf16.msrb.mxu0 %v7442_v4  ;;  %v9347_v4 = vld [vmem:[#allocation9 + $0xf4] sm:$0xf] }
 0x1c8   : > { %2116 = vmatpush.bf16.msra.mxu3 %v7496_v47  ;;  %v7516_v47 = vor.u32 %v9331_v32, %v7513_v33  ;;  %v7721_v33 = vld [vmem:[#allocation9 + $0x330] sm:$0xf] }
 0x1cc   : > { %2117 = vmatpush.bf16.msra.mxu3 %v7488_v62 }
 0x1d0   : > { %2118 = vmatpush.bf16.msra.mxu3 %v7480_v10  ;;  %v9327_v10 = vld [vmem:[#allocation9 + $0x54] sm:$0xf] }
 0x1d1   : > { %v7500_v16 = vor.u32 %v9327_v10, %v7497_v11  ;;  %v7457_v10 = vld [vmem:[#allocation9 + $0x8] sm:$0xf0]  ;;  %v9337_v11 = vld [vmem:[#allocation9 + $0xa4] sm:$0xf] }
 0x1d4   : > { %2119 = vmatpush.bf16.msra.mxu3 %v7472_v14 }
 0x1d8   : > { %2120 = vmatpush.bf16.msra.mxu3 %v7464_v18  ;;  %v7569_v18 = vld [vmem:[#allocation9 + $0xe8] sm:$0xf0] }
 0x1dc   : > { %2121 = vmatpush.bf16.msra.mxu3 %v7456_v37 }
 0x207   : > { %v1510_v8 = vpop.permute.xlu2 %1509 }
 0x208   : > { %1531 = vst.msk [vmem:[#allocation2 + $0x40] sm:$0x1] %vm458_vm5, %v1510_v8 }
 0x20f   : > { %v1508_v36 = vpop.permute.xlu2 %1507  ;;  %v1582_v17 = vld [vmem:[#allocation2 + $0x40] sm:$0x1] }
 0x210   : > { %v1513_v41 = vsel %vm433_vm6, %v1508_v36, %v1510_v8  ;;  %1529 = vst.msk [vmem:[#allocation2 + $0x30] sm:$0x1] %vm455_vm4, %v1508_v36  ;;  %v7584_v8 = vor.u32 %v9350_v5, %v7583_v3  ;;  %v1588_v23 = vpack.c.bf16 %v1582_v17, %v1582_v17  ;;  %v9348_v3 = vld [vmem:[#allocation9 + $0xf4] sm:$0xf0]  ;;  %v7577_v5 = vld [vmem:[#allocation9 + $0xf8] sm:$0xf0] }
 0x211   : > { %1530 = vst [vmem:[#allocation2 + $0x38] sm:$0x1] %v1513_v41  ;;  %v7593_v41 = vld [vmem:[#allocation9 + $0x118] sm:$0xf0]  ;;  %v7576_v14 = vor.u32 %v9348_v3, %v7575_v63  ;;  %v9345_v17 = vld [vmem:[#allocation9 + $0xe4] sm:$0xf] }
 0x212   : > { %2149 = vmatpush.bf16.msra.mxu1 %v7584_v8  ;;  %v1658_v31 = vshll.u32 %v1588_v23, 16  ;;  %v7596_v56 = vor.u32 %v9351_v40, %v7593_v41  ;;  %v7572_v37 = vor.u32 %v9345_v17, %v7569_v18  ;;  %v9342_v40 = vld [vmem:[#allocation9 + $0xc4] sm:$0xf0]  ;;  %v9321_v41 = vld [vmem:[#allocation9 + $0x24] sm:$0xf] }
 0x213   : > { %v9338_v63 = vld [vmem:[#allocation9 + $0xa4] sm:$0xf0]  ;;  %v7527_v17 = vld [vmem:[#allocation9 + $0x90] sm:$0xf]  ;;  %v9336_v18 = vld [vmem:[#allocation9 + $0x94] sm:$0xf0] }
 0x214   : > { %v1660_v39 = vrot.slane %v1658_v31, 1  ;;  %v7561_v31 = vld [vmem:[#allocation9 + $0xd8] sm:$0xf0] }
 0x217   : > { %v1502_v59 = vpop.permute.xlu0 %1501  ;;  %v1580_v35 = vld [vmem:[#allocation2 + $0x30] sm:$0x1] }
 0x218   : > { %1525 = vst.msk [vmem:[#allocation2 + $0x10] sm:$0xfe] %vm449_vm7, %v1502_v59  ;;  %v1581_v20 = vld [vmem:[#allocation2 + $0x38] sm:$0x1]  ;;  %v1586_v48 = vpack.c.bf16 %v1580_v35, %v1580_v35 }
 0x219   : > { %v1587_v26 = vpack.c.bf16 %v1581_v20, %v1581_v20 }
 0x21a   : > { %v1634_v62 = vshll.u32 %v1586_v48, 16  ;;  %v7543_v48 = vld [vmem:[#allocation9 + $0xb0] sm:$0xf] }
 0x21b   : > { %v1646_v38 = vshll.u32 %v1587_v26, 16  ;;  %v9344_v26 = vld [vmem:[#allocation9 + $0xd4] sm:$0xf0] }
 0x21d   : > { %v1648_v54 = vrot.slane %v1646_v38, 1  ;;  %v7551_v38 = vld [vmem:[#allocation9 + $0xc0] sm:$0xf] }
 0x21f   : > { %v1500_v13 = vpop.permute.xlu0 %1499  ;;  %v1579_v29 = vld [vmem:[#allocation2 + $0x10] sm:$0xfe] }
 0x220   : > { %v1511_v15 = vsel %vm433_vm6, %v1500_v13, %v1502_v59  ;;  %1523 = vst.msk [vmem:[#allocation2] sm:$0xfe] %vm446_vm8, %v1500_v13  ;;  %v1506_v7 = vpop.permute.xlu1 %1505  ;;  %v1636_v13 = vrot.slane %v1634_v62, 1  ;;  %v7535_v62 = vld [vmem:[#allocation9 + $0xa0] sm:$0xf] }
 0x221   : > { %1524 = vst [vmem:[#allocation2 + $0x8] sm:$0xfe] %v1511_v15  ;;  %v7580_v15 = vor.u32 %v9347_v4, %v7577_v5  ;;  %v7548_v5 = vor.u32 %v9339_v55, %v7545_v19  ;;  %v7681_v19 = vld [vmem:[#allocation9 + $0x2e0] sm:$0xf] }
 0x222   : > { %1528 = vst.msk [vmem:[#allocation2 + $0x28] sm:$0xff] %vm433_vm6, %v1506_v7 }
 0x227   : > { %v1577_v52 = vld [vmem:[#allocation2] sm:$0xfe] }
 0x228   : > { %v1504_v24 = vpop.permute.xlu1 %1503  ;;  %v1578_v25 = vld [vmem:[#allocation2 + $0x8] sm:$0xfe] }
 0x229   : > { %v10474_v27 = vsel %vm433_vm6, %v1504_v24, %v1506_v7  ;;  %1526 = vst.msk [vmem:[#allocation2 + $0x18] sm:$0xff] %vm451_vm3, %v1504_v24  ;;  %v10477_v28 = vld [vmem:[#allocation2 + $0x28] sm:$0xff]  ;;  %v7567_v7 = vld [vmem:[#allocation9 + $0xe0] sm:$0xf]  ;;  %v7492_v24 = vor.u32 %v9325_v21, %v7489_v22  ;;  %v7529_v22 = vld [vmem:[#allocation9 + $0x98] sm:$0xf0] }
 0x22a   : > { %v1585_v30 = vpack.c.bf16 %v10477_v28, %v1579_v29  ;;  %v1584_v44 = vpack.c.bf16 %v10474_v27, %v1578_v25  ;;  %v7568_v23 = vor.u32 %v9346_v12, %v7567_v7  ;;  %v7559_v25 = vld [vmem:[#allocation9 + $0xd0] sm:$0xf]  ;;  %v9323_v29 = vld [vmem:[#allocation9 + $0x34] sm:$0xf] }
 0x22b   : > { %v7560_v32 = vor.u32 %v9344_v26, %v7559_v25  ;;  %v7528_v25 = vor.u32 %v9336_v18, %v7527_v17  ;;  %v9419_v26 = vld [vmem:[#allocation9 + $0x334] sm:$0xf]  ;;  %v2199_v18 = vld [vmem:[#allocation2 + $0x8] sm:$0xfc] }
 0x22c   : > { %v1653_v34 = vshll.u32 %v1585_v30, 16  ;;  %v1641_v36 = vshll.u32 %v1584_v44, 16  ;;  %v1651_v42 = vshrl.u32 %v1585_v30, 16  ;;  %v1639_v45 = vshrl.u32 %v1584_v44, 16  ;;  %v7481_v30 = vld [vmem:[#allocation9 + $0x38] sm:$0xf0] }
 0x22d   : > { %v9343_v44 = vld [vmem:[#allocation9 + $0xd4] sm:$0xf]  ;;  %v7484_v35 = vor.u32 %v9323_v29, %v7481_v30  ;;  %v7723_v29 = vld [vmem:[#allocation9 + $0x338] sm:$0xf0]  ;;  %v7519_v30 = vld [vmem:[#allocation9 + $0x80] sm:$0xf] }
 0x22e   : > { %v1655_v43 = vrot.slane %v1653_v34, 1  ;;  %v1643_v46 = vrot.slane %v1641_v36, 1  ;;  %v9420_v34 = vld [vmem:[#allocation9 + $0x334] sm:$0xf0]  ;;  %v7564_v36 = vor.u32 %v9343_v44, %v7561_v31  ;;  %v9334_v31 = vld [vmem:[#allocation9 + $0x84] sm:$0xf0] }
 0x230   : > { %v1656_v49 = vor.u32 %v1655_v43, %v1651_v42  ;;  %v10481_v51 = vld [vmem:[#allocation2 + $0x18] sm:$0xff]  ;;  %v1644_v53 = vor.u32 %v1643_v46, %v1639_v45  ;;  %v7473_v42 = vld [vmem:[#allocation9 + $0x28] sm:$0xf0]  ;;  %v9341_v43 = vld [vmem:[#allocation9 + $0xc4] sm:$0xf] }
 0x231   : > { %v1583_v59 = vpack.c.bf16 %v10481_v51, %v1577_v52  ;;  %v7553_v45 = vld [vmem:[#allocation9 + $0xc8] sm:$0xf0]  ;;  %v1532_v46 = vld [vmem:[#allocation2] sm:$0xff]  ;;  %v7476_v52 = vor.u32 %v9321_v41, %v7473_v42  ;;  %v7726_v41 = vor.u32 %v9419_v26, %v7723_v29  ;;  %v7659_v42 = vld [vmem:[#allocation9 + $0x2b8] sm:$0xf0] }
 0x232   : > { %v10485_v60 = vsel %vm554_vm9, %v1656_v49, %v1660_v39  ;;  %v1649_v61 = vsel %vm554_vm9, %v1644_v53, %v1648_v54  ;;  %v7722_v39 = vor.u32 %v9420_v34, %v7721_v33  ;;  %v9340_v49 = vld [vmem:[#allocation9 + $0xb4] sm:$0xf0]  ;;  %v10492_v50 = vpack.c.bf16 %v10481_v51, %v1532_v46  ;;  %v9319_v54 = vld [vmem:[#allocation9 + $0x14] sm:$0xf]  ;;  %v7521_v33 = vld [vmem:[#allocation9 + $0x88] sm:$0xf0] }
 0x233   : > { %7451 = vmatmul.msk.bf16.vlgmr.msra.gmra.mxu2 %vm392_vm2, %v10485_v60  ;;  %v1629_v57 = vshll.u32 %v1583_v59, 16  ;;  %1869 = vmatmul.bf16.vlgmr.msrb.gmra.mxu3 %v1649_v61  ;;  %v1627_v8 = vshrl.u32 %v1583_v59, 16  ;;  %v7556_v53 = vor.u32 %v9341_v43, %v7553_v45  ;;  %v7465_v59 = vld [vmem:[#allocation9 + $0x18] sm:$0xf0]  ;;  %v7689_v43 = vld [vmem:[#allocation9 + $0x2f0] sm:$0xf]  ;;  %v7520_v46 = vor.u32 %v9334_v31, %v7519_v30 }
 0x234   : > { %2156 = vmatpush.bf16.msra.mxu2 %v7516_v47  ;;  %2190 = vmatpush.bf16.msrb.mxu3 %v7596_v56  ;;  %v7552_v47 = vor.u32 %v9342_v40, %v7551_v38  ;;  %v7713_v56 = vld [vmem:[#allocation9 + $0x320] sm:$0xf]  ;;  %v7468_v4 = vor.u32 %v9319_v54, %v7465_v59  ;;  %v9404_v38 = vld [vmem:[#allocation9 + $0x2b4] sm:$0xf0]  ;;  %v9403_v40 = vld [vmem:[#allocation9 + $0x2b4] sm:$0xf]  ;;  %v2205_v31 = vpack.c.bf16 %v10474_v27, %v2199_v18 }
 0x235   : > { %v1631_v9 = vrot.slane %v1629_v57, 1  ;;  %v1534_v57 = vld [vmem:[#allocation2 + $0x10] sm:$0xff]  ;;  %v9412_v45 = vld [vmem:[#allocation9 + $0x2f4] sm:$0xf0]  ;;  %v7649_v54 = vld [vmem:[#allocation9 + $0x2a0] sm:$0xf] }
 0x236   : > { %v10496_v3 = vpack.c.bf16 %v10477_v28, %v1534_v57  ;;  %v7690_v59 = vor.u32 %v9412_v45, %v7689_v43  ;;  %v9415_v57 = vld [vmem:[#allocation9 + $0x314] sm:$0xf]  ;;  %v7665_v26 = vld [vmem:[#allocation9 + $0x2c0] sm:$0xf]  ;;  %v9406_v29 = vld [vmem:[#allocation9 + $0x2c4] sm:$0xf0] }
 0x237   : > { %v1632_v2 = vor.u32 %v1631_v9, %v1627_v8  ;;  %v7705_v8 = vld [vmem:[#allocation9 + $0x310] sm:$0xf]  ;;  %v9416_v9 = vld [vmem:[#allocation9 + $0x314] sm:$0xf0]  ;;  %v9411_v30 = vld [vmem:[#allocation9 + $0x2f4] sm:$0xf] }
 0x238   : > { %2157 = vmatpush.bf16.msra.mxu2 %v7508_v1  ;;  %2191 = vmatpush.bf16.msrb.mxu3 %v7588_v6  ;;  %v7714_v1 = vor.u32 %v9418_v58, %v7713_v56  ;;  %v9317_v6 = vld [vmem:[#allocation9 + $0x4] sm:$0xf]  ;;  %v7706_v7 = vor.u32 %v9416_v9, %v7705_v8  ;;  %v9402_v56 = vld [vmem:[#allocation9 + $0x2a4] sm:$0xf0]  ;;  %v7641_v8 = vld [vmem:[#allocation9 + $0x290] sm:$0xf] }
 0x239   : > { %v1637_v20 = vsel %vm554_vm9, %v1632_v2, %v1636_v13  ;;  %v7537_v2 = vld [vmem:[#allocation9 + $0xa8] sm:$0xf0]  ;;  %v7737_v13 = vld [vmem:[#allocation9 + $0x350] sm:$0xf]  ;;  %v9401_v58 = vld [vmem:[#allocation9 + $0x2a4] sm:$0xf] }
 0x23a   : > { %1855 = vmatmul.bf16.vlgmr.msra.gmra.mxu0 %v1637_v20  ;;  %1897 = vmatmul.bf16.vlgmr.msrb.gmra.mxu1 %v1637_v20  ;;  %v7540_v12 = vor.u32 %v9337_v11, %v7537_v2  ;;  %v9335_v20 = vld [vmem:[#allocation9 + $0x94] sm:$0xf]  ;;  %v9400_v9 = vld [vmem:[#allocation9 + $0x294] sm:$0xf0]  ;;  %v7627_v45 = vld [vmem:[#allocation9 + $0x278] sm:$0xf0] }
 0x23b   : > { %2128 = vmatpush.bf16.msra.mxu0 %v7576_v14  ;;  %2170 = vmatpush.bf16.msrb.mxu1 %v7580_v15  ;;  %v9424_v14 = vld [vmem:[#allocation9 + $0x354] sm:$0xf0]  ;;  %v7536_v15 = vor.u32 %v9338_v63, %v7535_v62  ;;  %v7532_v44 = vor.u32 %v9335_v20, %v7529_v22  ;;  %v7707_v62 = vld [vmem:[#allocation9 + $0x318] sm:$0xf0]  ;;  %v2200_v63 = vld [vmem:[#allocation2 + $0x10] sm:$0xfc] }
 0x23c   : > { %2158 = vmatpush.bf16.msra.mxu2 %v7500_v16  ;;  %v7460_v16 = vor.u32 %v9317_v6, %v7457_v10  ;;  %v7738_v21 = vor.u32 %v9424_v14, %v7737_v13  ;;  %v9399_v10 = vld [vmem:[#allocation9 + $0x294] sm:$0xf]  ;;  %v7710_v2 = vor.u32 %v9415_v57, %v7707_v62  ;;  %v7643_v13 = vld [vmem:[#allocation9 + $0x298] sm:$0xf0]  ;;  %v7673_v14 = vld [vmem:[#allocation9 + $0x2d0] sm:$0xf] }
 0x23d   : > { %v2202_v20 = vld [vmem:[#allocation2 + $0x38] sm:$0x3]  ;;  %v7633_v22 = vld [vmem:[#allocation9 + $0x280] sm:$0xf]  ;;  %v9395_v43 = vld [vmem:[#allocation9 + $0x274] sm:$0xf] }
 0x23e   : > { %v7609_v57 = vld [vmem:[#allocation9 + $0x250] sm:$0xf]  ;;  %v9392_v62 = vld [vmem:[#allocation9 + $0x254] sm:$0xf0] }
 0x23f   : > { %2129 = vmatpush.bf16.msra.mxu0 %v7568_v23  ;;  %2171 = vmatpush.bf16.msrb.mxu1 %v7572_v37  ;;  %v7697_v23 = vld [vmem:[#allocation9 + $0x300] sm:$0xf] }
 0x240   : > { %2159 = vmatpush.bf16.msra.mxu2 %v7492_v24  ;;  %v7729_v37 = vld [vmem:[#allocation9 + $0x340] sm:$0xf]  ;;  %v9422_v24 = vld [vmem:[#allocation9 + $0x344] sm:$0xf0] }
 0x243   : > { %1911 = vmatmul.bf16.vlgmr.msrb.gmra.mxu2 %v1649_v61  ;;  %2130 = vmatpush.bf16.msra.mxu0 %v7560_v32  ;;  %v7544_v61 = vor.u32 %v9340_v49, %v7543_v48  ;;  %v9333_v32 = vld [vmem:[#allocation9 + $0x84] sm:$0xf] }
 0x244   : > { %2160 = vmatpush.bf16.msra.mxu2 %v7484_v35  ;;  %2172 = vmatpush.bf16.msrb.mxu1 %v7564_v36  ;;  %v7730_v35 = vor.u32 %v9422_v24, %v7729_v37  ;;  %v7657_v36 = vld [vmem:[#allocation9 + $0x2b0] sm:$0xf]  ;;  %v7524_v48 = vor.u32 %v9333_v32, %v7521_v33 }
 0x245   : > { %2122 = vmatmul.bf16.vlgmr.msra.gmra.mxu3 %v10492_v50  ;;  %v7658_v49 = vor.u32 %v9404_v38, %v7657_v36  ;;  %v9396_v36 = vld [vmem:[#allocation9 + $0x274] sm:$0xf0]  ;;  %v7666_v38 = vor.u32 %v9406_v29, %v7665_v26 }
 0x246   : > { %2461 = vmatpush.bf16.msra.mxu3 %v7722_v39  ;;  %v9417_v39 = vld [vmem:[#allocation9 + $0x324] sm:$0xf] }
 0x247   : > { %2131 = vmatpush.bf16.msra.mxu0 %v7552_v47  ;;  %v7715_v47 = vld [vmem:[#allocation9 + $0x328] sm:$0xf0] }
 0x248   : > { %2161 = vmatpush.bf16.msra.mxu2 %v7476_v52  ;;  %2173 = vmatpush.bf16.msrb.mxu1 %v7556_v53  ;;  %v1533_v52 = vld [vmem:[#allocation2 + $0x8] sm:$0xff]  ;;  %v7662_v53 = vor.u32 %v9403_v40, %v7659_v42  ;;  %v7718_v55 = vor.u32 %v9417_v39, %v7715_v47  ;;  %v2208_v40 = vpack.c.bf16 %v2202_v20, %v2202_v20  ;;  %v2256_v39 = vrot.slane %v2205_v31, 1 }
 0x24a   : > { %7452 = vmatmul.msk.bf16.vlgmr.msrb.gmra.mxu0 %vm392_vm2, %v10485_v60  ;;  %7597 = vmatmul.msk.bf16.vlgmr.msra.gmra.mxu1 %vm392_vm2, %v10496_v3  ;;  %v9414_v60 = vld [vmem:[#allocation9 + $0x304] sm:$0xf0] }
 0x24b   : > { %2132 = vmatpush.bf16.msra.mxu0 %v7544_v61  ;;  %2462 = vmatpush.bf16.msra.mxu3 %v7714_v1  ;;  %v7698_v34 = vor.u32 %v9414_v60, %v7697_v23  ;;  %v9410_v61 = vld [vmem:[#allocation9 + $0x2e4] sm:$0xf0]  ;;  %v1539_v1 = vpack.c.bf16 %v10474_v27, %v1533_v52  ;;  %v9397_v60 = vld [vmem:[#allocation9 + $0x284] sm:$0xf] }
 0x24c   : > { %2162 = vmatpush.bf16.msra.mxu2 %v7468_v4  ;;  %2174 = vmatpush.bf16.msrb.mxu1 %v7548_v5  ;;  %v7650_v4 = vor.u32 %v9402_v56, %v7649_v54  ;;  %v2203_v5 = vld [vmem:[#allocation2 + $0x40] sm:$0x3]  ;;  %v7682_v11 = vor.u32 %v9410_v61, %v7681_v19  ;;  %v9398_v23 = vld [vmem:[#allocation9 + $0x284] sm:$0xf0]  ;;  %v9409_v27 = vld [vmem:[#allocation9 + $0x2e4] sm:$0xf] }
 0x24d   : > { %v2209_v17 = vpack.c.bf16 %v2203_v5, %v2203_v5  ;;  %v7634_v33 = vor.u32 %v9398_v23, %v7633_v22  ;;  %v9394_v52 = vld [vmem:[#allocation9 + $0x264] sm:$0xf0]  ;;  %v9393_v56 = vld [vmem:[#allocation9 + $0x264] sm:$0xf]  ;;  %v7731_v23 = vld [vmem:[#allocation9 + $0x348] sm:$0xf0] }
 0x24e   : > { %v9405_v5 = vld [vmem:[#allocation9 + $0x2c4] sm:$0xf] }
 0x24f   : > { %2133 = vmatpush.bf16.msra.mxu0 %v7536_v15  ;;  %2463 = vmatpush.bf16.msra.mxu3 %v7706_v7  ;;  %v9408_v15 = vld [vmem:[#allocation9 + $0x2d4] sm:$0xf0]  ;;  %v9413_v7 = vld [vmem:[#allocation9 + $0x304] sm:$0xf]  ;;  %v2260_v32 = vrot.slane %v2209_v17, 1 }
 0x250   : > { %2163 = vmatpush.bf16.msra.mxu2 %v7460_v16  ;;  %2175 = vmatpush.bf16.msrb.mxu1 %v7540_v12  ;;  %v7699_v16 = vld [vmem:[#allocation9 + $0x308] sm:$0xf0]  ;;  %v7642_v12 = vor.u32 %v9400_v9, %v7641_v8  ;;  %v7674_v37 = vor.u32 %v9408_v15, %v7673_v14  ;;  %v2198_v8 = vld [vmem:[#allocation2] sm:$0xfc] }
 0x251   : > { %v7702_v24 = vor.u32 %v9413_v7, %v7699_v16  ;;  %v9389_v14 = vld [vmem:[#allocation9 + $0x244] sm:$0xf]  ;;  %v7603_v15 = vld [vmem:[#allocation9 + $0x248] sm:$0xf0]  ;;  %v2204_v7 = vpack.c.bf16 %v10481_v51, %v2198_v8  ;;  %v9423_v16 = vld [vmem:[#allocation9 + $0x354] sm:$0xf] }
 0x252   : > { %v7606_v18 = vor.u32 %v9389_v14, %v7603_v15  ;;  %v9421_v22 = vld [vmem:[#allocation9 + $0x344] sm:$0xf] }
 0x253   : > { %2134 = vmatpush.bf16.msra.mxu0 %v7528_v25  ;;  %2164 = vmatmul.bf16.vlgmr.msra.gmra.mxu2 %v10492_v50  ;;  %v7651_v50 = vld [vmem:[#allocation9 + $0x2a8] sm:$0xf0]  ;;  %v2253_v20 = vrot.slane %v2204_v7, 1  ;;  %v7734_v51 = vor.u32 %v9421_v22, %v7731_v23 }
 0x254   : > { %2481 = vmatpush.bf16.msrb.mxu2 %v7738_v21  ;;  %2176 = vmatpush.bf16.msrb.mxu1 %v7532_v44  ;;  %v7654_v6 = vor.u32 %v9401_v58, %v7651_v50  ;;  %v7646_v21 = vor.u32 %v9399_v10, %v7643_v13  ;;  %v7635_v25 = vld [vmem:[#allocation9 + $0x288] sm:$0xf0]  ;;  %v7691_v44 = vld [vmem:[#allocation9 + $0x2f8] sm:$0xf0]  ;;  %v7601_v10 = vld [vmem:[#allocation9 + $0x240] sm:$0xf] }
 0x255   : > { %2464 = vmatpush.bf16.msra.mxu3 %v7698_v34  ;;  %v7638_v34 = vor.u32 %v9397_v60, %v7635_v25  ;;  %v7694_v42 = vor.u32 %v9411_v30, %v7691_v44  ;;  %v7619_v58 = vld [vmem:[#allocation9 + $0x268] sm:$0xf0]  ;;  %v7675_v50 = vld [vmem:[#allocation9 + $0x2d8] sm:$0xf0] }
 0x256   : > { %7598 = vmatmul.msk.bf16.vlgmr.msrb.gmra.mxu3 %vm392_vm2, %v10496_v3  ;;  %v2206_v3 = vpack.c.bf16 %v10477_v28, %v2200_v63  ;;  %v7622_v61 = vor.u32 %v9393_v56, %v7619_v58 }
 0x257   : > { %2135 = vmatpush.bf16.msra.mxu0 %v7520_v46  ;;  %v7683_v46 = vld [vmem:[#allocation9 + $0x2e8] sm:$0xf0] }
 0x258   : > { %2482 = vmatpush.bf16.msrb.mxu2 %v7730_v35  ;;  %2177 = vmatpush.bf16.msrb.mxu1 %v7524_v48  ;;  %v2259_v28 = vrot.slane %v2206_v3, 1  ;;  %v7625_v35 = vld [vmem:[#allocation9 + $0x270] sm:$0xf]  ;;  %v7630_v48 = vor.u32 %v9395_v43, %v7627_v45  ;;  %v7686_v54 = vor.u32 %v9409_v27, %v7683_v46  ;;  %v7667_v3 = vld [vmem:[#allocation9 + $0x2c8] sm:$0xf0] }
 0x259   : > { %2465 = vmatpush.bf16.msra.mxu3 %v7690_v59  ;;  %v7626_v47 = vor.u32 %v9396_v36, %v7625_v35  ;;  %v7670_v13 = vor.u32 %v9405_v5, %v7667_v3 }
 0x25a   : > { %2136 = vmatmul.bf16.vlgmr.msra.gmra.mxu0 %v1539_v1 }
 0x25b   : > { %2447 = vmatpush.bf16.msrb.mxu0 %v7658_v49  ;;  %2178 = vmatmul.bf16.vlgmr.msrb.gmra.mxu1 %v1539_v1  ;;  %v7617_v49 = vld [vmem:[#allocation9 + $0x260] sm:$0xf]  ;;  %v9391_v1 = vld [vmem:[#allocation9 + $0x254] sm:$0xf] }
 0x25c   : > { %2503 = vmatpush.bf16.msra.mxu2 %v7726_v41  ;;  %2489 = vmatpush.bf16.msra.mxu1 %v7662_v53  ;;  %v10509_v41 = vsel %vm1182_vm10, %v2259_v28, %v2260_v32  ;;  %v2257_v53 = vrot.slane %v2208_v40, 1  ;;  %v7618_v19 = vor.u32 %v9394_v52, %v7617_v49 }
 0x25d   : > { %2466 = vmatpush.bf16.msra.mxu3 %v7682_v11  ;;  %v9390_v11 = vld [vmem:[#allocation9 + $0x244] sm:$0xf0] }
 0x25e   : > { %v2258_v59 = vsel %vm1182_vm10, %v2256_v39, %v2257_v53  ;;  %v7602_v17 = vor.u32 %v9390_v11, %v7601_v10 }
 0x25f   : > { %2448 = vmatpush.bf16.msrb.mxu0 %v7650_v4  ;;  %v7611_v4 = vld [vmem:[#allocation9 + $0x258] sm:$0xf0] }
 0x260   : > { %2504 = vmatpush.bf16.msra.mxu2 %v7718_v55  ;;  %2490 = vmatpush.bf16.msra.mxu1 %v7654_v6  ;;  %v9407_v55 = vld [vmem:[#allocation9 + $0x2d4] sm:$0xf]  ;;  %v7610_v6 = vor.u32 %v9392_v62, %v7609_v57  ;;  %v7614_v9 = vor.u32 %v9391_v1, %v7611_v4  ;;  %v2545_v62 = vld [vmem:[%s11713_s6] sm:$0x3] }
 0x261   : > { %2467 = vmatpush.bf16.msra.mxu3 %v7674_v37  ;;  %v7678_v63 = vor.u32 %v9407_v55, %v7675_v50 }
 0x263   : > { %2449 = vmatpush.bf16.msrb.mxu0 %v7642_v12  ;;  %7743 = vmatmul.msk.bf16.vlgmr.msrb.gmra.mxu2 %vm392_vm2, %v10509_v41  ;;  %v7739_v12 = vld [vmem:[#allocation9 + $0x358] sm:$0xf0] }
 0x264   : > { %2505 = vmatpush.bf16.msra.mxu2 %v7710_v2  ;;  %2491 = vmatpush.bf16.msra.mxu1 %v7646_v21  ;;  %v2201_v2 = vld [vmem:[#allocation2 + $0x30] sm:$0x3]  ;;  %v7742_v21 = vor.u32 %v9423_v16, %v7739_v12 }
 0x265   : > { %2468 = vmatpush.bf16.msra.mxu3 %v7666_v38  ;;  %v2207_v28 = vpack.c.bf16 %v2201_v2, %v2201_v2 }
 0x267   : > { %2450 = vmatpush.bf16.msrb.mxu0 %v7634_v33  ;;  %v2254_v60 = vrot.slane %v2207_v28, 1 }
 0x268   : > { %2506 = vmatpush.bf16.msra.mxu2 %v7702_v24  ;;  %2492 = vmatpush.bf16.msra.mxu1 %v7638_v34 }
 0x269   : > { %2469 = vmatmul.bf16.vlgmr.msra.gmra.mxu3 %v2258_v59  ;;  %v2255_v37 = vsel %vm1182_vm10, %v2253_v20, %v2254_v60 }
 0x26b   : > { %2451 = vmatpush.bf16.msrb.mxu0 %v7626_v47 }
 0x26c   : > { %2507 = vmatpush.bf16.msra.mxu2 %v7694_v42  ;;  %2493 = vmatpush.bf16.msra.mxu1 %v7630_v48 }
 0x26f   : > { %2452 = vmatpush.bf16.msrb.mxu0 %v7618_v19  ;;  %v2535_v19 = vld [vmem:[%s11712_s5] sm:$0x3] }
 0x270   : > { %2508 = vmatpush.bf16.msra.mxu2 %v7686_v54  ;;  %2494 = vmatpush.bf16.msra.mxu1 %v7622_v61  ;;  %v2537_v5 = vperm.slane %v2535_v19, 0 }
 0x273   : > { %2453 = vmatpush.bf16.msrb.mxu0 %v7610_v6 }
 0x274   : > { %2509 = vmatpush.bf16.msra.mxu2 %v7678_v63  ;;  %2495 = vmatpush.bf16.msra.mxu1 %v7614_v9  ;;  %v2547_v9 = vperm.slane %v2545_v62, 0 }
 0x277   : > { %2454 = vmatpush.bf16.msrb.mxu0 %v7602_v17 }
 0x278   : > { %2510 = vmatpush.bf16.msra.mxu2 %v7670_v13  ;;  %2496 = vmatpush.bf16.msra.mxu1 %v7606_v18 }
 0x27a   : > { %2455 = vmatmul.bf16.vlgmr.msrb.gmra.mxu0 %v2255_v37 }
 0x27b   : > { %2511 = vmatmul.bf16.vlgmr.msra.gmra.mxu2 %v2258_v59  ;;  %2523 = vmatpush.bf16.msra.mxu0 %v7742_v21 }
 0x27c   : > { %2497 = vmatmul.bf16.vlgmr.msra.gmra.mxu1 %v2255_v37 }
 0x27f   : > { %2524 = vmatpush.bf16.msra.mxu0 %v7734_v51 }
 0x28a   : > { %7744 = vmatmul.msk.bf16.vlgmr.msra.gmra.mxu0 %vm392_vm2, %v10509_v41 }
 0x2b6   : > { %v1884_v24 = vpop.f32.mrf.mxu2  ;;  %v1870_v25 = vpop.f32.mrf.mxu3 }
 0x2b7   : > { %v1856_v26 = vpop.f32.mrf.mxu0  ;;  %v1898_v31 = vpop.f32.mrf.mxu1 }
 0x2b8   : > { %v1871_v48 = vadd.f32 %v1870_v25, %v1856_v26 }
 0x2ba   : > { %v1885_v53 = vadd.f32 %v1884_v24, %v1871_v48 }
 0x2be   : > { %v1886_v29 = vpop.f32.mrf.mxu2  ;;  %v1872_v30 = vpop.f32.mrf.mxu3 }
 0x2bf   : > { %v1858_v44 = vpop.f32.mrf.mxu0  ;;  %v1900_v36 = vpop.f32.mrf.mxu1 }
 0x2c0   : > { %v1873_v58 = vadd.f32 %v1872_v30, %v1858_v44 }
 0x2c2   : > { %v1887_v63 = vadd.f32 %v1886_v29, %v1873_v58  ;;  %v2538_v29 = vperm.slane %v2535_v19, 1 }
 0x2c6   : > { %v1912_v32 = vpop.f32.mrf.mxu2 }
 0x2c7   : > { %v1926_v34 = vpop.f32.mrf.mxu0  ;;  %v2151_v43 = vpop.f32.mrf.mxu1  ;;  %v1913_v57 = vadd.f32 %v1912_v32, %v1898_v31  ;;  %v2548_v31 = vperm.slane %v2545_v62, 1 }
 0x2c8   : > { %v2123_v33 = vpop.f32.mrf.mxu3 }
 0x2c9   : > { %v2124_v54 = vadd.f32 %v2123_v33, %v1885_v53  ;;  %v1927_v10 = vadd.f32 %v1926_v34, %v1913_v57 }
 0x2ce   : > { %v1914_v35 = vpop.f32.mrf.mxu2 }
 0x2cf   : > { %v1928_v42 = vpop.f32.mrf.mxu0  ;;  %v2153_v41 = vpop.f32.mrf.mxu1  ;;  %v1915_v17 = vadd.f32 %v1914_v35, %v1900_v36 }
 0x2d0   : > { %v2125_v38 = vpop.f32.mrf.mxu3 }
 0x2d1   : > { %v2126_v6 = vadd.f32 %v2125_v38, %v1887_v63  ;;  %v1929_v23 = vadd.f32 %v1928_v42, %v1915_v17 }
 0x2d6   : > { %v2165_v40 = vpop.f32.mrf.mxu2 }
 0x2d7   : > { %v2137_v46 = vpop.f32.mrf.mxu0  ;;  %v2166_v13 = vadd.f32 %v2165_v40, %v1927_v10 }
 0x2d8   : > { %v2179_v52 = vpop.f32.mrf.mxu1  ;;  %v2138_v59 = vadd.f32 %v2137_v46, %v2124_v54 }
 0x2d9   : > { %v2193_v45 = vpop.f32.mrf.mxu3  ;;  %v2180_v20 = vadd.f32 %v2179_v52, %v2166_v13 }
 0x2da   : > { %v2152_v1 = vadd.f32 %v2151_v43, %v2138_v59 }
 0x2db   : > { %v2194_v51 = vadd.f32 %v2193_v45, %v2180_v20 }
 0x2de   : > { %v2167_v27 = vpop.f32.mrf.mxu2 }
 0x2df   : > { %v2139_v49 = vpop.f32.mrf.mxu0  ;;  %v2168_v25 = vadd.f32 %v2167_v27, %v1929_v23 }
 0x2e0   : > { %v2181_v3 = vpop.f32.mrf.mxu1  ;;  %v2140_v11 = vadd.f32 %v2139_v49, %v2126_v6 }
 0x2e1   : > { %v2195_v39 = vpop.f32.mrf.mxu3  ;;  %v2182_v33 = vadd.f32 %v2181_v3, %v2168_v25 }
 0x2e2   : > { %v2154_v28 = vadd.f32 %v2153_v41, %v2140_v11 }
 0x2e3   : > { %v2196_v42 = vadd.f32 %v2195_v39, %v2182_v33 }
 0x2e6   : > { %v2484_v47 = vpop.f32.mrf.mxu2 }
 0x2ec   : > { %v2470_v56 = vpop.f32.mrf.mxu3 }
 0x2ee   : > { %v2486_v55 = vpop.f32.mrf.mxu2 }
 0x2f4   : > { %v2472_v14 = vpop.f32.mrf.mxu3 }
 0x2f7   : > { %v2456_v50 = vpop.f32.mrf.mxu0 }
 0x2f8   : > { %v2471_v61 = vadd.f32 %v2470_v56, %v2456_v50 }
 0x2f9   : > { %v2498_v21 = vpop.f32.mrf.mxu1 }
 0x2fa   : > { %v2485_v4 = vadd.f32 %v2484_v47, %v2471_v61 }
 0x2fc   : > { %v2531_v8 = vadd.f32 %v2485_v4, %v2152_v1 }
 0x2fe   : > { %v2541_v2 = vmul.f32 %v2537_v5, %v2531_v8  ;;  %v2512_v12 = vpop.f32.mrf.mxu2 }
 0x2ff   : > { %v2458_v15 = vpop.f32.mrf.mxu0  ;;  %v2513_v60 = vadd.f32 %v2512_v12, %v2498_v21 }
 0x300   : > { %v2473_v7 = vadd.f32 %v2472_v14, %v2458_v15  ;;  %v10524_v16 = vadd.f32 %v2547_v9, %v2541_v2 }
 0x301   : > { %v2500_v35 = vpop.f32.mrf.mxu1 }
 0x302   : > { %v2487_v18 = vadd.f32 %v2486_v55, %v2473_v7  ;;  %2559 = vrot.lane.b32.xlu0 %v10524_v16, %s11735_s22 }
 0x304   : > { %v2533_v22 = vadd.f32 %v2487_v18, %v2154_v28 }
 0x306   : > { %v2543_v37 = vmul.f32 %v2537_v5, %v2533_v22  ;;  %v2514_v32 = vpop.f32.mrf.mxu2 }
 0x307   : > { %v2526_v24 = vpop.f32.mrf.mxu0  ;;  %v2515_v36 = vadd.f32 %v2514_v32, %v2500_v35 }
 0x308   : > { %v2527_v26 = vadd.f32 %v2526_v24, %v2513_v60  ;;  %v10528_v30 = vadd.f32 %v2547_v9, %v2543_v37 }
 0x30a   : > { %v2532_v44 = vadd.f32 %v2527_v26, %v2194_v51  ;;  %2563 = vrot.lane.b32.xlu2 %v10528_v30, %s11735_s22 }
 0x30c   : > { %v2542_v34 = vmul.f32 %v2538_v29, %v2532_v44 }
 0x30e   : > { %v10532_v38 = vadd.f32 %v2548_v31, %v2542_v34 }
 0x30f   : > { %v2528_v40 = vpop.f32.mrf.mxu0 }
 0x310   : > { %v2529_v43 = vadd.f32 %v2528_v40, %v2515_v36  ;;  %2561 = vrot.lane.b32.xlu1 %v10532_v38, %s11735_s22 }
 0x312   : > { %v2534_v45 = vadd.f32 %v2529_v43, %v2196_v42 }
 0x314   : > { %v2544_v27 = vmul.f32 %v2538_v29, %v2534_v45 }
 0x316   : > { %v10536_v46 = vadd.f32 %v2548_v31, %v2544_v27 }
 0x318   : > { %2565 = vrot.lane.b32.xlu0 %v10536_v46, %s11735_s22  ;;  %s11794_s22 = smov 44  }
 0x364   : > { %v2564_v56 = vpop.permute.xlu2 %2563 }
 0x374   : > { %v2560_v41 = vpop.permute.xlu0 %2559 }
 0x382   : > { %v2562_v47 = vpop.permute.xlu1 %2561 }
 0x383   : > { %v2568_v48 = vsel %vm2567_vm11, %v2560_v41, %v2562_v47  ;;  %v2576_v49 = vsel %vm2567_vm11, %v2562_v47, %v2560_v41 }
 0x384   : > { %v2578_v39 = vadd.f32 %v2568_v48, %v10524_v16  ;;  %v2579_v52 = vadd.f32 %v2576_v49, %v10532_v38  ;;  %v2582_v53 = vmax.f32 %v10524_v16, %v2568_v48  ;;  %v2583_v54 = vmax.f32 %v10532_v38, %v2576_v49 }
 0x386   : > { %2592 = vrot.lane.b32.xlu2 %v2579_v52, %s11721_s28  ;;  %2590 = vrot.lane.b32.xlu1 %v2578_v39, %s11721_s28  ;;  %v9869_v61 = vpack.i.bf16 %v2583_v54, %v2582_v53 }
 0x38a   : > { %v2566_v58 = vpop.permute.xlu0 %2565 }
 0x38b   : > { %v2569_v59 = vsel %vm2567_vm11, %v2564_v56, %v2566_v58  ;;  %v2577_v55 = vsel %vm2567_vm11, %v2566_v58, %v2564_v56 }
 0x38c   : > { %v2580_v50 = vadd.f32 %v2569_v59, %v10528_v30  ;;  %v2581_v19 = vadd.f32 %v2577_v55, %v10536_v46  ;;  %v2584_v57 = vmax.f32 %v10528_v30, %v2569_v59  ;;  %v2585_v62 = vmax.f32 %v10536_v46, %v2577_v55 }
 0x38e   : > { %9870 = vrot.lane.b32.xlu2 %v9869_v61, %s11721_s28  ;;  %2596 = vrot.lane.b32.xlu1 %v2581_v19, %s11721_s28  ;;  %v9874_v63 = vpack.i.bf16 %v2585_v62, %v2584_v57 }
 0x38f   : > { %2594 = vrot.lane.b32.xlu0 %v2580_v50, %s11721_s28 }
 0x397   : > { %9875 = vrot.lane.b32.xlu0 %v9874_v63, %s11721_s28  ;;  %v9431_v63 = vld [vmem:[%s11714_s7 + $0x30] sm:$0xff]  ;;  %s11727_s28 = smov 44  }
 0x3e0   : > { %v2593_v1 = vpop.permute.xlu2 %2592 }
 0x3e8   : > { %v9871_v4 = vpop.permute.xlu2 %9870 }
 0x3e9   : > { %v9873_v5 = vunpack.i.h.bf16 %v9871_v4  ;;  %v9872_v3 = vunpack.i.l.bf16 %v9871_v4  ;;  %v9430_v4 = vld [vmem:[%s11714_s7 + $0x28] sm:$0xff] }
 0x3eb   : > { %v2625_v2 = vsel %vm11742_vm12, %v9872_v3, %v9873_v5  ;;  %v2633_v13 = vsel %vm11742_vm12, %v9873_v5, %v9872_v3  ;;  %v9438_v5 = vld [vmem:[%s11714_s7 + $0x68] sm:$0xff]  ;;  %v9429_v3 = vld [vmem:[%s11714_s7 + $0x20] sm:$0xff] }
 0x3ec   : > { %v2635_v14 = vmax.f32 %v2582_v53, %v2625_v2  ;;  %v2636_v15 = vmax.f32 %v2583_v54, %v2633_v13  ;;  %v9427_v2 = vld [vmem:[%s11714_s7 + $0x10] sm:$0xff] }
 0x3ed   : > { %v9435_v13 = vld [vmem:[%s11714_s7 + $0x50] sm:$0xff] }
 0x3ee   : > { %v9879_v18 = vpack.i.bf16 %v2636_v15, %v2635_v14 }
 0x3f8   : > { %v2591_v6 = vpop.permute.xlu1 %2590 }
 0x3f9   : > { %v2599_v8 = vsel %vm11742_vm12, %v2591_v6, %v2593_v1  ;;  %v2607_v9 = vsel %vm11742_vm12, %v2593_v1, %v2591_v6  ;;  %v9439_v1 = vld [vmem:[%s11714_s7 + $0x70] sm:$0xff]  ;;  %v9437_v6 = vld [vmem:[%s11714_s7 + $0x60] sm:$0xff] }
 0x3fa   : > { %v2609_v10 = vadd.f32 %v2599_v8, %v2578_v39  ;;  %v2610_v11 = vadd.f32 %v2607_v9, %v2579_v52  ;;  %v9428_v8 = vld [vmem:[%s11714_s7 + $0x18] sm:$0xff] }
 0x3fb   : > { %v9436_v9 = vld [vmem:[%s11714_s7 + $0x58] sm:$0xff] }
 0x3fc   : > { %2645 = vrot.lane.b32.xlu2 %v2610_v11, %s11717_s19  ;;  %2643 = vrot.lane.b32.xlu1 %v2609_v10, %s11717_s19 }
 0x400   : > { %v2597_v7 = vpop.permute.xlu1 %2596 }
 0x401   : > { %v2595_v12 = vpop.permute.xlu0 %2594 }
 0x402   : > { %v2600_v17 = vsel %vm11742_vm12, %v2595_v12, %v2597_v7  ;;  %v2608_v28 = vsel %vm11742_vm12, %v2597_v7, %v2595_v12  ;;  %v9426_v7 = vld [vmem:[%s11714_s7 + $0x8] sm:$0xff] }
 0x403   : > { %v2611_v20 = vadd.f32 %v2600_v17, %v2580_v50  ;;  %v2612_v21 = vadd.f32 %v2608_v28, %v2581_v19  ;;  %v9434_v12 = vld [vmem:[%s11714_s7 + $0x48] sm:$0xff] }
 0x404   : > { %9880 = vrot.lane.b32.xlu2 %v9879_v18, %s11717_s19  ;;  %v9446_v17 = vld [vmem:[%s11714_s7 + $0xa8] sm:$0xff]  ;;  %v9425_v18 = vld [vmem:[%s11714_s7] sm:$0xff] }
 0x405   : > { %2649 = vrot.lane.b32.xlu1 %v2612_v21, %s11717_s19  ;;  %2647 = vrot.lane.b32.xlu0 %v2611_v20, %s11717_s19  ;;  %v9454_v28 = vld [vmem:[%s11714_s7 + $0xe8] sm:$0xff] }
 0x409   : > { %v9876_v22 = vpop.permute.xlu0 %9875 }
 0x40a   : > { %v9878_v23 = vunpack.i.h.bf16 %v9876_v22  ;;  %v9877_v60 = vunpack.i.l.bf16 %v9876_v22  ;;  %v9453_v22 = vld [vmem:[%s11714_s7 + $0xe0] sm:$0xff] }
 0x40c   : > { %v2626_v37 = vsel %vm11742_vm12, %v9877_v60, %v9878_v23  ;;  %v2634_v51 = vsel %vm11742_vm12, %v9878_v23, %v9877_v60  ;;  %v9444_v23 = vld [vmem:[%s11714_s7 + $0x98] sm:$0xff]  ;;  %vm11743_vm12 = vcmask 752640  }
 0x40d   : > { %v2637_v24 = vmax.f32 %v2584_v57, %v2626_v37  ;;  %v2638_v25 = vmax.f32 %v2585_v62, %v2634_v51  ;;  %v9432_v57 = vld [vmem:[%s11714_s7 + $0x38] sm:$0xff]  ;;  %v9443_v37 = vld [vmem:[%s11714_s7 + $0x90] sm:$0xff] }
 0x40e   : > { %v9440_v62 = vld [vmem:[%s11714_s7 + $0x78] sm:$0xff]  ;;  %3005 = vmatpush.bf16.msrb.mxu3 %v9432_v57  ;;  %v9451_v51 = vld [vmem:[%s11714_s7 + $0xd0] sm:$0xff] }
 0x40f   : > { %v9884_v26 = vpack.i.bf16 %v2638_v25, %v2637_v24  ;;  %3019 = vmatpush.bf16.msrb.mxu0 %v9440_v62  ;;  %v9452_v60 = vld [vmem:[%s11714_s7 + $0xd8] sm:$0xff] }
 0x411   : > { %9885 = vrot.lane.b32.xlu0 %v9884_v26, %s11717_s19  ;;  %v9441_v26 = vld [vmem:[%s11714_s7 + $0x80] sm:$0xff]  ;;  %s11726_s19 = smov 4  }
 0x412   : > { %3006 = vmatpush.bf16.msrb.mxu3 %v9431_v63 }
 0x413   : > { %3020 = vmatpush.bf16.msrb.mxu0 %v9439_v1 }
 0x416   : > { %3007 = vmatpush.bf16.msrb.mxu3 %v9430_v4 }
 0x417   : > { %3021 = vmatpush.bf16.msrb.mxu0 %v9438_v5 }
 0x41a   : > { %3008 = vmatpush.bf16.msrb.mxu3 %v9429_v3 }
 0x41b   : > { %3022 = vmatpush.bf16.msrb.mxu0 %v9437_v6 }
 0x41e   : > { %3009 = vmatpush.bf16.msrb.mxu3 %v9428_v8 }
 0x41f   : > { %3023 = vmatpush.bf16.msrb.mxu0 %v9436_v9 }
 0x422   : > { %3010 = vmatpush.bf16.msrb.mxu3 %v9427_v2 }
 0x423   : > { %3024 = vmatpush.bf16.msrb.mxu0 %v9435_v13 }
 0x426   : > { %3011 = vmatpush.bf16.msrb.mxu3 %v9426_v7 }
 0x427   : > { %3025 = vmatpush.bf16.msrb.mxu0 %v9434_v12 }
 0x42a   : > { %3012 = vmatpush.bf16.msrb.mxu3 %v9425_v18  ;;  %v8034_v18 = vld [vmem:[%s10364_s23 + $0x38] sm:$0xff] }
 0x456   : > { %v2646_v29 = vpop.permute.xlu2 %2645 }
 0x45e   : > { %v9881_v44 = vpop.permute.xlu2 %9880 }
 0x45f   : > { %v9883_v31 = vunpack.i.h.bf16 %v9881_v44  ;;  %v9882_v32 = vunpack.i.l.bf16 %v9881_v44 }
 0x461   : > { %v2678_v42 = vsel %vm11739_vm13, %v9882_v32, %v9883_v31  ;;  %v2686_v43 = vsel %vm11739_vm13, %v9883_v31, %v9882_v32 }
 0x462   : > { %v10584_v45 = vmax.f32 %v2635_v14, %v2678_v42  ;;  %v10586_v27 = vmax.f32 %v2636_v15, %v2686_v43  ;;  %v9447_v14 = vld [vmem:[%s11714_s7 + $0xb0] sm:$0xff] }
 0x463   : > { %v9455_v15 = vld [vmem:[%s11714_s7 + $0xf0] sm:$0xff] }
 0x464   : > { %v9889_v39 = vpack.i.bf16 %v10586_v27, %v10584_v45 }
 0x46e   : > { %v2644_v33 = vpop.permute.xlu1 %2643 }
 0x46f   : > { %v2652_v34 = vsel %vm11739_vm13, %v2644_v33, %v2646_v29  ;;  %v2660_v35 = vsel %vm11739_vm13, %v2646_v29, %v2644_v33  ;;  %v9449_v29 = vld [vmem:[%s11714_s7 + $0xc0] sm:$0xff] }
 0x470   : > { %v10574_v36 = vadd.f32 %v2652_v34, %v2609_v10  ;;  %v10576_v40 = vadd.f32 %v2660_v35, %v2610_v11  ;;  %v9448_v10 = vld [vmem:[%s11714_s7 + $0xb8] sm:$0xff] }
 0x471   : > { %v9456_v11 = vld [vmem:[%s11714_s7 + $0xf8] sm:$0xff]  ;;  %3033 = vmatpush.bf16.msrb.mxu1 %v9448_v10 }
 0x472   : > { %2698 = vrot.lane.b32.xlu2 %v10576_v40, %s11719_s15  ;;  %2696 = vrot.lane.b32.xlu1 %v10574_v36, %s11719_s15 }
 0x473   : > { %3047 = vmatpush.bf16.msrb.mxu2 %v9456_v11 }
 0x475   : > { %3034 = vmatpush.bf16.msrb.mxu1 %v9447_v14 }
 0x477   : > { %v2650_v41 = vpop.permute.xlu1 %2649  ;;  %v2648_v47 = vpop.permute.xlu0 %2647  ;;  %3048 = vmatpush.bf16.msrb.mxu2 %v9455_v15 }
 0x478   : > { %v2653_v48 = vsel %vm11739_vm13, %v2648_v47, %v2650_v41  ;;  %v2661_v49 = vsel %vm11739_vm13, %v2650_v41, %v2648_v47 }
 0x479   : > { %v10592_v52 = vadd.f32 %v2653_v48, %v2611_v20  ;;  %v10594_v53 = vadd.f32 %v2661_v49, %v2612_v21  ;;  %v9433_v20 = vld [vmem:[%s11714_s7 + $0x40] sm:$0xff]  ;;  %3035 = vmatpush.bf16.msrb.mxu1 %v9446_v17  ;;  %v8032_v17 = vld [vmem:[%s10364_s23 + $0x28] sm:$0xff] }
 0x47a   : > { %9890 = vrot.lane.b32.xlu2 %v9889_v39, %s11719_s15  ;;  %v9445_v21 = vld [vmem:[%s11714_s7 + $0xa0] sm:$0xff]  ;;  %3026 = vmatpush.bf16.msrb.mxu0 %v9433_v20  ;;  %v3601_v20 = vrot.slane %v8034_v18, 7 }
 0x47b   : > { %2702 = vrot.lane.b32.xlu1 %v10594_v53, %s11719_s15  ;;  %2700 = vrot.lane.b32.xlu0 %v10592_v52, %s11719_s15 }
 0x47c   : > { %3049 = vmatpush.bf16.msrb.mxu2 %v9454_v28  ;;  %v3598_v28 = vrot.slane %v8032_v17, 7 }
 0x47d   : > { %3036 = vmatpush.bf16.msrb.mxu1 %v9445_v21 }
 0x47e   : > { %v3602_v21 = vsel %vm414_vm1, %v3598_v28, %v3601_v20 }
 0x480   : > { %3050 = vmatpush.bf16.msrb.mxu2 %v9453_v22 }
 0x481   : > { %3037 = vmatpush.bf16.msrb.mxu1 %v9444_v23 }
 0x483   : > { %v9886_v54 = vpop.permute.xlu0 %9885 }
 0x484   : > { %v9888_v56 = vunpack.i.h.bf16 %v9886_v54  ;;  %v9887_v58 = vunpack.i.l.bf16 %v9886_v54  ;;  %3051 = vmatpush.bf16.msrb.mxu2 %v9452_v60 }
 0x485   : > { %3038 = vmatpush.bf16.msrb.mxu1 %v9443_v37  ;;  %v7931_v37 = vld [vmem:[%s11715_s8 + $0x70] sm:$0xf] }
 0x486   : > { %v2679_v59 = vsel %vm11739_vm13, %v9887_v58, %v9888_v56  ;;  %v2687_v55 = vsel %vm11739_vm13, %v9888_v56, %v9887_v58  ;;  %vm11747_vm13 = vcmask 64512  }
 0x487   : > { %v10603_v50 = vmax.f32 %v2637_v24, %v2679_v59  ;;  %v10605_v19 = vmax.f32 %v2638_v25, %v2687_v55  ;;  %v9442_v24 = vld [vmem:[%s11714_s7 + $0x88] sm:$0xff] }
 0x488   : > { %3052 = vmatpush.bf16.msrb.mxu2 %v9451_v51  ;;  %v9450_v25 = vld [vmem:[%s11714_s7 + $0xc8] sm:$0xff]  ;;  %v9472_v51 = vld [vmem:[%s11715_s8 + $0x74] sm:$0xf0] }
 0x489   : > { %v9894_v61 = vpack.i.bf16 %v10605_v19, %v10603_v50  ;;  %3039 = vmatpush.bf16.msrb.mxu1 %v9442_v24  ;;  %v7932_v24 = vor.u32 %v9472_v51, %v7931_v37  ;;  %v9464_v37 = vld [vmem:[%s11715_s8 + $0x34] sm:$0xf0]  ;;  %v8011_v51 = vld [vmem:[%s11715_s8 + $0x110] sm:$0xf] }
 0x48b   : > { %9895 = vrot.lane.b32.xlu0 %v9894_v61, %s11719_s15  ;;  %3412 = vmatpush.bf16.msra.mxu3 %v7932_v24  ;;  %s11724_s15 = smov 48   ;;  %v9492_v24 = vld [vmem:[%s11715_s8 + $0x114] sm:$0xf0] }
 0x48c   : > { %3053 = vmatpush.bf16.msrb.mxu2 %v9450_v25  ;;  %v7923_v25 = vld [vmem:[%s11715_s8 + $0x60] sm:$0xf] }
 0x48d   : > { %3040 = vmatpush.bf16.msrb.mxu1 %v9441_v26  ;;  %v9470_v26 = vld [vmem:[%s11715_s8 + $0x64] sm:$0xf0] }
 0x490   : > { %3054 = vmatpush.bf16.msrb.mxu2 %v9449_v29  ;;  %v7924_v29 = vor.u32 %v9470_v26, %v7923_v25  ;;  %v8012_v26 = vor.u32 %v9492_v24, %v8011_v51  ;;  %v8021_v51 = vld [vmem:[%s11715_s8 + $0x128] sm:$0xf0]  ;;  %v7939_v24 = vld [vmem:[%s11715_s8 + $0x80] sm:$0xf] }
 0x492   : > { %3413 = vmatpush.bf16.msra.mxu3 %v7924_v29  ;;  %v9467_v29 = vld [vmem:[%s11715_s8 + $0x54] sm:$0xf] }
 0x4cc   : > { %v2699_v31 = vpop.permute.xlu2 %2698 }
 0x4d4   : > { %v9891_v56 = vpop.permute.xlu2 %9890 }
 0x4d5   : > { %v9893_v58 = vunpack.i.h.bf16 %v9891_v56  ;;  %v9892_v59 = vunpack.i.l.bf16 %v9891_v56 }
 0x4d7   : > { %v2731_v61 = vsel %vm11723_vm14, %v9892_v59, %v9893_v58  ;;  %v2739_v57 = vsel %vm11723_vm14, %v9893_v58, %v9892_v59 }
 0x4d8   : > { %v2742_v63 = vmax.f32 %v10586_v27, %v2739_v57  ;;  %v8031_v57 = vld [vmem:[%s10364_s23 + $0x20] sm:$0xff] }
 0x4e4   : > { %v2697_v44 = vpop.permute.xlu1 %2696 }
 0x4e5   : > { %v2705_v32 = vsel %vm11723_vm14, %v2697_v44, %v2699_v31  ;;  %v2713_v33 = vsel %vm11723_vm14, %v2699_v31, %v2697_v44 }
 0x4e6   : > { %v2715_v41 = vadd.f32 %v2705_v32, %v10574_v36  ;;  %v2716_v47 = vadd.f32 %v2713_v33, %v10576_v40 }
 0x4ed   : > { %v2703_v34 = vpop.permute.xlu1 %2702  ;;  %v2701_v35 = vpop.permute.xlu0 %2700 }
 0x4ee   : > { %v2706_v42 = vsel %vm11723_vm14, %v2701_v35, %v2703_v34  ;;  %v2714_v43 = vsel %vm11723_vm14, %v2703_v34, %v2701_v35 }
 0x4ef   : > { %v2717_v48 = vadd.f32 %v2706_v42, %v10592_v52  ;;  %v2718_v49 = vadd.f32 %v2714_v43, %v10594_v53  ;;  %v2741_v53 = vmax.f32 %v10584_v45, %v2731_v61  ;;  %v8033_v61 = vld [vmem:[%s10364_s23 + $0x30] sm:$0xff] }
 0x4f1   : > { %v2745_v39 = vpack.c.bf16 %v2717_v48, %v2715_v41  ;;  %v2746_v54 = vpack.c.bf16 %v2718_v49, %v2716_v47 }
 0x4f3   : > { %3013 = vmatmul.bf16.vlgmr.msrb.gmra.mxu3 %v2745_v39  ;;  %3027 = vmatmul.bf16.vlgmr.msrb.gmra.mxu0 %v2746_v54 }
 0x4fd   : > { %v9896_v55 = vpop.permute.xlu0 %9895 }
 0x4fe   : > { %v9898_v62 = vunpack.i.h.bf16 %v9896_v55  ;;  %v9897_v36 = vunpack.i.l.bf16 %v9896_v55 }
 0x500   : > { %v2732_v40 = vsel %vm11723_vm14, %v9897_v36, %v9898_v62  ;;  %v2740_v52 = vsel %vm11723_vm14, %v9898_v62, %v9897_v36  ;;  %vm11734_vm14 = vcmask 335048   ;;  %v3599_v36 = vrot.slane %v8033_v61, 7 }
 0x501   : > { %v2743_v1 = vmax.f32 %v10603_v50, %v2732_v40  ;;  %v2744_v4 = vmax.f32 %v10605_v19, %v2740_v52  ;;  %v3597_v40 = vrot.slane %v8031_v57, 7  ;;  %v9480_v57 = vld [vmem:[%s11715_s8 + $0xb4] sm:$0xf0] }
 0x503   : > { %v2747_v5 = vpack.c.bf16 %v2743_v1, %v2741_v53  ;;  %v2748_v3 = vpack.c.bf16 %v2744_v4, %v2742_v63  ;;  %v3600_v52 = vsel %vm414_vm1, %v3597_v40, %v3599_v36  ;;  %v7995_v53 = vld [vmem:[%s11715_s8 + $0xf0] sm:$0xf]  ;;  %v9488_v63 = vld [vmem:[%s11715_s8 + $0xf4] sm:$0xf0] }
 0x504   : > { %v7915_v1 = vld [vmem:[%s11715_s8 + $0x50] sm:$0xf]  ;;  %v7996_v4 = vor.u32 %v9488_v63, %v7995_v53  ;;  %v9463_v63 = vld [vmem:[%s11715_s8 + $0x34] sm:$0xf] }
 0x505   : > { %3041 = vmatmul.bf16.vlgmr.msrb.gmra.mxu1 %v2747_v5  ;;  %3055 = vmatmul.bf16.vlgmr.msrb.gmra.mxu2 %v2748_v3  ;;  %v9468_v5 = vld [vmem:[%s11715_s8 + $0x54] sm:$0xf0]  ;;  %v10780_v3 = vld [vmem:[%s11715_s8 + $0x130] sm:$0x33] }
 0x506   : > { %3426 = vmatpush.bf16.msra.mxu0 %v7996_v4  ;;  %v9485_v4 = vld [vmem:[%s11715_s8 + $0xe4] sm:$0xf] }
 0x570   : > { %v3028_v27 = vpop.f32.mrf.mxu0 }
 0x576   : > { %v3014_v45 = vpop.f32.mrf.mxu3 }
 0x577   : > { %v3029_v50 = vadd.f32 %v3028_v27, %v3014_v45  ;;  %v7916_v45 = vor.u32 %v9468_v5, %v7915_v1  ;;  %v3321_v27 = vunpack.c.l.b16 %v10780_v3  ;;  %v7901_v1 = vld [vmem:[%s11715_s8 + $0x38] sm:$0xf0] }
 0x578   : > { %v3030_v2 = vpop.f32.mrf.mxu0  ;;  %v7904_v5 = vor.u32 %v9463_v63, %v7901_v1  ;;  %v8005_v63 = vld [vmem:[%s11715_s8 + $0x108] sm:$0xf0]  ;;  %v8165_v1 = vld [vmem:[#allocation7 + $0x220] sm:$0xf] }
 0x579   : > { %3414 = vmatpush.bf16.msra.mxu3 %v7916_v45  ;;  %v7955_v45 = vld [vmem:[%s11715_s8 + $0xa0] sm:$0xf] }
 0x57e   : > { %v3016_v10 = vpop.f32.mrf.mxu3 }
 0x57f   : > { %v3031_v14 = vadd.f32 %v3030_v2, %v3016_v10  ;;  %v7907_v10 = vld [vmem:[%s11715_s8 + $0x40] sm:$0xf]  ;;  %v3361_v2 = vpack.c.b16 %v3321_v27, %v3321_v27 }
 0x582   : > { %v3042_v6 = vpop.f32.mrf.mxu1 }
 0x583   : > { %v3043_v8 = vadd.f32 %v3042_v6, %v3029_v50  ;;  %v9471_v6 = vld [vmem:[%s11715_s8 + $0x74] sm:$0xf]  ;;  %v7933_v50 = vld [vmem:[%s11715_s8 + $0x78] sm:$0xf0] }
 0x588   : > { %v3056_v19 = vpop.f32.mrf.mxu2 }
 0x589   : > { %v3057_v9 = vadd.f32 %v3056_v19, %v3043_v8  ;;  %v7987_v8 = vld [vmem:[%s11715_s8 + $0xe0] sm:$0xf]  ;;  %v7936_v19 = vor.u32 %v9471_v6, %v7933_v50  ;;  %v9478_v6 = vld [vmem:[%s11715_s8 + $0xa4] sm:$0xf0] }
 0x58a   : > { %v3044_v13 = vpop.f32.mrf.mxu1  ;;  %v7875_v50 = vld [vmem:[%s11715_s8] sm:$0xf] }
 0x58b   : > { %v3061_v11 = vmul.f32 0.0625, %v3057_v9  ;;  %3076 = vrot.lane.b32.xlu0 %v3057_v9, %s11732_s25  ;;  %v3045_v0 = vadd.f32 %v3044_v13, %v3031_v14  ;;  %v9486_v9 = vld [vmem:[%s11715_s8 + $0xe4] sm:$0xf0]  ;;  %3454 = vmatpush.bf16.msra.mxu2 %v7936_v19  ;;  %v7956_v19 = vor.u32 %v9478_v6, %v7955_v45  ;;  %v9542_v6 = vld [vmem:[#allocation7 + $0x174] sm:$0xf0] }
 0x58c   : > { %v7988_v13 = vor.u32 %v9486_v9, %v7987_v8  ;;  %v9458_v8 = vld [vmem:[%s11715_s8 + $0x4] sm:$0xf0]  ;;  %v9461_v9 = vld [vmem:[%s11715_s8 + $0x24] sm:$0xf] }
 0x58d   : > { %3065 = vrot.lane.b32.xlu1 %v3061_v11, %s11730_s26  ;;  %v9466_v11 = vld [vmem:[%s11715_s8 + $0x44] sm:$0xf0] }
 0x58e   : > { %v7908_v14 = vor.u32 %v9466_v11, %v7907_v10  ;;  %3427 = vmatpush.bf16.msra.mxu0 %v7988_v13  ;;  %v7893_v10 = vld [vmem:[%s11715_s8 + $0x28] sm:$0xf0]  ;;  %v9483_v11 = vld [vmem:[%s11715_s8 + $0xd4] sm:$0xf]  ;;  %v7876_v13 = vor.u32 %v9458_v8, %v7875_v50 }
 0x58f   : > { %v9475_v8 = vld [vmem:[%s11715_s8 + $0x94] sm:$0xf] }
 0x590   : > { %v3058_v15 = vpop.f32.mrf.mxu2  ;;  %3415 = vmatpush.bf16.msra.mxu3 %v7908_v14  ;;  %v7981_v14 = vld [vmem:[%s11715_s8 + $0xd8] sm:$0xf0] }
 0x591   : > { %v3059_v7 = vadd.f32 %v3058_v15, %v3045_v0  ;;  %v8019_v0 = vld [vmem:[%s11715_s8 + $0x120] sm:$0xf]  ;;  %v9494_v15 = vld [vmem:[%s11715_s8 + $0x124] sm:$0xf0] }
 0x592   : > { %v8020_v18 = vor.u32 %v9494_v15, %v8019_v0  ;;  %v7947_v0 = vld [vmem:[%s11715_s8 + $0x90] sm:$0xf] }
 0x593   : > { %v3062_v12 = vmul.f32 0.0625, %v3059_v7  ;;  %3613 = vrot.lane.b32.xlu0 %v3601_v20, %s10198_s1 }
 0x595   : > { %3067 = vrot.lane.b32.xlu2 %v3062_v12, %s11730_s26  ;;  %3078 = vrot.lane.b32.xlu1 %v3059_v7, %s11732_s25  ;;  %v9469_v7 = vld [vmem:[%s11715_s8 + $0x64] sm:$0xf]  ;;  %v7925_v12 = vld [vmem:[%s11715_s8 + $0x68] sm:$0xf0]  ;;  %s11106_s25 = scalar_lea.vmem [#allocation10], %s6865_s4  ;;  %s11787_s4 = smov 3  }
 0x596   : > { %s11792_s26 = smov 8  }
 0x59d   : > { %3605 = vrot.lane.b32.xlu1 %v3598_v28, %s10198_s1  ;;  %3609 = vrot.lane.b32.xlu2 %v3602_v21, %s10198_s1  ;;  %v7928_v28 = vor.u32 %v9469_v7, %v7925_v12  ;;  %v7979_v21 = vld [vmem:[%s11715_s8 + $0xd0] sm:$0xf]  ;;  %v7896_v7 = vor.u32 %v9461_v9, %v7893_v10  ;;  %v7984_v12 = vor.u32 %v9483_v11, %v7981_v14  ;;  %v8069_v10 = vld [vmem:[#allocation7 + $0x160] sm:$0xf]  ;;  %v9540_v11 = vld [vmem:[#allocation7 + $0x164] sm:$0xf0] }
 0x59e   : > { %v7941_v14 = vld [vmem:[%s11715_s8 + $0x88] sm:$0xf0] }
 0x59f   : > { %3455 = vmatpush.bf16.msra.mxu2 %v7928_v28  ;;  %v9459_v28 = vld [vmem:[%s11715_s8 + $0x14] sm:$0xf] }
 0x5ef   : > { %v3068_v22 = vpop.permute.xlu2 %3067 }
 0x5f0   : > { %3073 = vst.msk [vmem:[#allocation3 + $0xb] sm:$0xff] %vm11738_vm0, %v3068_v22  ;;  %v9484_v22 = vld [vmem:[%s11715_s8 + $0xd4] sm:$0xf0] }
 0x5f7   : > { %v10814_v20 = vpop.permute.xlu2 %3609 }
 0x5f8   : > { %3632 = vst.msk [vmem:[#allocation2 + $0x28] sm:$0xff] %vm433_vm6, %v10814_v20 }
 0x5fd   : > { %v3077_v60 = vpop.permute.xlu0 %3076 }
 0x5ff   : > { %v3066_v23 = vpop.permute.xlu1 %3065 }
 0x600   : > { %3072 = vst.msk [vmem:[#allocation3 + $0x3] sm:$0xff] %vm11738_vm0, %v3066_v23  ;;  %v7899_v23 = vld [vmem:[%s11715_s8 + $0x30] sm:$0xf]  ;;  %vm11745_vm0 = vcmask 31744  }
 0x601   : > { %3083 = vst.msk [vmem:[#allocation3 + $0x3] sm:$0xff] %vm11734_vm14, %v3077_v60  ;;  %v7980_v60 = vor.u32 %v9484_v22, %v7979_v21  ;;  %v7900_v25 = vor.u32 %v9464_v37, %v7899_v23  ;;  %v9481_v21 = vld [vmem:[%s11715_s8 + $0xc4] sm:$0xf]  ;;  %v7973_v22 = vld [vmem:[%s11715_s8 + $0xc8] sm:$0xf0] }
 0x602   : > { %v9493_v37 = vld [vmem:[%s11715_s8 + $0x124] sm:$0xf] }
 0x603   : > { %3428 = vmatpush.bf16.msra.mxu0 %v7980_v60  ;;  %3416 = vmatpush.bf16.msra.mxu3 %v7900_v25  ;;  %v9474_v25 = vld [vmem:[%s11715_s8 + $0x84] sm:$0xf0] }
 0x605   : > { %v10928_v15 = vpop.permute.xlu0 %3613 }
 0x606   : > { %3635 = vst.msk [vmem:[#allocation2 + $0x40] sm:$0x1] %vm458_vm5, %v10928_v15 }
 0x607   : > { %v3079_v44 = vpop.permute.xlu1 %3078 }
 0x608   : > { %3084 = vst.msk [vmem:[#allocation3 + $0xb] sm:$0xff] %vm11734_vm14, %v3079_v44  ;;  %v3091_v31 = vld [vmem:[#allocation3 + $0x3] sm:$0xff]  ;;  %vm11737_vm14 = vcmask 1041408   ;;  %v7917_v44 = vld [vmem:[%s11715_s8 + $0x58] sm:$0xf0] }
 0x609   : > { %v3089_v32 = vld [vmem:[#allocation3 + $0x2] sm:$0xff]  ;;  %v3407_v17 = vsel %vm11737_vm14, %v3361_v2, 0 }
 0x60a   : > { %v3087_v33 = vld [vmem:[#allocation3 + $0x1] sm:$0xff]  ;;  %3444 = vmatpush.bf16.msra.mxu1 %v3407_v17  ;;  %v9476_v17 = vld [vmem:[%s11715_s8 + $0x94] sm:$0xf0] }
 0x60b   : > { %v7948_v60 = vor.u32 %v9476_v17, %v7947_v0  ;;  %v9538_v17 = vld [vmem:[#allocation7 + $0x154] sm:$0xf0] }
 0x60e   : > { %3445 = vmatpush.bf16.msra.mxu1 %v8020_v18  ;;  %v7885_v18 = vld [vmem:[%s11715_s8 + $0x18] sm:$0xf0] }
 0x60f   : > { %v3092_v34 = vld [vmem:[#allocation3 + $0xb] sm:$0xff] }
 0x610   : > { %v3090_v35 = vld [vmem:[#allocation3 + $0xa] sm:$0xff]  ;;  %v9909_v43 = vpack.i.bf16 %v3092_v34, %v3091_v31  ;;  %v7971_v31 = vld [vmem:[%s11715_s8 + $0xc0] sm:$0xf] }
 0x611   : > { %v3088_v42 = vld [vmem:[#allocation3 + $0x9] sm:$0xff]  ;;  %v9904_v41 = vpack.i.bf16 %v3090_v35, %v3089_v32  ;;  %v7920_v32 = vor.u32 %v9467_v29, %v7917_v44  ;;  %v7891_v34 = vld [vmem:[%s11715_s8 + $0x20] sm:$0xf]  ;;  %v9462_v35 = vld [vmem:[%s11715_s8 + $0x24] sm:$0xf0]  ;;  %v7976_v29 = vor.u32 %v9481_v21, %v7973_v22 }
 0x612   : > { %v9899_v47 = vpack.i.bf16 %v3088_v42, %v3087_v33  ;;  %9910 = vrot.lane.b32.xlu1 %v9909_v43, %s11726_s19  ;;  %v3093_v48 = vld [vmem:[#allocation3 + $0x4] sm:$0xff]  ;;  %v3094_v49 = vld [vmem:[#allocation3 + $0xc] sm:$0xff]  ;;  %v9482_v33 = vld [vmem:[%s11715_s8 + $0xc4] sm:$0xf0]  ;;  %3446 = vmatpush.bf16.msra.mxu1 %v8012_v26  ;;  %v7892_v43 = vor.u32 %v9462_v35, %v7891_v34  ;;  %v7888_v26 = vor.u32 %v9459_v28, %v7885_v18  ;;  %s9782_s19 = sshll.u32 %s10283_s13, 6  ;;  %s6747_s13 = scalar_lea.sflag [#allocation6], %s10358_s24 }
 0x613   : > { %9905 = vrot.lane.b32.xlu0 %v9904_v41, %s11725_s27  ;;  %v3097_v39 = vld [vmem:[#allocation3 + $0x6] sm:$0xff]  ;;  %v3098_v54 = vld [vmem:[#allocation3 + $0xe] sm:$0xff]  ;;  %v9924_v59 = vpack.i.bf16 %v3094_v49, %v3093_v48  ;;  %v7972_v42 = vor.u32 %v9482_v33, %v7971_v31  ;;  %v8003_v41 = vld [vmem:[%s11715_s8 + $0x100] sm:$0xf]  ;;  %3456 = vmatpush.bf16.msra.mxu2 %v7920_v32  ;;  %v8024_v32 = vor.u32 %v9493_v37, %v8021_v51  ;;  %s11796_s27 = smov 88  }
 0x614   : > { %9900 = vrot.lane.b32.xlu2 %v9899_v47, %s11727_s28  ;;  %v3095_v56 = vld [vmem:[#allocation3 + $0x5] sm:$0xff]  ;;  %v3096_v58 = vld [vmem:[#allocation3 + $0xd] sm:$0xff]  ;;  %v9919_v55 = vpack.i.bf16 %v3098_v54, %v3097_v39  ;;  %v9490_v47 = vld [vmem:[%s11715_s8 + $0x104] sm:$0xf0]  ;;  %3417 = vmatpush.bf16.msra.mxu3 %v7892_v43  ;;  %v7940_v35 = vor.u32 %v9474_v25, %v7939_v24  ;;  %s11758_s28 = smov 127  }
 0x615   : > { %v9914_v62 = vpack.i.bf16 %v3096_v58, %v3095_v56  ;;  %v9465_v48 = vld [vmem:[%s11715_s8 + $0x44] sm:$0xf]  ;;  %v8004_v49 = vor.u32 %v9490_v47, %v8003_v41  ;;  %v7909_v39 = vld [vmem:[%s11715_s8 + $0x48] sm:$0xf0]  ;;  %v9487_v56 = vld [vmem:[%s11715_s8 + $0xf4] sm:$0xf]  ;;  %3429 = vmatpush.bf16.msra.mxu0 %v7972_v42 }
 0x616   : > { %v7912_v54 = vor.u32 %v9465_v48, %v7909_v39  ;;  %v7997_v58 = vld [vmem:[%s11715_s8 + $0xf8] sm:$0xf0]  ;;  %v8093_v44 = vld [vmem:[#allocation7 + $0x190] sm:$0xf]  ;;  %v9546_v31 = vld [vmem:[#allocation7 + $0x194] sm:$0xf0] }
 0x617   : > { %v8000_v61 = vor.u32 %v9487_v56, %v7997_v58  ;;  %3447 = vmatpush.bf16.msra.mxu1 %v8004_v49  ;;  %v9457_v33 = vld [vmem:[%s11715_s8 + $0x4] sm:$0xf]  ;;  %v7877_v34 = vld [vmem:[%s11715_s8 + $0x8] sm:$0xf0]  ;;  %v8094_v42 = vor.u32 %v9546_v31, %v8093_v44  ;;  %v9479_v41 = vld [vmem:[%s11715_s8 + $0xb4] sm:$0xf] }
 0x618   : > { %3457 = vmatpush.bf16.msra.mxu2 %v7912_v54  ;;  %v7880_v43 = vor.u32 %v9457_v33, %v7877_v34  ;;  %v7965_v47 = vld [vmem:[%s11715_s8 + $0xb8] sm:$0xf0]  ;;  %v9491_v49 = vld [vmem:[%s11715_s8 + $0x114] sm:$0xf]  ;;  %v8173_v54 = vld [vmem:[#allocation7 + $0x230] sm:$0xf] }
 0x619   : > { %v7968_v48 = vor.u32 %v9479_v41, %v7965_v47  ;;  %v8013_v39 = vld [vmem:[%s11715_s8 + $0x118] sm:$0xf0]  ;;  %v9566_v58 = vld [vmem:[#allocation7 + $0x234] sm:$0xf0]  ;;  %v8053_v18 = vld [vmem:[#allocation7 + $0x140] sm:$0xf] }
 0x61a   : > { %9925 = vrot.lane.b32.xlu1 %v9924_v59, %s11724_s15  ;;  %v7963_v59 = vld [vmem:[%s11715_s8 + $0xb0] sm:$0xf]  ;;  %v8016_v56 = vor.u32 %v9491_v49, %v8013_v39  ;;  %v9536_v21 = vld [vmem:[#allocation7 + $0x144] sm:$0xf0]  ;;  %v9534_v37 = vld [vmem:[#allocation7 + $0x134] sm:$0xf0] }
 0x61b   : > { %9920 = vrot.lane.b32.xlu0 %v9919_v55, %s11729_s20  ;;  %v10875_v55 = vpop.permute.xlu1 %3605  ;;  %3468 = vmatpush.bf16.msrb.mxu1 %v8000_v61  ;;  %v9544_v61 = vld [vmem:[#allocation7 + $0x184] sm:$0xf0]  ;;  %v8054_v22 = vor.u32 %v9536_v21, %v8053_v18  ;;  %v8037_v25 = vld [vmem:[#allocation7 + $0x120] sm:$0xf]  ;;  %v3086_v41 = vld [vmem:[#allocation3 + $0x8] sm:$0xff]  ;;  %s11762_s20 = smov 124  }
 0x61c   : > { %9915 = vrot.lane.b32.xlu2 %v9914_v62, %s11728_s29  ;;  %v7883_v62 = vld [vmem:[%s11715_s8 + $0x10] sm:$0xf]  ;;  %3629 = vst.msk [vmem:[#allocation2 + $0x10] sm:$0xfe] %vm449_vm7, %v10875_v55  ;;  %3458 = vmatpush.bf16.msra.mxu2 %v7904_v5  ;;  %v9532_v44 = vld [vmem:[#allocation7 + $0x124] sm:$0xf0] }
 0x61d   : > { %v3085_v31 = vld [vmem:[#allocation3] sm:$0xff]  ;;  %v8038_v33 = vor.u32 %v9532_v44, %v8037_v25  ;;  %v8133_v44 = vld [vmem:[#allocation7 + $0x1e0] sm:$0xf]  ;;  %s11793_s29 = smov 92   ;;  %s11797_s15 = smov 48  }
 0x61e   : > { %v11011_v49 = vld [vmem:[#allocation2 + $0x28] sm:$0xff] }
 0x620   : > { %3459 = vmatpush.bf16.msra.mxu2 %v7896_v7 }
 0x622   : > { %3611 = vrot.lane.b32.xlu1 %v3599_v36, %s10198_s1  ;;  %v9460_v36 = vld [vmem:[%s11715_s8 + $0x14] sm:$0xf0] }
 0x623   : > { %3607 = vrot.lane.b32.xlu0 %v3600_v52, %s10198_s1  ;;  %v7964_v52 = vor.u32 %v9480_v57, %v7963_v59  ;;  %v7884_v53 = vor.u32 %v9460_v36, %v7883_v62  ;;  %v8085_v59 = vld [vmem:[#allocation7 + $0x180] sm:$0xf]  ;;  %v8174_v57 = vor.u32 %v9566_v58, %v8173_v54  ;;  %v9477_v36 = vld [vmem:[%s11715_s8 + $0xa4] sm:$0xf]  ;;  %v3683_v39 = vld [vmem:[#allocation2 + $0x10] sm:$0xfe] }
 0x624   : > { %3603 = vrot.lane.b32.xlu2 %v3597_v40, %s10198_s1  ;;  %v3322_v40 = vunpack.c.h.b16 %v10780_v3  ;;  %v7989_v3 = vld [vmem:[%s11715_s8 + $0xe8] sm:$0xf0]  ;;  %3460 = vmatpush.bf16.msra.mxu2 %v7888_v26  ;;  %v8086_v62 = vor.u32 %v9544_v61, %v8085_v59 }
 0x625   : > { %v7992_v27 = vor.u32 %v9485_v4, %v7989_v3  ;;  %3430 = vmatpush.bf16.msra.mxu0 %v7964_v52  ;;  %3418 = vmatpush.bf16.msra.mxu3 %v7884_v53  ;;  %v9489_v52 = vld [vmem:[%s11715_s8 + $0x104] sm:$0xf]  ;;  %v9564_v4 = vld [vmem:[#allocation7 + $0x224] sm:$0xf0] }
 0x626   : > { %v3362_v2 = vpack.c.b16 %v3322_v40, %v3322_v40  ;;  %v7957_v40 = vld [vmem:[%s11715_s8 + $0xa8] sm:$0xf0]  ;;  %v8008_v3 = vor.u32 %v9489_v52, %v8005_v63  ;;  %v8166_v45 = vor.u32 %v9564_v4, %v8165_v1  ;;  %v8141_v63 = vld [vmem:[#allocation7 + $0x1f0] sm:$0xf]  ;;  %v9558_v1 = vld [vmem:[#allocation7 + $0x1f4] sm:$0xf0]  ;;  %v11018_v4 = vpack.c.bf16 %v11011_v49, %v3683_v39 }
 0x627   : > { %3469 = vmatpush.bf16.msrb.mxu1 %v7992_v27  ;;  %v7960_v53 = vor.u32 %v9477_v36, %v7957_v40  ;;  %v8077_v27 = vld [vmem:[#allocation7 + $0x170] sm:$0xf]  ;;  %v9560_v36 = vld [vmem:[#allocation7 + $0x204] sm:$0xf0]  ;;  %v9559_v40 = vld [vmem:[#allocation7 + $0x204] sm:$0xf] }
 0x628   : > { %v3410_v23 = vsel %vm11737_vm14, %v3362_v2, 0  ;;  %3461 = vmatpush.bf16.msra.mxu2 %v7880_v43  ;;  %v8078_v50 = vor.u32 %v9542_v6, %v8077_v27  ;;  %v8070_v2 = vor.u32 %v9540_v11, %v8069_v10  ;;  %vm11740_vm14 = vcmask 719872   ;;  %v9561_v43 = vld [vmem:[#allocation7 + $0x214] sm:$0xf]  ;;  %v8095_v6 = vld [vmem:[#allocation7 + $0x198] sm:$0xf0] }
 0x629   : > { %3431 = vmatpush.bf16.msra.mxu0 %v7956_v19  ;;  %3419 = vmatpush.bf16.msra.mxu3 %v7876_v13  ;;  %v7949_v19 = vld [vmem:[%s11715_s8 + $0x98] sm:$0xf0]  ;;  %v9473_v13 = vld [vmem:[%s11715_s8 + $0x84] sm:$0xf]  ;;  %v9545_v27 = vld [vmem:[#allocation7 + $0x194] sm:$0xf] }
 0x62a   : > { %v7952_v9 = vor.u32 %v9475_v8, %v7949_v19  ;;  %v7944_v0 = vor.u32 %v9473_v13, %v7941_v14  ;;  %v8142_v19 = vor.u32 %v9558_v1, %v8141_v63  ;;  %v8143_v10 = vld [vmem:[#allocation7 + $0x1f8] sm:$0xf0] }
 0x62b   : > { %3470 = vmatpush.bf16.msrb.mxu1 %v7984_v12  ;;  %v8061_v12 = vld [vmem:[#allocation7 + $0x150] sm:$0xf]  ;;  %v8079_v63 = vld [vmem:[#allocation7 + $0x178] sm:$0xf0] }
 0x62c   : > { %3984 = vmatpush.bf16.msrb.mxu2 %v8174_v57  ;;  %v8062_v28 = vor.u32 %v9538_v17, %v8061_v12  ;;  %v3756_v12 = vshll.u32 %v11018_v4, 16 }
 0x62d   : > { %3486 = vmatpush.bf16.msrb.mxu3 %v3410_v23  ;;  %3432 = vmatpush.bf16.msra.mxu0 %v7948_v60  ;;  %v8045_v60 = vld [vmem:[#allocation7 + $0x130] sm:$0xf] }
 0x62e   : > { %v8046_v24 = vor.u32 %v9534_v37, %v8045_v60  ;;  %v8098_v60 = vor.u32 %v9545_v27, %v8095_v6 }
 0x62f   : > { %3471 = vmatpush.bf16.msrb.mxu1 %v7976_v29 }
 0x630   : > { %3985 = vmatpush.bf16.msrb.mxu2 %v8166_v45 }
 0x631   : > { %3487 = vmatpush.bf16.msrb.mxu3 %v8024_v32  ;;  %3433 = vmatpush.bf16.msra.mxu0 %v7940_v35  ;;  %v8157_v32 = vld [vmem:[#allocation7 + $0x210] sm:$0xf] }
 0x633   : > { %3472 = vmatpush.bf16.msrb.mxu1 %v7968_v48 }
 0x635   : > { %3950 = vmatpush.bf16.msrb.mxu0 %v8094_v42  ;;  %3488 = vmatpush.bf16.msrb.mxu3 %v8016_v56  ;;  %v9562_v42 = vld [vmem:[#allocation7 + $0x214] sm:$0xf0] }
 0x636   : > { %v8158_v61 = vor.u32 %v9562_v42, %v8157_v32  ;;  %v8087_v42 = vld [vmem:[#allocation7 + $0x188] sm:$0xf0] }
 0x637   : > { %3473 = vmatpush.bf16.msrb.mxu1 %v7960_v53  ;;  %v8151_v53 = vld [vmem:[#allocation7 + $0x208] sm:$0xf0] }
 0x638   : > { %v8154_v8 = vor.u32 %v9559_v40, %v8151_v53  ;;  %v9541_v53 = vld [vmem:[#allocation7 + $0x174] sm:$0xf] }
 0x639   : > { %3951 = vmatpush.bf16.msrb.mxu0 %v8086_v62  ;;  %3489 = vmatpush.bf16.msrb.mxu3 %v8008_v3  ;;  %v8149_v62 = vld [vmem:[#allocation7 + $0x200] sm:$0xf] }
 0x63b   : > { %3474 = vmatpush.bf16.msrb.mxu1 %v7952_v9  ;;  %v9557_v9 = vld [vmem:[#allocation7 + $0x1f4] sm:$0xf] }
 0x63c   : > { %v8146_v37 = vor.u32 %v9557_v9, %v8143_v10  ;;  %v9552_v9 = vld [vmem:[#allocation7 + $0x1c4] sm:$0xf0]  ;;  %v9539_v10 = vld [vmem:[#allocation7 + $0x164] sm:$0xf] }
 0x63d   : > { %3952 = vmatpush.bf16.msrb.mxu0 %v8078_v50  ;;  %v8150_v50 = vor.u32 %v9560_v36, %v8149_v62 }
 0x63f   : > { %3475 = vmatpush.bf16.msrb.mxu1 %v7944_v0 }
 0x641   : > { %3953 = vmatpush.bf16.msrb.mxu0 %v8070_v2 }
 0x645   : > { %3954 = vmatpush.bf16.msrb.mxu0 %v8062_v28 }
 0x649   : > { %3955 = vmatpush.bf16.msrb.mxu0 %v8054_v22 }
 0x64d   : > { %3956 = vmatpush.bf16.msrb.mxu0 %v8046_v24  ;;  %v8175_v24 = vld [vmem:[#allocation7 + $0x238] sm:$0xf0] }
 0x651   : > { %3957 = vmatpush.bf16.msrb.mxu0 %v8038_v33 }
 0x66e   : > { %v10990_v5 = vpop.permute.xlu2 %9900 }
 0x66f   : > { %v9903_v26 = vunpack.i.h.bf16 %v10990_v5  ;;  %v9902_v29 = vunpack.i.l.bf16 %v10990_v5  ;;  %v3686_v5 = vld [vmem:[#allocation2 + $0x40] sm:$0x1] }
 0x670   : > { %v3692_v0 = vpack.c.bf16 %v3686_v5, %v3686_v5 }
 0x671   : > { %v3147_v54 = vsel %vm11741_vm15, %v3085_v31, %v9902_v29  ;;  %v3148_v56 = vsel %vm11741_vm15, %v3086_v41, %v9903_v26  ;;  %vm11746_vm15 = vcmask 424960   ;;  %v9556_v31 = vld [vmem:[#allocation7 + $0x1e4] sm:$0xf0]  ;;  %v9555_v41 = vld [vmem:[#allocation7 + $0x1e4] sm:$0xf] }
 0x672   : > { %v3761_v39 = vshll.u32 %v3692_v0, 16  ;;  %v8109_v0 = vld [vmem:[#allocation7 + $0x1b0] sm:$0xf] }
 0x674   : > { %v3763_v5 = vrot.slane %v3761_v39, 1 }
 0x676   : > { %v11004_v7 = vpop.permute.xlu2 %9915 }
 0x677   : > { %v9918_v11 = vunpack.i.h.bf16 %v11004_v7  ;;  %v9917_v2 = vunpack.i.l.bf16 %v11004_v7 }
 0x67e   : > { %v3604_v23 = vpop.permute.xlu2 %3603 }
 0x67f   : > { %v3615_v51 = vsel %vm433_vm6, %v3604_v23, %v10875_v55  ;;  %3627 = vst.msk [vmem:[#allocation2] sm:$0xfe] %vm446_vm8, %v3604_v23  ;;  %v8159_v55 = vld [vmem:[#allocation7 + $0x218] sm:$0xf0] }
 0x680   : > { %3628 = vst [vmem:[#allocation2 + $0x8] sm:$0xfe] %v3615_v51  ;;  %v8162_v57 = vor.u32 %v9561_v43, %v8159_v55  ;;  %v9565_v51 = vld [vmem:[#allocation7 + $0x234] sm:$0xf]  ;;  %v3754_v43 = vshrl.u32 %v11018_v4, 16 }
 0x684   : > { %v9911_v35 = vpop.permute.xlu1 %9910 }
 0x685   : > { %v9906_v34 = vpop.permute.xlu0 %9905  ;;  %v9913_v3 = vunpack.i.h.bf16 %v9911_v35  ;;  %v9912_v45 = vunpack.i.l.bf16 %v9911_v35  ;;  %v9543_v35 = vld [vmem:[#allocation7 + $0x184] sm:$0xf] }
 0x686   : > { %v9908_v47 = vunpack.i.h.bf16 %v9906_v34  ;;  %v9907_v48 = vunpack.i.l.bf16 %v9906_v34 }
 0x688   : > { %v3150_v58 = vsel %vm11740_vm14, %v3147_v54, %v9907_v48  ;;  %v3151_v59 = vsel %vm11740_vm14, %v3148_v56, %v9908_v47  ;;  %vm11744_vm14 = vcmask 392192   ;;  %v3154_v22 = vsel %vm11745_vm0, %v9908_v47, %v9913_v3  ;;  %v8135_v47 = vld [vmem:[#allocation7 + $0x1e8] sm:$0xf0]  ;;  %v9563_v56 = vld [vmem:[#allocation7 + $0x224] sm:$0xf] }
 0x689   : > { %v3164_v52 = vpack.c.bf16 %v3151_v59, %v3150_v58  ;;  %v3153_v23 = vsel %vm11745_vm0, %v9907_v48, %v9912_v45  ;;  %v3758_v48 = vrot.slane %v3756_v12, 1  ;;  %v8178_v54 = vor.u32 %v9565_v51, %v8175_v24  ;;  %v8167_v58 = vld [vmem:[#allocation7 + $0x228] sm:$0xf0]  ;;  %v9553_v3 = vld [vmem:[#allocation7 + $0x1d4] sm:$0xf] }
 0x68a   : > { %v8134_v59 = vor.u32 %v9556_v31, %v8133_v44  ;;  %v8138_v40 = vor.u32 %v9555_v41, %v8135_v47  ;;  %v8127_v45 = vld [vmem:[#allocation7 + $0x1d8] sm:$0xf0]  ;;  %v8170_v27 = vor.u32 %v9563_v56, %v8167_v58  ;;  %v3681_v12 = vld [vmem:[#allocation2] sm:$0xfe]  ;;  %v9549_v51 = vld [vmem:[#allocation7 + $0x1b4] sm:$0xf] }
 0x68b   : > { %3420 = vmatmul.bf16.vlgmr.msra.gmra.mxu3 %v3164_v52  ;;  %3462 = vmatmul.bf16.vlgmr.msra.gmra.mxu2 %v3164_v52  ;;  %v9554_v52 = vld [vmem:[#allocation7 + $0x1d4] sm:$0xf0]  ;;  %v3759_v4 = vor.u32 %v3758_v48, %v3754_v43  ;;  %v8111_v24 = vld [vmem:[#allocation7 + $0x1b8] sm:$0xf0]  ;;  %v8101_v31 = vld [vmem:[#allocation7 + $0x1a0] sm:$0xf] }
 0x68c   : > { %3964 = vmatpush.bf16.msra.mxu3 %v8158_v61  ;;  %4006 = vmatpush.bf16.msra.mxu2 %v8162_v57  ;;  %v9926_v14 = vpop.permute.xlu1 %9925  ;;  %v8090_v61 = vor.u32 %v9543_v35, %v8087_v42  ;;  %v8125_v57 = vld [vmem:[#allocation7 + $0x1d0] sm:$0xf]  ;;  %v9547_v41 = vld [vmem:[#allocation7 + $0x1a4] sm:$0xf]  ;;  %v8103_v47 = vld [vmem:[#allocation7 + $0x1a8] sm:$0xf0] }
 0x68d   : > { %v9921_v13 = vpop.permute.xlu0 %9920  ;;  %v9928_v18 = vunpack.i.h.bf16 %v9926_v14  ;;  %v9927_v21 = vunpack.i.l.bf16 %v9926_v14  ;;  %v8126_v6 = vor.u32 %v9554_v52, %v8125_v57  ;;  %v8119_v14 = vld [vmem:[#allocation7 + $0x1c8] sm:$0xf0]  ;;  %v8303_v58 = vld [vmem:[#allocation7 + $0xf0] sm:$0xf]  ;;  %v9509_v52 = vld [vmem:[#allocation7 + $0x74] sm:$0xf] }
 0x68e   : > { %v9923_v17 = vunpack.i.h.bf16 %v9921_v13  ;;  %v9922_v28 = vunpack.i.l.bf16 %v9921_v13  ;;  %v9551_v13 = vld [vmem:[#allocation7 + $0x1c4] sm:$0xf]  ;;  %v8239_v57 = vld [vmem:[#allocation7 + $0x70] sm:$0xf] }
 0x68f   : > { %v3156_v26 = vsel %vm11744_vm14, %v3153_v23, %v9927_v21  ;;  %v3157_v29 = vsel %vm11744_vm14, %v3154_v22, %v9928_v18  ;;  %v9550_v18 = vld [vmem:[#allocation7 + $0x1b4] sm:$0xf0]  ;;  %v9537_v21 = vld [vmem:[#allocation7 + $0x154] sm:$0xf]  ;;  %v8063_v22 = vld [vmem:[#allocation7 + $0x158] sm:$0xf0] }
 0x690   : > { %v3162_v25 = vsel %vm11747_vm13, %v9917_v2, %v9922_v28  ;;  %v3163_v7 = vsel %vm11747_vm13, %v9918_v11, %v9923_v17  ;;  %3965 = vmatpush.bf16.msra.mxu3 %v8150_v50  ;;  %4007 = vmatpush.bf16.msra.mxu2 %v8154_v8  ;;  %v3159_v33 = vsel %vm11743_vm12, %v3156_v26, %v9917_v2  ;;  %v8117_v8 = vld [vmem:[#allocation7 + $0x1c0] sm:$0xf] }
 0x691   : > { %v3166_v32 = vpack.c.bf16 %v3163_v7, %v3162_v25  ;;  %v3160_v34 = vsel %vm11743_vm12, %v3157_v29, %v9918_v11  ;;  %v8082_v50 = vor.u32 %v9541_v53, %v8079_v63  ;;  %v8071_v11 = vld [vmem:[#allocation7 + $0x168] sm:$0xf0]  ;;  %v11045_v2 = vsel %vm554_vm9, %v3759_v4, %v3763_v5  ;;  %v8241_v53 = vld [vmem:[#allocation7 + $0x78] sm:$0xf0] }
 0x692   : > { %v11032_v55 = vpack.c.bf16 %v3160_v34, %v3159_v33  ;;  %v8118_v17 = vor.u32 %v9552_v9, %v8117_v8  ;;  %v8074_v28 = vor.u32 %v9539_v10, %v8071_v11  ;;  %v8110_v26 = vor.u32 %v9550_v18, %v8109_v0  ;;  %v9535_v33 = vld [vmem:[#allocation7 + $0x144] sm:$0xf]  ;;  %v8055_v34 = vld [vmem:[#allocation7 + $0x148] sm:$0xf0]  ;;  %v8295_v8 = vld [vmem:[#allocation7 + $0xe0] sm:$0xf] }
 0x693   : > { %8025 = vmatmul.msk.bf16.vlgmr.msra.gmra.mxu1 %vm11746_vm15, %v3166_v32  ;;  %v8066_v29 = vor.u32 %v9537_v21, %v8063_v22  ;;  %v8058_v4 = vor.u32 %v9535_v33, %v8055_v34  ;;  %v9524_v11 = vld [vmem:[#allocation7 + $0xe4] sm:$0xf0]  ;;  %v9507_v0 = vld [vmem:[#allocation7 + $0x64] sm:$0xf]  ;;  %v8039_v21 = vld [vmem:[#allocation7 + $0x128] sm:$0xf0] }
 0x694   : > { %3966 = vmatpush.bf16.msra.mxu3 %v8142_v19  ;;  %3992 = vmatpush.bf16.msra.mxu1 %v8098_v60  ;;  %v3612_v36 = vpop.permute.xlu1 %3611  ;;  %v8122_v60 = vor.u32 %v9551_v13, %v8119_v14  ;;  %v8231_v13 = vld [vmem:[#allocation7 + $0x60] sm:$0xf]  ;;  %v9508_v14 = vld [vmem:[#allocation7 + $0x64] sm:$0xf0]  ;;  %v8296_v18 = vor.u32 %v9524_v11, %v8295_v8  ;;  %v8287_v22 = vld [vmem:[#allocation7 + $0xd0] sm:$0xf] }
 0x695   : > { %4008 = vmatpush.bf16.msra.mxu2 %v8146_v37  ;;  %3434 = vmatmul.bf16.vlgmr.msra.gmra.mxu0 %v11032_v55  ;;  %v3608_v62 = vpop.permute.xlu0 %3607  ;;  %v3617_v1 = vsel %vm433_vm6, %v3612_v36, %v10928_v15  ;;  %3633 = vst.msk [vmem:[#allocation2 + $0x30] sm:$0x1] %vm455_vm4, %v3612_v36  ;;  %v8130_v15 = vor.u32 %v9553_v3, %v8127_v45  ;;  %v9500_v11 = vld [vmem:[#allocation7 + $0x24] sm:$0xf0] }
 0x696   : > { %3630 = vst.msk [vmem:[#allocation2 + $0x18] sm:$0xff] %vm451_vm3, %v3608_v62  ;;  %4026 = vmatpush.bf16.msra.mxu0 %v8178_v54  ;;  %v11042_v19 = vsel %vm433_vm6, %v3608_v62, %v10814_v20  ;;  %v3682_v20 = vld [vmem:[#allocation2 + $0x8] sm:$0xfe]  ;;  %v8114_v54 = vor.u32 %v9549_v51, %v8111_v24  ;;  %v9510_v62 = vld [vmem:[#allocation7 + $0x74] sm:$0xf0]  ;;  %v8106_v3 = vor.u32 %v9547_v41, %v8103_v47 }
 0x697   : > { %3634 = vst [vmem:[#allocation2 + $0x38] sm:$0x1] %v3617_v1  ;;  %v11051_v23 = vpack.c.bf16 %v11042_v19, %v3682_v20  ;;  %v8232_v51 = vor.u32 %v9508_v14, %v8231_v13  ;;  %v8215_v47 = vld [vmem:[#allocation7 + $0x40] sm:$0xf]  ;;  %v9499_v13 = vld [vmem:[#allocation7 + $0x24] sm:$0xf] }
 0x698   : > { %3967 = vmatpush.bf16.msra.mxu3 %v8134_v59  ;;  %3993 = vmatpush.bf16.msra.mxu1 %v8090_v61  ;;  %v9526_v59 = vld [vmem:[#allocation7 + $0xf4] sm:$0xf0]  ;;  %v8201_v14 = vld [vmem:[#allocation7 + $0x28] sm:$0xf0] }
 0x699   : > { %4009 = vmatpush.bf16.msra.mxu2 %v8138_v40  ;;  %v3744_v39 = vshll.u32 %v11051_v23, 16  ;;  %v8304_v45 = vor.u32 %v9526_v59, %v8303_v58  ;;  %v3742_v9 = vshrl.u32 %v11051_v23, 16  ;;  %v8217_v58 = vld [vmem:[#allocation7 + $0x48] sm:$0xf0]  ;;  %v9525_v59 = vld [vmem:[#allocation7 + $0xf4] sm:$0xf] }
 0x69a   : > { %4027 = vmatpush.bf16.msra.mxu0 %v8170_v27  ;;  %v8240_v27 = vor.u32 %v9510_v62, %v8239_v57 }
 0x69b   : > { %8026 = vmatmul.msk.bf16.vlgmr.msrb.gmra.mxu3 %vm11746_vm15, %v3166_v32  ;;  %8179 = vmatmul.msk.bf16.vlgmr.msrb.gmra.mxu2 %vm392_vm2, %v11045_v2  ;;  %v9548_v32 = vld [vmem:[#allocation7 + $0x1a4] sm:$0xf0]  ;;  %v3746_v5 = vrot.slane %v3744_v39, 1 }
 0x69c   : > { %3968 = vmatpush.bf16.msra.mxu3 %v8126_v6  ;;  %3994 = vmatpush.bf16.msra.mxu1 %v8082_v50  ;;  %v3684_v25 = vld [vmem:[#allocation2 + $0x30] sm:$0x1]  ;;  %v8102_v1 = vor.u32 %v9548_v32, %v8101_v31  ;;  %v9533_v6 = vld [vmem:[#allocation7 + $0x134] sm:$0xf]  ;;  %v8047_v50 = vld [vmem:[#allocation7 + $0x138] sm:$0xf0] }
 0x69d   : > { %4010 = vmatpush.bf16.msra.mxu2 %v8130_v15  ;;  %v11053_v37 = vld [vmem:[#allocation2 + $0x18] sm:$0xff]  ;;  %v3690_v44 = vpack.c.bf16 %v3684_v25, %v3684_v25  ;;  %v3747_v20 = vor.u32 %v3746_v5, %v3742_v9  ;;  %v8223_v25 = vld [vmem:[#allocation7 + $0x50] sm:$0xf]  ;;  %v9528_v39 = vld [vmem:[#allocation7 + $0x104] sm:$0xf0] }
 0x69e   : > { %v3687_v7 = vpack.c.bf16 %v11053_v37, %v3681_v12  ;;  %v3685_v35 = vld [vmem:[#allocation2 + $0x38] sm:$0x1]  ;;  %v8233_v12 = vld [vmem:[#allocation7 + $0x68] sm:$0xf0]  ;;  %v8225_v31 = vld [vmem:[#allocation7 + $0x58] sm:$0xf0] }
 0x69f   : > { %v3691_v48 = vpack.c.bf16 %v3685_v35, %v3685_v35  ;;  %v3737_v56 = vshll.u32 %v3690_v44, 16  ;;  %v8236_v24 = vor.u32 %v9507_v0, %v8233_v12  ;;  %v9505_v44 = vld [vmem:[#allocation7 + $0x54] sm:$0xf]  ;;  %v8279_v35 = vld [vmem:[#allocation7 + $0xc0] sm:$0xf] }
 0x6a0   : > { %3969 = vmatpush.bf16.msra.mxu3 %v8118_v17  ;;  %3995 = vmatpush.bf16.msra.mxu1 %v8074_v28  ;;  %v3730_v42 = vshrl.u32 %v3687_v7, 16  ;;  %v3732_v43 = vshll.u32 %v3687_v7, 16  ;;  %v8050_v17 = vor.u32 %v9533_v6, %v8047_v50  ;;  %v9531_v28 = vld [vmem:[#allocation7 + $0x124] sm:$0xf]  ;;  %v8319_v7 = vld [vmem:[#allocation7 + $0x110] sm:$0xf]  ;;  %v8228_v41 = vor.u32 %v9505_v44, %v8225_v31 }
 0x6a1   : > { %4011 = vmatpush.bf16.msra.mxu2 %v8122_v60  ;;  %v3749_v36 = vshll.u32 %v3691_v48, 16  ;;  %v3739_v40 = vrot.slane %v3737_v56, 1  ;;  %v9522_v60 = vld [vmem:[#allocation7 + $0xd4] sm:$0xf0]  ;;  %v8042_v32 = vor.u32 %v9531_v28, %v8039_v21  ;;  %v8311_v48 = vld [vmem:[#allocation7 + $0x100] sm:$0xf]  ;;  %v8204_v28 = vor.u32 %v9499_v13, %v8201_v14 }
 0x6a2   : > { %v3734_v61 = vrot.slane %v3732_v43, 1  ;;  %v8288_v33 = vor.u32 %v9522_v60, %v8287_v22  ;;  %v9503_v56 = vld [vmem:[#allocation7 + $0x44] sm:$0xf]  ;;  %v8312_v62 = vor.u32 %v9528_v39, %v8311_v48  ;;  %v9501_v5 = vld [vmem:[#allocation7 + $0x34] sm:$0xf] }
 0x6a3   : > { %3476 = vmatmul.bf16.vlgmr.msrb.gmra.mxu1 %v11032_v55  ;;  %v8244_v55 = vor.u32 %v9509_v52, %v8241_v53  ;;  %v3751_v10 = vrot.slane %v3749_v36, 1  ;;  %v8271_v52 = vld [vmem:[#allocation7 + $0xb0] sm:$0xf]  ;;  %v9518_v53 = vld [vmem:[#allocation7 + $0xb4] sm:$0xf0] }
 0x6a4   : > { %3970 = vmatpush.bf16.msra.mxu3 %v8110_v26  ;;  %3996 = vmatpush.bf16.msra.mxu1 %v8066_v29  ;;  %v3735_v63 = vor.u32 %v3734_v61, %v3730_v42  ;;  %v9530_v26 = vld [vmem:[#allocation7 + $0x114] sm:$0xf0]  ;;  %v9520_v42 = vld [vmem:[#allocation7 + $0xc4] sm:$0xf0]  ;;  %v8305_v61 = vld [vmem:[#allocation7 + $0xf8] sm:$0xf0]  ;;  %v8272_v6 = vor.u32 %v9518_v53, %v8271_v52 }
 0x6a5   : > { %4012 = vmatpush.bf16.msra.mxu2 %v8114_v54  ;;  %v3752_v23 = vsel %vm554_vm9, %v3747_v20, %v3751_v10  ;;  %v9506_v29 = vld [vmem:[#allocation7 + $0x54] sm:$0xf0]  ;;  %v8320_v34 = vor.u32 %v9530_v26, %v8319_v7  ;;  %v9504_v54 = vld [vmem:[#allocation7 + $0x44] sm:$0xf0]  ;;  %v8280_v57 = vor.u32 %v9520_v42, %v8279_v35  ;;  %v8199_v10 = vld [vmem:[#allocation7 + $0x20] sm:$0xf] }
 0x6a6   : > { %v11059_v15 = vsel %vm554_vm9, %v3735_v63, %v3739_v40  ;;  %v8224_v43 = vor.u32 %v9506_v29, %v8223_v25  ;;  %v8216_v36 = vor.u32 %v9504_v54, %v8215_v47  ;;  %v8220_v40 = vor.u32 %v9503_v56, %v8217_v58  ;;  %v8207_v63 = vld [vmem:[#allocation7 + $0x30] sm:$0xf]  ;;  %v9516_v9 = vld [vmem:[#allocation7 + $0xa4] sm:$0xf0]  ;;  %v9521_v0 = vld [vmem:[#allocation7 + $0xd4] sm:$0xf] }
 0x6a7   : > { %3958 = vmatmul.bf16.vlgmr.msrb.gmra.mxu0 %v11059_v15  ;;  %v8289_v12 = vld [vmem:[#allocation7 + $0xd8] sm:$0xf0]  ;;  %v9514_v21 = vld [vmem:[#allocation7 + $0x94] sm:$0xf0]  ;;  %v8191_v22 = vld [vmem:[#allocation7 + $0x10] sm:$0xf] }
 0x6a8   : > { %3971 = vmatpush.bf16.msra.mxu3 %v8102_v1  ;;  %3997 = vmatpush.bf16.msra.mxu1 %v8058_v4  ;;  %v8308_v1 = vor.u32 %v9525_v59, %v8305_v61  ;;  %v9502_v4 = vld [vmem:[#allocation7 + $0x34] sm:$0xf0]  ;;  %v8292_v60 = vor.u32 %v9521_v0, %v8289_v12  ;;  %v8281_v25 = vld [vmem:[#allocation7 + $0xc8] sm:$0xf0]  ;;  %v8247_v26 = vld [vmem:[#allocation7 + $0x80] sm:$0xf] }
 0x6a9   : > { %4013 = vmatpush.bf16.msra.mxu2 %v8106_v3  ;;  %4231 = vmatpush.bf16.msrb.mxu0 %v8304_v45  ;;  %v8209_v3 = vld [vmem:[#allocation7 + $0x38] sm:$0xf0]  ;;  %v9523_v45 = vld [vmem:[#allocation7 + $0xe4] sm:$0xf]  ;;  %v8208_v50 = vor.u32 %v9502_v4, %v8207_v63  ;;  %v9512_v29 = vld [vmem:[#allocation7 + $0x84] sm:$0xf0] }
 0x6aa   : > { %v8212_v8 = vor.u32 %v9501_v5, %v8209_v3  ;;  %v3638_v44 = vld [vmem:[#allocation2 + $0x10] sm:$0xff]  ;;  %v9495_v35 = vld [vmem:[#allocation7 + $0x4] sm:$0xf]  ;;  %v9582_v47 = vld [vmem:[#allocation7 + $0x2b4] sm:$0xf0]  ;;  %v8248_v56 = vor.u32 %v9512_v29, %v8247_v26 }
 0x6ab   : > { %3972 = vmatmul.bf16.vlgmr.msra.gmra.mxu3 %v3752_v23  ;;  %v9517_v48 = vld [vmem:[#allocation7 + $0xb4] sm:$0xf]  ;;  %v8273_v39 = vld [vmem:[#allocation7 + $0xb8] sm:$0xf0]  ;;  %v8465_v59 = vld [vmem:[#allocation7 + $0x350] sm:$0xf] }
 0x6ac   : > { %4217 = vmatpush.bf16.msrb.mxu3 %v8240_v27  ;;  %3998 = vmatpush.bf16.msra.mxu1 %v8050_v17  ;;  %v8297_v27 = vld [vmem:[#allocation7 + $0xe8] sm:$0xf0]  ;;  %v8200_v17 = vor.u32 %v9500_v11, %v8199_v10  ;;  %v9529_v54 = vld [vmem:[#allocation7 + $0x114] sm:$0xf]  ;;  %v8321_v58 = vld [vmem:[#allocation7 + $0x118] sm:$0xf0]  ;;  %v8276_v53 = vor.u32 %v9517_v48, %v8273_v39 }
 0x6ad   : > { %4259 = vmatpush.bf16.msrb.mxu2 %v8244_v55  ;;  %4232 = vmatpush.bf16.msrb.mxu0 %v8296_v18  ;;  %v8263_v55 = vld [vmem:[#allocation7 + $0xa0] sm:$0xf]  ;;  %v8255_v18 = vld [vmem:[#allocation7 + $0x90] sm:$0xf]  ;;  %v9602_v61 = vld [vmem:[#allocation7 + $0x354] sm:$0xf0]  ;;  %v8324_v3 = vor.u32 %v9529_v54, %v8321_v58 }
 0x6ae   : > { %4014 = vmatmul.bf16.vlgmr.msra.gmra.mxu2 %v3752_v23  ;;  %v8264_v20 = vor.u32 %v9516_v9, %v8263_v55  ;;  %v9498_v23 = vld [vmem:[#allocation7 + $0x14] sm:$0xf0]  ;;  %v8256_v7 = vor.u32 %v9514_v21, %v8255_v18  ;;  %v3637_v63 = vld [vmem:[#allocation2 + $0x8] sm:$0xff]  ;;  %v9515_v5 = vld [vmem:[#allocation7 + $0xa4] sm:$0xf] }
 0x6af   : > { %v8192_v31 = vor.u32 %v9498_v23, %v8191_v22  ;;  %v9580_v4 = vld [vmem:[#allocation7 + $0x2a4] sm:$0xf0]  ;;  %v8449_v9 = vld [vmem:[#allocation7 + $0x330] sm:$0xf]  ;;  %v11073_v10 = vpack.c.bf16 %v11042_v19, %v3637_v63  ;;  %v9597_v11 = vld [vmem:[#allocation7 + $0x334] sm:$0xf] }
 0x6b0   : > { %4218 = vmatpush.bf16.msrb.mxu3 %v8232_v51  ;;  %3999 = vmatpush.bf16.msra.mxu1 %v8042_v32  ;;  %v9497_v51 = vld [vmem:[#allocation7 + $0x14] sm:$0xf]  ;;  %v9600_v55 = vld [vmem:[#allocation7 + $0x344] sm:$0xf0]  ;;  %v8451_v13 = vld [vmem:[#allocation7 + $0x338] sm:$0xf0] }
 0x6b1   : > { %4260 = vmatpush.bf16.msrb.mxu2 %v8236_v24  ;;  %4233 = vmatpush.bf16.msrb.mxu0 %v8288_v33  ;;  %v9519_v24 = vld [vmem:[#allocation7 + $0xc4] sm:$0xf]  ;;  %v8183_v33 = vld [vmem:[#allocation7] sm:$0xf]  ;;  %v9578_v18 = vld [vmem:[#allocation7 + $0x294] sm:$0xf0]  ;;  %v8454_v23 = vor.u32 %v9597_v11, %v8451_v13 }
 0x6b2   : > { %v8284_v42 = vor.u32 %v9519_v24, %v8281_v25  ;;  %v9513_v21 = vld [vmem:[#allocation7 + $0x94] sm:$0xf]  ;;  %v8257_v22 = vld [vmem:[#allocation7 + $0x98] sm:$0xf0]  ;;  %v9595_v24 = vld [vmem:[#allocation7 + $0x324] sm:$0xf] }
 0x6b3   : > { %4000 = vmatmul.bf16.vlgmr.msra.gmra.mxu1 %v11059_v15  ;;  %v8300_v15 = vor.u32 %v9523_v45, %v8297_v27  ;;  %v8466_v45 = vor.u32 %v9602_v61, %v8465_v59  ;;  %v8265_v27 = vld [vmem:[#allocation7 + $0xa8] sm:$0xf0]  ;;  %v8260_v26 = vor.u32 %v9513_v21, %v8257_v22  ;;  %v8361_v29 = vld [vmem:[#allocation7 + $0x280] sm:$0xf]  ;;  %v9594_v48 = vld [vmem:[#allocation7 + $0x314] sm:$0xf0] }
 0x6b4   : > { %4251 = vmatpush.bf16.msrb.mxu1 %v8320_v34  ;;  %4219 = vmatpush.bf16.msrb.mxu3 %v8224_v43  ;;  %v9496_v34 = vld [vmem:[#allocation7 + $0x4] sm:$0xf0]  ;;  %v8185_v43 = vld [vmem:[#allocation7 + $0x8] sm:$0xf0]  ;;  %v8268_v12 = vor.u32 %v9515_v5, %v8265_v27  ;;  %v9593_v39 = vld [vmem:[#allocation7 + $0x314] sm:$0xf] }
 0x6b5   : > { %4261 = vmatpush.bf16.msrb.mxu2 %v8228_v41  ;;  %4234 = vmatpush.bf16.msrb.mxu0 %v8280_v57  ;;  %v8385_v41 = vld [vmem:[#allocation7 + $0x2b0] sm:$0xf]  ;;  %v11068_v57 = vpack.c.bf16 %v11011_v49, %v3638_v44  ;;  %v8443_v25 = vld [vmem:[#allocation7 + $0x328] sm:$0xf0]  ;;  %v8435_v54 = vld [vmem:[#allocation7 + $0x318] sm:$0xf0] }
 0x6b6   : > { %v8386_v52 = vor.u32 %v9582_v47, %v8385_v41  ;;  %v4303_v44 = vld [vmem:[#allocation2 + $0x10] sm:$0xfc]  ;;  %v8387_v47 = vld [vmem:[#allocation7 + $0x2b8] sm:$0xf0]  ;;  %v8425_v63 = vld [vmem:[#allocation7 + $0x300] sm:$0xf] }
 0x6b7   : > { %8180 = vmatmul.msk.bf16.vlgmr.msra.gmra.mxu0 %vm392_vm2, %v11045_v2  ;;  %v8193_v2 = vld [vmem:[#allocation7 + $0x18] sm:$0xf0]  ;;  %v9581_v41 = vld [vmem:[#allocation7 + $0x2b4] sm:$0xf]  ;;  %v8353_v61 = vld [vmem:[#allocation7 + $0x270] sm:$0xf] }
 0x6b8   : > { %4252 = vmatpush.bf16.msrb.mxu1 %v8312_v62  ;;  %4220 = vmatpush.bf16.msrb.mxu3 %v8216_v36  ;;  %v8196_v32 = vor.u32 %v9497_v51, %v8193_v2  ;;  %v8184_v62 = vor.u32 %v9496_v34, %v8183_v33  ;;  %v8188_v36 = vor.u32 %v9495_v35, %v8185_v43  ;;  %v8441_v51 = vld [vmem:[#allocation7 + $0x320] sm:$0xf]  ;;  %v9596_v2 = vld [vmem:[#allocation7 + $0x324] sm:$0xf0]  ;;  %v9511_v33 = vld [vmem:[#allocation7 + $0x84] sm:$0xf] }
 0x6b9   : > { %4262 = vmatpush.bf16.msrb.mxu2 %v8220_v40  ;;  %4235 = vmatpush.bf16.msrb.mxu0 %v8272_v6  ;;  %v3636_v40 = vld [vmem:[#allocation2] sm:$0xff]  ;;  %v8249_v34 = vld [vmem:[#allocation7 + $0x88] sm:$0xf0]  ;;  %v8442_v35 = vor.u32 %v9596_v2, %v8441_v51  ;;  %v8433_v43 = vld [vmem:[#allocation7 + $0x310] sm:$0xf]  ;;  %v8390_v59 = vor.u32 %v9581_v41, %v8387_v47 }
 0x6ba   : > { %v9527_v6 = vld [vmem:[#allocation7 + $0x104] sm:$0xf]  ;;  %v3642_v14 = vpack.c.bf16 %v11053_v37, %v3636_v40  ;;  %v8252_v58 = vor.u32 %v9511_v33, %v8249_v34  ;;  %v9592_v5 = vld [vmem:[#allocation7 + $0x304] sm:$0xf0]  ;;  %v8417_v11 = vld [vmem:[#allocation7 + $0x2f0] sm:$0xf] }
 0x6bb   : > { %v9577_v13 = vld [vmem:[#allocation7 + $0x294] sm:$0xf]  ;;  %v8337_v21 = vld [vmem:[#allocation7 + $0x250] sm:$0xf]  ;;  %v9570_v22 = vld [vmem:[#allocation7 + $0x254] sm:$0xf0] }
 0x6bc   : > { %4273 = vmatpush.bf16.msra.mxu1 %v8308_v1  ;;  %4221 = vmatpush.bf16.msrb.mxu3 %v8208_v50  ;;  %v8377_v1 = vld [vmem:[#allocation7 + $0x2a0] sm:$0xf]  ;;  %v8313_v50 = vld [vmem:[#allocation7 + $0x108] sm:$0xf0]  ;;  %v9568_v33 = vld [vmem:[#allocation7 + $0x244] sm:$0xf0] }
 0x6bd   : > { %4263 = vmatpush.bf16.msrb.mxu2 %v8212_v8  ;;  %4236 = vmatpush.bf16.msrb.mxu0 %v8264_v20  ;;  %v8457_v8 = vld [vmem:[#allocation7 + $0x340] sm:$0xf]  ;;  %v8378_v0 = vor.u32 %v9580_v4, %v8377_v1  ;;  %v8369_v20 = vld [vmem:[#allocation7 + $0x290] sm:$0xf]  ;;  %v9579_v1 = vld [vmem:[#allocation7 + $0x2a4] sm:$0xf] }
 0x6be   : > { %v8379_v4 = vld [vmem:[#allocation7 + $0x2a8] sm:$0xf0]  ;;  %v8401_v34 = vld [vmem:[#allocation7 + $0x2d0] sm:$0xf]  ;;  %v8355_v47 = vld [vmem:[#allocation7 + $0x278] sm:$0xf0] }
 0x6c0   : > { %4274 = vmatpush.bf16.msra.mxu1 %v8300_v15  ;;  %4222 = vmatpush.bf16.msrb.mxu3 %v8200_v17  ;;  %v9598_v15 = vld [vmem:[#allocation7 + $0x334] sm:$0xf0]  ;;  %v8316_v17 = vor.u32 %v9527_v6, %v8313_v50  ;;  %v8382_v6 = vor.u32 %v9579_v1, %v8379_v4  ;;  %v8347_v4 = vld [vmem:[#allocation7 + $0x268] sm:$0xf0] }
 0x6c1   : > { %4264 = vmatpush.bf16.msrb.mxu2 %v8204_v28  ;;  %4237 = vmatpush.bf16.msrb.mxu0 %v8256_v7  ;;  %v8458_v28 = vor.u32 %v9600_v55, %v8457_v8  ;;  %v8370_v7 = vor.u32 %v9578_v18, %v8369_v20  ;;  %v8345_v55 = vld [vmem:[#allocation7 + $0x260] sm:$0xf]  ;;  %v8419_v20 = vld [vmem:[#allocation7 + $0x2f8] sm:$0xf0] }
 0x6c3   : > { %8325 = vmatmul.msk.bf16.vlgmr.msrb.gmra.mxu1 %vm392_vm2, %v11068_v57 }
 0x6c4   : > { %4275 = vmatpush.bf16.msra.mxu1 %v8292_v60  ;;  %4223 = vmatpush.bf16.msrb.mxu3 %v8192_v31  ;;  %v8450_v60 = vor.u32 %v9598_v15, %v8449_v9  ;;  %v4306_v31 = vld [vmem:[#allocation2 + $0x40] sm:$0x3]  ;;  %v8426_v9 = vor.u32 %v9592_v5, %v8425_v63  ;;  %v9599_v5 = vld [vmem:[#allocation7 + $0x344] sm:$0xf] }
 0x6c5   : > { %4265 = vmatpush.bf16.msrb.mxu2 %v8196_v32  ;;  %4238 = vmatpush.bf16.msrb.mxu0 %v8248_v56  ;;  %v9576_v32 = vld [vmem:[#allocation7 + $0x284] sm:$0xf0]  ;;  %v4312_v40 = vpack.c.bf16 %v4306_v31, %v4306_v31  ;;  %v8329_v31 = vld [vmem:[#allocation7 + $0x240] sm:$0xf] }
 0x6c6   : > { %v8362_v56 = vor.u32 %v9576_v32, %v8361_v29  ;;  %v8411_v29 = vld [vmem:[#allocation7 + $0x2e8] sm:$0xf0] }
 0x6c7   : > { %v4362_v8 = vrot.slane %v4312_v40, 1 }
 0x6c8   : > { %4276 = vmatpush.bf16.msra.mxu1 %v8284_v42  ;;  %4224 = vmatpush.bf16.msrb.mxu3 %v8184_v62  ;;  %v8446_v42 = vor.u32 %v9595_v24, %v8443_v25  ;;  %v9574_v62 = vld [vmem:[#allocation7 + $0x274] sm:$0xf0]  ;;  %v8409_v24 = vld [vmem:[#allocation7 + $0x2e0] sm:$0xf]  ;;  %v8363_v25 = vld [vmem:[#allocation7 + $0x288] sm:$0xf0] }
 0x6c9   : > { %4266 = vmatpush.bf16.msrb.mxu2 %v8188_v36  ;;  %4549 = vmatpush.bf16.msra.mxu0 %v8386_v52  ;;  %v4309_v36 = vpack.c.bf16 %v11011_v49, %v4303_v44  ;;  %v8434_v52 = vor.u32 %v9594_v48, %v8433_v43  ;;  %v8354_v27 = vor.u32 %v9574_v62, %v8353_v61  ;;  %v9572_v49 = vld [vmem:[#allocation7 + $0x264] sm:$0xf0]  ;;  %v9601_v48 = vld [vmem:[#allocation7 + $0x354] sm:$0xf]  ;;  %v4305_v61 = vld [vmem:[#allocation2 + $0x38] sm:$0x3] }
 0x6ca   : > { %4239 = vmatmul.bf16.vlgmr.msrb.gmra.mxu0 %v11073_v10  ;;  %v8338_v44 = vor.u32 %v9570_v22, %v8337_v21 }
 0x6cb   : > { %4225 = vmatmul.bf16.vlgmr.msrb.gmra.mxu3 %v3642_v14  ;;  %v4361_v50 = vrot.slane %v4309_v36, 1 }
 0x6cc   : > { %4277 = vmatpush.bf16.msra.mxu1 %v8276_v53  ;;  %4293 = vmatpush.bf16.msra.mxu3 %v8324_v3  ;;  %v8438_v53 = vor.u32 %v9593_v39, %v8435_v54  ;;  %v9591_v3 = vld [vmem:[#allocation7 + $0x304] sm:$0xf]  ;;  %v8467_v39 = vld [vmem:[#allocation7 + $0x358] sm:$0xf0]  ;;  %v9586_v54 = vld [vmem:[#allocation7 + $0x2d4] sm:$0xf0] }
 0x6cd   : > { %4583 = vmatpush.bf16.msra.mxu2 %v8466_v45  ;;  %4550 = vmatpush.bf16.msra.mxu0 %v8378_v0  ;;  %v8427_v45 = vld [vmem:[#allocation7 + $0x308] sm:$0xf0]  ;;  %v9590_v0 = vld [vmem:[#allocation7 + $0x2f4] sm:$0xf0]  ;;  %v8402_v63 = vor.u32 %v9586_v54, %v8401_v34 }
 0x6ce   : > { %4267 = vmatmul.bf16.vlgmr.msrb.gmra.mxu2 %v3642_v14  ;;  %v8430_v15 = vor.u32 %v9591_v3, %v8427_v45  ;;  %v8371_v14 = vld [vmem:[#allocation7 + $0x298] sm:$0xf0]  ;;  %v8418_v51 = vor.u32 %v9590_v0, %v8417_v11  ;;  %v8459_v3 = vld [vmem:[#allocation7 + $0x348] sm:$0xf0]  ;;  %v9584_v45 = vld [vmem:[#allocation7 + $0x2c4] sm:$0xf0] }
 0x6cf   : > { %v8374_v18 = vor.u32 %v9577_v13, %v8371_v14  ;;  %v9569_v14 = vld [vmem:[#allocation7 + $0x254] sm:$0xf]  ;;  %v8339_v0 = vld [vmem:[#allocation7 + $0x258] sm:$0xf0] }
 0x6d0   : > { %4278 = vmatpush.bf16.msra.mxu1 %v8268_v12  ;;  %4294 = vmatpush.bf16.msra.mxu3 %v8316_v17  ;;  %v9589_v12 = vld [vmem:[#allocation7 + $0x2f4] sm:$0xf]  ;;  %v8346_v17 = vor.u32 %v9572_v49, %v8345_v55 }
 0x6d1   : > { %4584 = vmatpush.bf16.msra.mxu2 %v8458_v28  ;;  %4551 = vmatpush.bf16.msra.mxu0 %v8370_v7  ;;  %v4301_v28 = vld [vmem:[#allocation2] sm:$0xfc]  ;;  %v8422_v2 = vor.u32 %v9589_v12, %v8419_v20  ;;  %v9588_v7 = vld [vmem:[#allocation7 + $0x2e4] sm:$0xf0] }
 0x6d4   : > { %4563 = vmatpush.bf16.msrb.mxu3 %v8450_v60  ;;  %4279 = vmatpush.bf16.msra.mxu1 %v8260_v26  ;;  %v4304_v60 = vld [vmem:[#allocation2 + $0x30] sm:$0x3]  ;;  %v9587_v26 = vld [vmem:[#allocation7 + $0x2e4] sm:$0xf] }
 0x6d5   : > { %4605 = vmatpush.bf16.msrb.mxu2 %v8454_v23  ;;  %4552 = vmatpush.bf16.msra.mxu0 %v8362_v56  ;;  %v11080_v23 = vsel %vm1182_vm10, %v4361_v50, %v4362_v8  ;;  %v4310_v43 = vpack.c.bf16 %v4304_v60, %v4304_v60  ;;  %v8414_v41 = vor.u32 %v9587_v26, %v8411_v29  ;;  %v9585_v56 = vld [vmem:[#allocation7 + $0x2d4] sm:$0xf]  ;;  %v4302_v50 = vld [vmem:[#allocation2 + $0x8] sm:$0xfc] }
 0x6d6   : > { %v4311_v8 = vpack.c.bf16 %v4305_v61, %v4305_v61  ;;  %v4308_v49 = vpack.c.bf16 %v11042_v19, %v4302_v50  ;;  %v8331_v19 = vld [vmem:[#allocation7 + $0x248] sm:$0xf0] }
 0x6d7   : > { %v4356_v40 = vrot.slane %v4310_v43, 1 }
 0x6d8   : > { %4564 = vmatpush.bf16.msrb.mxu3 %v8442_v35  ;;  %4280 = vmatpush.bf16.msra.mxu1 %v8252_v58  ;;  %v9573_v35 = vld [vmem:[#allocation7 + $0x274] sm:$0xf]  ;;  %v8403_v58 = vld [vmem:[#allocation7 + $0x2d8] sm:$0xf0]  ;;  %v4359_v12 = vrot.slane %v4311_v8, 1  ;;  %v4358_v20 = vrot.slane %v4308_v49, 1 }
 0x6d9   : > { %4606 = vmatpush.bf16.msrb.mxu2 %v8446_v42  ;;  %4553 = vmatpush.bf16.msra.mxu0 %v8354_v27  ;;  %v4307_v42 = vpack.c.bf16 %v11053_v37, %v4301_v28  ;;  %v8358_v62 = vor.u32 %v9573_v35, %v8355_v47  ;;  %v9571_v37 = vld [vmem:[#allocation7 + $0x264] sm:$0xf]  ;;  %v8406_v1 = vor.u32 %v9585_v56, %v8403_v58 }
 0x6da   : > { %v9583_v27 = vld [vmem:[#allocation7 + $0x2c4] sm:$0xf]  ;;  %v8350_v55 = vor.u32 %v9571_v37, %v8347_v4 }
 0x6db   : > { %4281 = vmatmul.bf16.vlgmr.msra.gmra.mxu1 %v11073_v10  ;;  %v9575_v10 = vld [vmem:[#allocation7 + $0x284] sm:$0xf]  ;;  %8326 = vmatmul.msk.bf16.vlgmr.msra.gmra.mxu3 %vm392_vm2, %v11068_v57  ;;  %v8410_v57 = vor.u32 %v9588_v7, %v8409_v24  ;;  %v4355_v36 = vrot.slane %v4307_v42, 1 }
 0x6dc   : > { %4591 = vmatpush.bf16.msrb.mxu1 %v8390_v59  ;;  %4565 = vmatpush.bf16.msrb.mxu3 %v8434_v52  ;;  %v8366_v32 = vor.u32 %v9575_v10, %v8363_v25  ;;  %v8330_v59 = vor.u32 %v9568_v33, %v8329_v31  ;;  %v8393_v52 = vld [vmem:[#allocation7 + $0x2c0] sm:$0xf]  ;;  %v9567_v28 = vld [vmem:[#allocation7 + $0x244] sm:$0xf] }
 0x6dd   : > { %4607 = vmatpush.bf16.msrb.mxu2 %v8438_v53  ;;  %4554 = vmatpush.bf16.msra.mxu0 %v8346_v17  ;;  %v8470_v53 = vor.u32 %v9601_v48, %v8467_v39  ;;  %v8394_v11 = vor.u32 %v9584_v45, %v8393_v52  ;;  %v8342_v17 = vor.u32 %v9569_v14, %v8339_v0 }
 0x6de   : > { %8471 = vmatmul.msk.bf16.vlgmr.msra.gmra.mxu2 %vm392_vm2, %v11080_v23  ;;  %v8334_v21 = vor.u32 %v9567_v28, %v8331_v19 }
 0x6e0   : > { %4592 = vmatpush.bf16.msrb.mxu1 %v8382_v6  ;;  %4566 = vmatpush.bf16.msrb.mxu3 %v8426_v9  ;;  %v8395_v6 = vld [vmem:[#allocation7 + $0x2c8] sm:$0xf0]  ;;  %v8462_v9 = vor.u32 %v9599_v5, %v8459_v3 }
 0x6e1   : > { %4608 = vmatpush.bf16.msrb.mxu2 %v8430_v15  ;;  %4555 = vmatpush.bf16.msra.mxu0 %v8338_v44  ;;  %v4357_v15 = vsel %vm1182_vm10, %v4355_v36, %v4356_v40  ;;  %v8398_v13 = vor.u32 %v9583_v27, %v8395_v6 }
 0x6e4   : > { %4593 = vmatpush.bf16.msrb.mxu1 %v8374_v18  ;;  %4567 = vmatpush.bf16.msrb.mxu3 %v8418_v51  ;;  %v4360_v18 = vsel %vm1182_vm10, %v4358_v20, %v4359_v12 }
 0x6e5   : > { %4609 = vmatpush.bf16.msrb.mxu2 %v8422_v2  ;;  %4556 = vmatpush.bf16.msra.mxu0 %v8330_v59 }
 0x6e8   : > { %4594 = vmatpush.bf16.msrb.mxu1 %v8366_v32  ;;  %4568 = vmatpush.bf16.msrb.mxu3 %v8410_v57 }
 0x6e9   : > { %4610 = vmatpush.bf16.msrb.mxu2 %v8414_v41  ;;  %4625 = vmatpush.bf16.msrb.mxu0 %v8470_v53 }
 0x6ea   : > { %4557 = vmatmul.bf16.vlgmr.msra.gmra.mxu0 %v4357_v15 }
 0x6ec   : > { %4595 = vmatpush.bf16.msrb.mxu1 %v8358_v62  ;;  %4569 = vmatpush.bf16.msrb.mxu3 %v8402_v63 }
 0x6ed   : > { %4611 = vmatpush.bf16.msrb.mxu2 %v8406_v1  ;;  %4626 = vmatpush.bf16.msrb.mxu0 %v8462_v9 }
 0x6f0   : > { %4596 = vmatpush.bf16.msrb.mxu1 %v8350_v55  ;;  %4570 = vmatpush.bf16.msrb.mxu3 %v8394_v11  ;;  %v10021_v11 = vld [vmem:[%s10364_s23] sm:$0xff] }
 0x6f1   : > { %4612 = vmatpush.bf16.msrb.mxu2 %v8398_v13 }
 0x6f3   : > { %4571 = vmatmul.bf16.vlgmr.msrb.gmra.mxu3 %v4360_v18 }
 0x6f4   : > { %4613 = vmatmul.bf16.vlgmr.msrb.gmra.mxu2 %v4360_v18  ;;  %4597 = vmatpush.bf16.msrb.mxu1 %v8342_v17 }
 0x6f8   : > { %4598 = vmatpush.bf16.msrb.mxu1 %v8334_v21 }
 0x6fa   : > { %8472 = vmatmul.msk.bf16.vlgmr.msrb.gmra.mxu0 %vm392_vm2, %v11080_v23 }
 0x6fb   : > { %4599 = vmatmul.bf16.vlgmr.msrb.gmra.mxu1 %v4357_v15 }
 0x70e   : > { %v3421_v22 = vpop.f32.mrf.mxu3  ;;  %v3463_v2 = vpop.f32.mrf.mxu2 }
 0x710   : > { %v3449_v60 = vpop.f32.mrf.mxu1 }
 0x712   : > { %v3435_v51 = vpop.f32.mrf.mxu0 }
 0x713   : > { %v3436_v24 = vadd.f32 %v3435_v51, %v3421_v22 }
 0x715   : > { %v3450_v10 = vadd.f32 %v3449_v60, %v3436_v24 }
 0x716   : > { %v3423_v7 = vpop.f32.mrf.mxu3  ;;  %v3465_v31 = vpop.f32.mrf.mxu2 }
 0x717   : > { %v8027_v25 = vmul.f32 -1.442695, %v3450_v10 }
 0x718   : > { %v3451_v26 = vpop.f32.mrf.mxu1 }
 0x719   : > { %9989 = vpow2.f32 %v8027_v25 }
 0x71a   : > { %v3437_v29 = vpop.f32.mrf.mxu0 }
 0x71b   : > { %v3438_v44 = vadd.f32 %v3437_v29, %v3423_v7  ;;  %v10022_v7 = vld [vmem:[%s10364_s23 + $0x10] sm:$0xff] }
 0x71d   : > { %v3452_v32 = vadd.f32 %v3451_v26, %v3438_v44 }
 0x71e   : > { %v3491_v23 = vpop.f32.mrf.mxu3  ;;  %v11092_v47 = vpop.f32.mrf.mxu2 }
 0x71f   : > { %v9990_v33 = vpop.eup %9989  ;;  %v8029_v34 = vmul.f32 -1.442695, %v3452_v32 }
 0x720   : > { %v3508_v35 = vadd.f32 1.0, %v9990_v33  ;;  %v3477_v42 = vpop.f32.mrf.mxu1 }
 0x721   : > { %9991 = vpow2.f32 %v8029_v34  ;;  %v3478_v43 = vadd.f32 %v3477_v42, %v3463_v2 }
 0x722   : > { %9993 = vrcp.f32 %v3508_v35  ;;  %v3523_v36 = vand.u32 2147483648, %v3508_v35  ;;  %v3521_v37 = vand.u32 2147483647, %v3508_v35  ;;  %vm3517_vm14 = vweird.f32 %v3508_v35 }
 0x723   : > { %v3492_v57 = vadd.f32 %v3491_v23, %v3478_v43 }
 0x724   : > { %v11094_v58 = vpop.f32.mrf.mxu0  ;;  %v3524_v3 = vor.u32 1.1754944e-38, %v3523_v36  ;;  %vm3522_vm15 = vcmp.eq.f32.partialorder %v3521_v37, 8.507059e+37 }
 0x725   : > { %v8028_v48 = vmul.f32 -1.442695, %v3492_v57 }
 0x726   : > { %v3493_v40 = vpop.f32.mrf.mxu3  ;;  %v11096_v50 = vpop.f32.mrf.mxu2 }
 0x727   : > { %v9992_v41 = vpop.eup %9991  ;;  %9995 = vpow2.f32 %v8028_v48 }
 0x728   : > { %v9994_v39 = vpop.eup %9993  ;;  %v3510_v54 = vadd.f32 1.0, %v9992_v41  ;;  %v3479_v59 = vpop.f32.mrf.mxu1 }
 0x729   : > { %v3513_v56 = vmul.f32 %v9994_v39, %v3508_v35  ;;  %v3480_v62 = vadd.f32 %v3479_v59, %v3465_v31  ;;  %vm3518_vm12 = vweird.f32 %v9994_v39 }
 0x72a   : > { %9997 = vrcp.f32 %v3510_v54  ;;  %vm3519_vm0 = vmor %vm3517_vm14, %vm3518_vm12  ;;  %v3553_v15 = vand.u32 2147483648, %v3510_v54  ;;  %v3551_v0 = vand.u32 2147483647, %v3510_v54  ;;  %vm3547_vm14 = vweird.f32 %v3510_v54 }
 0x72b   : > { %v3514_v61 = vsub.f32 1.0, %v3513_v56  ;;  %v3494_v53 = vadd.f32 %v3493_v40, %v3480_v62 }
 0x72c   : > { %v11099_v9 = vpop.f32.mrf.mxu0 }
 0x72d   : > { %v3515_v52 = vmul.f32 %v9994_v39, %v3514_v61  ;;  %v9996_v63 = vpop.eup %9995  ;;  %v8030_v4 = vmul.f32 -1.442695, %v3494_v53 }
 0x72e   : > { %v3509_v45 = vadd.f32 1.0, %v9996_v63  ;;  %v3973_v51 = vpop.f32.mrf.mxu3 }
 0x72f   : > { %v3516_v1 = vadd.f32 %v9994_v39, %v3515_v52  ;;  %9999 = vpow2.f32 %v8030_v4 }
 0x730   : > { %v9998_v5 = vpop.eup %9997  ;;  %10001 = vrcp.f32 %v3509_v45  ;;  %v11102_v28 = vpop.f32.mrf.mxu1  ;;  %v3538_v25 = vand.u32 2147483648, %v3509_v45  ;;  %v3536_v44 = vand.u32 2147483647, %v3509_v45 }
 0x731   : > { %v3520_v27 = vsel %vm3519_vm0, %v9994_v39, %v3516_v1  ;;  %v3543_v6 = vmul.f32 %v9998_v5, %v3510_v54  ;;  %vm3548_vm12 = vweird.f32 %v9998_v5  ;;  %vm3552_vm0 = vcmp.eq.f32.partialorder %v3551_v0, 8.507059e+37  ;;  %v11110_v10 = vpop.f32.mrf.mxu2  ;;  %v10023_v54 = vld [vmem:[%s10364_s23 + $0x8] sm:$0xff] }
 0x732   : > { %v3525_v8 = vsel %vm3522_vm15, %v3524_v3, %v3520_v27  ;;  %vm3549_vm15 = vmor %vm3547_vm14, %vm3548_vm12  ;;  %vm3532_vm14 = vweird.f32 %v3509_v45  ;;  %v3539_v35 = vor.u32 1.1754944e-38, %v3538_v25  ;;  %v3974_v0 = vadd.f32 %v3973_v51, %v11094_v58  ;;  %v4637_v58 = vld [vmem:[%s11709_s2] sm:$0x3] }
 0x733   : > { %v3572_v55 = vmul.f32 %v3525_v8, %v10524_v16  ;;  %v3544_v49 = vsub.f32 1.0, %v3543_v6  ;;  %v3554_v16 = vor.u32 1.1754944e-38, %v3553_v15 }
 0x734   : > { %v4029_v31 = vpop.f32.mrf.mxu0 }
 0x735   : > { %v3576_v13 = vadd.f32 %v10021_v11, %v3572_v55  ;;  %v3545_v14 = vmul.f32 %v9998_v5, %v3544_v49  ;;  %v10000_v12 = vpop.eup %9999 }
 0x736   : > { %v10002_v19 = vpop.eup %10001  ;;  %v3511_v18 = vadd.f32 1.0, %v10000_v12  ;;  %v3975_v39 = vpop.f32.mrf.mxu3 }
 0x737   : > { %v3580_v20 = vmax.f32 %v3576_v13, 0.0  ;;  %v3546_v17 = vadd.f32 %v9998_v5, %v3545_v14  ;;  %v3528_v22 = vmul.f32 %v10002_v19, %v3509_v45  ;;  %vm3533_vm12 = vweird.f32 %v10002_v19 }
 0x738   : > { %10003 = vrcp.f32 %v3511_v18  ;;  %v11114_v42 = vpop.f32.mrf.mxu1  ;;  %v3568_v48 = vand.u32 2147483648, %v3511_v18  ;;  %v3566_v61 = vand.u32 2147483647, %v3511_v18 }
 0x739   : > { %3584 = vst [vmem:[%s11106_s25] sm:$0xff] %v3580_v20  ;;  %v3550_v21 = vsel %vm3549_vm15, %v9998_v5, %v3546_v17  ;;  %v3529_v24 = vsub.f32 1.0, %v3528_v22  ;;  %vm3534_vm15 = vmor %vm3532_vm14, %vm3533_vm12  ;;  %v4017_v62 = vpop.f32.mrf.mxu2  ;;  %vm3562_vm12 = vweird.f32 %v3511_v18  ;;  %v10024_v5 = vld [vmem:[%s10364_s23 + $0x18] sm:$0xff]  ;;  %v3976_v22 = vadd.f32 %v3975_v39, %v11099_v9 }
 0x73a   : > { %v3555_v60 = vsel %vm3552_vm0, %v3554_v16, %v3550_v21  ;;  %vm3537_vm0 = vcmp.eq.f32.partialorder %v3536_v44, 8.507059e+37  ;;  %v3569_v37 = vor.u32 1.1754944e-38, %v3568_v48 }
 0x73b   : > { %v3574_v2 = vmul.f32 %v3555_v60, %v10528_v30  ;;  %v3530_v29 = vmul.f32 %v10002_v19, %v3529_v24 }
 0x73c   : > { %v4031_v52 = vpop.f32.mrf.mxu0 }
 0x73d   : > { %v3578_v26 = vadd.f32 %v10022_v7, %v3574_v2  ;;  %v3531_v33 = vadd.f32 %v10002_v19, %v3530_v29 }
 0x73e   : > { %v10004_v34 = vpop.eup %10003 }
 0x73f   : > { %v3582_v32 = vmax.f32 %v3578_v26, 0.0  ;;  %v3535_v30 = vsel %vm3534_vm15, %v10002_v19, %v3531_v33  ;;  %v3558_v23 = vmul.f32 %v10004_v34, %v3511_v18  ;;  %vm3563_vm13 = vweird.f32 %v10004_v34 }
 0x740   : > { %v3540_v43 = vsel %vm3537_vm0, %v3539_v35, %v3535_v30  ;;  %vm3564_vm14 = vmor %vm3562_vm12, %vm3563_vm13  ;;  %vm3567_vm15 = vcmp.eq.f32.partialorder %v3566_v61, 8.507059e+37  ;;  %v4254_v1 = vpop.f32.mrf.mxu1  ;;  %v4016_v18 = vadd.f32 %v11110_v10, %v11102_v28  ;;  %v4647_v28 = vld [vmem:[%s11710_s3] sm:$0x3]  ;;  %v4018_v33 = vadd.f32 %v4017_v62, %v11114_v42 }
 0x741   : > { %3586 = vst [vmem:[%s11106_s25 + $0x10] sm:$0xff] %v3582_v32  ;;  %v3573_v57 = vmul.f32 %v3540_v43, %v10532_v38  ;;  %v3559_v41 = vsub.f32 1.0, %v3558_v23  ;;  %v4640_v35 = vperm.slane %v4637_v58, 1 }
 0x742   : > { %v4030_v60 = vadd.f32 %v4029_v31, %v4016_v18  ;;  %v4639_v31 = vperm.slane %v4637_v58, 0  ;;  %v8531_v18 = vld [vmem:[#allocation9 + $0x190] sm:$0xf]  ;;  %v8587_v58 = vld [vmem:[#allocation9 + $0x200] sm:$0xf] }
 0x743   : > { %v3577_v56 = vadd.f32 %v10023_v54, %v3573_v57  ;;  %v3560_v59 = vmul.f32 %v10004_v34, %v3559_v41  ;;  %v4032_v57 = vadd.f32 %v4031_v52, %v4018_v33  ;;  %v9650_v33 = vld [vmem:[#allocation9 + $0x174] sm:$0xf0] }
 0x745   : > { %v3581_v36 = vmax.f32 %v3577_v56, 0.0  ;;  %v3561_v40 = vadd.f32 %v10004_v34, %v3560_v59 }
 0x747   : > { %3585 = vst [vmem:[%s11106_s25 + $0x8] sm:$0xff] %v3581_v36  ;;  %v3565_v38 = vsel %vm3564_vm14, %v10004_v34, %v3561_v40  ;;  %v4240_v6 = vpop.f32.mrf.mxu0  ;;  %v4650_v40 = vperm.slane %v4647_v28, 1 }
 0x748   : > { %v3570_v53 = vsel %vm3567_vm15, %v3569_v37, %v3565_v38  ;;  %v4256_v55 = vpop.f32.mrf.mxu1 }
 0x749   : > { %v3575_v63 = vmul.f32 %v3570_v53, %v10536_v46  ;;  %v3988_v46 = vadd.f32 %v11092_v47, %v3974_v0  ;;  %v3990_v47 = vadd.f32 %v11096_v50, %v3976_v22  ;;  %v4649_v50 = vperm.slane %v4647_v28, 0  ;;  %v9654_v22 = vld [vmem:[#allocation9 + $0x194] sm:$0xf0] }
 0x74b   : > { %v3579_v3 = vadd.f32 %v10024_v5, %v3575_v63 }
 0x74d   : > { %v3583_v27 = vmax.f32 %v3579_v3, 0.0 }
 0x74e   : > { %v4226_v4 = vpop.f32.mrf.mxu3 }
 0x74f   : > { %3587 = vst [vmem:[%s11106_s25 + $0x18] sm:$0xff] %v3583_v27  ;;  %v4242_v15 = vpop.f32.mrf.mxu0  ;;  %v4227_v19 = vadd.f32 %v4226_v4, %v3988_v46 }
 0x751   : > { %v4268_v45 = vpop.f32.mrf.mxu2  ;;  %v4241_v2 = vadd.f32 %v4240_v6, %v4227_v19  ;;  %v8595_v19 = vld [vmem:[#allocation9 + $0x210] sm:$0xf] }
 0x752   : > { %v4269_v24 = vadd.f32 %v4268_v45, %v4030_v60  ;;  %v9653_v60 = vld [vmem:[#allocation9 + $0x194] sm:$0xf] }
 0x753   : > { %v4255_v26 = vadd.f32 %v4254_v1, %v4241_v2  ;;  %v8533_v2 = vld [vmem:[#allocation9 + $0x198] sm:$0xf0] }
 0x756   : > { %v4228_v8 = vpop.f32.mrf.mxu3 }
 0x757   : > { %v4229_v9 = vadd.f32 %v4228_v8, %v3990_v47  ;;  %v8523_v47 = vld [vmem:[#allocation9 + $0x180] sm:$0xf] }
 0x758   : > { %v4282_v14 = vpop.f32.mrf.mxu1 }
 0x759   : > { %v4270_v49 = vpop.f32.mrf.mxu2  ;;  %v4283_v29 = vadd.f32 %v4282_v14, %v4269_v24  ;;  %v4243_v41 = vadd.f32 %v4242_v15, %v4229_v9  ;;  %v8532_v24 = vor.u32 %v9654_v22, %v8531_v18  ;;  %v8547_v18 = vld [vmem:[#allocation9 + $0x1b0] sm:$0xf] }
 0x75a   : > { %v4271_v54 = vadd.f32 %v4270_v49, %v4032_v57  ;;  %v8571_v57 = vld [vmem:[#allocation9 + $0x1e0] sm:$0xf] }
 0x75b   : > { %v4257_v42 = vadd.f32 %v4256_v55, %v4243_v41  ;;  %5018 = vmatpush.bf16.msra.mxu3 %v8532_v24  ;;  %v9664_v41 = vld [vmem:[#allocation9 + $0x1e4] sm:$0xf0]  ;;  %v8581_v24 = vld [vmem:[#allocation9 + $0x1f8] sm:$0xf0] }
 0x75e   : > { %v4296_v11 = vpop.f32.mrf.mxu3 }
 0x75f   : > { %v4297_v30 = vadd.f32 %v4296_v11, %v4283_v29  ;;  %v9651_v29 = vld [vmem:[#allocation9 + $0x184] sm:$0xf] }
 0x760   : > { %v4284_v16 = vpop.f32.mrf.mxu1 }
 0x761   : > { %v4586_v13 = vpop.f32.mrf.mxu2  ;;  %v4285_v37 = vadd.f32 %v4284_v16, %v4271_v54  ;;  %v9670_v16 = vld [vmem:[#allocation9 + $0x214] sm:$0xf0]  ;;  %v8507_v54 = vld [vmem:[#allocation9 + $0x160] sm:$0xf] }
 0x766   : > { %v4298_v20 = vpop.f32.mrf.mxu3 }
 0x767   : > { %v4558_v12 = vpop.f32.mrf.mxu0  ;;  %v4299_v4 = vadd.f32 %v4298_v20, %v4285_v37  ;;  %v8509_v37 = vld [vmem:[#allocation9 + $0x168] sm:$0xf0] }
 0x769   : > { %v4588_v17 = vpop.f32.mrf.mxu2 }
 0x76f   : > { %v4560_v21 = vpop.f32.mrf.mxu0 }
 0x776   : > { %v4572_v25 = vpop.f32.mrf.mxu3 }
 0x777   : > { %v4614_v51 = vpop.f32.mrf.mxu2  ;;  %v4573_v7 = vadd.f32 %v4572_v25, %v4558_v12  ;;  %v4628_v34 = vpop.f32.mrf.mxu0  ;;  %v8536_v25 = vor.u32 %v9653_v60, %v8533_v2  ;;  %v9665_v2 = vld [vmem:[#allocation9 + $0x1f4] sm:$0xf] }
 0x778   : > { %v4600_v44 = vpop.f32.mrf.mxu1 }
 0x779   : > { %v4587_v10 = vadd.f32 %v4586_v13, %v4573_v7  ;;  %v4615_v32 = vadd.f32 %v4614_v51, %v4600_v44  ;;  %v9668_v51 = vld [vmem:[#allocation9 + $0x204] sm:$0xf0]  ;;  %v8525_v44 = vld [vmem:[#allocation9 + $0x188] sm:$0xf0]  ;;  %5060 = vmatpush.bf16.msra.mxu2 %v8536_v25  ;;  %v8584_v25 = vor.u32 %v9665_v2, %v8581_v24 }
 0x77a   : > { %v8588_v7 = vor.u32 %v9668_v51, %v8587_v58  ;;  %v8528_v9 = vor.u32 %v9651_v29, %v8525_v44  ;;  %v9641_v29 = vld [vmem:[#allocation9 + $0x134] sm:$0xf]  ;;  %v8485_v44 = vld [vmem:[#allocation9 + $0x138] sm:$0xf0]  ;;  %v9608_v2 = vld [vmem:[#allocation9 + $0x24] sm:$0xf0] }
 0x77b   : > { %v4633_v23 = vadd.f32 %v4587_v10, %v4255_v26  ;;  %v4629_v43 = vadd.f32 %v4628_v34, %v4615_v32  ;;  %v9652_v26 = vld [vmem:[#allocation9 + $0x184] sm:$0xf0]  ;;  %v8579_v10 = vld [vmem:[#allocation9 + $0x1f0] sm:$0xf] }
 0x77c   : > { %v8524_v28 = vor.u32 %v9652_v26, %v8523_v47  ;;  %v8515_v32 = vld [vmem:[#allocation9 + $0x170] sm:$0xf] }
 0x77d   : > { %v4643_v48 = vmul.f32 %v4639_v31, %v4633_v23  ;;  %v4634_v39 = vadd.f32 %v4629_v43, %v4297_v30  ;;  %v8611_v34 = vld [vmem:[#allocation9 + $0x230] sm:$0xf]  ;;  %v9649_v23 = vld [vmem:[#allocation9 + $0x174] sm:$0xf]  ;;  %v8517_v43 = vld [vmem:[#allocation9 + $0x178] sm:$0xf0]  ;;  %5061 = vmatpush.bf16.msra.mxu2 %v8528_v9 }
 0x77e   : > { %v4574_v56 = vpop.f32.mrf.mxu3  ;;  %5019 = vmatpush.bf16.msra.mxu3 %v8524_v28  ;;  %v8483_v47 = vld [vmem:[#allocation9 + $0x130] sm:$0xf]  ;;  %v8488_v28 = vor.u32 %v9641_v29, %v8485_v44  ;;  %v8539_v9 = vld [vmem:[#allocation9 + $0x1a0] sm:$0xf] }
 0x77f   : > { %v4644_v59 = vmul.f32 %v4640_v35, %v4634_v39  ;;  %v4575_v61 = vadd.f32 %v4574_v56, %v4560_v21  ;;  %v4653_v36 = vadd.f32 %v4649_v50, %v4643_v48  ;;  %v4616_v38 = vpop.f32.mrf.mxu2  ;;  %v4630_v5 = vpop.f32.mrf.mxu0  ;;  %v8596_v21 = vor.u32 %v9670_v16, %v8595_v19  ;;  %v8603_v56 = vld [vmem:[#allocation9 + $0x220] sm:$0xf]  ;;  %v8493_v16 = vld [vmem:[#allocation9 + $0x148] sm:$0xf0] }
 0x780   : > { %v4602_v53 = vpop.f32.mrf.mxu1  ;;  %v8516_v48 = vor.u32 %v9650_v33, %v8515_v32  ;;  %v8520_v39 = vor.u32 %v9649_v23, %v8517_v43  ;;  %v8573_v33 = vld [vmem:[#allocation9 + $0x1e8] sm:$0xf0]  ;;  %v8475_v43 = vld [vmem:[#allocation9 + $0x120] sm:$0xf] }
 0x781   : > { %v4589_v62 = vadd.f32 %v4588_v17, %v4575_v61  ;;  %v4617_v63 = vadd.f32 %v4616_v38, %v4602_v53  ;;  %v4657_v1 = vmax.f32 %v4653_v36, 0.0  ;;  %v4654_v27 = vadd.f32 %v4650_v40, %v4644_v59  ;;  %5032 = vmatpush.bf16.msra.mxu0 %v8596_v21  ;;  %v9672_v59 = vld [vmem:[#allocation9 + $0x224] sm:$0xf0]  ;;  %v9669_v38 = vld [vmem:[#allocation9 + $0x214] sm:$0xf] }
 0x782   : > { %v9648_v61 = vld [vmem:[#allocation9 + $0x164] sm:$0xf0]  ;;  %v8604_v36 = vor.u32 %v9672_v59, %v8603_v56  ;;  %v8597_v53 = vld [vmem:[#allocation9 + $0x218] sm:$0xf0]  ;;  %5020 = vmatpush.bf16.msra.mxu3 %v8516_v48  ;;  %5062 = vmatpush.bf16.msra.mxu2 %v8520_v39  ;;  %v9658_v21 = vld [vmem:[#allocation9 + $0x1b4] sm:$0xf0] }
 0x783   : > { %v4635_v3 = vadd.f32 %v4589_v62, %v4257_v42  ;;  %v4631_v52 = vadd.f32 %v4630_v5, %v4617_v63  ;;  %v4665_v45 = vrot.slane %v4657_v1, 7  ;;  %v4658_v15 = vmax.f32 %v4654_v27, 0.0  ;;  %v9662_v5 = vld [vmem:[#allocation9 + $0x1d4] sm:$0xf0]  ;;  %v8477_v48 = vld [vmem:[#allocation9 + $0x128] sm:$0xf0] }
 0x784   : > { %v8572_v42 = vor.u32 %v9664_v41, %v8571_v57  ;;  %v8600_v62 = vor.u32 %v9669_v38, %v8597_v53  ;;  %v8508_v63 = vor.u32 %v9648_v61, %v8507_v54  ;;  %v9646_v27 = vld [vmem:[#allocation9 + $0x154] sm:$0xf0]  ;;  %v8548_v60 = vor.u32 %v9658_v21, %v8547_v18  ;;  %v9639_v57 = vld [vmem:[#allocation9 + $0x124] sm:$0xf]  ;;  %v9661_v39 = vld [vmem:[#allocation9 + $0x1d4] sm:$0xf] }
 0x785   : > { %v4645_v6 = vmul.f32 %v4639_v31, %v4635_v3  ;;  %v4636_v8 = vadd.f32 %v4631_v52, %v4299_v4  ;;  %4671 = vrot.lane.b32.xlu2 %v4665_v45, %s10198_s1  ;;  %v4666_v0 = vrot.slane %v4658_v15, 7  ;;  %v9666_v31 = vld [vmem:[#allocation9 + $0x1f4] sm:$0xf0]  ;;  %5033 = vmatpush.bf16.msra.mxu0 %v8588_v7  ;;  %v8563_v4 = vld [vmem:[#allocation9 + $0x1d0] sm:$0xf]  ;;  %v8480_v56 = vor.u32 %v9639_v57, %v8477_v48 }
 0x786   : > { %v8564_v3 = vor.u32 %v9662_v5, %v8563_v4  ;;  %5021 = vmatpush.bf16.msra.mxu3 %v8508_v63  ;;  %v8555_v15 = vld [vmem:[#allocation9 + $0x1c0] sm:$0xf]  ;;  %v9642_v7 = vld [vmem:[#allocation9 + $0x134] sm:$0xf0]  ;;  %v8565_v54 = vld [vmem:[#allocation9 + $0x1d8] sm:$0xf0] }
 0x787   : > { %v4646_v49 = vmul.f32 %v4640_v35, %v4636_v8  ;;  %v4655_v11 = vadd.f32 %v4649_v50, %v4645_v6  ;;  %v9674_v35 = vld [vmem:[#allocation9 + $0x234] sm:$0xf0]  ;;  %v8580_v50 = vor.u32 %v9666_v31, %v8579_v10  ;;  %v9645_v8 = vld [vmem:[#allocation9 + $0x154] sm:$0xf]  ;;  %v8484_v26 = vor.u32 %v9642_v7, %v8483_v47  ;;  %v9656_v10 = vld [vmem:[#allocation9 + $0x1a4] sm:$0xf0] }
 0x788   : > { %v8612_v30 = vor.u32 %v9674_v35, %v8611_v34  ;;  %v9663_v31 = vld [vmem:[#allocation9 + $0x1e4] sm:$0xf]  ;;  %v8540_v32 = vor.u32 %v9656_v10, %v8539_v9  ;;  %v8677_v34 = vld [vmem:[#allocation9 + $0x70] sm:$0xf]  ;;  %v9618_v35 = vld [vmem:[#allocation9 + $0x74] sm:$0xf0]  ;;  %v8568_v59 = vor.u32 %v9661_v39, %v8565_v54 }
 0x789   : > { %v4659_v13 = vmax.f32 %v4655_v11, 0.0  ;;  %v4656_v14 = vadd.f32 %v4650_v40, %v4646_v49  ;;  %v9647_v40 = vld [vmem:[#allocation9 + $0x164] sm:$0xf]  ;;  %5034 = vmatpush.bf16.msra.mxu0 %v8580_v50  ;;  %v8501_v49 = vld [vmem:[#allocation9 + $0x158] sm:$0xf0]  ;;  %v8678_v23 = vor.u32 %v9618_v35, %v8677_v34 }
 0x78a   : > { %5052 = vmatpush.bf16.msra.mxu1 %v8612_v30  ;;  %v8512_v1 = vor.u32 %v9647_v40, %v8509_v37  ;;  %v8504_v11 = vor.u32 %v9645_v8, %v8501_v49  ;;  %v8576_v30 = vor.u32 %v9663_v31, %v8573_v33  ;;  %v9640_v50 = vld [vmem:[#allocation9 + $0x124] sm:$0xf0]  ;;  %v9673_v61 = vld [vmem:[#allocation9 + $0x234] sm:$0xf]  ;;  %v8757_v40 = vld [vmem:[#allocation9 + $0x110] sm:$0xf] }
 0x78b   : > { %v4667_v55 = vrot.slane %v4659_v13, 7  ;;  %v4660_v46 = vmax.f32 %v4656_v14, 0.0  ;;  %v9660_v13 = vld [vmem:[#allocation9 + $0x1c4] sm:$0xf0]  ;;  %v9667_v14 = vld [vmem:[#allocation9 + $0x204] sm:$0xf]  ;;  %v8476_v41 = vor.u32 %v9640_v50, %v8475_v43 }
 0x78c   : > { %5063 = vmatpush.bf16.msra.mxu2 %v8512_v1  ;;  %v9638_v38 = vld [vmem:[#allocation9 + $0x114] sm:$0xf0]  ;;  %v8669_v53 = vld [vmem:[#allocation9 + $0x60] sm:$0xf]  ;;  %v9659_v1 = vld [vmem:[#allocation9 + $0x1c4] sm:$0xf] }
 0x78d   : > { %4673 = vrot.lane.b32.xlu2 %v4666_v0, %s10198_s1  ;;  %4679 = vrot.lane.b32.xlu1 %v4667_v55, %s10198_s1  ;;  %v4668_v12 = vsel %vm414_vm1, %v4665_v45, %v4667_v55  ;;  %v4669_v20 = vrot.slane %v4660_v46, 7  ;;  %v8499_v45 = vld [vmem:[#allocation9 + $0x150] sm:$0xf]  ;;  %v8556_v55 = vor.u32 %v9660_v13, %v8555_v15  ;;  %v8491_v46 = vld [vmem:[#allocation9 + $0x140] sm:$0xf] }
 0x78e   : > { %4675 = vrot.lane.b32.xlu0 %v4668_v12, %s10198_s1  ;;  %5053 = vmatpush.bf16.msra.mxu1 %v8604_v36  ;;  %v8500_v6 = vor.u32 %v9646_v27, %v8499_v45  ;;  %v8613_v36 = vld [vmem:[#allocation9 + $0x238] sm:$0xf0]  ;;  %v8557_v4 = vld [vmem:[#allocation9 + $0x1c8] sm:$0xf0]  ;;  %v9671_v5 = vld [vmem:[#allocation9 + $0x224] sm:$0xf] }
 0x78f   : > { %v4670_v17 = vsel %vm414_vm1, %v4666_v0, %v4669_v20  ;;  %5035 = vmatpush.bf16.msra.mxu0 %v8572_v42  ;;  %v8589_v0 = vld [vmem:[#allocation9 + $0x208] sm:$0xf0]  ;;  %v8616_v37 = vor.u32 %v9673_v61, %v8613_v36  ;;  %v9616_v42 = vld [vmem:[#allocation9 + $0x64] sm:$0xf0]  ;;  %v8560_v27 = vor.u32 %v9659_v1, %v8557_v4  ;;  %v8661_v49 = vld [vmem:[#allocation9 + $0x50] sm:$0xf] }
 0x790   : > { %5022 = vmatpush.bf16.msra.mxu3 %v8500_v6  ;;  %v8592_v12 = vor.u32 %v9667_v14, %v8589_v0  ;;  %5064 = vmatpush.bf16.msra.mxu2 %v8504_v11  ;;  %v8670_v63 = vor.u32 %v9616_v42, %v8669_v53  ;;  %v9636_v45 = vld [vmem:[#allocation9 + $0x104] sm:$0xf0]  ;;  %v9614_v15 = vld [vmem:[#allocation9 + $0x54] sm:$0xf0]  ;;  %v9657_v13 = vld [vmem:[#allocation9 + $0x1b4] sm:$0xf] }
 0x791   : > { %v8662_v11 = vor.u32 %v9614_v15, %v8661_v49  ;;  %v8549_v14 = vld [vmem:[#allocation9 + $0x1b8] sm:$0xf0]  ;;  %v8653_v0 = vld [vmem:[#allocation9 + $0x40] sm:$0xf]  ;;  %v9610_v18 = vld [vmem:[#allocation9 + $0x34] sm:$0xf0] }
 0x792   : > { %5074 = vmatpush.bf16.msrb.mxu1 %v8600_v62  ;;  %v8758_v62 = vor.u32 %v9638_v38, %v8757_v40  ;;  %v8621_v7 = vld [vmem:[#allocation9] sm:$0xf]  ;;  %v8741_v57 = vld [vmem:[#allocation9 + $0xf0] sm:$0xf]  ;;  %v9633_v48 = vld [vmem:[#allocation9 + $0xf4] sm:$0xf] }
 0x793   : > { %5036 = vmatpush.bf16.msra.mxu0 %v8564_v3  ;;  %v8605_v3 = vld [vmem:[#allocation9 + $0x228] sm:$0xf0]  ;;  %v8743_v39 = vld [vmem:[#allocation9 + $0xf8] sm:$0xf0]  ;;  %v8733_v61 = vld [vmem:[#allocation9 + $0xe0] sm:$0xf] }
 0x794   : > { %v8608_v6 = vor.u32 %v9671_v5, %v8605_v3  ;;  %v8746_v38 = vor.u32 %v9633_v48, %v8743_v39  ;;  %v9632_v53 = vld [vmem:[#allocation9 + $0xe4] sm:$0xf0]  ;;  %v8711_v48 = vld [vmem:[#allocation9 + $0xb8] sm:$0xf0]  ;;  %vm11760_vm1 = vcmask 1031168  }
 0x795   : > { %4681 = vrot.lane.b32.xlu1 %v4669_v20, %s10198_s1  ;;  %v9644_v20 = vld [vmem:[#allocation9 + $0x144] sm:$0xf0] }
 0x796   : > { %4677 = vrot.lane.b32.xlu0 %v4670_v17, %s10198_s1  ;;  %v9643_v17 = vld [vmem:[#allocation9 + $0x144] sm:$0xf]  ;;  %v8492_v19 = vor.u32 %v9644_v20, %v8491_v46  ;;  %5075 = vmatpush.bf16.msrb.mxu1 %v8592_v12  ;;  %v8552_v12 = vor.u32 %v9657_v13, %v8549_v14  ;;  %v8725_v13 = vld [vmem:[#allocation9 + $0xd0] sm:$0xf]  ;;  %v9630_v14 = vld [vmem:[#allocation9 + $0xd4] sm:$0xf0] }
 0x797   : > { %5037 = vmatpush.bf16.msra.mxu0 %v8556_v55  ;;  %v8496_v22 = vor.u32 %v9643_v17, %v8493_v16  ;;  %v9612_v55 = vld [vmem:[#allocation9 + $0x44] sm:$0xf0]  ;;  %v9655_v20 = vld [vmem:[#allocation9 + $0x1a4] sm:$0xf]  ;;  %v8541_v17 = vld [vmem:[#allocation9 + $0x1a8] sm:$0xf0] }
 0x798   : > { %5023 = vmatpush.bf16.msra.mxu3 %v8492_v19  ;;  %v8654_v46 = vor.u32 %v9612_v55, %v8653_v0  ;;  %v8544_v19 = vor.u32 %v9655_v20, %v8541_v17  ;;  %v8645_v16 = vld [vmem:[#allocation9 + $0x30] sm:$0xf] }
 0x799   : > { %5065 = vmatpush.bf16.msra.mxu2 %v8496_v22  ;;  %v8646_v21 = vor.u32 %v9610_v18, %v8645_v16  ;;  %v8637_v22 = vld [vmem:[#allocation9 + $0x20] sm:$0xf]  ;;  %v9617_v16 = vld [vmem:[#allocation9 + $0x74] sm:$0xf] }
 0x79a   : > { %5076 = vmatpush.bf16.msrb.mxu1 %v8584_v25  ;;  %v8638_v25 = vor.u32 %v9608_v2, %v8637_v22  ;;  %v8726_v22 = vor.u32 %v9630_v14, %v8725_v13  ;;  %v9635_v2 = vld [vmem:[#allocation9 + $0x104] sm:$0xf] }
 0x79b   : > { %5038 = vmatpush.bf16.msra.mxu0 %v8548_v60 }
 0x79c   : > { %5024 = vmatpush.bf16.msra.mxu3 %v8484_v26  ;;  %v9604_v26 = vld [vmem:[#allocation9 + $0x4] sm:$0xf0] }
 0x79d   : > { %5066 = vmatpush.bf16.msra.mxu2 %v8488_v28  ;;  %v8622_v33 = vor.u32 %v9604_v26, %v8621_v7  ;;  %v8717_v7 = vld [vmem:[#allocation9 + $0xc0] sm:$0xf]  ;;  %v9628_v26 = vld [vmem:[#allocation9 + $0xc4] sm:$0xf0] }
 0x79e   : > { %5077 = vmatpush.bf16.msrb.mxu1 %v8576_v30 }
 0x79f   : > { %5039 = vmatpush.bf16.msra.mxu0 %v8540_v32 }
 0x7a0   : > { %5025 = vmatpush.bf16.msra.mxu3 %v8476_v41  ;;  %v9634_v41 = vld [vmem:[#allocation9 + $0xf4] sm:$0xf0] }
 0x7a1   : > { %5067 = vmatpush.bf16.msra.mxu2 %v8480_v56 }
 0x7a2   : > { %5078 = vmatpush.bf16.msrb.mxu1 %v8568_v59 }
 0x7a3   : > { %5285 = vmatpush.bf16.msrb.mxu0 %v8678_v23 }
 0x7a4   : > { %5094 = vmatpush.bf16.msrb.mxu3 %v8616_v37  ;;  %v8742_v37 = vor.u32 %v9634_v41, %v8741_v57  ;;  %v9626_v57 = vld [vmem:[#allocation9 + $0xb4] sm:$0xf0]  ;;  %v9625_v41 = vld [vmem:[#allocation9 + $0xb4] sm:$0xf] }
 0x7a5   : > { %5319 = vmatpush.bf16.msrb.mxu2 %v8758_v62  ;;  %v9631_v62 = vld [vmem:[#allocation9 + $0xe4] sm:$0xf] }
 0x7a6   : > { %5079 = vmatpush.bf16.msrb.mxu1 %v8560_v27  ;;  %v8759_v27 = vld [vmem:[#allocation9 + $0x118] sm:$0xf0] }
 0x7a7   : > { %5286 = vmatpush.bf16.msrb.mxu0 %v8670_v63  ;;  %v8735_v63 = vld [vmem:[#allocation9 + $0xe8] sm:$0xf0] }
 0x7a8   : > { %5095 = vmatpush.bf16.msrb.mxu3 %v8608_v6  ;;  %v8734_v6 = vor.u32 %v9632_v53, %v8733_v61  ;;  %v8738_v15 = vor.u32 %v9631_v62, %v8735_v63  ;;  %v9623_v53 = vld [vmem:[#allocation9 + $0xa4] sm:$0xf] }
 0x7a9   : > { %v9611_v63 = vld [vmem:[#allocation9 + $0x44] sm:$0xf] }
 0x7aa   : > { %5080 = vmatpush.bf16.msrb.mxu1 %v8552_v12  ;;  %v9629_v12 = vld [vmem:[#allocation9 + $0xd4] sm:$0xf] }
 0x7ab   : > { %5287 = vmatpush.bf16.msrb.mxu0 %v8662_v11 }
 0x7ae   : > { %5081 = vmatpush.bf16.msrb.mxu1 %v8544_v19 }
 0x7af   : > { %5288 = vmatpush.bf16.msrb.mxu0 %v8654_v46  ;;  %v8727_v46 = vld [vmem:[#allocation9 + $0xd8] sm:$0xf0] }
 0x7b3   : > { %5289 = vmatpush.bf16.msrb.mxu0 %v8646_v21 }
 0x7b7   : > { %5290 = vmatpush.bf16.msrb.mxu0 %v8638_v25 }
 0x7df   : > { %v4672_v52 = vpop.permute.xlu2 %4671 }
 0x7e0   : > { %4695 = vst.msk [vmem:[#allocation2] sm:$0xfe] %vm446_vm8, %v4672_v52  ;;  %vm11768_vm8 = vmmov %vm11760_vm1 }
 0x7e7   : > { %v4674_v58 = vpop.permute.xlu2 %4673  ;;  %v4749_v31 = vld [vmem:[#allocation2] sm:$0xfe] }
 0x7e8   : > { %v4683_v51 = vsel %vm433_vm6, %v4672_v52, %v4674_v58  ;;  %4697 = vst.msk [vmem:[#allocation2 + $0x10] sm:$0xfe] %vm449_vm7, %v4674_v58  ;;  %v8749_v52 = vld [vmem:[#allocation9 + $0x100] sm:$0xf]  ;;  %v8629_v58 = vld [vmem:[#allocation9 + $0x10] sm:$0xf]  ;;  %vm11767_vm7 = vmmov %vm11760_vm1 }
 0x7e9   : > { %4696 = vst [vmem:[#allocation2 + $0x8] sm:$0xfe] %v4683_v51  ;;  %v8750_v8 = vor.u32 %v9636_v45, %v8749_v52  ;;  %v9606_v51 = vld [vmem:[#allocation9 + $0x14] sm:$0xf0]  ;;  %v9637_v45 = vld [vmem:[#allocation9 + $0x114] sm:$0xf] }
 0x7ea   : > { %v8630_v47 = vor.u32 %v9606_v51, %v8629_v58  ;;  %v8762_v20 = vor.u32 %v9637_v45, %v8759_v27  ;;  %v8730_v51 = vor.u32 %v9629_v12, %v8727_v46  ;;  %v8693_v45 = vld [vmem:[#allocation9 + $0x90] sm:$0xf]  ;;  %v9622_v27 = vld [vmem:[#allocation9 + $0x94] sm:$0xf0]  ;;  %v4704_v13 = vld [vmem:[#allocation2] sm:$0xff] }
 0x7eb   : > { %5320 = vmatpush.bf16.msrb.mxu2 %v8750_v8  ;;  %v8879_v12 = vld [vmem:[#allocation9 + $0x320] sm:$0xf]  ;;  %v9704_v46 = vld [vmem:[#allocation9 + $0x324] sm:$0xf0] }
 0x7ec   : > { %5291 = vmatpush.bf16.msrb.mxu0 %v8630_v47 }
 0x7ef   : > { %v4751_v49 = vld [vmem:[#allocation2 + $0x10] sm:$0xfe] }
 0x7f0   : > { %v4750_v30 = vld [vmem:[#allocation2 + $0x8] sm:$0xfe]  ;;  %5292 = vmatpush.bf16.msrb.mxu0 %v8622_v33  ;;  %v9615_v33 = vld [vmem:[#allocation9 + $0x64] sm:$0xf]  ;;  %v4706_v61 = vld [vmem:[#allocation2 + $0x10] sm:$0xff] }
 0x7ff   : > { %v4680_v60 = vpop.permute.xlu1 %4679 }
 0x800   : > { %4701 = vst.msk [vmem:[#allocation2 + $0x30] sm:$0x1] %vm455_vm4, %v4680_v60  ;;  %v4676_v24 = vpop.permute.xlu0 %4675  ;;  %vm11764_vm4 = vmmov %vm11760_vm1 }
 0x801   : > { %4698 = vst.msk [vmem:[#allocation2 + $0x18] sm:$0xff] %vm451_vm3, %v4676_v24  ;;  %vm11763_vm3 = vmmov %vm11760_vm1 }
 0x807   : > { %v4682_v29 = vpop.permute.xlu1 %4681  ;;  %v4752_v44 = vld [vmem:[#allocation2 + $0x30] sm:$0x1] }
 0x808   : > { %v4685_v28 = vsel %vm433_vm6, %v4680_v60, %v4682_v29  ;;  %4703 = vst.msk [vmem:[#allocation2 + $0x40] sm:$0x1] %vm458_vm5, %v4682_v29  ;;  %v4678_v9 = vpop.permute.xlu0 %4677  ;;  %v11150_v10 = vld [vmem:[#allocation2 + $0x18] sm:$0xff]  ;;  %v4758_v32 = vpack.c.bf16 %v4752_v44, %v4752_v44  ;;  %v9627_v29 = vld [vmem:[#allocation9 + $0xc4] sm:$0xf]  ;;  %vm11765_vm5 = vmmov %vm11760_vm1 }
 0x809   : > { %4702 = vst [vmem:[#allocation2 + $0x38] sm:$0x1] %v4685_v28  ;;  %v11153_v34 = vsel %vm433_vm6, %v4676_v24, %v4678_v9  ;;  %v4755_v35 = vpack.c.bf16 %v11150_v10, %v4749_v31  ;;  %v8679_v60 = vld [vmem:[#allocation9 + $0x78] sm:$0xf0]  ;;  %v8751_v24 = vld [vmem:[#allocation9 + $0x108] sm:$0xf0] }
 0x80a   : > { %v4756_v23 = vpack.c.bf16 %v11153_v34, %v4750_v30  ;;  %4700 = vst.msk [vmem:[#allocation2 + $0x28] sm:$0xff] %vm433_vm6, %v4678_v9  ;;  %v4805_v50 = vshll.u32 %v4758_v32, 16  ;;  %v8719_v44 = vld [vmem:[#allocation9 + $0xc8] sm:$0xf0]  ;;  %v8682_v31 = vor.u32 %v9617_v16, %v8679_v60  ;;  %v8754_v32 = vor.u32 %v9635_v2, %v8751_v24  ;;  %v9620_v16 = vld [vmem:[#allocation9 + $0x84] sm:$0xf0]  ;;  %vm11766_vm6 = vmmov %vm11760_vm1 }
 0x80b   : > { %v4800_v43 = vshll.u32 %v4755_v35, 16  ;;  %v4798_v54 = vshrl.u32 %v4755_v35, 16  ;;  %v8671_v35 = vld [vmem:[#allocation9 + $0x68] sm:$0xf0]  ;;  %v8823_v60 = vld [vmem:[#allocation9 + $0x2b0] sm:$0xf] }
 0x80c   : > { %v4812_v59 = vshll.u32 %v4756_v23, 16  ;;  %v4807_v40 = vrot.slane %v4805_v50, 1  ;;  %v4810_v0 = vshrl.u32 %v4756_v23, 16  ;;  %v8718_v23 = vor.u32 %v9628_v26, %v8717_v7  ;;  %v8709_v50 = vld [vmem:[#allocation9 + $0xb0] sm:$0xf] }
 0x80d   : > { %v4802_v56 = vrot.slane %v4800_v43, 1  ;;  %v8722_v43 = vor.u32 %v9627_v29, %v8719_v44  ;;  %v8674_v39 = vor.u32 %v9615_v33, %v8671_v35  ;;  %v9690_v24 = vld [vmem:[#allocation9 + $0x2b4] sm:$0xf0]  ;;  %v8639_v7 = vld [vmem:[#allocation9 + $0x28] sm:$0xf0] }
 0x80e   : > { %v4814_v52 = vrot.slane %v4812_v59, 1  ;;  %v8710_v59 = vor.u32 %v9626_v57, %v8709_v50  ;;  %v8871_v26 = vld [vmem:[#allocation9 + $0x310] sm:$0xf]  ;;  %v9702_v29 = vld [vmem:[#allocation9 + $0x314] sm:$0xf0] }
 0x80f   : > { %v4803_v36 = vor.u32 %v4802_v56, %v4798_v54  ;;  %v4754_v42 = vld [vmem:[#allocation2 + $0x40] sm:$0x1]  ;;  %v9613_v54 = vld [vmem:[#allocation9 + $0x54] sm:$0xf]  ;;  %v8663_v56 = vld [vmem:[#allocation9 + $0x58] sm:$0xf0]  ;;  %v8872_v50 = vor.u32 %v9702_v29, %v8871_v26 }
 0x810   : > { %v4753_v1 = vld [vmem:[#allocation2 + $0x38] sm:$0x1]  ;;  %v4760_v5 = vpack.c.bf16 %v4754_v42, %v4754_v42  ;;  %v4815_v18 = vor.u32 %v4814_v52, %v4810_v0  ;;  %v8703_v42 = vld [vmem:[#allocation9 + $0xa8] sm:$0xf0]  ;;  %v8666_v62 = vor.u32 %v9613_v54, %v8663_v56  ;;  %v8647_v0 = vld [vmem:[#allocation9 + $0x38] sm:$0xf0] }
 0x811   : > { %v4808_v4 = vsel %vm554_vm9, %v4803_v36, %v4807_v40  ;;  %v4759_v3 = vpack.c.bf16 %v4753_v1, %v4753_v1  ;;  %v11159_v8 = vld [vmem:[#allocation2 + $0x28] sm:$0xff]  ;;  %v8714_v36 = vor.u32 %v9625_v41, %v8711_v48  ;;  %v8701_v40 = vld [vmem:[#allocation9 + $0xa0] sm:$0xf]  ;;  %v8706_v52 = vor.u32 %v9623_v53, %v8703_v42  ;;  %v8631_v57 = vld [vmem:[#allocation9 + $0x18] sm:$0xf0] }
 0x812   : > { %5026 = vmatmul.bf16.vlgmr.msra.gmra.mxu3 %v4808_v4  ;;  %5068 = vmatmul.bf16.vlgmr.msra.gmra.mxu2 %v4808_v4  ;;  %v4757_v11 = vpack.c.bf16 %v11159_v8, %v4751_v49  ;;  %v4829_v19 = vshll.u32 %v4760_v5, 16  ;;  %v8655_v1 = vld [vmem:[#allocation9 + $0x48] sm:$0xf0]  ;;  %v8887_v4 = vld [vmem:[#allocation9 + $0x330] sm:$0xf] }
 0x813   : > { %5299 = vmatpush.bf16.msra.mxu3 %v8742_v37  ;;  %5341 = vmatpush.bf16.msra.mxu2 %v8746_v38  ;;  %v4817_v55 = vshll.u32 %v4759_v3, 16  ;;  %v11169_v37 = vpack.c.bf16 %v11159_v8, %v4706_v61  ;;  %v9624_v38 = vld [vmem:[#allocation9 + $0xa4] sm:$0xf0]  ;;  %v9706_v5 = vld [vmem:[#allocation9 + $0x334] sm:$0xf0] }
 0x814   : > { %v4824_v17 = vshll.u32 %v4757_v11, 16  ;;  %v4822_v25 = vshrl.u32 %v4757_v11, 16  ;;  %v4831_v9 = vrot.slane %v4829_v19, 1  ;;  %v8702_v3 = vor.u32 %v9624_v38, %v8701_v40  ;;  %v8695_v49 = vld [vmem:[#allocation9 + $0x98] sm:$0xf0] }
 0x815   : > { %v4819_v21 = vrot.slane %v4817_v55, 1  ;;  %v9609_v11 = vld [vmem:[#allocation9 + $0x34] sm:$0xf]  ;;  %v8888_v14 = vor.u32 %v9706_v5, %v8887_v4  ;;  %v11175_v55 = vpack.c.bf16 %v11150_v10, %v4704_v13  ;;  %v8685_v19 = vld [vmem:[#allocation9 + $0x80] sm:$0xf] }
 0x816   : > { %v4826_v58 = vrot.slane %v4824_v17, 1  ;;  %v8650_v2 = vor.u32 %v9609_v11, %v8647_v0  ;;  %v8686_v44 = vor.u32 %v9620_v16, %v8685_v19  ;;  %v8815_v33 = vld [vmem:[#allocation9 + $0x2a0] sm:$0xf]  ;;  %v9700_v48 = vld [vmem:[#allocation9 + $0x304] sm:$0xf0] }
 0x817   : > { %5300 = vmatpush.bf16.msra.mxu3 %v8734_v6  ;;  %5342 = vmatpush.bf16.msra.mxu2 %v8738_v15  ;;  %v11163_v47 = vsel %vm554_vm9, %v4815_v18, %v4819_v21  ;;  %v9621_v6 = vld [vmem:[#allocation9 + $0x94] sm:$0xf]  ;;  %v8658_v15 = vor.u32 %v9611_v63, %v8655_v1  ;;  %v9607_v18 = vld [vmem:[#allocation9 + $0x24] sm:$0xf]  ;;  %v8863_v41 = vld [vmem:[#allocation9 + $0x300] sm:$0xf] }
 0x818   : > { %5040 = vmatmul.bf16.vlgmr.msra.gmra.mxu0 %v11163_v47  ;;  %v4827_v28 = vor.u32 %v4826_v58, %v4822_v25  ;;  %v8698_v17 = vor.u32 %v9621_v6, %v8695_v49  ;;  %v9619_v21 = vld [vmem:[#allocation9 + $0x84] sm:$0xf]  ;;  %v9689_v25 = vld [vmem:[#allocation9 + $0x2b4] sm:$0xf]  ;;  %v8825_v58 = vld [vmem:[#allocation9 + $0x2b8] sm:$0xf0]  ;;  %v8642_v35 = vor.u32 %v9607_v18, %v8639_v7  ;;  %v8864_v53 = vor.u32 %v9700_v48, %v8863_v41 }
 0x819   : > { %5361 = vmatpush.bf16.msra.mxu0 %v8762_v20  ;;  %v8694_v20 = vor.u32 %v9622_v27, %v8693_v45  ;;  %v9685_v40 = vld [vmem:[#allocation9 + $0x294] sm:$0xf]  ;;  %v8809_v38 = vld [vmem:[#allocation9 + $0x298] sm:$0xf0]  ;;  %v9603_v42 = vld [vmem:[#allocation9 + $0x4] sm:$0xf] }
 0x81a   : > { %v4832_v30 = vsel %vm554_vm9, %v4827_v28, %v4831_v9  ;;  %v8824_v9 = vor.u32 %v9690_v24, %v8823_v60  ;;  %v8903_v63 = vld [vmem:[#allocation9 + $0x350] sm:$0xf]  ;;  %v9710_v1 = vld [vmem:[#allocation9 + $0x354] sm:$0xf0]  ;;  %v8799_v27 = vld [vmem:[#allocation9 + $0x280] sm:$0xf] }
 0x81b   : > { %5301 = vmatpush.bf16.msra.mxu3 %v8726_v22  ;;  %5343 = vmatpush.bf16.msra.mxu2 %v8730_v51  ;;  %v8687_v22 = vld [vmem:[#allocation9 + $0x88] sm:$0xf0]  ;;  %v8880_v51 = vor.u32 %v9704_v46, %v8879_v12  ;;  %v8855_v4 = vld [vmem:[#allocation9 + $0x2f0] sm:$0xf]  ;;  %v9698_v5 = vld [vmem:[#allocation9 + $0x2f4] sm:$0xf0]  ;;  %v8904_v49 = vor.u32 %v9710_v1, %v8903_v63 }
 0x81c   : > { %8617 = vmatmul.msk.bf16.vlgmr.msra.gmra.mxu1 %vm392_vm2, %v4832_v30  ;;  %v8690_v28 = vor.u32 %v9619_v21, %v8687_v22  ;;  %v9684_v6 = vld [vmem:[#allocation9 + $0x284] sm:$0xf0]  ;;  %v9683_v11 = vld [vmem:[#allocation9 + $0x284] sm:$0xf]  ;;  %v8801_v13 = vld [vmem:[#allocation9 + $0x288] sm:$0xf0] }
 0x81d   : > { %5327 = vmatpush.bf16.msra.mxu1 %v8682_v31  ;;  %5362 = vmatpush.bf16.msra.mxu0 %v8754_v32  ;;  %v8828_v31 = vor.u32 %v9689_v25, %v8825_v58  ;;  %v9605_v32 = vld [vmem:[#allocation9 + $0x14] sm:$0xf]  ;;  %v9708_v0 = vld [vmem:[#allocation9 + $0x344] sm:$0xf0]  ;;  %v8847_v12 = vld [vmem:[#allocation9 + $0x2e0] sm:$0xf]  ;;  %v8804_v16 = vor.u32 %v9683_v11, %v8801_v13 }
 0x81e   : > { %v8634_v61 = vor.u32 %v9605_v32, %v8631_v57  ;;  %v9696_v46 = vld [vmem:[#allocation9 + $0x2e4] sm:$0xf0]  ;;  %v8889_v19 = vld [vmem:[#allocation9 + $0x338] sm:$0xf0]  ;;  %v8791_v18 = vld [vmem:[#allocation9 + $0x270] sm:$0xf] }
 0x81f   : > { %5302 = vmatpush.bf16.msra.mxu3 %v8718_v23  ;;  %5344 = vmatpush.bf16.msra.mxu2 %v8722_v43  ;;  %v9687_v23 = vld [vmem:[#allocation9 + $0x2a4] sm:$0xf]  ;;  %v8817_v43 = vld [vmem:[#allocation9 + $0x2a8] sm:$0xf0]  ;;  %v9682_v21 = vld [vmem:[#allocation9 + $0x274] sm:$0xf0]  ;;  %v8848_v24 = vor.u32 %v9696_v46, %v8847_v12 }
 0x820   : > { %v8820_v56 = vor.u32 %v9687_v23, %v8817_v43  ;;  %v9681_v60 = vld [vmem:[#allocation9 + $0x274] sm:$0xf]  ;;  %v8839_v58 = vld [vmem:[#allocation9 + $0x2d0] sm:$0xf]  ;;  %v8792_v7 = vor.u32 %v9682_v21, %v8791_v18  ;;  %v9703_v26 = vld [vmem:[#allocation9 + $0x324] sm:$0xf] }
 0x821   : > { %5328 = vmatpush.bf16.msra.mxu1 %v8674_v39  ;;  %v4705_v39 = vld [vmem:[#allocation2 + $0x8] sm:$0xff]  ;;  %v8873_v57 = vld [vmem:[#allocation9 + $0x318] sm:$0xf0]  ;;  %v5374_v41 = vld [vmem:[#allocation2 + $0x40] sm:$0x3]  ;;  %vm11769_vm9 = vcmask 1014784  }
 0x822   : > { %8618 = vmatmul.msk.bf16.vlgmr.msrb.gmra.mxu3 %vm392_vm2, %v4832_v30  ;;  %8763 = vmatmul.msk.bf16.vlgmr.msrb.gmra.mxu2 %vm392_vm2, %v11169_v37  ;;  %v9688_v30 = vld [vmem:[#allocation9 + $0x2a4] sm:$0xf0]  ;;  %v8881_v29 = vld [vmem:[#allocation9 + $0x328] sm:$0xf0]  ;;  %v5372_v63 = vld [vmem:[#allocation2 + $0x30] sm:$0x3] }
 0x823   : > { %5303 = vmatpush.bf16.msra.mxu3 %v8710_v59  ;;  %5345 = vmatpush.bf16.msra.mxu2 %v8714_v36  ;;  %v8816_v54 = vor.u32 %v9688_v30, %v8815_v33  ;;  %v8807_v59 = vld [vmem:[#allocation9 + $0x290] sm:$0xf]  ;;  %v9686_v36 = vld [vmem:[#allocation9 + $0x294] sm:$0xf0]  ;;  %v8785_v32 = vld [vmem:[#allocation9 + $0x268] sm:$0xf0]  ;;  %v5378_v11 = vpack.c.bf16 %v5372_v63, %v5372_v63 }
 0x824   : > { %v8831_v30 = vld [vmem:[#allocation9 + $0x2c0] sm:$0xf]  ;;  %v9692_v23 = vld [vmem:[#allocation9 + $0x2c4] sm:$0xf0]  ;;  %v8905_v13 = vld [vmem:[#allocation9 + $0x358] sm:$0xf0] }
 0x825   : > { %5329 = vmatpush.bf16.msra.mxu1 %v8666_v62  ;;  %v8623_v62 = vld [vmem:[#allocation9 + $0x8] sm:$0xf0]  ;;  %vm11773_vm13 = vmmov %vm11769_vm9 }
 0x826   : > { %v8626_v45 = vor.u32 %v9603_v42, %v8623_v62  ;;  %v5370_v43 = vld [vmem:[#allocation2 + $0x8] sm:$0xfc]  ;;  %v5380_v42 = vpack.c.bf16 %v5374_v41, %v5374_v41  ;;  %v5369_v62 = vld [vmem:[#allocation2] sm:$0xfc]  ;;  %vm11774_vm0 = vmmov %vm11769_vm9 }
 0x827   : > { %5304 = vmatpush.bf16.msra.mxu3 %v8702_v3  ;;  %5346 = vmatpush.bf16.msra.mxu2 %v8706_v52  ;;  %v8808_v3 = vor.u32 %v9686_v36, %v8807_v59  ;;  %v8812_v52 = vor.u32 %v9685_v40, %v8809_v38  ;;  %v5376_v48 = vpack.c.bf16 %v11153_v34, %v5370_v43  ;;  %v9677_v59 = vld [vmem:[#allocation9 + $0x254] sm:$0xf]  ;;  %vm11775_vm12 = vmmov %vm11774_vm0 }
 0x828   : > { %5293 = vmatmul.bf16.vlgmr.msrb.gmra.mxu0 %v11175_v55  ;;  %v8832_v36 = vor.u32 %v9692_v23, %v8831_v30  ;;  %v5371_v40 = vld [vmem:[#allocation2 + $0x10] sm:$0xfc]  ;;  %v5430_v12 = vrot.slane %v5380_v42, 1  ;;  %vm11776_vm14 = vmmov %vm11774_vm0 }
 0x829   : > { %5330 = vmatpush.bf16.msra.mxu1 %v8658_v15  ;;  %5631 = vmatpush.bf16.msrb.mxu0 %v8888_v14  ;;  %v8895_v15 = vld [vmem:[#allocation9 + $0x340] sm:$0xf]  ;;  %v8856_v14 = vor.u32 %v9698_v5, %v8855_v4  ;;  %v8865_v4 = vld [vmem:[#allocation9 + $0x308] sm:$0xf0]  ;;  %v5426_v5 = vrot.slane %v5376_v48, 1  ;;  %vm11777_vm15 = vmmov %vm11774_vm0 }
 0x82a   : > { %v8896_v22 = vor.u32 %v9708_v0, %v8895_v15  ;;  %v5375_v15 = vpack.c.bf16 %v11150_v10, %v5369_v62  ;;  %v9707_v10 = vld [vmem:[#allocation9 + $0x344] sm:$0xf] }
 0x82b   : > { %5305 = vmatpush.bf16.msra.mxu3 %v8694_v20  ;;  %5347 = vmatpush.bf16.msra.mxu2 %v8698_v17  ;;  %v8800_v20 = vor.u32 %v9684_v6, %v8799_v27  ;;  %v9705_v17 = vld [vmem:[#allocation9 + $0x334] sm:$0xf]  ;;  %v9676_v27 = vld [vmem:[#allocation9 + $0x244] sm:$0xf0]  ;;  %v9675_v6 = vld [vmem:[#allocation9 + $0x244] sm:$0xf] }
 0x82c   : > { %5082 = vmatmul.bf16.vlgmr.msrb.gmra.mxu1 %v11163_v47  ;;  %v4711_v47 = vpack.c.bf16 %v11153_v34, %v4705_v39  ;;  %v8892_v25 = vor.u32 %v9705_v17, %v8889_v19  ;;  %v9699_v34 = vld [vmem:[#allocation9 + $0x304] sm:$0xf]  ;;  %v9697_v17 = vld [vmem:[#allocation9 + $0x2f4] sm:$0xf]  ;;  %v8857_v19 = vld [vmem:[#allocation9 + $0x2f8] sm:$0xf0] }
 0x82d   : > { %5331 = vmatpush.bf16.msra.mxu1 %v8650_v2  ;;  %5632 = vmatpush.bf16.msrb.mxu0 %v8880_v51  ;;  %v8793_v2 = vld [vmem:[#allocation9 + $0x278] sm:$0xf0]  ;;  %v9694_v51 = vld [vmem:[#allocation9 + $0x2d4] sm:$0xf0]  ;;  %v5423_v21 = vrot.slane %v5375_v15, 1 }
 0x82e   : > { %v8840_v33 = vor.u32 %v9694_v51, %v8839_v58  ;;  %v8849_v58 = vld [vmem:[#allocation9 + $0x2e8] sm:$0xf0] }
 0x82f   : > { %5306 = vmatpush.bf16.msra.mxu3 %v8686_v44  ;;  %5348 = vmatpush.bf16.msra.mxu2 %v8690_v28  ;;  %v8783_v44 = vld [vmem:[#allocation9 + $0x260] sm:$0xf]  ;;  %v9680_v28 = vld [vmem:[#allocation9 + $0x264] sm:$0xf0] }
 0x831   : > { %5332 = vmatpush.bf16.msra.mxu1 %v8642_v35  ;;  %5633 = vmatpush.bf16.msrb.mxu0 %v8872_v50  ;;  %v8884_v35 = vor.u32 %v9703_v26, %v8881_v29  ;;  %v9701_v50 = vld [vmem:[#allocation9 + $0x314] sm:$0xf] }
 0x832   : > { %5307 = vmatmul.bf16.vlgmr.msra.gmra.mxu3 %v4711_v47  ;;  %5349 = vmatmul.bf16.vlgmr.msra.gmra.mxu2 %v4711_v47  ;;  %v8876_v38 = vor.u32 %v9701_v50, %v8873_v57  ;;  %v9693_v29 = vld [vmem:[#allocation9 + $0x2d4] sm:$0xf] }
 0x833   : > { %5617 = vmatpush.bf16.msrb.mxu3 %v8824_v9  ;;  %5659 = vmatpush.bf16.msrb.mxu2 %v8828_v31  ;;  %v5373_v9 = vld [vmem:[#allocation2 + $0x38] sm:$0x3]  ;;  %v9679_v31 = vld [vmem:[#allocation9 + $0x264] sm:$0xf] }
 0x834   : > { %v5379_v39 = vpack.c.bf16 %v5373_v9, %v5373_v9  ;;  %v8788_v47 = vor.u32 %v9679_v31, %v8785_v32  ;;  %v8833_v9 = vld [vmem:[#allocation9 + $0x2c8] sm:$0xf0] }
 0x835   : > { %5333 = vmatpush.bf16.msra.mxu1 %v8634_v61  ;;  %5634 = vmatpush.bf16.msrb.mxu0 %v8864_v53  ;;  %v8777_v61 = vld [vmem:[#allocation9 + $0x258] sm:$0xf0]  ;;  %v5377_v53 = vpack.c.bf16 %v11159_v8, %v5371_v40  ;;  %v9709_v8 = vld [vmem:[#allocation9 + $0x354] sm:$0xf] }
 0x836   : > { %v8908_v18 = vor.u32 %v9709_v8, %v8905_v13 }
 0x837   : > { %5618 = vmatpush.bf16.msrb.mxu3 %v8816_v54  ;;  %5660 = vmatpush.bf16.msrb.mxu2 %v8820_v56  ;;  %v8775_v54 = vld [vmem:[#allocation9 + $0x250] sm:$0xf]  ;;  %v9678_v56 = vld [vmem:[#allocation9 + $0x254] sm:$0xf0]  ;;  %v5429_v0 = vrot.slane %v5377_v53, 1 }
 0x838   : > { %8764 = vmatmul.msk.bf16.vlgmr.msra.gmra.mxu0 %vm392_vm2, %v11169_v37  ;;  %v8796_v37 = vor.u32 %v9681_v60, %v8793_v2  ;;  %v8776_v1 = vor.u32 %v9678_v56, %v8775_v54  ;;  %v8897_v60 = vld [vmem:[#allocation9 + $0x348] sm:$0xf0] }
 0x839   : > { %5334 = vmatpush.bf16.msra.mxu1 %v8626_v45  ;;  %5635 = vmatpush.bf16.msrb.mxu0 %v8856_v14  ;;  %v8767_v45 = vld [vmem:[#allocation9 + $0x240] sm:$0xf]  ;;  %v8868_v14 = vor.u32 %v9699_v34, %v8865_v4  ;;  %v5431_v2 = vsel %vm1182_vm10, %v5429_v0, %v5430_v12  ;;  %v8900_v51 = vor.u32 %v9707_v10, %v8897_v60 }
 0x83a   : > { %v8768_v46 = vor.u32 %v9676_v27, %v8767_v45 }
 0x83b   : > { %5619 = vmatpush.bf16.msrb.mxu3 %v8808_v3  ;;  %5661 = vmatpush.bf16.msrb.mxu2 %v8812_v52  ;;  %v5427_v3 = vrot.slane %v5379_v39, 1  ;;  %v8780_v52 = vor.u32 %v9677_v59, %v8777_v61 }
 0x83c   : > { %5335 = vmatmul.bf16.vlgmr.msra.gmra.mxu1 %v11175_v55  ;;  %v8784_v55 = vor.u32 %v9680_v28, %v8783_v44  ;;  %v9691_v28 = vld [vmem:[#allocation9 + $0x2c4] sm:$0xf] }
 0x83d   : > { %5651 = vmatpush.bf16.msrb.mxu1 %v8904_v49  ;;  %5636 = vmatpush.bf16.msrb.mxu0 %v8848_v24  ;;  %v8769_v49 = vld [vmem:[#allocation9 + $0x248] sm:$0xf0]  ;;  %v8860_v24 = vor.u32 %v9697_v17, %v8857_v19  ;;  %v8836_v31 = vor.u32 %v9691_v28, %v8833_v9 }
 0x83f   : > { %5620 = vmatpush.bf16.msrb.mxu3 %v8800_v20  ;;  %5662 = vmatpush.bf16.msrb.mxu2 %v8804_v16  ;;  %v5428_v20 = vsel %vm1182_vm10, %v5426_v5, %v5427_v3  ;;  %v8772_v16 = vor.u32 %v9675_v6, %v8769_v49  ;;  %v5705_v6 = vld [vmem:[%s11712_s5] sm:$0x3] }
 0x840   : > { %v5707_v0 = vperm.slane %v5705_v6, 0 }
 0x841   : > { %5652 = vmatpush.bf16.msrb.mxu1 %v8896_v22  ;;  %5637 = vmatpush.bf16.msrb.mxu0 %v8840_v33  ;;  %v5424_v22 = vrot.slane %v5378_v11, 1  ;;  %v5715_v11 = vld [vmem:[%s11713_s6] sm:$0x3] }
 0x842   : > { %v5717_v17 = vperm.slane %v5715_v11, 0 }
 0x843   : > { %5621 = vmatpush.bf16.msrb.mxu3 %v8792_v7  ;;  %5663 = vmatpush.bf16.msrb.mxu2 %v8796_v37  ;;  %v5425_v7 = vsel %vm1182_vm10, %v5423_v21, %v5424_v22  ;;  %v8841_v37 = vld [vmem:[#allocation9 + $0x2d8] sm:$0xf0]  ;;  %vm11770_vm10 = vmmov %vm11769_vm9 }
 0x844   : > { %v8844_v44 = vor.u32 %v9693_v29, %v8841_v37 }
 0x845   : > { %5673 = vmatpush.bf16.msra.mxu1 %v8892_v25  ;;  %5638 = vmatpush.bf16.msrb.mxu0 %v8832_v36  ;;  %v9695_v25 = vld [vmem:[#allocation9 + $0x2e4] sm:$0xf] }
 0x846   : > { %v8852_v26 = vor.u32 %v9695_v25, %v8849_v58 }
 0x847   : > { %5622 = vmatpush.bf16.msrb.mxu3 %v8784_v55  ;;  %5664 = vmatpush.bf16.msrb.mxu2 %v8788_v47 }
 0x848   : > { %5639 = vmatmul.bf16.vlgmr.msrb.gmra.mxu0 %v5428_v20 }
 0x849   : > { %5674 = vmatpush.bf16.msra.mxu1 %v8884_v35 }
 0x84b   : > { %5623 = vmatpush.bf16.msrb.mxu3 %v8776_v1  ;;  %5665 = vmatpush.bf16.msrb.mxu2 %v8780_v52 }
 0x84c   : > { %8909 = vmatmul.msk.bf16.vlgmr.msrb.gmra.mxu1 %vm392_vm2, %v5431_v2 }
 0x84d   : > { %5675 = vmatpush.bf16.msra.mxu1 %v8876_v38 }
 0x84f   : > { %5624 = vmatpush.bf16.msrb.mxu3 %v8768_v46  ;;  %5666 = vmatpush.bf16.msrb.mxu2 %v8772_v16 }
 0x851   : > { %5676 = vmatpush.bf16.msra.mxu1 %v8868_v14 }
 0x852   : > { %5625 = vmatmul.bf16.vlgmr.msrb.gmra.mxu3 %v5425_v7  ;;  %5667 = vmatmul.bf16.vlgmr.msrb.gmra.mxu2 %v5425_v7 }
 0x853   : > { %5693 = vmatpush.bf16.msra.mxu3 %v8908_v18 }
 0x855   : > { %5677 = vmatpush.bf16.msra.mxu1 %v8860_v24 }
 0x857   : > { %5694 = vmatpush.bf16.msra.mxu3 %v8900_v51 }
 0x859   : > { %5678 = vmatpush.bf16.msra.mxu1 %v8852_v26 }
 0x85d   : > { %5679 = vmatpush.bf16.msra.mxu1 %v8844_v44 }
 0x861   : > { %5680 = vmatpush.bf16.msra.mxu1 %v8836_v31 }
 0x862   : > { %8910 = vmatmul.msk.bf16.vlgmr.msra.gmra.mxu3 %vm392_vm2, %v5431_v2  ;;  %vm11761_vm2 = vmmov %vm11760_vm1 }
 0x864   : > { %5681 = vmatmul.bf16.vlgmr.msra.gmra.mxu1 %v5428_v20 }
 0x895   : > { %v5041_v32 = vpop.f32.mrf.mxu0  ;;  %v5027_v33 = vpop.f32.mrf.mxu3 }
 0x896   : > { %v5069_v55 = vpop.f32.mrf.mxu2  ;;  %v5042_v42 = vadd.f32 %v5041_v32, %v5027_v33 }
 0x899   : > { %v5055_v35 = vpop.f32.mrf.mxu1 }
 0x89a   : > { %v5056_v34 = vadd.f32 %v5055_v35, %v5042_v42  ;;  %v5708_v35 = vperm.slane %v5705_v6, 1 }
 0x89d   : > { %v5043_v30 = vpop.f32.mrf.mxu0  ;;  %v5029_v43 = vpop.f32.mrf.mxu3 }
 0x89e   : > { %v5071_v48 = vpop.f32.mrf.mxu2  ;;  %v5044_v3 = vadd.f32 %v5043_v30, %v5029_v43  ;;  %v5718_v43 = vperm.slane %v5715_v11, 1 }
 0x8a1   : > { %v5057_v23 = vpop.f32.mrf.mxu1 }
 0x8a2   : > { %v5058_v8 = vadd.f32 %v5057_v23, %v5044_v3 }
 0x8a5   : > { %v5294_v50 = vpop.f32.mrf.mxu0  ;;  %v5097_v41 = vpop.f32.mrf.mxu3 }
 0x8a6   : > { %v5322_v56 = vpop.f32.mrf.mxu2  ;;  %v5295_v4 = vadd.f32 %v5294_v50, %v5056_v34 }
 0x8a9   : > { %v5083_v57 = vpop.f32.mrf.mxu1 }
 0x8aa   : > { %v5084_v15 = vadd.f32 %v5083_v57, %v5069_v55 }
 0x8ac   : > { %v5098_v19 = vadd.f32 %v5097_v41, %v5084_v15 }
 0x8ad   : > { %v5296_v47 = vpop.f32.mrf.mxu0  ;;  %v5099_v54 = vpop.f32.mrf.mxu3 }
 0x8ae   : > { %v5324_v38 = vpop.f32.mrf.mxu2  ;;  %v5297_v46 = vadd.f32 %v5296_v47, %v5058_v8 }
 0x8b1   : > { %v5085_v39 = vpop.f32.mrf.mxu1 }
 0x8b2   : > { %v5086_v25 = vadd.f32 %v5085_v39, %v5071_v48 }
 0x8b4   : > { %v5100_v37 = vadd.f32 %v5099_v54, %v5086_v25 }
 0x8b5   : > { %v5364_v61 = vpop.f32.mrf.mxu0  ;;  %v5308_v36 = vpop.f32.mrf.mxu3 }
 0x8b6   : > { %v5350_v1 = vpop.f32.mrf.mxu2  ;;  %v5309_v52 = vadd.f32 %v5308_v36, %v5295_v4 }
 0x8b8   : > { %v5323_v13 = vadd.f32 %v5322_v56, %v5309_v52 }
 0x8b9   : > { %v5336_v59 = vpop.f32.mrf.mxu1 }
 0x8ba   : > { %v5337_v21 = vadd.f32 %v5336_v59, %v5098_v19 }
 0x8bc   : > { %v5351_v7 = vadd.f32 %v5350_v1, %v5337_v21 }
 0x8bd   : > { %v5366_v53 = vpop.f32.mrf.mxu0  ;;  %v5310_v63 = vpop.f32.mrf.mxu3 }
 0x8be   : > { %v5352_v12 = vpop.f32.mrf.mxu2  ;;  %v5311_v16 = vadd.f32 %v5310_v63, %v5297_v46  ;;  %v5365_v9 = vadd.f32 %v5364_v61, %v5351_v7 }
 0x8c0   : > { %v5325_v58 = vadd.f32 %v5324_v38, %v5311_v16 }
 0x8c1   : > { %v5338_v40 = vpop.f32.mrf.mxu1 }
 0x8c2   : > { %v5339_v32 = vadd.f32 %v5338_v40, %v5100_v37 }
 0x8c4   : > { %v5353_v50 = vadd.f32 %v5352_v12, %v5339_v32 }
 0x8c5   : > { %v5640_v5 = vpop.f32.mrf.mxu0 }
 0x8c6   : > { %v5367_v54 = vadd.f32 %v5366_v53, %v5353_v50 }
 0x8c9   : > { %v5654_v62 = vpop.f32.mrf.mxu1 }
 0x8cd   : > { %v5642_v22 = vpop.f32.mrf.mxu0 }
 0x8d1   : > { %v5656_v45 = vpop.f32.mrf.mxu1 }
 0x8d5   : > { %v5626_v27 = vpop.f32.mrf.mxu3  ;;  %v5668_v26 = vpop.f32.mrf.mxu2 }
 0x8d6   : > { %v5641_v49 = vadd.f32 %v5640_v5, %v5626_v27 }
 0x8d8   : > { %v5655_v14 = vadd.f32 %v5654_v62, %v5641_v49 }
 0x8da   : > { %v5701_v20 = vadd.f32 %v5655_v14, %v5323_v13 }
 0x8dc   : > { %v5711_v18 = vmul.f32 %v5707_v0, %v5701_v20 }
 0x8dd   : > { %v5628_v10 = vpop.f32.mrf.mxu3  ;;  %v5670_v41 = vpop.f32.mrf.mxu2 }
 0x8de   : > { %v5643_v60 = vadd.f32 %v5642_v22, %v5628_v10  ;;  %v11197_v2 = vadd.f32 %v5717_v17, %v5711_v18 }
 0x8e0   : > { %v5657_v51 = vadd.f32 %v5656_v45, %v5643_v60  ;;  %5729 = vrot.lane.b32.xlu2 %v11197_v2, %s11758_s28 }
 0x8e1   : > { %v5682_v24 = vpop.f32.mrf.mxu1 }
 0x8e2   : > { %v5703_v29 = vadd.f32 %v5657_v51, %v5325_v58  ;;  %v5683_v44 = vadd.f32 %v5682_v24, %v5668_v26 }
 0x8e4   : > { %v5713_v28 = vmul.f32 %v5707_v0, %v5703_v29 }
 0x8e5   : > { %v5696_v31 = vpop.f32.mrf.mxu3 }
 0x8e6   : > { %v5697_v33 = vadd.f32 %v5696_v31, %v5683_v44  ;;  %v11201_v30 = vadd.f32 %v5717_v17, %v5713_v28 }
 0x8e8   : > { %v5702_v23 = vadd.f32 %v5697_v33, %v5365_v9  ;;  %5733 = vrot.lane.b32.xlu1 %v11201_v30, %s11758_s28  ;;  %v9718_v33 = vld [vmem:[%s11714_s7 + $0x38] sm:$0xff] }
 0x8e9   : > { %v5684_v55 = vpop.f32.mrf.mxu1  ;;  %6171 = vmatpush.bf16.msra.mxu0 %v9718_v33 }
 0x8ea   : > { %v5712_v57 = vmul.f32 %v5708_v35, %v5702_v23  ;;  %v5685_v48 = vadd.f32 %v5684_v55, %v5670_v41 }
 0x8ec   : > { %v11205_v39 = vadd.f32 %v5718_v43, %v5712_v57 }
 0x8ed   : > { %v5698_v47 = vpop.f32.mrf.mxu3 }
 0x8ee   : > { %v5699_v56 = vadd.f32 %v5698_v47, %v5685_v48  ;;  %5731 = vrot.lane.b32.xlu0 %v11205_v39, %s11758_s28 }
 0x8f0   : > { %v5704_v59 = vadd.f32 %v5699_v56, %v5367_v54 }
 0x8f2   : > { %v5714_v61 = vmul.f32 %v5708_v35, %v5704_v59  ;;  %v9726_v35 = vld [vmem:[%s11714_s7 + $0x78] sm:$0xff] }
 0x8f3   : > { %6185 = vmatpush.bf16.msrb.mxu3 %v9726_v35 }
 0x8f4   : > { %v11209_v36 = vadd.f32 %v5718_v43, %v5714_v61 }
 0x8f6   : > { %5735 = vrot.lane.b32.xlu2 %v11209_v36, %s11758_s28 }
 0x93a   : > { %v5730_v40 = vpop.permute.xlu2 %5729 }
 0x950   : > { %v5736_v38 = vpop.permute.xlu2 %5735 }
 0x95a   : > { %v5734_v42 = vpop.permute.xlu1 %5733 }
 0x95b   : > { %v5738_v62 = vsel %vm2567_vm11, %v5734_v42, %v5736_v38  ;;  %v5746_v53 = vsel %vm2567_vm11, %v5736_v38, %v5734_v42 }
 0x95c   : > { %v5749_v63 = vadd.f32 %v5738_v62, %v11201_v30  ;;  %v5753_v1 = vmax.f32 %v11201_v30, %v5738_v62  ;;  %v5754_v34 = vmax.f32 %v11209_v36, %v5746_v53  ;;  %v5750_v15 = vadd.f32 %v5746_v53, %v11209_v36 }
 0x95e   : > { %5763 = vrot.lane.b32.xlu2 %v5749_v63, %s11759_s18  ;;  %v9934_v27 = vpack.i.bf16 %v5754_v34, %v5753_v1 }
 0x960   : > { %v5732_v4 = vpop.permute.xlu0 %5731 }
 0x961   : > { %v5737_v5 = vsel %vm2567_vm11, %v5730_v40, %v5732_v4  ;;  %v5745_v3 = vsel %vm2567_vm11, %v5732_v4, %v5730_v40  ;;  %vm11772_vm11 = vmmov %vm11769_vm9 }
 0x962   : > { %v5747_v52 = vadd.f32 %v5737_v5, %v11197_v2  ;;  %v5748_v45 = vadd.f32 %v5745_v3, %v11205_v39  ;;  %v5751_v6 = vmax.f32 %v11197_v2, %v5737_v5  ;;  %v5752_v49 = vmax.f32 %v11205_v39, %v5745_v3 }
 0x964   : > { %5761 = vrot.lane.b32.xlu1 %v5748_v45, %s11759_s18  ;;  %5759 = vrot.lane.b32.xlu0 %v5747_v52, %s11759_s18  ;;  %v9929_v11 = vpack.i.bf16 %v5752_v49, %v5751_v6 }
 0x966   : > { %9935 = vrot.lane.b32.xlu2 %v9934_v27, %s11759_s18 }
 0x96c   : > { %9930 = vrot.lane.b32.xlu1 %v9929_v11, %s11759_s18  ;;  %5765 = vrot.lane.b32.xlu0 %v5750_v15, %s11759_s18  ;;  %v9725_v11 = vld [vmem:[%s11714_s7 + $0x70] sm:$0xff] }
 0x96d   : > { %6186 = vmatpush.bf16.msrb.mxu3 %v9725_v11 }
 0x9b8   : > { %v5764_v8 = vpop.permute.xlu2 %5763 }
 0x9c0   : > { %v9936_v17 = vpop.permute.xlu2 %9935 }
 0x9c1   : > { %v9938_v19 = vunpack.i.h.bf16 %v9936_v17  ;;  %v9937_v16 = vunpack.i.l.bf16 %v9936_v17  ;;  %v9741_v17 = vld [vmem:[%s11714_s7 + $0xf0] sm:$0xff] }
 0x9c3   : > { %v5794_v51 = vsel %vm11765_vm5, %v9937_v16, %v9938_v19  ;;  %v5802_v7 = vsel %vm11766_vm6, %v9938_v19, %v9937_v16  ;;  %v9714_v19 = vld [vmem:[%s11714_s7 + $0x18] sm:$0xff] }
 0x9c4   : > { %v5805_v9 = vmax.f32 %v5753_v1, %v5794_v51  ;;  %v5806_v31 = vmax.f32 %v5754_v34, %v5802_v7  ;;  %v9722_v16 = vld [vmem:[%s11714_s7 + $0x58] sm:$0xff] }
 0x9c5   : > { %v9730_v51 = vld [vmem:[%s11714_s7 + $0x98] sm:$0xff] }
 0x9c6   : > { %v9944_v32 = vpack.i.bf16 %v5806_v31, %v5805_v9  ;;  %v9738_v7 = vld [vmem:[%s11714_s7 + $0xd8] sm:$0xff] }
 0x9d6   : > { %v5762_v13 = vpop.permute.xlu1 %5761  ;;  %v5760_v14 = vpop.permute.xlu0 %5759 }
 0x9d7   : > { %v5767_v0 = vsel %vm11760_vm1, %v5760_v14, %v5762_v13  ;;  %v5775_v12 = vsel %vm11761_vm2, %v5762_v13, %v5760_v14  ;;  %v9724_v13 = vld [vmem:[%s11714_s7 + $0x68] sm:$0xff]  ;;  %v9734_v14 = vld [vmem:[%s11714_s7 + $0xb8] sm:$0xff]  ;;  %vm11778_vm1 = vcmask 982016  }
 0x9d8   : > { %v5777_v46 = vadd.f32 %v5767_v0, %v5747_v52  ;;  %v5778_v20 = vadd.f32 %v5775_v12, %v5748_v45  ;;  %6187 = vmatpush.bf16.msrb.mxu3 %v9724_v13  ;;  %v9742_v0 = vld [vmem:[%s11714_s7 + $0xf8] sm:$0xff]  ;;  %v9715_v12 = vld [vmem:[%s11714_s7 + $0x20] sm:$0xff]  ;;  %6199 = vmatpush.bf16.msra.mxu2 %v9734_v14  ;;  %vm11779_vm2 = vmmov %vm11778_vm1 }
 0x9d9   : > { %6213 = vmatpush.bf16.msrb.mxu1 %v9742_v0  ;;  %vm11782_vm5 = vmmov %vm11778_vm1 }
 0x9da   : > { %5813 = vrot.lane.b32.xlu1 %v5778_v20, %s11762_s20  ;;  %5811 = vrot.lane.b32.xlu0 %v5777_v46, %s11762_s20  ;;  %vm11783_vm6 = vmmov %vm11778_vm1 }
 0x9dd   : > { %6214 = vmatpush.bf16.msrb.mxu1 %v9741_v17 }
 0x9de   : > { %v9931_v18 = vpop.permute.xlu1 %9930  ;;  %v5766_v21 = vpop.permute.xlu0 %5765 }
 0x9df   : > { %v9933_v22 = vunpack.i.h.bf16 %v9931_v18  ;;  %v9932_v10 = vunpack.i.l.bf16 %v9931_v18  ;;  %v5768_v60 = vsel %vm11763_vm3, %v5764_v8, %v5766_v21  ;;  %v5776_v24 = vsel %vm11764_vm4, %v5766_v21, %v5764_v8  ;;  %v9716_v8 = vld [vmem:[%s11714_s7 + $0x28] sm:$0xff]  ;;  %vm11780_vm3 = vmmov %vm11778_vm1 }
 0x9e0   : > { %v5779_v25 = vadd.f32 %v5768_v60, %v5749_v63  ;;  %v5780_v58 = vadd.f32 %v5776_v24, %v5750_v15  ;;  %v9717_v15 = vld [vmem:[%s11714_s7 + $0x30] sm:$0xff]  ;;  %v9732_v18 = vld [vmem:[%s11714_s7 + $0xa8] sm:$0xff]  ;;  %v9731_v60 = vld [vmem:[%s11714_s7 + $0xa0] sm:$0xff] }
 0x9e1   : > { %v5793_v26 = vsel %vm11767_vm7, %v9932_v10, %v9933_v22  ;;  %v5801_v29 = vsel %vm11768_vm8, %v9933_v22, %v9932_v10  ;;  %6172 = vmatpush.bf16.msra.mxu0 %v9717_v15  ;;  %v9740_v21 = vld [vmem:[%s11714_s7 + $0xe8] sm:$0xff]  ;;  %v9713_v22 = vld [vmem:[%s11714_s7 + $0x10] sm:$0xff]  ;;  %v9739_v24 = vld [vmem:[%s11714_s7 + $0xe0] sm:$0xff] }
 0x9e2   : > { %5817 = vrot.lane.b32.xlu0 %v5780_v58, %s11762_s20  ;;  %5815 = vrot.lane.b32.xlu2 %v5779_v25, %s11762_s20  ;;  %v5803_v37 = vmax.f32 %v5751_v6, %v5793_v26  ;;  %v5804_v44 = vmax.f32 %v5752_v49, %v5801_v29  ;;  %v9721_v10 = vld [vmem:[%s11714_s7 + $0x50] sm:$0xff]  ;;  %v9711_v26 = vld [vmem:[%s11714_s7] sm:$0xff]  ;;  %vm11781_vm4 = vmmov %vm11778_vm1 }
 0x9e3   : > { %6215 = vmatpush.bf16.msrb.mxu1 %v9740_v21  ;;  %v9719_v29 = vld [vmem:[%s11714_s7 + $0x40] sm:$0xff]  ;;  %vm11784_vm7 = vmmov %vm11778_vm1 }
 0x9e4   : > { %v9939_v28 = vpack.i.bf16 %v5804_v44, %v5803_v37  ;;  %vm11785_vm8 = vmmov %vm11778_vm1 }
 0x9e5   : > { %6173 = vmatpush.bf16.msra.mxu0 %v9716_v8 }
 0x9e6   : > { %9940 = vrot.lane.b32.xlu1 %v9939_v28, %s11762_s20  ;;  %v9728_v28 = vld [vmem:[%s11714_s7 + $0x88] sm:$0xff] }
 0x9e7   : > { %6216 = vmatpush.bf16.msrb.mxu1 %v9739_v24 }
 0x9e9   : > { %6174 = vmatpush.bf16.msra.mxu0 %v9715_v12 }
 0x9ea   : > { %9945 = vrot.lane.b32.xlu2 %v9944_v32, %s11762_s20  ;;  %v9735_v32 = vld [vmem:[%s11714_s7 + $0xc0] sm:$0xff]  ;;  %s11786_s20 = smov 9  }
 0x9eb   : > { %6217 = vmatpush.bf16.msrb.mxu1 %v9738_v7 }
 0x9ed   : > { %6175 = vmatpush.bf16.msra.mxu0 %v9714_v19 }
 0x9f1   : > { %6176 = vmatpush.bf16.msra.mxu0 %v9713_v22 }
 0xa3c   : > { %v5816_v23 = vpop.permute.xlu2 %5815 }
 0xa44   : > { %v9946_v47 = vpop.permute.xlu2 %9945 }
 0xa45   : > { %v9948_v54 = vunpack.i.h.bf16 %v9946_v47  ;;  %v9947_v56 = vunpack.i.l.bf16 %v9946_v47 }
 0xa47   : > { %v5846_v62 = vsel %vm11774_vm0, %v9947_v56, %v9948_v54  ;;  %v5854_v63 = vsel %vm11775_vm12, %v9948_v54, %v9947_v56  ;;  %vm11798_vm0 = vcmask 1041408  }
 0xa48   : > { %v11273_v4 = vmax.f32 %v5805_v9, %v5846_v62  ;;  %v11275_v5 = vmax.f32 %v5806_v31, %v5854_v63  ;;  %v9736_v9 = vld [vmem:[%s11714_s7 + $0xc8] sm:$0xff]  ;;  %v9727_v31 = vld [vmem:[%s11714_s7 + $0x80] sm:$0xff]  ;;  %vm11799_vm12 = vmmov %vm11798_vm0 }
 0xa4a   : > { %v9954_v49 = vpack.i.bf16 %v11275_v5, %v11273_v4 }
 0xa4c   : > { %v5814_v43 = vpop.permute.xlu1 %5813  ;;  %v5812_v55 = vpop.permute.xlu0 %5811 }
 0xa4d   : > { %v5819_v50 = vsel %vm11769_vm9, %v5812_v55, %v5814_v43  ;;  %v5827_v57 = vsel %vm11770_vm10, %v5814_v43, %v5812_v55  ;;  %vm11788_vm9 = vcmask 154648   ;;  %vm11789_vm10 = vcmask 335048  }
 0xa4e   : > { %v11253_v41 = vadd.f32 %v5819_v50, %v5777_v46  ;;  %v11255_v48 = vadd.f32 %v5827_v57, %v5778_v20  ;;  %v9723_v46 = vld [vmem:[%s11714_s7 + $0x60] sm:$0xff]  ;;  %v9733_v20 = vld [vmem:[%s11714_s7 + $0xb0] sm:$0xff] }
 0xa4f   : > { %6188 = vmatpush.bf16.msrb.mxu3 %v9723_v46  ;;  %6200 = vmatpush.bf16.msra.mxu2 %v9733_v20 }
 0xa50   : > { %5865 = vrot.lane.b32.xlu1 %v11255_v48, %s11771_s17  ;;  %5863 = vrot.lane.b32.xlu0 %v11253_v41, %s11771_s17 }
 0xa53   : > { %6189 = vmatpush.bf16.msrb.mxu3 %v9722_v16  ;;  %6201 = vmatpush.bf16.msra.mxu2 %v9732_v18 }
 0xa54   : > { %v5818_v59 = vpop.permute.xlu0 %5817 }
 0xa55   : > { %v5820_v61 = vsel %vm11772_vm11, %v5816_v23, %v5818_v59  ;;  %v5828_v40 = vsel %vm11773_vm13, %v5818_v59, %v5816_v23  ;;  %vm11790_vm11 = vmmov %vm11788_vm9 }
 0xa56   : > { %v11263_v38 = vadd.f32 %v5820_v61, %v5779_v25  ;;  %v11265_v42 = vadd.f32 %v5828_v40, %v5780_v58  ;;  %v9712_v25 = vld [vmem:[%s11714_s7 + $0x8] sm:$0xff]  ;;  %vm11791_vm13 = vmmov %vm11789_vm10 }
 0xa57   : > { %6190 = vmatpush.bf16.msrb.mxu3 %v9721_v10  ;;  %v9720_v58 = vld [vmem:[%s11714_s7 + $0x48] sm:$0xff]  ;;  %6202 = vmatpush.bf16.msra.mxu2 %v9731_v60 }
 0xa58   : > { %v9941_v53 = vpop.permute.xlu1 %9940  ;;  %5869 = vrot.lane.b32.xlu0 %v11265_v42, %s11771_s17  ;;  %5867 = vrot.lane.b32.xlu2 %v11263_v38, %s11771_s17 }
 0xa59   : > { %v9943_v1 = vunpack.i.h.bf16 %v9941_v53  ;;  %v9942_v34 = vunpack.i.l.bf16 %v9941_v53  ;;  %6177 = vmatpush.bf16.msra.mxu0 %v9712_v25 }
 0xa5b   : > { %v5845_v3 = vsel %vm11776_vm14, %v9942_v34, %v9943_v1  ;;  %v5853_v52 = vsel %vm11777_vm15, %v9943_v1, %v9942_v34  ;;  %6191 = vmatpush.bf16.msrb.mxu3 %v9720_v58  ;;  %6203 = vmatpush.bf16.msra.mxu2 %v9730_v51  ;;  %vm11800_vm14 = vcmask 64512  }
 0xa5c   : > { %v11279_v45 = vmax.f32 %v5803_v37, %v5845_v3  ;;  %v11281_v27 = vmax.f32 %v5804_v44, %v5853_v52  ;;  %v9729_v37 = vld [vmem:[%s11714_s7 + $0x90] sm:$0xff]  ;;  %vm11801_vm15 = vmmov %vm11800_vm14 }
 0xa5d   : > { %v9737_v44 = vld [vmem:[%s11714_s7 + $0xd0] sm:$0xff]  ;;  %6178 = vmatpush.bf16.msra.mxu0 %v9711_v26 }
 0xa5e   : > { %v9949_v6 = vpack.i.bf16 %v11281_v27, %v11279_v45  ;;  %6218 = vmatpush.bf16.msrb.mxu1 %v9737_v44 }
 0xa5f   : > { %6192 = vmatpush.bf16.msrb.mxu3 %v9719_v29  ;;  %6204 = vmatpush.bf16.msra.mxu2 %v9729_v37 }
 0xa60   : > { %9950 = vrot.lane.b32.xlu1 %v9949_v6, %s11771_s17  ;;  %9955 = vrot.lane.b32.xlu2 %v9954_v49, %s11771_s17  ;;  %s11795_s17 = smov 4  }
 0xa62   : > { %6219 = vmatpush.bf16.msrb.mxu1 %v9736_v9 }
 0xa63   : > { %6205 = vmatpush.bf16.msra.mxu2 %v9728_v28 }
 0xa66   : > { %6220 = vmatpush.bf16.msrb.mxu1 %v9735_v32 }
 0xa67   : > { %6206 = vmatpush.bf16.msra.mxu2 %v9727_v31 }
 0xab2   : > { %v5868_v33 = vpop.permute.xlu2 %5867 }
 0xaba   : > { %v9956_v54 = vpop.permute.xlu2 %9955 }
 0xabb   : > { %v9958_v53 = vunpack.i.h.bf16 %v9956_v54  ;;  %v9957_v1 = vunpack.i.l.bf16 %v9956_v54  ;;  %v11412_v54 = vld [vmem:[%s11715_s8 + $0x130] sm:$0x33] }
 0xabd   : > { %v5898_v3 = vsel %vm11782_vm5, %v9957_v1, %v9958_v53  ;;  %v5906_v52 = vsel %vm11783_vm6, %v9958_v53, %v9957_v1  ;;  %v9185_v1 = vld [vmem:[%s11715_s8 + $0x120] sm:$0xf]  ;;  %vm11806_vm5 = vcmask 719872  }
 0xabe   : > { %vm11807_vm6 = vmmov %vm11806_vm5 }
 0xac2   : > { %v5864_v35 = vpop.permute.xlu0 %5863  ;;  %v5866_v23 = vpop.permute.xlu1 %5865 }
 0xac3   : > { %v5871_v43 = vsel %vm11778_vm1, %v5864_v35, %v5866_v23  ;;  %v5879_v55 = vsel %vm11779_vm2, %v5866_v23, %v5864_v35  ;;  %vm11802_vm1 = vcmask 424960   ;;  %vm11803_vm2 = vcmask 359424  }
 0xac4   : > { %v5881_v56 = vadd.f32 %v5871_v43, %v11253_v41  ;;  %v5882_v59 = vadd.f32 %v5879_v55, %v11255_v48 }
 0xaca   : > { %v5870_v50 = vpop.permute.xlu0 %5869 }
 0xacb   : > { %v5872_v57 = vsel %vm11780_vm3, %v5868_v33, %v5870_v50  ;;  %v5880_v47 = vsel %vm11781_vm4, %v5870_v50, %v5868_v33  ;;  %vm11804_vm3 = vmmov %vm11803_vm2  ;;  %vm11805_vm4 = vcmask 31744  }
 0xacc   : > { %v5883_v61 = vadd.f32 %v5872_v57, %v11263_v38  ;;  %v5884_v40 = vadd.f32 %v5880_v47, %v11265_v42  ;;  %v5909_v38 = vmax.f32 %v11273_v4, %v5898_v3  ;;  %v5910_v42 = vmax.f32 %v11275_v5, %v5906_v52 }
 0xace   : > { %v5911_v62 = vpack.c.bf16 %v5883_v61, %v5881_v56  ;;  %v5912_v63 = vpack.c.bf16 %v5884_v40, %v5882_v59  ;;  %v6480_v56 = vunpack.c.l.b16 %v11412_v54  ;;  %v9097_v59 = vld [vmem:[%s11715_s8 + $0x70] sm:$0xf]  ;;  %v9758_v61 = vld [vmem:[%s11715_s8 + $0x74] sm:$0xf0]  ;;  %v9757_v40 = vld [vmem:[%s11715_s8 + $0x74] sm:$0xf] }
 0xad0   : > { %6179 = vmatmul.bf16.vlgmr.msra.gmra.mxu0 %v5911_v62  ;;  %6193 = vmatmul.bf16.vlgmr.msrb.gmra.mxu3 %v5912_v63  ;;  %v9098_v62 = vor.u32 %v9758_v61, %v9097_v59  ;;  %v9099_v63 = vld [vmem:[%s11715_s8 + $0x78] sm:$0xf0]  ;;  %v6520_v53 = vpack.c.b16 %v6480_v56, %v6480_v56  ;;  %v9769_v56 = vld [vmem:[%s11715_s8 + $0xd4] sm:$0xf] }
 0xad1   : > { %v9102_v3 = vor.u32 %v9757_v40, %v9099_v63  ;;  %v9147_v59 = vld [vmem:[%s11715_s8 + $0xd8] sm:$0xf0]  ;;  %v9766_v63 = vld [vmem:[%s11715_s8 + $0xb4] sm:$0xf0] }
 0xad2   : > { %v9951_v34 = vpop.permute.xlu1 %9950  ;;  %6569 = vmatpush.bf16.msrb.mxu0 %v9098_v62  ;;  %v6564_v52 = vsel %vm11798_vm0, %v6520_v53, 0  ;;  %v9150_v40 = vor.u32 %v9769_v56, %v9147_v59  ;;  %v9129_v62 = vld [vmem:[%s11715_s8 + $0xb0] sm:$0xf]  ;;  %v9057_v53 = vld [vmem:[%s11715_s8 + $0x20] sm:$0xf] }
 0xad3   : > { %v9953_v6 = vunpack.i.h.bf16 %v9951_v34  ;;  %v9952_v49 = vunpack.i.l.bf16 %v9951_v34  ;;  %v9780_v34 = vld [vmem:[%s11715_s8 + $0x124] sm:$0xf0]  ;;  %6611 = vmatpush.bf16.msra.mxu1 %v9102_v3  ;;  %6601 = vmatpush.bf16.msrb.mxu2 %v6564_v52  ;;  %v9747_v3 = vld [vmem:[%s11715_s8 + $0x24] sm:$0xf]  ;;  %v9059_v52 = vld [vmem:[%s11715_s8 + $0x28] sm:$0xf0] }
 0xad5   : > { %v5897_v41 = vsel %vm11784_vm7, %v9952_v49, %v9953_v6  ;;  %v5905_v48 = vsel %vm11785_vm8, %v9953_v6, %v9952_v49  ;;  %v9186_v6 = vor.u32 %v9780_v34, %v9185_v1  ;;  %v9161_v49 = vld [vmem:[%s11715_s8 + $0xf0] sm:$0xf]  ;;  %v9130_v1 = vor.u32 %v9766_v63, %v9129_v62  ;;  %v9748_v34 = vld [vmem:[%s11715_s8 + $0x24] sm:$0xf0]  ;;  %vm11808_vm7 = vmmov %vm11805_vm4 }
 0xad6   : > { %v5907_v15 = vmax.f32 %v11279_v45, %v5897_v41  ;;  %v5908_v11 = vmax.f32 %v11281_v27, %v5905_v48  ;;  %v9774_v41 = vld [vmem:[%s11715_s8 + $0xf4] sm:$0xf0]  ;;  %v9177_v48 = vld [vmem:[%s11715_s8 + $0x110] sm:$0xf]  ;;  %vm11809_vm8 = vcmask 392192  }
 0xad7   : > { %6602 = vmatpush.bf16.msrb.mxu2 %v9186_v6  ;;  %v9058_v6 = vor.u32 %v9748_v34, %v9057_v53 }
 0xad8   : > { %v5913_v8 = vpack.c.bf16 %v5909_v38, %v5907_v15  ;;  %v5914_v13 = vpack.c.bf16 %v5910_v42, %v5908_v11  ;;  %v9162_v38 = vor.u32 %v9774_v41, %v9161_v49  ;;  %v9778_v42 = vld [vmem:[%s11715_s8 + $0x114] sm:$0xf0]  ;;  %v9089_v15 = vld [vmem:[%s11715_s8 + $0x60] sm:$0xf]  ;;  %v9756_v11 = vld [vmem:[%s11715_s8 + $0x64] sm:$0xf0]  ;;  %v9062_v49 = vor.u32 %v9747_v3, %v9059_v52 }
 0xad9   : > { %v9767_v41 = vld [vmem:[%s11715_s8 + $0xc4] sm:$0xf] }
 0xada   : > { %6207 = vmatmul.bf16.vlgmr.msra.gmra.mxu2 %v5913_v8  ;;  %6221 = vmatmul.bf16.vlgmr.msrb.gmra.mxu1 %v5914_v13  ;;  %v9178_v8 = vor.u32 %v9778_v42, %v9177_v48  ;;  %v9090_v13 = vor.u32 %v9756_v11, %v9089_v15  ;;  %v9139_v48 = vld [vmem:[%s11715_s8 + $0xc8] sm:$0xf0]  ;;  %v9764_v15 = vld [vmem:[%s11715_s8 + $0xa4] sm:$0xf0]  ;;  %v9049_v11 = vld [vmem:[%s11715_s8 + $0x10] sm:$0xf] }
 0xadb   : > { %6583 = vmatpush.bf16.msra.mxu3 %v9162_v38  ;;  %v9121_v38 = vld [vmem:[%s11715_s8 + $0xa0] sm:$0xf]  ;;  %v9142_v42 = vor.u32 %v9767_v41, %v9139_v48 }
 0xadc   : > { %6570 = vmatpush.bf16.msrb.mxu0 %v9090_v13  ;;  %6603 = vmatpush.bf16.msrb.mxu2 %v9178_v8  ;;  %v9746_v8 = vld [vmem:[%s11715_s8 + $0x14] sm:$0xf0]  ;;  %v9122_v13 = vor.u32 %v9764_v15, %v9121_v38 }
 0xb4d   : > { %v6180_v0 = vpop.f32.mrf.mxu0 }
 0xb53   : > { %v6194_v14 = vpop.f32.mrf.mxu3 }
 0xb54   : > { %v6195_v12 = vadd.f32 %v6194_v14, %v6180_v0  ;;  %v9755_v14 = vld [vmem:[%s11715_s8 + $0x64] sm:$0xf]  ;;  %v9091_v0 = vld [vmem:[%s11715_s8 + $0x68] sm:$0xf0] }
 0xb55   : > { %v6182_v5 = vpop.f32.mrf.mxu0 }
 0xb57   : > { %v6222_v46 = vpop.f32.mrf.mxu1 }
 0xb5b   : > { %v6196_v16 = vpop.f32.mrf.mxu3 }
 0xb5c   : > { %v6197_v18 = vadd.f32 %v6196_v16, %v6182_v5  ;;  %v9754_v5 = vld [vmem:[%s11715_s8 + $0x54] sm:$0xf0] }
 0xb5d   : > { %v6208_v20 = vpop.f32.mrf.mxu2 }
 0xb5e   : > { %v6209_v17 = vadd.f32 %v6208_v20, %v6195_v12  ;;  %v9153_v12 = vld [vmem:[%s11715_s8 + $0xe0] sm:$0xf]  ;;  %v9772_v20 = vld [vmem:[%s11715_s8 + $0xe4] sm:$0xf0] }
 0xb5f   : > { %v6224_v21 = vpop.f32.mrf.mxu1  ;;  %v9154_v16 = vor.u32 %v9772_v20, %v9153_v12  ;;  %v9051_v12 = vld [vmem:[%s11715_s8 + $0x18] sm:$0xf0] }
 0xb60   : > { %v6223_v19 = vadd.f32 %v6222_v46, %v6209_v17  ;;  %v9094_v46 = vor.u32 %v9755_v14, %v9091_v0  ;;  %v9169_v17 = vld [vmem:[%s11715_s8 + $0x100] sm:$0xf]  ;;  %v9050_v14 = vor.u32 %v9746_v8, %v9049_v11  ;;  %v9745_v0 = vld [vmem:[%s11715_s8 + $0x14] sm:$0xf] }
 0xb61   : > { %6584 = vmatpush.bf16.msra.mxu3 %v9154_v16  ;;  %v9054_v20 = vor.u32 %v9745_v0, %v9051_v12  ;;  %v9113_v16 = vld [vmem:[%s11715_s8 + $0x90] sm:$0xf] }
 0xb62   : > { %6241 = vrot.lane.b32.xlu2 %v6223_v19, %s11786_s20  ;;  %v6227_v4 = vmul.f32 0.0625, %v6223_v19  ;;  %v9776_v19 = vld [vmem:[%s11715_s8 + $0x104] sm:$0xf0]  ;;  %6612 = vmatpush.bf16.msra.mxu1 %v9094_v46  ;;  %v9765_v46 = vld [vmem:[%s11715_s8 + $0xb4] sm:$0xf] }
 0xb64   : > { %6231 = vrot.lane.b32.xlu0 %v6227_v4, %s11787_s4  ;;  %v9081_v4 = vld [vmem:[%s11715_s8 + $0x50] sm:$0xf] }
 0xb65   : > { %v6210_v45 = vpop.f32.mrf.mxu2 }
 0xb66   : > { %v6211_v27 = vadd.f32 %v6210_v45, %v6197_v18  ;;  %v9753_v18 = vld [vmem:[%s11715_s8 + $0x54] sm:$0xf]  ;;  %v9082_v45 = vor.u32 %v9754_v5, %v9081_v4  ;;  %v9762_v4 = vld [vmem:[%s11715_s8 + $0x94] sm:$0xf0]  ;;  %v9041_v5 = vld [vmem:[%s11715_s8] sm:$0xf] }
 0xb68   : > { %v6225_v22 = vadd.f32 %v6224_v21, %v6211_v27  ;;  %v9083_v27 = vld [vmem:[%s11715_s8 + $0x58] sm:$0xf0]  ;;  %v9773_v21 = vld [vmem:[%s11715_s8 + $0xf4] sm:$0xf]  ;;  %6571 = vmatpush.bf16.msrb.mxu0 %v9082_v45  ;;  %v9114_v45 = vor.u32 %v9762_v4, %v9113_v16 }
 0xb6a   : > { %v6228_v10 = vmul.f32 0.0625, %v6225_v22 }
 0xb6c   : > { %6233 = vrot.lane.b32.xlu1 %v6228_v10, %s11787_s4  ;;  %6243 = vrot.lane.b32.xlu0 %v6225_v22, %s11786_s20  ;;  %v9163_v22 = vld [vmem:[%s11715_s8 + $0xf8] sm:$0xf0]  ;;  %v9170_v10 = vor.u32 %v9776_v19, %v9169_v17  ;;  %s6759_s20 = scalar_lea.hbm %s11716_s9, %s9782_s19  ;;  %s6760_s4 = sshll.u32 %s11106_s25, 4  ;;  %s6761_s4 = int_to_ptr.vmem [resolvable:$true] %s6760_s4 }
 0xb6d   : > { %v9131_v17 = vld [vmem:[%s11715_s8 + $0xb8] sm:$0xf0] }
 0xb6e   : > { %6604 = vmatpush.bf16.msrb.mxu2 %v9170_v10  ;;  %v9134_v19 = vor.u32 %v9765_v46, %v9131_v17 }
 0xbbc   : > { %v6242_v24 = vpop.permute.xlu2 %6241 }
 0xbd6   : > { %v6232_v60 = vpop.permute.xlu0 %6231 }
 0xbd7   : > { %6237 = vst.msk [vmem:[#allocation3 + $0x3] sm:$0xff] %vm11788_vm9, %v6232_v60  ;;  %v9086_v60 = vor.u32 %v9753_v18, %v9083_v27  ;;  %v6481_v18 = vunpack.c.h.b16 %v11412_v54  ;;  %v9744_v27 = vld [vmem:[%s11715_s8 + $0x4] sm:$0xf0]  ;;  %v9123_v54 = vld [vmem:[%s11715_s8 + $0xa8] sm:$0xf0]  ;;  %vm11810_vm9 = vmmov %vm11809_vm8 }
 0xbd8   : > { %6247 = vst.msk [vmem:[#allocation3 + $0x3] sm:$0xff] %vm11789_vm10, %v6242_v24  ;;  %v9145_v24 = vld [vmem:[%s11715_s8 + $0xd0] sm:$0xf]  ;;  %v9042_v10 = vor.u32 %v9744_v27, %v9041_v5  ;;  %vm11811_vm10 = vcmask 752640  }
 0xbd9   : > { %6613 = vmatpush.bf16.msra.mxu1 %v9086_v60 }
 0xbde   : > { %v6234_v25 = vpop.permute.xlu1 %6233  ;;  %v6244_v58 = vpop.permute.xlu0 %6243 }
 0xbdf   : > { %6238 = vst.msk [vmem:[#allocation3 + $0xb] sm:$0xff] %vm11790_vm11, %v6234_v25  ;;  %v6251_v44 = vld [vmem:[#allocation3 + $0x1] sm:$0xff]  ;;  %v9770_v25 = vld [vmem:[%s11715_s8 + $0xd4] sm:$0xf0]  ;;  %vm11812_vm11 = vmmov %vm11811_vm10 }
 0xbe0   : > { %6248 = vst.msk [vmem:[#allocation3 + $0xb] sm:$0xff] %vm11791_vm13, %v6244_v58  ;;  %v6255_v43 = vld [vmem:[#allocation3 + $0x3] sm:$0xff]  ;;  %v9073_v58 = vld [vmem:[%s11715_s8 + $0x40] sm:$0xf]  ;;  %vm11813_vm13 = vmmov %vm11802_vm1 }
 0xbe1   : > { %v6253_v50 = vld [vmem:[#allocation3 + $0x2] sm:$0xff] }
 0xbe2   : > { %v6249_v11 = vld [vmem:[#allocation3] sm:$0xff] }
 0xbe7   : > { %v6261_v51 = vld [vmem:[#allocation3 + $0x6] sm:$0xff]  ;;  %v6262_v7 = vld [vmem:[#allocation3 + $0xe] sm:$0xff] }
 0xbe8   : > { %v6259_v26 = vld [vmem:[#allocation3 + $0x5] sm:$0xff]  ;;  %v9964_v29 = vpack.i.bf16 %v6262_v7, %v6261_v51  ;;  %v6260_v37 = vld [vmem:[#allocation3 + $0xd] sm:$0xff]  ;;  %v9166_v51 = vor.u32 %v9773_v21, %v9163_v22  ;;  %v9146_v7 = vor.u32 %v9770_v25, %v9145_v24  ;;  %v9743_v21 = vld [vmem:[%s11715_s8 + $0x4] sm:$0xf] }
 0xbe9   : > { %v6252_v28 = vld [vmem:[#allocation3 + $0x9] sm:$0xff]  ;;  %v9959_v9 = vpack.i.bf16 %v6260_v37, %v6259_v26  ;;  %v9752_v26 = vld [vmem:[%s11715_s8 + $0x44] sm:$0xf0]  ;;  %v9075_v37 = vld [vmem:[%s11715_s8 + $0x48] sm:$0xf0] }
 0xbea   : > { %v9969_v31 = vpack.i.bf16 %v6252_v28, %v6251_v44  ;;  %9965 = vrot.lane.b32.xlu2 %v9964_v29, %s11792_s26  ;;  %v6256_v32 = vld [vmem:[#allocation3 + $0xb] sm:$0xff]  ;;  %v9751_v29 = vld [vmem:[%s11715_s8 + $0x44] sm:$0xf]  ;;  %v9074_v44 = vor.u32 %v9752_v26, %v9073_v58  ;;  %6625 = vmatpush.bf16.msra.mxu2 %v9166_v51  ;;  %v9043_v22 = vld [vmem:[%s11715_s8 + $0x8] sm:$0xf0]  ;;  %s6762_s26 = sshll.u32 %s6759_s20, 4  ;;  %s6763_s26 = int_to_ptr.hbm [resolvable:$true] %s6762_s26 }
 0xbeb   : > { %9960 = vrot.lane.b32.xlu1 %v9959_v9, %s11793_s29  ;;  %v6254_v33 = vld [vmem:[#allocation3 + $0xa] sm:$0xff]  ;;  %v9979_v55 = vpack.i.bf16 %v6256_v32, %v6255_v43  ;;  %v9771_v28 = vld [vmem:[%s11715_s8 + $0xe4] sm:$0xf]  ;;  %v9155_v9 = vld [vmem:[%s11715_s8 + $0xe8] sm:$0xf0]  ;;  %v9078_v32 = vor.u32 %v9751_v29, %v9075_v37  ;;  %6585 = vmatpush.bf16.msra.mxu3 %v9146_v7  ;;  %v9046_v60 = vor.u32 %v9743_v21, %v9043_v22  ;;  %s10133_s29 = sshra.s32 %s6763_s26, 4  ;;  %s10134_s29 = int_to_ptr.hbm [resolvable:$true] %s10133_s29 }
 0xbec   : > { %9970 = vrot.lane.b32.xlu0 %v9969_v31, %s11794_s22  ;;  %v6257_v35 = vld [vmem:[#allocation3 + $0x4] sm:$0xff]  ;;  %v6258_v23 = vld [vmem:[#allocation3 + $0xc] sm:$0xff]  ;;  %v9974_v57 = vpack.i.bf16 %v6254_v33, %v6253_v50  ;;  %v9137_v31 = vld [vmem:[%s11715_s8 + $0xc0] sm:$0xf]  ;;  %v9158_v50 = vor.u32 %v9771_v28, %v9155_v9  ;;  %6572 = vmatpush.bf16.msrb.mxu0 %v9074_v44  ;;  %v6521_v7 = vpack.c.b16 %v6481_v18, %v6481_v18  ;;  %s10135_s22 = scalar_lea.hbm %s10134_s29, 64  ;;  %p10140_p11 = scmp.lt.s32.totalorder %s10134_s29, %s11716_s9 }
 0xbed   : > { %v9984_v47 = vpack.i.bf16 %v6258_v23, %v6257_v35  ;;  %v9768_v33 = vld [vmem:[%s11715_s8 + $0xc4] sm:$0xf0]  ;;  %v9065_v35 = vld [vmem:[%s11715_s8 + $0x30] sm:$0xf]  ;;  %v9750_v23 = vld [vmem:[%s11715_s8 + $0x34] sm:$0xf0]  ;;  %6614 = vmatpush.bf16.msra.mxu1 %v9078_v32  ;;  %p10136_p1 = scmp.ne.s32.totalorder %s10134_s29, %s10135_s22 }
 0xbee   : > { %v9749_v43 = vld [vmem:[%s11715_s8 + $0x34] sm:$0xf]  ;;  %6626 = vmatpush.bf16.msra.mxu2 %v9158_v50  ;;  %v9763_v24 = vld [vmem:[%s11715_s8 + $0xa4] sm:$0xf]  ;;  %v9105_v25 = vld [vmem:[%s11715_s8 + $0x80] sm:$0xf] }
 0xbef   : > { %v9126_v58 = vor.u32 %v9763_v24, %v9123_v54  ;;  %v9760_v51 = vld [vmem:[%s11715_s8 + $0x84] sm:$0xf0]  ;;  %v9761_v26 = vld [vmem:[%s11715_s8 + $0x94] sm:$0xf]  ;;  %v9115_v29 = vld [vmem:[%s11715_s8 + $0x98] sm:$0xf0]  ;;  %p10137_p4 = pnand %p10136_p1, %p10328_p3 }
 0xbf0   : > { %v9106_v37 = vor.u32 %v9760_v51, %v9105_v25  ;;  %v9779_v44 = vld [vmem:[%s11715_s8 + $0x124] sm:$0xf]  ;;  %v9187_v28 = vld [vmem:[%s11715_s8 + $0x128] sm:$0xf0]  ;;  %v6567_v9 = vsel %vm11799_vm12, %v6521_v7, 0  ;;  %v6250_v8 = vld [vmem:[#allocation3 + $0x8] sm:$0xff] }
 0xbf1   : > { %v9190_v32 = vor.u32 %v9779_v44, %v9187_v28  ;;  %p10138_p8 = pneg %p10137_p4 }
 0xbf2   : > { %9980 = vrot.lane.b32.xlu2 %v9979_v55, %s11795_s17  ;;  %v9067_v55 = vld [vmem:[%s11715_s8 + $0x38] sm:$0xf0]  ;;  %6627 = vmatpush.bf16.msra.mxu2 %v9150_v40 }
 0xbf3   : > { %9975 = vrot.lane.b32.xlu1 %v9974_v57, %s11796_s27  ;;  %v9138_v57 = vor.u32 %v9768_v33, %v9137_v31  ;;  %v9070_v61 = vor.u32 %v9749_v43, %v9067_v55  ;;  %v9118_v31 = vor.u32 %v9761_v26, %v9115_v29  ;;  %v9759_v33 = vld [vmem:[%s11715_s8 + $0x84] sm:$0xf]  ;;  %v9179_v43 = vld [vmem:[%s11715_s8 + $0x118] sm:$0xf0] }
 0xbf4   : > { %9985 = vrot.lane.b32.xlu0 %v9984_v47, %s11797_s15  ;;  %v9066_v47 = vor.u32 %v9750_v23, %v9065_v35  ;;  %v9107_v35 = vld [vmem:[%s11715_s8 + $0x88] sm:$0xf0]  ;;  %v9777_v23 = vld [vmem:[%s11715_s8 + $0x114] sm:$0xf]  ;;  %s10139_s15 = scalar_lea.hbm %s11716_s9, 128 }
 0xbf5   : > { %6586 = vmatpush.bf16.msra.mxu3 %v9138_v57  ;;  %6615 = vmatpush.bf16.msra.mxu1 %v9070_v61  ;;  %v9110_v55 = vor.u32 %v9759_v33, %v9107_v35  ;;  %v9182_v50 = vor.u32 %v9777_v23, %v9179_v43  ;;  %v9775_v57 = vld [vmem:[%s11715_s8 + $0x104] sm:$0xf]  ;;  %p10141_p2 = scmp.lt.s32.totalorder %s10139_s15, %s10135_s22 }
 0xbf6   : > { %6573 = vmatpush.bf16.msrb.mxu0 %v9066_v47  ;;  %6628 = vmatpush.bf16.msra.mxu2 %v9142_v42  ;;  %v9171_v47 = vld [vmem:[%s11715_s8 + $0x108] sm:$0xf0] }
 0xbf7   : > { %v9174_v59 = vor.u32 %v9775_v57, %v9171_v47  ;;  %p10142_p9 = por %p10141_p2, %p10140_p11 }
 0xbf9   : > { %6587 = vmatpush.bf16.msra.mxu3 %v9130_v1  ;;  %6616 = vmatpush.bf16.msra.mxu1 %v9062_v49  ;;  %p10143_p10 = pnand %p10142_p9, %p10138_p8 }
 0xbfa   : > { %6574 = vmatpush.bf16.msrb.mxu0 %v9058_v6  ;;  %6629 = vmatpush.bf16.msra.mxu2 %v9134_v19 }
 0xbfd   : > { %6588 = vmatpush.bf16.msra.mxu3 %v9122_v13  ;;  %6617 = vmatpush.bf16.msra.mxu1 %v9054_v20 }
 0xbfe   : > { %6575 = vmatpush.bf16.msrb.mxu0 %v9050_v14  ;;  %6630 = vmatpush.bf16.msra.mxu2 %v9126_v58 }
 0xc01   : > { %6589 = vmatpush.bf16.msra.mxu3 %v9114_v45  ;;  %6618 = vmatpush.bf16.msra.mxu1 %v9046_v60 }
 0xc02   : > { %6576 = vmatpush.bf16.msrb.mxu0 %v9042_v10  ;;  %6631 = vmatpush.bf16.msra.mxu2 %v9118_v31 }
 0xc05   : > { %6590 = vmatpush.bf16.msra.mxu3 %v9106_v37 }
 0xc06   : > { %6643 = vmatpush.bf16.msra.mxu0 %v6567_v9  ;;  %6632 = vmatpush.bf16.msra.mxu2 %v9110_v55 }
 0xc0a   : > { %6644 = vmatpush.bf16.msra.mxu0 %v9190_v32 }
 0xc0e   : > { %6645 = vmatpush.bf16.msra.mxu0 %v9182_v50 }
 0xc12   : > { %6646 = vmatpush.bf16.msra.mxu0 %v9174_v59 }
 0xc44   : > { %v9966_v56 = vpop.permute.xlu2 %9965 }
 0xc45   : > { %v9968_v62 = vunpack.i.h.bf16 %v9966_v56  ;;  %v9967_v63 = vunpack.i.l.bf16 %v9966_v56 }
 0xc4c   : > { %v9981_v6 = vpop.permute.xlu2 %9980 }
 0xc4d   : > { %v9983_v48 = vunpack.i.h.bf16 %v9981_v6  ;;  %v9982_v38 = vunpack.i.l.bf16 %v9981_v6 }
 0xc5d   : > { %v9961_v61 = vpop.permute.xlu1 %9960 }
 0xc5e   : > { %v9971_v40 = vpop.permute.xlu0 %9970  ;;  %v9963_v53 = vunpack.i.h.bf16 %v9961_v61  ;;  %v9962_v1 = vunpack.i.l.bf16 %v9961_v61 }
 0xc5f   : > { %v9973_v49 = vunpack.i.h.bf16 %v9971_v40  ;;  %v9972_v41 = vunpack.i.l.bf16 %v9971_v40 }
 0xc60   : > { %v6322_v34 = vsel %vm11800_vm14, %v9963_v53, %v9968_v62  ;;  %v6321_v3 = vsel %vm11801_vm15, %v9962_v1, %v9967_v63 }
 0xc61   : > { %v6325_v52 = vpack.c.bf16 %v6322_v34, %v6321_v3  ;;  %v6311_v46 = vsel %vm11803_vm2, %v6249_v11, %v9972_v41  ;;  %v6312_v20 = vsel %vm11804_vm3, %v6250_v8, %v9973_v49 }
 0xc63   : > { %9191 = vmatmul.msk.bf16.vlgmr.msrb.gmra.mxu2 %vm11802_vm1, %v6325_v52 }
 0xc65   : > { %v9976_v42 = vpop.permute.xlu1 %9975 }
 0xc66   : > { %v9986_v15 = vpop.permute.xlu0 %9985  ;;  %v9978_v13 = vunpack.i.h.bf16 %v9976_v42  ;;  %v9977_v14 = vunpack.i.l.bf16 %v9976_v42 }
 0xc67   : > { %v9988_v0 = vunpack.i.h.bf16 %v9986_v15  ;;  %v9987_v12 = vunpack.i.l.bf16 %v9986_v15 }
 0xc68   : > { %v6316_v17 = vsel %vm11805_vm4, %v9978_v13, %v9983_v48  ;;  %v6313_v19 = vsel %vm11806_vm5, %v6311_v46, %v9977_v14  ;;  %v6314_v16 = vsel %vm11807_vm6, %v6312_v20, %v9978_v13  ;;  %v6315_v4 = vsel %vm11808_vm7, %v9977_v14, %v9982_v38 }
 0xc69   : > { %v6323_v5 = vpack.c.bf16 %v6314_v16, %v6313_v19  ;;  %v6318_v18 = vsel %vm11809_vm8, %v6316_v17, %v9988_v0  ;;  %v6317_v45 = vsel %vm11810_vm9, %v6315_v4, %v9987_v12  ;;  %v10025_v4 = vld [vmem:[%s10364_s23 + $0x20] sm:$0xff] }
 0xc6a   : > { %v6320_v27 = vsel %vm11811_vm10, %v6318_v18, %v9963_v53  ;;  %v6319_v21 = vsel %vm11812_vm11, %v6317_v45, %v9962_v1 }
 0xc6b   : > { %v6324_v22 = vpack.c.bf16 %v6320_v27, %v6319_v21  ;;  %6577 = vmatmul.bf16.vlgmr.msrb.gmra.mxu0 %v6323_v5  ;;  %6619 = vmatmul.bf16.vlgmr.msra.gmra.mxu1 %v6323_v5 }
 0xc6d   : > { %6591 = vmatmul.bf16.vlgmr.msra.gmra.mxu3 %v6324_v22 }
 0xc73   : > { %6633 = vmatmul.bf16.vlgmr.msra.gmra.mxu2 %v6324_v22 }
 0xc7b   : > { %9192 = vmatmul.msk.bf16.vlgmr.msra.gmra.mxu0 %vm11813_vm13, %v6325_v52 }
 0xce6   : > { %v6606_v10 = vpop.f32.mrf.mxu2 }
 0xce8   : > { %v6578_v60 = vpop.f32.mrf.mxu0  ;;  %v6620_v26 = vpop.f32.mrf.mxu1 }
 0xcee   : > { %v6608_v24 = vpop.f32.mrf.mxu2 }
 0xcf0   : > { %v6580_v54 = vpop.f32.mrf.mxu0  ;;  %v6592_v25 = vpop.f32.mrf.mxu3 }
 0xcf1   : > { %v6593_v58 = vadd.f32 %v6592_v25, %v6578_v60  ;;  %v6622_v50 = vpop.f32.mrf.mxu1 }
 0xcf3   : > { %v6607_v51 = vadd.f32 %v6606_v10, %v6593_v58 }
 0xcf5   : > { %v9193_v7 = vmul.f32 -1.442695, %v6607_v51 }
 0xcf6   : > { %v6634_v29 = vpop.f32.mrf.mxu2 }
 0xcf7   : > { %10005 = vpow2.f32 %v9193_v7  ;;  %v6635_v37 = vadd.f32 %v6634_v29, %v6620_v26  ;;  %v10026_v29 = vld [vmem:[%s10364_s23 + $0x28] sm:$0xff] }
 0xcf8   : > { %v6594_v44 = vpop.f32.mrf.mxu3  ;;  %v6648_v9 = vpop.f32.mrf.mxu0 }
 0xcf9   : > { %v6595_v28 = vadd.f32 %v6594_v44, %v6580_v54  ;;  %v6649_v31 = vadd.f32 %v6648_v9, %v6635_v37  ;;  %v10027_v44 = vld [vmem:[%s10364_s23 + $0x30] sm:$0xff] }
 0xcfb   : > { %v6609_v32 = vadd.f32 %v6608_v24, %v6595_v28  ;;  %v9194_v33 = vmul.f32 -1.442695, %v6649_v31 }
 0xcfd   : > { %v10006_v35 = vpop.eup %10005  ;;  %v9195_v23 = vmul.f32 -1.442695, %v6609_v32  ;;  %10007 = vpow2.f32 %v9194_v33 }
 0xcfe   : > { %v6665_v43 = vadd.f32 1.0, %v10006_v35  ;;  %v6636_v55 = vpop.f32.mrf.mxu2 }
 0xcff   : > { %10009 = vpow2.f32 %v9195_v23  ;;  %v6637_v57 = vadd.f32 %v6636_v55, %v6622_v50 }
 0xd00   : > { %10011 = vrcp.f32 %v6665_v43  ;;  %v6650_v47 = vpop.f32.mrf.mxu0  ;;  %v6680_v3 = vand.u32 2147483648, %v6665_v43  ;;  %v6678_v6 = vand.u32 2147483647, %v6665_v43  ;;  %vm6674_vm12 = vweird.f32 %v6665_v43 }
 0xd01   : > { %v6651_v56 = vadd.f32 %v6650_v47, %v6637_v57  ;;  %v10028_v57 = vld [vmem:[%s10364_s23 + $0x38] sm:$0xff] }
 0xd02   : > { %v6681_v38 = vor.u32 1.1754944e-38, %v6680_v3  ;;  %vm6679_vm15 = vcmp.eq.f32.partialorder %v6678_v6, 8.507059e+37 }
 0xd03   : > { %v10008_v59 = vpop.eup %10007  ;;  %v9196_v62 = vmul.f32 -1.442695, %v6651_v56 }
 0xd04   : > { %v6666_v40 = vadd.f32 1.0, %v10008_v59 }
 0xd05   : > { %v10010_v61 = vpop.eup %10009 }
 0xd06   : > { %v10012_v63 = vpop.eup %10011  ;;  %v6667_v53 = vadd.f32 1.0, %v10010_v61  ;;  %10013 = vrcp.f32 %v6666_v40  ;;  %v6695_v17 = vand.u32 2147483648, %v6666_v40  ;;  %v6693_v16 = vand.u32 2147483647, %v6666_v40 }
 0xd07   : > { %v6670_v1 = vmul.f32 %v10012_v63, %v6665_v43  ;;  %vm6675_vm0 = vweird.f32 %v10012_v63  ;;  %vm6689_vm3 = vweird.f32 %v6666_v40 }
 0xd08   : > { %10015 = vrcp.f32 %v6667_v53  ;;  %vm6676_vm14 = vmor %vm6674_vm12, %vm6675_vm0  ;;  %v6710_v20 = vand.u32 2147483648, %v6667_v53  ;;  %v6708_v45 = vand.u32 2147483647, %v6667_v53  ;;  %vm6704_vm4 = vweird.f32 %v6667_v53 }
 0xd09   : > { %v6671_v34 = vsub.f32 1.0, %v6670_v1  ;;  %10017 = vpow2.f32 %v9196_v62  ;;  %vm6694_vm7 = vcmp.eq.f32.partialorder %v6693_v16, 8.507059e+37 }
 0xd0a   : > { %v6711_v10 = vor.u32 1.1754944e-38, %v6710_v20  ;;  %vm6709_vm8 = vcmp.eq.f32.partialorder %v6708_v45, 8.507059e+37 }
 0xd0b   : > { %v6672_v52 = vmul.f32 %v10012_v63, %v6671_v34 }
 0xd0c   : > { %v10014_v49 = vpop.eup %10013 }
 0xd0d   : > { %v6673_v41 = vadd.f32 %v10012_v63, %v6672_v52  ;;  %v6685_v42 = vmul.f32 %v10014_v49, %v6666_v40  ;;  %vm6690_vm1 = vweird.f32 %v10014_v49 }
 0xd0e   : > { %v10016_v48 = vpop.eup %10015  ;;  %vm6691_vm5 = vmor %vm6689_vm3, %vm6690_vm1 }
 0xd0f   : > { %v10018_v15 = vpop.eup %10017  ;;  %v6677_v11 = vsel %vm6676_vm14, %v10012_v63, %v6673_v41  ;;  %v6700_v8 = vmul.f32 %v10016_v48, %v6667_v53  ;;  %v6686_v14 = vsub.f32 1.0, %v6685_v42  ;;  %vm6705_vm2 = vweird.f32 %v10016_v48 }
 0xd10   : > { %v6682_v13 = vsel %vm6679_vm15, %v6681_v38, %v6677_v11  ;;  %v6668_v0 = vadd.f32 1.0, %v10018_v15  ;;  %vm6706_vm6 = vmor %vm6704_vm4, %vm6705_vm2 }
 0xd11   : > { %v6729_v12 = vmul.f32 %v6682_v13, %v11197_v2  ;;  %v6701_v46 = vsub.f32 1.0, %v6700_v8  ;;  %v6687_v19 = vmul.f32 %v10014_v49, %v6686_v14  ;;  %v6696_v2 = vor.u32 1.1754944e-38, %v6695_v17 }
 0xd12   : > { %10019 = vrcp.f32 %v6668_v0  ;;  %v6725_v32 = vand.u32 2147483648, %v6668_v0  ;;  %v6723_v23 = vand.u32 2147483647, %v6668_v0  ;;  %vm6719_vm10 = vweird.f32 %v6668_v0 }
 0xd13   : > { %v6733_v5 = vadd.f32 %v10025_v4, %v6729_v12  ;;  %v6702_v18 = vmul.f32 %v10016_v48, %v6701_v46  ;;  %v6688_v27 = vadd.f32 %v10014_v49, %v6687_v19 }
 0xd14   : > { %vm6724_vm13 = vcmp.eq.f32.partialorder %v6723_v23, 8.507059e+37 }
 0xd15   : > { %v6737_v21 = vmax.f32 %v6733_v5, 0.0  ;;  %v6703_v22 = vadd.f32 %v10016_v48, %v6702_v18  ;;  %v6692_v60 = vsel %vm6691_vm5, %v10014_v49, %v6688_v27 }
 0xd16   : > { %v6697_v54 = vsel %vm6694_vm7, %v6696_v2, %v6692_v60 }
 0xd17   : > { %9197 = vst [vmem:[%s11106_s25 + $0x20] sm:$0xff] %v6737_v21  ;;  %v6707_v24 = vsel %vm6706_vm6, %v10016_v48, %v6703_v22  ;;  %v6730_v51 = vmul.f32 %v6697_v54, %v11205_v39 }
 0xd18   : > { %v10020_v25 = vpop.eup %10019  ;;  %v6712_v58 = vsel %vm6709_vm8, %v6711_v10, %v6707_v24 }
 0xd19   : > { %v6731_v7 = vmul.f32 %v6712_v58, %v11201_v30  ;;  %v6715_v26 = vmul.f32 %v10020_v25, %v6668_v0  ;;  %v6734_v37 = vadd.f32 %v10026_v29, %v6730_v51  ;;  %vm6720_vm9 = vweird.f32 %v10020_v25 }
 0xd1a   : > { %vm6721_vm11 = vmor %vm6719_vm10, %vm6720_vm9  ;;  %v6726_v30 = vor.u32 1.1754944e-38, %v6725_v32 }
 0xd1b   : > { %v6735_v28 = vadd.f32 %v10027_v44, %v6731_v7  ;;  %v6716_v9 = vsub.f32 1.0, %v6715_v26  ;;  %v6738_v31 = vmax.f32 %v6734_v37, 0.0 }
 0xd1d   : > { %v6739_v33 = vmax.f32 %v6735_v28, 0.0  ;;  %v6717_v35 = vmul.f32 %v10020_v25, %v6716_v9  ;;  %9198 = vst [vmem:[%s11106_s25 + $0x28] sm:$0xff] %v6738_v31 }
 0xd1f   : > { %9199 = vst [vmem:[%s11106_s25 + $0x30] sm:$0xff] %v6739_v33  ;;  %v6718_v39 = vadd.f32 %v10020_v25, %v6717_v35 }
 0xd21   : > { %v6722_v43 = vsel %vm6721_vm11, %v10020_v25, %v6718_v39 }
 0xd22   : > { %v6727_v55 = vsel %vm6724_vm13, %v6726_v30, %v6722_v43 }
 0xd23   : > { %v6732_v50 = vmul.f32 %v6727_v55, %v11209_v36 }
 0xd25   : > { %v6736_v47 = vadd.f32 %v10028_v57, %v6732_v50 }
 0xd27   : > { %v6740_v56 = vmax.f32 %v6736_v47, 0.0 }
 0xd29   : > { %9200 = vst [vmem:[%s11106_s25 + $0x38] sm:$0xff] %v6740_v56 }
 0xd2a   : > { %10146 = shalt.err (!%p10143_p10)
}
 0xd2b   : > { %s10211_s24 = smov 256  }
 0xd2c   : > { %9793 = dma.vmem_to_hbm [thread:$0]  (%p10328_p3), %s6761_s4, 1024, %s6763_s26, %s6747_s13, %s10211_s24, %s10211_s24, %s10198_s1  }
 0xd2d PF: > { %s6777_s23 = sand.u32 1, %s10177_s30   ;;  %p11814_p12 = scmp.ge.s32.totalorder %s10189_s12, 2 }
 0xd2e   : > { %s6778_s25 = scalar_lea.sflag [#allocation6], %s6777_s23 }
 0xd2f   : > { %p9807_p13 = pnand %p11814_p12, %p10297_p6 }
 0xd31   : > { %p9808_p0 = pneg %p9807_p13 }
 0xd33   : > { %10172 = dma.done.wait (%p9808_p0), %s6778_s25, 1024  }
 0xd34   : > { %10174 = vsyncadd (%p9808_p0), %s6778_s25, 4294966272  ;;  %s11815_s18 = sld [smem:[#allocation14_spill]]  ;;  %p23_p5 = scmp.ge.s32.totalorder %s10318_s14, 4  }
 0xd35   : > { %s11816_s30 = smov %s10181_s10  ;;  %s11817_s10 = smov %s10185_s11 }
 0xd36   : > { %s11819_s12 = smov %s10318_s14  ;;  %25 = sbr.rel (!%p23_p5) target bundleno = 9 (0x9), region = 115 }
 0xd3a   : > { %s11818_s11 = smov %s11815_s18 }
 0xd3b   :  { %6784 = vsyncpa [#allocation5], 1 }
 0xd3c   :  { %6786 = vsyncpa [#allocation5 + $0x1], 1 }
 0xd3d   :  { %6787 = vsyncpa [#allocation8], 1 }
 0xd3e   :  { %6788 = vsyncpa [#allocation6], 1 }
 0xd3f   :  { %6790 = vsyncpa [#allocation6 + $0x1], 1 }

</bundles_post_ra>
